<compile_context>
chip_gen: v7x
topology: tpu7x:2x2x1
jax: 0.10.0
libtpu: 0.0.40
codegen_flags: <defaults>
</compile_context>

<pallas_src>
import numpy as np
import jax
import jax.numpy as jnp
from jax.experimental import pallas as pl
from jax.experimental.pallas import tpu as pltpu


# ----------------------------- Pallas kernels ------------------------------

def _conv_bn_relu_kernel(x_ref, b_ref, scale_ref, shift_ref, o_ref):
    # x_ref:  (k, 1, D, H*W*Cin)  bf16 — k depth-shifted views of the padded input (one batch n)
    # b_ref:  (k, H*W*Cin, H*W*Cout) bf16 — per-depth-tap banded weight matrices
    # out = relu( (sum_kd x[kd] @ B[kd]) * scale + shift )      (Conv3d + folded BN + ReLU)
    k = b_ref.shape[0]
    acc = jnp.dot(x_ref[0, 0], b_ref[0], preferred_element_type=jnp.float32)
    for i in range(1, k):
        acc = acc + jnp.dot(x_ref[i, 0], b_ref[i], preferred_element_type=jnp.float32)
    o_ref[0, :, :] = jnp.maximum(acc * scale_ref[...] + shift_ref[...], 0.0)


def _conv_bn_res_relu_kernel(x_ref, b_ref, scale_ref, shift_ref, res_ref, o_ref):
    # ResidualBlock: out = relu( residual + BN(conv(x)) )
    k = b_ref.shape[0]
    acc = jnp.dot(x_ref[0, 0], b_ref[0], preferred_element_type=jnp.float32)
    for i in range(1, k):
        acc = acc + jnp.dot(x_ref[i, 0], b_ref[i], preferred_element_type=jnp.float32)
    o_ref[0, :, :] = jnp.maximum(res_ref[0] + acc * scale_ref[...] + shift_ref[...], 0.0)


def _maxpool_kernel(x_ref, o_ref):
    # x_ref: (8, bx) — the 8 taps of each 2x2x2 pooling window, lane-dense flat layout.
    o_ref[...] = jnp.max(x_ref[...], axis=0, keepdims=True)


def _head_kernel(x_ref, w1_ref, b1_ref, w2_ref, b2_ref, o_ref):
    # out = softmax( relu(x @ W1 + b1) @ W2 + b2 )      (fc1 + fc2 + softmax fused)
    h = jnp.dot(x_ref[...], w1_ref[...], preferred_element_type=jnp.float32) + b1_ref[...]
    h = jnp.maximum(h, 0.0)
    logits = jnp.dot(h, w2_ref[...], preferred_element_type=jnp.float32) + b2_ref[...]
    m = jnp.max(logits, axis=-1, keepdims=True)
    e = jnp.exp(logits - m)
    o_ref[...] = e / jnp.sum(e, axis=-1, keepdims=True)


# ----------------------------- wrappers (glue) ------------------------------

def conv_banded(x, cp, residual=None):
    """Fused Conv3d(k, stride=1, pad=k//2) + folded BN + (optional residual) + ReLU.

    x: (N, D, H*W*Cin) float32, logical layout (n, d, h, w, c).
    cp["B"]: (k, H*W*Cin, H*W*Cout) bf16; cp["scale"]/cp["shift"]: (1, H*W*Cout) f32.
    Returns (N, D, H*W*Cout) float32.
    """
    B, scale, shift = cp["B"], cp["scale"], cp["shift"]
    k, kin, kout = B.shape
    p = k // 2
    n, d, _ = x.shape

    # k depth-shifted views of the D-padded input (k x a tiny activation; no k^3 im2col).
    xpad = jnp.pad(x, ((0, 0), (p, p), (0, 0)))
    xsh = jnp.stack([xpad[:, i:i + d, :] for i in range(k)], axis=0).astype(jnp.bfloat16)

    in_specs = [
        pl.BlockSpec((k, 1, d, kin), lambda i: (0, i, 0, 0)),
        pl.BlockSpec((k, kin, kout), lambda i: (0, 0, 0)),
        pl.BlockSpec((1, kout), lambda i: (0, 0)),
        pl.BlockSpec((1, kout), lambda i: (0, 0)),
    ]
    args = [xsh, B, scale, shift]
    kernel = _conv_bn_relu_kernel
    if residual is not None:
        in_specs.append(pl.BlockSpec((1, d, kout), lambda i: (i, 0, 0)))
        args.append(residual)
        kernel = _conv_bn_res_relu_kernel

    return pl.pallas_call(
        kernel,
        out_shape=jax.ShapeDtypeStruct((n, d, kout), jnp.float32),
        grid=(n,),
        in_specs=in_specs,
        out_specs=pl.BlockSpec((1, d, kout), lambda i: (i, 0, 0)),
        compiler_params=pltpu.CompilerParams(
            dimension_semantics=("parallel",),
            vmem_limit_bytes=32 * 1024 * 1024),
    )(*args)


def maxpool2(x, n, d, h, w, c):
    """MaxPool3d(kernel=2, stride=2). x: (n, d, h*w*c) float32 (already post-ReLU, so the
    PyTorch ReLU that follows the pool is a no-op and is dropped)."""
    y = x.reshape(n, d // 2, 2, h // 2, 2, w // 2, 2, c)
    taps = jnp.transpose(y, (2, 4, 6, 0, 1, 3, 5, 7)).reshape(8, -1)   # (8, X) lane-dense
    xdim = taps.shape[1]
    bx = 512 if xdim % 512 == 0 else xdim
    out = pl.pallas_call(
        _maxpool_kernel,
        out_shape=jax.ShapeDtypeStruct((1, xdim), jnp.float32),
        grid=(xdim // bx,),
        in_specs=[pl.BlockSpec((8, bx), lambda i: (0, i))],
        out_specs=pl.BlockSpec((1, bx), lambda i: (0, i)),
        compiler_params=pltpu.CompilerParams(dimension_semantics=("parallel",)),
    )(taps)
    return out.reshape(n, d // 2, (h // 2) * (w // 2) * c)


def fc_head(x, w1, b1, w2, b2):
    """fc1 + ReLU + fc2 + softmax in a single Pallas kernel."""
    m, kin = x.shape
    h1 = w1.shape[1]
    nout = w2.shape[1]
    return pl.pallas_call(
        _head_kernel,
        out_shape=jax.ShapeDtypeStruct((m, nout), jnp.float32),
        grid=(1,),
        in_specs=[pl.BlockSpec((m, kin), lambda i: (0, 0)),
                  pl.BlockSpec((kin, h1), lambda i: (0, 0)),
                  pl.BlockSpec((1, h1), lambda i: (0, 0)),
                  pl.BlockSpec((h1, nout), lambda i: (0, 0)),
                  pl.BlockSpec((1, nout), lambda i: (0, 0))],
        out_specs=pl.BlockSpec((m, nout), lambda i: (0, 0)),
    )(x, w1, b1.reshape(1, h1), w2, b2.reshape(1, nout))


# ----------------------------- forward pass ------------------------------

def network_forward(x_ncdhw, params):
    n = x_ncdhw.shape[0]
    s = x_ncdhw.shape[2]
    # NCDHW -> NDHWC -> lane-dense (N, D, H*W*C)
    x = jnp.transpose(x_ncdhw, (0, 2, 3, 4, 1)).astype(jnp.float32).reshape(n, s, s * s)
    # NOTE: self.bn = BatchNorm3d(1) in Network.__init__ is never used in forward -> skipped.

    # conv_1: Conv3d(1, f, 9, pad=4) + BN + ReLU (one fused Pallas kernel), then MaxPool3d(2).
    x = conv_banded(x, params["conv1"])
    c = x.shape[2] // (s * s)
    x = maxpool2(x, n, s, s, s, c)
    s //= 2

    # 3x ResidualLayerWithDrop
    for name in ("layer1", "layer2", "layer3"):
        p = params[name]
        x = conv_banded(x, p["conv"])                 # Conv + BN + ReLU
        c = x.shape[2] // (s * s)
        x = conv_banded(x, p["res"], residual=x)      # relu(x + BN(conv(x)))  (ResidualBlock)
        # Dropout3d: identity in eval mode.
        x = maxpool2(x, n, s, s, s, c)                # MaxPool(2); trailing ReLU is redundant
        s //= 2

    # flatten in PyTorch (C, D, H, W) order
    feat = x.reshape(n, s, s, s, c)
    feat = jnp.transpose(feat, (0, 4, 1, 2, 3)).reshape(n, -1)

    w1, b1 = params["fc1"]
    w2, b2 = params["fc2"]
    return fc_head(feat, w1, b1, w2, b2)


# ----------------------------- deterministic params ------------------------------

def _fold_bn(key, k, cin, cout):
    kw_, kb, kg, kbe, km, kv = jax.random.split(key, 6)
    fan_in = k * k * k * cin
    w = jax.random.normal(kw_, (k, k, k, cin, cout), jnp.float32) / np.sqrt(fan_in)
    bias = 0.1 * jax.random.normal(kb, (cout,), jnp.float32)
    gamma = 1.0 + 0.1 * jax.random.normal(kg, (cout,), jnp.float32)
    beta = 0.1 * jax.random.normal(kbe, (cout,), jnp.float32)
    mean = 0.1 * jax.random.normal(km, (cout,), jnp.float32)
    var = 0.5 + jax.random.uniform(kv, (cout,), jnp.float32)
    scale = gamma / jnp.sqrt(var + 1e-5)          # BN folded to affine (eval mode)
    shift = beta - mean * scale + scale * bias    # absorbs conv bias too
    return np.asarray(w), np.asarray(scale), np.asarray(shift)


def _banded_weights(w, spatial):
    """Fold the (kh, kw) taps into per-kd banded matrices.

    w: (k, k, k, Cin, Cout) -> B: (k, S*S*Cin, S*S*Cout) with
    B[kd, (hi*S+wi)*Cin+ci, (ho*S+wo)*Cout+co] = w[kd, hi-ho+p, wi-wo+p, ci, co] (0 outside).
    """
    k = w.shape[0]
    cin, cout = w.shape[3], w.shape[4]
    p = k // 2
    s = spatial
    idx = np.arange(s)
    dh = idx[:, None] - idx[None, :] + p          # (S_in, S_out)
    valid = (dh >= 0) & (dh < k)
    dhc = np.clip(dh, 0, k - 1)
    b7 = w[:, dhc][:, :, :, dhc]                  # (k, S, S, S, S, Cin, Cout): (kd,hi,ho,wi,wo,ci,co)
    mask = valid[None, :, :, None, None, None, None] & valid[None, None, None, :, :, None, None]
    b7 = b7 * mask
    b = np.transpose(b7, (0, 1, 3, 5, 2, 4, 6)).reshape(k, s * s * cin, s * s * cout)
    return b.astype(np.float32)


def _make_conv_params(key, k, cin, cout, spatial):
    w, scale, shift = _fold_bn(key, k, cin, cout)
    b = _banded_weights(w, spatial)
    return {
        "B": jnp.asarray(b, jnp.bfloat16),
        "scale": jnp.asarray(np.tile(scale, spatial * spatial).reshape(1, -1), jnp.float32),
        "shift": jnp.asarray(np.tile(shift, spatial * spatial).reshape(1, -1), jnp.float32),
    }


def _fc_params(key, din, dout):
    kw_, kb = jax.random.split(key)
    w = jax.random.normal(kw_, (din, dout), jnp.float32) / np.sqrt(din)
    b = 0.1 * jax.random.normal(kb, (dout,), jnp.float32)
    return w, b


# ----------------------------- main ------------------------------

if __name__ == "__main__":
    FILTERS = 4     # PyTorch default filters=10; small deterministic config
    GRID = 16       # PyTorch default grid_size=32; 16 keeps the 4x halving structure
    B = 2

    key = jax.random.PRNGKey(0)
    k_in, *ks = jax.random.split(key, 10)

    params = {
        "conv1": _make_conv_params(ks[0], 9, 1, FILTERS, GRID),
        "layer1": {"conv": _make_conv_params(ks[1], 3, FILTERS, 2 * FILTERS, GRID // 2),
                   "res":  _make_conv_params(ks[2], 3, 2 * FILTERS, 2 * FILTERS, GRID // 2)},
        "layer2": {"conv": _make_conv_params(ks[3], 3, 2 * FILTERS, 4 * FILTERS, GRID // 4),
                   "res":  _make_conv_params(ks[4], 3, 4 * FILTERS, 4 * FILTERS, GRID // 4)},
        "layer3": {"conv": _make_conv_params(ks[5], 3, 4 * FILTERS, 8 * FILTERS, GRID // 8),
                   "res":  _make_conv_params(ks[6], 3, 8 * FILTERS, 8 * FILTERS, GRID // 8)},
    }
    size_after_convs = int((GRID / 2 ** 4) ** 3)
    n_in = 8 * FILTERS * size_after_convs
    params["fc1"] = _fc_params(ks[7], n_in, n_in // 4)
    params["fc2"] = _fc_params(ks[8], n_in // 4, 2)

    x = jax.random.normal(k_in, (B, 1, GRID, GRID, GRID), jnp.float32)

    out = jax.jit(network_forward)(x, params)
    out = jax.block_until_ready(out)

    assert out.shape == (B, 2)
    assert bool(jnp.all(jnp.isfinite(out)))
    assert bool(jnp.allclose(jnp.sum(out, axis=-1), 1.0, atol=1e-4))  # softmax rows
    print("KERNEL_OK")
</pallas_src>

<mosaic_0001>
module attributes {stable_mosaic.version = 11 : i64} {
  func.func @_conv_bn_relu_kernel(%arg0: i32, %arg1: memref<9x1x16x256xbf16, #tpu.memory_space<vmem>>, %arg2: memref<9x256x1024xbf16, #tpu.memory_space<vmem>>, %arg3: memref<1x1024xf32, #tpu.memory_space<vmem>>, %arg4: memref<1x1024xf32, #tpu.memory_space<vmem>>, %arg5: memref<1x16x1024xf32, #tpu.memory_space<vmem>>) attributes {dimension_semantics = [#tpu.dimension_semantics<parallel>], iteration_bounds = array<i64: 2>, scalar_prefetch = 0 : i64, scratch_operands = 0 : i64, tpu.core_type = #tpu.core_type<tc>, window_params = [{transform_indices = @transform_0, window_bounds = array<i64: 9, 1, 16, 256>}, {pipeline_mode = #tpu.pipeline_mode<synchronous>, transform_indices = @transform_1, window_bounds = array<i64: 9, 256, 1024>}, {pipeline_mode = #tpu.pipeline_mode<synchronous>, transform_indices = @transform_2, window_bounds = array<i64: 1, 1024>}, {pipeline_mode = #tpu.pipeline_mode<synchronous>, transform_indices = @transform_3, window_bounds = array<i64: 1, 1024>}, {transform_indices = @transform_4, window_bounds = array<i64: 1, 16, 1024>}]} {
    %c0 = arith.constant 0 : index
    %c0_0 = arith.constant 0 : index
    %c0_1 = arith.constant 0 : index
    %c0_2 = arith.constant 0 : index
    %0 = vector.load %arg1[%c0, %c0_0, %c0_1, %c0_2] : memref<9x1x16x256xbf16, #tpu.memory_space<vmem>>, vector<1x1x16x256xbf16>
    %1 = vector.shape_cast %0 : vector<1x1x16x256xbf16> to vector<16x256xbf16>
    %c0_3 = arith.constant 0 : index
    %c0_4 = arith.constant 0 : index
    %c0_5 = arith.constant 0 : index
    %2 = vector.load %arg2[%c0_3, %c0_4, %c0_5] : memref<9x256x1024xbf16, #tpu.memory_space<vmem>>, vector<1x256x1024xbf16>
    %3 = vector.shape_cast %2 : vector<1x256x1024xbf16> to vector<256x1024xbf16>
    %cst = arith.constant dense<0.000000e+00> : vector<16x1024xf32>
    %4 = tpu.matmul %1, %3, %cst {dimension_numbers = #tpu.dot_dimension_numbers<[1], [0], [0], [1], [0, 0, 1, 1], [], []>} : vector<16x256xbf16>, vector<256x1024xbf16>, vector<16x1024xf32> -> vector<16x1024xf32>
    %c1 = arith.constant 1 : index
    %c0_6 = arith.constant 0 : index
    %c0_7 = arith.constant 0 : index
    %c0_8 = arith.constant 0 : index
    %5 = vector.load %arg1[%c1, %c0_6, %c0_7, %c0_8] : memref<9x1x16x256xbf16, #tpu.memory_space<vmem>>, vector<1x1x16x256xbf16>
    %6 = vector.shape_cast %5 : vector<1x1x16x256xbf16> to vector<16x256xbf16>
    %c1_9 = arith.constant 1 : index
    %c0_10 = arith.constant 0 : index
    %c0_11 = arith.constant 0 : index
    %7 = vector.load %arg2[%c1_9, %c0_10, %c0_11] : memref<9x256x1024xbf16, #tpu.memory_space<vmem>>, vector<1x256x1024xbf16>
    %8 = vector.shape_cast %7 : vector<1x256x1024xbf16> to vector<256x1024xbf16>
    %cst_12 = arith.constant dense<0.000000e+00> : vector<16x1024xf32>
    %9 = tpu.matmul %6, %8, %cst_12 {dimension_numbers = #tpu.dot_dimension_numbers<[1], [0], [0], [1], [0, 0, 1, 1], [], []>} : vector<16x256xbf16>, vector<256x1024xbf16>, vector<16x1024xf32> -> vector<16x1024xf32>
    %10 = arith.addf %4, %9 : vector<16x1024xf32>
    %c2 = arith.constant 2 : index
    %c0_13 = arith.constant 0 : index
    %c0_14 = arith.constant 0 : index
    %c0_15 = arith.constant 0 : index
    %11 = vector.load %arg1[%c2, %c0_13, %c0_14, %c0_15] : memref<9x1x16x256xbf16, #tpu.memory_space<vmem>>, vector<1x1x16x256xbf16>
    %12 = vector.shape_cast %11 : vector<1x1x16x256xbf16> to vector<16x256xbf16>
    %c2_16 = arith.constant 2 : index
    %c0_17 = arith.constant 0 : index
    %c0_18 = arith.constant 0 : index
    %13 = vector.load %arg2[%c2_16, %c0_17, %c0_18] : memref<9x256x1024xbf16, #tpu.memory_space<vmem>>, vector<1x256x1024xbf16>
    %14 = vector.shape_cast %13 : vector<1x256x1024xbf16> to vector<256x1024xbf16>
    %cst_19 = arith.constant dense<0.000000e+00> : vector<16x1024xf32>
    %15 = tpu.matmul %12, %14, %cst_19 {dimension_numbers = #tpu.dot_dimension_numbers<[1], [0], [0], [1], [0, 0, 1, 1], [], []>} : vector<16x256xbf16>, vector<256x1024xbf16>, vector<16x1024xf32> -> vector<16x1024xf32>
    %16 = arith.addf %10, %15 : vector<16x1024xf32>
    %c3 = arith.constant 3 : index
    %c0_20 = arith.constant 0 : index
    %c0_21 = arith.constant 0 : index
    %c0_22 = arith.constant 0 : index
    %17 = vector.load %arg1[%c3, %c0_20, %c0_21, %c0_22] : memref<9x1x16x256xbf16, #tpu.memory_space<vmem>>, vector<1x1x16x256xbf16>
    %18 = vector.shape_cast %17 : vector<1x1x16x256xbf16> to vector<16x256xbf16>
    %c3_23 = arith.constant 3 : index
    %c0_24 = arith.constant 0 : index
    %c0_25 = arith.constant 0 : index
    %19 = vector.load %arg2[%c3_23, %c0_24, %c0_25] : memref<9x256x1024xbf16, #tpu.memory_space<vmem>>, vector<1x256x1024xbf16>
    %20 = vector.shape_cast %19 : vector<1x256x1024xbf16> to vector<256x1024xbf16>
    %cst_26 = arith.constant dense<0.000000e+00> : vector<16x1024xf32>
    %21 = tpu.matmul %18, %20, %cst_26 {dimension_numbers = #tpu.dot_dimension_numbers<[1], [0], [0], [1], [0, 0, 1, 1], [], []>} : vector<16x256xbf16>, vector<256x1024xbf16>, vector<16x1024xf32> -> vector<16x1024xf32>
    %22 = arith.addf %16, %21 : vector<16x1024xf32>
    %c4 = arith.constant 4 : index
    %c0_27 = arith.constant 0 : index
    %c0_28 = arith.constant 0 : index
    %c0_29 = arith.constant 0 : index
    %23 = vector.load %arg1[%c4, %c0_27, %c0_28, %c0_29] : memref<9x1x16x256xbf16, #tpu.memory_space<vmem>>, vector<1x1x16x256xbf16>
    %24 = vector.shape_cast %23 : vector<1x1x16x256xbf16> to vector<16x256xbf16>
    %c4_30 = arith.constant 4 : index
    %c0_31 = arith.constant 0 : index
    %c0_32 = arith.constant 0 : index
    %25 = vector.load %arg2[%c4_30, %c0_31, %c0_32] : memref<9x256x1024xbf16, #tpu.memory_space<vmem>>, vector<1x256x1024xbf16>
    %26 = vector.shape_cast %25 : vector<1x256x1024xbf16> to vector<256x1024xbf16>
    %cst_33 = arith.constant dense<0.000000e+00> : vector<16x1024xf32>
    %27 = tpu.matmul %24, %26, %cst_33 {dimension_numbers = #tpu.dot_dimension_numbers<[1], [0], [0], [1], [0, 0, 1, 1], [], []>} : vector<16x256xbf16>, vector<256x1024xbf16>, vector<16x1024xf32> -> vector<16x1024xf32>
    %28 = arith.addf %22, %27 : vector<16x1024xf32>
    %c5 = arith.constant 5 : index
    %c0_34 = arith.constant 0 : index
    %c0_35 = arith.constant 0 : index
    %c0_36 = arith.constant 0 : index
    %29 = vector.load %arg1[%c5, %c0_34, %c0_35, %c0_36] : memref<9x1x16x256xbf16, #tpu.memory_space<vmem>>, vector<1x1x16x256xbf16>
    %30 = vector.shape_cast %29 : vector<1x1x16x256xbf16> to vector<16x256xbf16>
    %c5_37 = arith.constant 5 : index
    %c0_38 = arith.constant 0 : index
    %c0_39 = arith.constant 0 : index
    %31 = vector.load %arg2[%c5_37, %c0_38, %c0_39] : memref<9x256x1024xbf16, #tpu.memory_space<vmem>>, vector<1x256x1024xbf16>
    %32 = vector.shape_cast %31 : vector<1x256x1024xbf16> to vector<256x1024xbf16>
    %cst_40 = arith.constant dense<0.000000e+00> : vector<16x1024xf32>
    %33 = tpu.matmul %30, %32, %cst_40 {dimension_numbers = #tpu.dot_dimension_numbers<[1], [0], [0], [1], [0, 0, 1, 1], [], []>} : vector<16x256xbf16>, vector<256x1024xbf16>, vector<16x1024xf32> -> vector<16x1024xf32>
    %34 = arith.addf %28, %33 : vector<16x1024xf32>
    %c6 = arith.constant 6 : index
    %c0_41 = arith.constant 0 : index
    %c0_42 = arith.constant 0 : index
    %c0_43 = arith.constant 0 : index
    %35 = vector.load %arg1[%c6, %c0_41, %c0_42, %c0_43] : memref<9x1x16x256xbf16, #tpu.memory_space<vmem>>, vector<1x1x16x256xbf16>
    %36 = vector.shape_cast %35 : vector<1x1x16x256xbf16> to vector<16x256xbf16>
    %c6_44 = arith.constant 6 : index
    %c0_45 = arith.constant 0 : index
    %c0_46 = arith.constant 0 : index
    %37 = vector.load %arg2[%c6_44, %c0_45, %c0_46] : memref<9x256x1024xbf16, #tpu.memory_space<vmem>>, vector<1x256x1024xbf16>
    %38 = vector.shape_cast %37 : vector<1x256x1024xbf16> to vector<256x1024xbf16>
    %cst_47 = arith.constant dense<0.000000e+00> : vector<16x1024xf32>
    %39 = tpu.matmul %36, %38, %cst_47 {dimension_numbers = #tpu.dot_dimension_numbers<[1], [0], [0], [1], [0, 0, 1, 1], [], []>} : vector<16x256xbf16>, vector<256x1024xbf16>, vector<16x1024xf32> -> vector<16x1024xf32>
    %40 = arith.addf %34, %39 : vector<16x1024xf32>
    %c7 = arith.constant 7 : index
    %c0_48 = arith.constant 0 : index
    %c0_49 = arith.constant 0 : index
    %c0_50 = arith.constant 0 : index
    %41 = vector.load %arg1[%c7, %c0_48, %c0_49, %c0_50] : memref<9x1x16x256xbf16, #tpu.memory_space<vmem>>, vector<1x1x16x256xbf16>
    %42 = vector.shape_cast %41 : vector<1x1x16x256xbf16> to vector<16x256xbf16>
    %c7_51 = arith.constant 7 : index
    %c0_52 = arith.constant 0 : index
    %c0_53 = arith.constant 0 : index
    %43 = vector.load %arg2[%c7_51, %c0_52, %c0_53] : memref<9x256x1024xbf16, #tpu.memory_space<vmem>>, vector<1x256x1024xbf16>
    %44 = vector.shape_cast %43 : vector<1x256x1024xbf16> to vector<256x1024xbf16>
    %cst_54 = arith.constant dense<0.000000e+00> : vector<16x1024xf32>
    %45 = tpu.matmul %42, %44, %cst_54 {dimension_numbers = #tpu.dot_dimension_numbers<[1], [0], [0], [1], [0, 0, 1, 1], [], []>} : vector<16x256xbf16>, vector<256x1024xbf16>, vector<16x1024xf32> -> vector<16x1024xf32>
    %46 = arith.addf %40, %45 : vector<16x1024xf32>
    %c8 = arith.constant 8 : index
    %c0_55 = arith.constant 0 : index
    %c0_56 = arith.constant 0 : index
    %c0_57 = arith.constant 0 : index
    %47 = vector.load %arg1[%c8, %c0_55, %c0_56, %c0_57] : memref<9x1x16x256xbf16, #tpu.memory_space<vmem>>, vector<1x1x16x256xbf16>
    %48 = vector.shape_cast %47 : vector<1x1x16x256xbf16> to vector<16x256xbf16>
    %c8_58 = arith.constant 8 : index
    %c0_59 = arith.constant 0 : index
    %c0_60 = arith.constant 0 : index
    %49 = vector.load %arg2[%c8_58, %c0_59, %c0_60] : memref<9x256x1024xbf16, #tpu.memory_space<vmem>>, vector<1x256x1024xbf16>
    %50 = vector.shape_cast %49 : vector<1x256x1024xbf16> to vector<256x1024xbf16>
    %cst_61 = arith.constant dense<0.000000e+00> : vector<16x1024xf32>
    %51 = tpu.matmul %48, %50, %cst_61 {dimension_numbers = #tpu.dot_dimension_numbers<[1], [0], [0], [1], [0, 0, 1, 1], [], []>} : vector<16x256xbf16>, vector<256x1024xbf16>, vector<16x1024xf32> -> vector<16x1024xf32>
    %52 = arith.addf %46, %51 : vector<16x1024xf32>
    %c0_62 = arith.constant 0 : index
    %c0_63 = arith.constant 0 : index
    %53 = vector.load %arg3[%c0_62, %c0_63] : memref<1x1024xf32, #tpu.memory_space<vmem>>, vector<1x1024xf32>
    %54 = vector.broadcast %53 : vector<1x1024xf32> to vector<16x1024xf32>
    %55 = arith.mulf %52, %54 : vector<16x1024xf32>
    %c0_64 = arith.constant 0 : index
    %c0_65 = arith.constant 0 : index
    %56 = vector.load %arg4[%c0_64, %c0_65] : memref<1x1024xf32, #tpu.memory_space<vmem>>, vector<1x1024xf32>
    %57 = vector.broadcast %56 : vector<1x1024xf32> to vector<16x1024xf32>
    %58 = arith.addf %55, %57 : vector<16x1024xf32>
    %cst_66 = arith.constant 0.000000e+00 : f32
    %59 = vector.broadcast %cst_66 : f32 to vector<16x1024xf32>
    %60 = arith.maximumf %58, %59 : vector<16x1024xf32>
    %c0_67 = arith.constant 0 : index
    %c0_68 = arith.constant 0 : index
    %c0_69 = arith.constant 0 : index
    %61 = vector.load %arg5[%c0_67, %c0_68, %c0_69] : memref<1x16x1024xf32, #tpu.memory_space<vmem>>, vector<1x16x1024xf32>
    %62 = vector.shape_cast %61 : vector<1x16x1024xf32> to vector<16x1024xf32>
    %63 = vector.shape_cast %60 : vector<16x1024xf32> to vector<1x16x1024xf32>
    tpu.vector_store %arg5[%c0_67, %c0_68, %c0_69], %63 {strides = array<i32>} : memref<1x16x1024xf32, #tpu.memory_space<vmem>>, vector<1x16x1024xf32>,
    return
  }
  func.func @transform_0(%arg0: i32) -> (i32, i32, i32, i32) {
    %c0_i32 = arith.constant 0 : i32
    %c0_i32_0 = arith.constant 0 : i32
    %c0_i32_1 = arith.constant 0 : i32
    %c0_i32_2 = arith.constant 0 : i32
    return %c0_i32, %arg0, %c0_i32_0, %c0_i32_1 : i32, i32, i32, i32
  }
  func.func @transform_1(%arg0: i32) -> (i32, i32, i32) {
    %c0_i32 = arith.constant 0 : i32
    %c0_i32_0 = arith.constant 0 : i32
    %c0_i32_1 = arith.constant 0 : i32
    %c0_i32_2 = arith.constant 0 : i32
    return %c0_i32, %c0_i32_0, %c0_i32_1 : i32, i32, i32
  }
  func.func @transform_2(%arg0: i32) -> (i32, i32) {
    %c0_i32 = arith.constant 0 : i32
    %c0_i32_0 = arith.constant 0 : i32
    %c0_i32_1 = arith.constant 0 : i32
    return %c0_i32, %c0_i32_0 : i32, i32
  }
  func.func @transform_3(%arg0: i32) -> (i32, i32) {
    %c0_i32 = arith.constant 0 : i32
    %c0_i32_0 = arith.constant 0 : i32
    %c0_i32_1 = arith.constant 0 : i32
    return %c0_i32, %c0_i32_0 : i32, i32
  }
  func.func @transform_4(%arg0: i32) -> (i32, i32, i32) {
    %c0_i32 = arith.constant 0 : i32
    %c0_i32_0 = arith.constant 0 : i32
    %c0_i32_1 = arith.constant 0 : i32
    return %arg0, %c0_i32, %c0_i32_0 : i32, i32, i32
  }
}

module attributes {stable_mosaic.version = 11 : i64} {
  func.func @_maxpool_kernel(%arg0: i32, %arg1: memref<8x512xf32, #tpu.memory_space<vmem>>, %arg2: memref<1x512xf32, #tpu.memory_space<vmem>>) attributes {dimension_semantics = [#tpu.dimension_semantics<parallel>], iteration_bounds = array<i64: 8>, scalar_prefetch = 0 : i64, scratch_operands = 0 : i64, tpu.core_type = #tpu.core_type<tc>, window_params = [{transform_indices = @transform_0, window_bounds = array<i64: 8, 512>}, {transform_indices = @transform_1, window_bounds = array<i64: 1, 512>}]} {
    %c0 = arith.constant 0 : index
    %c0_0 = arith.constant 0 : index
    %0 = vector.load %arg1[%c0, %c0_0] : memref<8x512xf32, #tpu.memory_space<vmem>>, vector<8x512xf32>
    %cst = arith.constant dense<0xFF800000> : vector<512xf32>
    %1 = vector.multi_reduction <maximumf>, %0, %cst [0] : vector<8x512xf32> to vector<512xf32>
    %2 = vector.shape_cast %1 : vector<512xf32> to vector<1x512xf32>
    %c0_1 = arith.constant 0 : index
    %c0_2 = arith.constant 0 : index
    %3 = vector.load %arg2[%c0_1, %c0_2] : memref<1x512xf32, #tpu.memory_space<vmem>>, vector<1x512xf32>
    tpu.vector_store %arg2[%c0_1, %c0_2], %2 {strides = array<i32>} : memref<1x512xf32, #tpu.memory_space<vmem>>, vector<1x512xf32>,
    return
  }
  func.func @transform_0(%arg0: i32) -> (i32, i32) {
    %c0_i32 = arith.constant 0 : i32
    %c0_i32_0 = arith.constant 0 : i32
    return %c0_i32, %arg0 : i32, i32
  }
  func.func @transform_1(%arg0: i32) -> (i32, i32) {
    %c0_i32 = arith.constant 0 : i32
    %c0_i32_0 = arith.constant 0 : i32
    return %c0_i32, %arg0 : i32, i32
  }
}

module attributes {stable_mosaic.version = 11 : i64} {
  func.func @_conv_bn_relu_kernel(%arg0: i32, %arg1: memref<3x1x8x256xbf16, #tpu.memory_space<vmem>>, %arg2: memref<3x256x512xbf16, #tpu.memory_space<vmem>>, %arg3: memref<1x512xf32, #tpu.memory_space<vmem>>, %arg4: memref<1x512xf32, #tpu.memory_space<vmem>>, %arg5: memref<1x8x512xf32, #tpu.memory_space<vmem>>) attributes {dimension_semantics = [#tpu.dimension_semantics<parallel>], iteration_bounds = array<i64: 2>, scalar_prefetch = 0 : i64, scratch_operands = 0 : i64, tpu.core_type = #tpu.core_type<tc>, window_params = [{transform_indices = @transform_0, window_bounds = array<i64: 3, 1, 8, 256>}, {pipeline_mode = #tpu.pipeline_mode<synchronous>, transform_indices = @transform_1, window_bounds = array<i64: 3, 256, 512>}, {pipeline_mode = #tpu.pipeline_mode<synchronous>, transform_indices = @transform_2, window_bounds = array<i64: 1, 512>}, {pipeline_mode = #tpu.pipeline_mode<synchronous>, transform_indices = @transform_3, window_bounds = array<i64: 1, 512>}, {transform_indices = @transform_4, window_bounds = array<i64: 1, 8, 512>}]} {
    %c0 = arith.constant 0 : index
    %c0_0 = arith.constant 0 : index
    %c0_1 = arith.constant 0 : index
    %c0_2 = arith.constant 0 : index
    %0 = vector.load %arg1[%c0, %c0_0, %c0_1, %c0_2] : memref<3x1x8x256xbf16, #tpu.memory_space<vmem>>, vector<1x1x8x256xbf16>
    %1 = vector.shape_cast %0 : vector<1x1x8x256xbf16> to vector<8x256xbf16>
    %c0_3 = arith.constant 0 : index
    %c0_4 = arith.constant 0 : index
    %c0_5 = arith.constant 0 : index
    %2 = vector.load %arg2[%c0_3, %c0_4, %c0_5] : memref<3x256x512xbf16, #tpu.memory_space<vmem>>, vector<1x256x512xbf16>
    %3 = vector.shape_cast %2 : vector<1x256x512xbf16> to vector<256x512xbf16>
    %cst = arith.constant dense<0.000000e+00> : vector<8x512xf32>
    %4 = tpu.matmul %1, %3, %cst {dimension_numbers = #tpu.dot_dimension_numbers<[1], [0], [0], [1], [0, 0, 1, 1], [], []>} : vector<8x256xbf16>, vector<256x512xbf16>, vector<8x512xf32> -> vector<8x512xf32>
    %c1 = arith.constant 1 : index
    %c0_6 = arith.constant 0 : index
    %c0_7 = arith.constant 0 : index
    %c0_8 = arith.constant 0 : index
    %5 = vector.load %arg1[%c1, %c0_6, %c0_7, %c0_8] : memref<3x1x8x256xbf16, #tpu.memory_space<vmem>>, vector<1x1x8x256xbf16>
    %6 = vector.shape_cast %5 : vector<1x1x8x256xbf16> to vector<8x256xbf16>
    %c1_9 = arith.constant 1 : index
    %c0_10 = arith.constant 0 : index
    %c0_11 = arith.constant 0 : index
    %7 = vector.load %arg2[%c1_9, %c0_10, %c0_11] : memref<3x256x512xbf16, #tpu.memory_space<vmem>>, vector<1x256x512xbf16>
    %8 = vector.shape_cast %7 : vector<1x256x512xbf16> to vector<256x512xbf16>
    %cst_12 = arith.constant dense<0.000000e+00> : vector<8x512xf32>
    %9 = tpu.matmul %6, %8, %cst_12 {dimension_numbers = #tpu.dot_dimension_numbers<[1], [0], [0], [1], [0, 0, 1, 1], [], []>} : vector<8x256xbf16>, vector<256x512xbf16>, vector<8x512xf32> -> vector<8x512xf32>
    %10 = arith.addf %4, %9 : vector<8x512xf32>
    %c2 = arith.constant 2 : index
    %c0_13 = arith.constant 0 : index
    %c0_14 = arith.constant 0 : index
    %c0_15 = arith.constant 0 : index
    %11 = vector.load %arg1[%c2, %c0_13, %c0_14, %c0_15] : memref<3x1x8x256xbf16, #tpu.memory_space<vmem>>, vector<1x1x8x256xbf16>
    %12 = vector.shape_cast %11 : vector<1x1x8x256xbf16> to vector<8x256xbf16>
    %c2_16 = arith.constant 2 : index
    %c0_17 = arith.constant 0 : index
    %c0_18 = arith.constant 0 : index
    %13 = vector.load %arg2[%c2_16, %c0_17, %c0_18] : memref<3x256x512xbf16, #tpu.memory_space<vmem>>, vector<1x256x512xbf16>
    %14 = vector.shape_cast %13 : vector<1x256x512xbf16> to vector<256x512xbf16>
    %cst_19 = arith.constant dense<0.000000e+00> : vector<8x512xf32>
    %15 = tpu.matmul %12, %14, %cst_19 {dimension_numbers = #tpu.dot_dimension_numbers<[1], [0], [0], [1], [0, 0, 1, 1], [], []>} : vector<8x256xbf16>, vector<256x512xbf16>, vector<8x512xf32> -> vector<8x512xf32>
    %16 = arith.addf %10, %15 : vector<8x512xf32>
    %c0_20 = arith.constant 0 : index
    %c0_21 = arith.constant 0 : index
    %17 = vector.load %arg3[%c0_20, %c0_21] : memref<1x512xf32, #tpu.memory_space<vmem>>, vector<1x512xf32>
    %18 = vector.broadcast %17 : vector<1x512xf32> to vector<8x512xf32>
    %19 = arith.mulf %16, %18 : vector<8x512xf32>
    %c0_22 = arith.constant 0 : index
    %c0_23 = arith.constant 0 : index
    %20 = vector.load %arg4[%c0_22, %c0_23] : memref<1x512xf32, #tpu.memory_space<vmem>>, vector<1x512xf32>
    %21 = vector.broadcast %20 : vector<1x512xf32> to vector<8x512xf32>
    %22 = arith.addf %19, %21 : vector<8x512xf32>
    %cst_24 = arith.constant 0.000000e+00 : f32
    %23 = vector.broadcast %cst_24 : f32 to vector<8x512xf32>
    %24 = arith.maximumf %22, %23 : vector<8x512xf32>
    %c0_25 = arith.constant 0 : index
    %c0_26 = arith.constant 0 : index
    %c0_27 = arith.constant 0 : index
    %25 = vector.load %arg5[%c0_25, %c0_26, %c0_27] : memref<1x8x512xf32, #tpu.memory_space<vmem>>, vector<1x8x512xf32>
    %26 = vector.shape_cast %25 : vector<1x8x512xf32> to vector<8x512xf32>
    %27 = vector.shape_cast %24 : vector<8x512xf32> to vector<1x8x512xf32>
    tpu.vector_store %arg5[%c0_25, %c0_26, %c0_27], %27 {strides = array<i32>} : memref<1x8x512xf32, #tpu.memory_space<vmem>>, vector<1x8x512xf32>,
    return
  }
  func.func @transform_0(%arg0: i32) -> (i32, i32, i32, i32) {
    %c0_i32 = arith.constant 0 : i32
    %c0_i32_0 = arith.constant 0 : i32
    %c0_i32_1 = arith.constant 0 : i32
    %c0_i32_2 = arith.constant 0 : i32
    return %c0_i32, %arg0, %c0_i32_0, %c0_i32_1 : i32, i32, i32, i32
  }
  func.func @transform_1(%arg0: i32) -> (i32, i32, i32) {
    %c0_i32 = arith.constant 0 : i32
    %c0_i32_0 = arith.constant 0 : i32
    %c0_i32_1 = arith.constant 0 : i32
    %c0_i32_2 = arith.constant 0 : i32
    return %c0_i32, %c0_i32_0, %c0_i32_1 : i32, i32, i32
  }
  func.func @transform_2(%arg0: i32) -> (i32, i32) {
    %c0_i32 = arith.constant 0 : i32
    %c0_i32_0 = arith.constant 0 : i32
    %c0_i32_1 = arith.constant 0 : i32
    return %c0_i32, %c0_i32_0 : i32, i32
  }
  func.func @transform_3(%arg0: i32) -> (i32, i32) {
    %c0_i32 = arith.constant 0 : i32
    %c0_i32_0 = arith.constant 0 : i32
    %c0_i32_1 = arith.constant 0 : i32
    return %c0_i32, %c0_i32_0 : i32, i32
  }
  func.func @transform_4(%arg0: i32) -> (i32, i32, i32) {
    %c0_i32 = arith.constant 0 : i32
    %c0_i32_0 = arith.constant 0 : i32
    %c0_i32_1 = arith.constant 0 : i32
    return %arg0, %c0_i32, %c0_i32_0 : i32, i32, i32
  }
}

module attributes {stable_mosaic.version = 11 : i64} {
  func.func @_conv_bn_res_relu_kernel(%arg0: i32, %arg1: memref<3x1x8x512xbf16, #tpu.memory_space<vmem>>, %arg2: memref<3x512x512xbf16, #tpu.memory_space<vmem>>, %arg3: memref<1x512xf32, #tpu.memory_space<vmem>>, %arg4: memref<1x512xf32, #tpu.memory_space<vmem>>, %arg5: memref<1x8x512xf32, #tpu.memory_space<vmem>>, %arg6: memref<1x8x512xf32, #tpu.memory_space<vmem>>) attributes {dimension_semantics = [#tpu.dimension_semantics<parallel>], iteration_bounds = array<i64: 2>, scalar_prefetch = 0 : i64, scratch_operands = 0 : i64, tpu.core_type = #tpu.core_type<tc>, window_params = [{transform_indices = @transform_0, window_bounds = array<i64: 3, 1, 8, 512>}, {pipeline_mode = #tpu.pipeline_mode<synchronous>, transform_indices = @transform_1, window_bounds = array<i64: 3, 512, 512>}, {pipeline_mode = #tpu.pipeline_mode<synchronous>, transform_indices = @transform_2, window_bounds = array<i64: 1, 512>}, {pipeline_mode = #tpu.pipeline_mode<synchronous>, transform_indices = @transform_3, window_bounds = array<i64: 1, 512>}, {transform_indices = @transform_4, window_bounds = array<i64: 1, 8, 512>}, {transform_indices = @transform_5, window_bounds = array<i64: 1, 8, 512>}]} {
    %c0 = arith.constant 0 : index
    %c0_0 = arith.constant 0 : index
    %c0_1 = arith.constant 0 : index
    %c0_2 = arith.constant 0 : index
    %0 = vector.load %arg1[%c0, %c0_0, %c0_1, %c0_2] : memref<3x1x8x512xbf16, #tpu.memory_space<vmem>>, vector<1x1x8x512xbf16>
    %1 = vector.shape_cast %0 : vector<1x1x8x512xbf16> to vector<8x512xbf16>
    %c0_3 = arith.constant 0 : index
    %c0_4 = arith.constant 0 : index
    %c0_5 = arith.constant 0 : index
    %2 = vector.load %arg2[%c0_3, %c0_4, %c0_5] : memref<3x512x512xbf16, #tpu.memory_space<vmem>>, vector<1x512x512xbf16>
    %3 = vector.shape_cast %2 : vector<1x512x512xbf16> to vector<512x512xbf16>
    %cst = arith.constant dense<0.000000e+00> : vector<8x512xf32>
    %4 = tpu.matmul %1, %3, %cst {dimension_numbers = #tpu.dot_dimension_numbers<[1], [0], [0], [1], [0, 0, 1, 1], [], []>} : vector<8x512xbf16>, vector<512x512xbf16>, vector<8x512xf32> -> vector<8x512xf32>
    %c1 = arith.constant 1 : index
    %c0_6 = arith.constant 0 : index
    %c0_7 = arith.constant 0 : index
    %c0_8 = arith.constant 0 : index
    %5 = vector.load %arg1[%c1, %c0_6, %c0_7, %c0_8] : memref<3x1x8x512xbf16, #tpu.memory_space<vmem>>, vector<1x1x8x512xbf16>
    %6 = vector.shape_cast %5 : vector<1x1x8x512xbf16> to vector<8x512xbf16>
    %c1_9 = arith.constant 1 : index
    %c0_10 = arith.constant 0 : index
    %c0_11 = arith.constant 0 : index
    %7 = vector.load %arg2[%c1_9, %c0_10, %c0_11] : memref<3x512x512xbf16, #tpu.memory_space<vmem>>, vector<1x512x512xbf16>
    %8 = vector.shape_cast %7 : vector<1x512x512xbf16> to vector<512x512xbf16>
    %cst_12 = arith.constant dense<0.000000e+00> : vector<8x512xf32>
    %9 = tpu.matmul %6, %8, %cst_12 {dimension_numbers = #tpu.dot_dimension_numbers<[1], [0], [0], [1], [0, 0, 1, 1], [], []>} : vector<8x512xbf16>, vector<512x512xbf16>, vector<8x512xf32> -> vector<8x512xf32>
    %10 = arith.addf %4, %9 : vector<8x512xf32>
    %c2 = arith.constant 2 : index
    %c0_13 = arith.constant 0 : index
    %c0_14 = arith.constant 0 : index
    %c0_15 = arith.constant 0 : index
    %11 = vector.load %arg1[%c2, %c0_13, %c0_14, %c0_15] : memref<3x1x8x512xbf16, #tpu.memory_space<vmem>>, vector<1x1x8x512xbf16>
    %12 = vector.shape_cast %11 : vector<1x1x8x512xbf16> to vector<8x512xbf16>
    %c2_16 = arith.constant 2 : index
    %c0_17 = arith.constant 0 : index
    %c0_18 = arith.constant 0 : index
    %13 = vector.load %arg2[%c2_16, %c0_17, %c0_18] : memref<3x512x512xbf16, #tpu.memory_space<vmem>>, vector<1x512x512xbf16>
    %14 = vector.shape_cast %13 : vector<1x512x512xbf16> to vector<512x512xbf16>
    %cst_19 = arith.constant dense<0.000000e+00> : vector<8x512xf32>
    %15 = tpu.matmul %12, %14, %cst_19 {dimension_numbers = #tpu.dot_dimension_numbers<[1], [0], [0], [1], [0, 0, 1, 1], [], []>} : vector<8x512xbf16>, vector<512x512xbf16>, vector<8x512xf32> -> vector<8x512xf32>
    %16 = arith.addf %10, %15 : vector<8x512xf32>
    %c0_20 = arith.constant 0 : index
    %c0_21 = arith.constant 0 : index
    %c0_22 = arith.constant 0 : index
    %17 = vector.load %arg5[%c0_20, %c0_21, %c0_22] : memref<1x8x512xf32, #tpu.memory_space<vmem>>, vector<1x8x512xf32>
    %18 = vector.shape_cast %17 : vector<1x8x512xf32> to vector<8x512xf32>
    %c0_23 = arith.constant 0 : index
    %c0_24 = arith.constant 0 : index
    %19 = vector.load %arg3[%c0_23, %c0_24] : memref<1x512xf32, #tpu.memory_space<vmem>>, vector<1x512xf32>
    %20 = vector.broadcast %19 : vector<1x512xf32> to vector<8x512xf32>
    %21 = arith.mulf %16, %20 : vector<8x512xf32>
    %22 = arith.addf %18, %21 : vector<8x512xf32>
    %c0_25 = arith.constant 0 : index
    %c0_26 = arith.constant 0 : index
    %23 = vector.load %arg4[%c0_25, %c0_26] : memref<1x512xf32, #tpu.memory_space<vmem>>, vector<1x512xf32>
    %24 = vector.broadcast %23 : vector<1x512xf32> to vector<8x512xf32>
    %25 = arith.addf %22, %24 : vector<8x512xf32>
    %cst_27 = arith.constant 0.000000e+00 : f32
    %26 = vector.broadcast %cst_27 : f32 to vector<8x512xf32>
    %27 = arith.maximumf %25, %26 : vector<8x512xf32>
    %c0_28 = arith.constant 0 : index
    %c0_29 = arith.constant 0 : index
    %c0_30 = arith.constant 0 : index
    %28 = vector.load %arg6[%c0_28, %c0_29, %c0_30] : memref<1x8x512xf32, #tpu.memory_space<vmem>>, vector<1x8x512xf32>
    %29 = vector.shape_cast %28 : vector<1x8x512xf32> to vector<8x512xf32>
    %30 = vector.shape_cast %27 : vector<8x512xf32> to vector<1x8x512xf32>
    tpu.vector_store %arg6[%c0_28, %c0_29, %c0_30], %30 {strides = array<i32>} : memref<1x8x512xf32, #tpu.memory_space<vmem>>, vector<1x8x512xf32>,
    return
  }
  func.func @transform_0(%arg0: i32) -> (i32, i32, i32, i32) {
    %c0_i32 = arith.constant 0 : i32
    %c0_i32_0 = arith.constant 0 : i32
    %c0_i32_1 = arith.constant 0 : i32
    %c0_i32_2 = arith.constant 0 : i32
    return %c0_i32, %arg0, %c0_i32_0, %c0_i32_1 : i32, i32, i32, i32
  }
  func.func @transform_1(%arg0: i32) -> (i32, i32, i32) {
    %c0_i32 = arith.constant 0 : i32
    %c0_i32_0 = arith.constant 0 : i32
    %c0_i32_1 = arith.constant 0 : i32
    %c0_i32_2 = arith.constant 0 : i32
    return %c0_i32, %c0_i32_0, %c0_i32_1 : i32, i32, i32
  }
  func.func @transform_2(%arg0: i32) -> (i32, i32) {
    %c0_i32 = arith.constant 0 : i32
    %c0_i32_0 = arith.constant 0 : i32
    %c0_i32_1 = arith.constant 0 : i32
    return %c0_i32, %c0_i32_0 : i32, i32
  }
  func.func @transform_3(%arg0: i32) -> (i32, i32) {
    %c0_i32 = arith.constant 0 : i32
    %c0_i32_0 = arith.constant 0 : i32
    %c0_i32_1 = arith.constant 0 : i32
    return %c0_i32, %c0_i32_0 : i32, i32
  }
  func.func @transform_4(%arg0: i32) -> (i32, i32, i32) {
    %c0_i32 = arith.constant 0 : i32
    %c0_i32_0 = arith.constant 0 : i32
    %c0_i32_1 = arith.constant 0 : i32
    return %arg0, %c0_i32, %c0_i32_0 : i32, i32, i32
  }
  func.func @transform_5(%arg0: i32) -> (i32, i32, i32) {
    %c0_i32 = arith.constant 0 : i32
    %c0_i32_0 = arith.constant 0 : i32
    %c0_i32_1 = arith.constant 0 : i32
    return %arg0, %c0_i32, %c0_i32_0 : i32, i32, i32
  }
}

module attributes {stable_mosaic.version = 11 : i64} {
  func.func @_maxpool_kernel(%arg0: i32, %arg1: memref<8x512xf32, #tpu.memory_space<vmem>>, %arg2: memref<1x512xf32, #tpu.memory_space<vmem>>) attributes {dimension_semantics = [#tpu.dimension_semantics<parallel>], iteration_bounds = array<i64: 2>, scalar_prefetch = 0 : i64, scratch_operands = 0 : i64, tpu.core_type = #tpu.core_type<tc>, window_params = [{transform_indices = @transform_0, window_bounds = array<i64: 8, 512>}, {transform_indices = @transform_1, window_bounds = array<i64: 1, 512>}]} {
    %c0 = arith.constant 0 : index
    %c0_0 = arith.constant 0 : index
    %0 = vector.load %arg1[%c0, %c0_0] : memref<8x512xf32, #tpu.memory_space<vmem>>, vector<8x512xf32>
    %cst = arith.constant dense<0xFF800000> : vector<512xf32>
    %1 = vector.multi_reduction <maximumf>, %0, %cst [0] : vector<8x512xf32> to vector<512xf32>
    %2 = vector.shape_cast %1 : vector<512xf32> to vector<1x512xf32>
    %c0_1 = arith.constant 0 : index
    %c0_2 = arith.constant 0 : index
    %3 = vector.load %arg2[%c0_1, %c0_2] : memref<1x512xf32, #tpu.memory_space<vmem>>, vector<1x512xf32>
    tpu.vector_store %arg2[%c0_1, %c0_2], %2 {strides = array<i32>} : memref<1x512xf32, #tpu.memory_space<vmem>>, vector<1x512xf32>,
    return
  }
  func.func @transform_0(%arg0: i32) -> (i32, i32) {
    %c0_i32 = arith.constant 0 : i32
    %c0_i32_0 = arith.constant 0 : i32
    return %c0_i32, %arg0 : i32, i32
  }
  func.func @transform_1(%arg0: i32) -> (i32, i32) {
    %c0_i32 = arith.constant 0 : i32
    %c0_i32_0 = arith.constant 0 : i32
    return %c0_i32, %arg0 : i32, i32
  }
}

module attributes {stable_mosaic.version = 11 : i64} {
  func.func @_conv_bn_relu_kernel(%arg0: i32, %arg1: memref<3x1x4x128xbf16, #tpu.memory_space<vmem>>, %arg2: memref<3x128x256xbf16, #tpu.memory_space<vmem>>, %arg3: memref<1x256xf32, #tpu.memory_space<vmem>>, %arg4: memref<1x256xf32, #tpu.memory_space<vmem>>, %arg5: memref<1x4x256xf32, #tpu.memory_space<vmem>>) attributes {dimension_semantics = [#tpu.dimension_semantics<parallel>], iteration_bounds = array<i64: 2>, scalar_prefetch = 0 : i64, scratch_operands = 0 : i64, tpu.core_type = #tpu.core_type<tc>, window_params = [{transform_indices = @transform_0, window_bounds = array<i64: 3, 1, 4, 128>}, {pipeline_mode = #tpu.pipeline_mode<synchronous>, transform_indices = @transform_1, window_bounds = array<i64: 3, 128, 256>}, {pipeline_mode = #tpu.pipeline_mode<synchronous>, transform_indices = @transform_2, window_bounds = array<i64: 1, 256>}, {pipeline_mode = #tpu.pipeline_mode<synchronous>, transform_indices = @transform_3, window_bounds = array<i64: 1, 256>}, {transform_indices = @transform_4, window_bounds = array<i64: 1, 4, 256>}]} {
    %c0 = arith.constant 0 : index
    %c0_0 = arith.constant 0 : index
    %c0_1 = arith.constant 0 : index
    %c0_2 = arith.constant 0 : index
    %0 = vector.load %arg1[%c0, %c0_0, %c0_1, %c0_2] : memref<3x1x4x128xbf16, #tpu.memory_space<vmem>>, vector<1x1x4x128xbf16>
    %1 = vector.shape_cast %0 : vector<1x1x4x128xbf16> to vector<4x128xbf16>
    %c0_3 = arith.constant 0 : index
    %c0_4 = arith.constant 0 : index
    %c0_5 = arith.constant 0 : index
    %2 = vector.load %arg2[%c0_3, %c0_4, %c0_5] : memref<3x128x256xbf16, #tpu.memory_space<vmem>>, vector<1x128x256xbf16>
    %3 = vector.shape_cast %2 : vector<1x128x256xbf16> to vector<128x256xbf16>
    %cst = arith.constant dense<0.000000e+00> : vector<4x256xf32>
    %4 = tpu.matmul %1, %3, %cst {dimension_numbers = #tpu.dot_dimension_numbers<[1], [0], [0], [1], [0, 0, 1, 1], [], []>} : vector<4x128xbf16>, vector<128x256xbf16>, vector<4x256xf32> -> vector<4x256xf32>
    %c1 = arith.constant 1 : index
    %c0_6 = arith.constant 0 : index
    %c0_7 = arith.constant 0 : index
    %c0_8 = arith.constant 0 : index
    %5 = vector.load %arg1[%c1, %c0_6, %c0_7, %c0_8] : memref<3x1x4x128xbf16, #tpu.memory_space<vmem>>, vector<1x1x4x128xbf16>
    %6 = vector.shape_cast %5 : vector<1x1x4x128xbf16> to vector<4x128xbf16>
    %c1_9 = arith.constant 1 : index
    %c0_10 = arith.constant 0 : index
    %c0_11 = arith.constant 0 : index
    %7 = vector.load %arg2[%c1_9, %c0_10, %c0_11] : memref<3x128x256xbf16, #tpu.memory_space<vmem>>, vector<1x128x256xbf16>
    %8 = vector.shape_cast %7 : vector<1x128x256xbf16> to vector<128x256xbf16>
    %cst_12 = arith.constant dense<0.000000e+00> : vector<4x256xf32>
    %9 = tpu.matmul %6, %8, %cst_12 {dimension_numbers = #tpu.dot_dimension_numbers<[1], [0], [0], [1], [0, 0, 1, 1], [], []>} : vector<4x128xbf16>, vector<128x256xbf16>, vector<4x256xf32> -> vector<4x256xf32>
    %10 = arith.addf %4, %9 : vector<4x256xf32>
    %c2 = arith.constant 2 : index
    %c0_13 = arith.constant 0 : index
    %c0_14 = arith.constant 0 : index
    %c0_15 = arith.constant 0 : index
    %11 = vector.load %arg1[%c2, %c0_13, %c0_14, %c0_15] : memref<3x1x4x128xbf16, #tpu.memory_space<vmem>>, vector<1x1x4x128xbf16>
    %12 = vector.shape_cast %11 : vector<1x1x4x128xbf16> to vector<4x128xbf16>
    %c2_16 = arith.constant 2 : index
    %c0_17 = arith.constant 0 : index
    %c0_18 = arith.constant 0 : index
    %13 = vector.load %arg2[%c2_16, %c0_17, %c0_18] : memref<3x128x256xbf16, #tpu.memory_space<vmem>>, vector<1x128x256xbf16>
    %14 = vector.shape_cast %13 : vector<1x128x256xbf16> to vector<128x256xbf16>
    %cst_19 = arith.constant dense<0.000000e+00> : vector<4x256xf32>
    %15 = tpu.matmul %12, %14, %cst_19 {dimension_numbers = #tpu.dot_dimension_numbers<[1], [0], [0], [1], [0, 0, 1, 1], [], []>} : vector<4x128xbf16>, vector<128x256xbf16>, vector<4x256xf32> -> vector<4x256xf32>
    %16 = arith.addf %10, %15 : vector<4x256xf32>
    %c0_20 = arith.constant 0 : index
    %c0_21 = arith.constant 0 : index
    %17 = vector.load %arg3[%c0_20, %c0_21] : memref<1x256xf32, #tpu.memory_space<vmem>>, vector<1x256xf32>
    %18 = vector.broadcast %17 : vector<1x256xf32> to vector<4x256xf32>
    %19 = arith.mulf %16, %18 : vector<4x256xf32>
    %c0_22 = arith.constant 0 : index
    %c0_23 = arith.constant 0 : index
    %20 = vector.load %arg4[%c0_22, %c0_23] : memref<1x256xf32, #tpu.memory_space<vmem>>, vector<1x256xf32>
    %21 = vector.broadcast %20 : vector<1x256xf32> to vector<4x256xf32>
    %22 = arith.addf %19, %21 : vector<4x256xf32>
    %cst_24 = arith.constant 0.000000e+00 : f32
    %23 = vector.broadcast %cst_24 : f32 to vector<4x256xf32>
    %24 = arith.maximumf %22, %23 : vector<4x256xf32>
    %c0_25 = arith.constant 0 : index
    %c0_26 = arith.constant 0 : index
    %c0_27 = arith.constant 0 : index
    %25 = vector.load %arg5[%c0_25, %c0_26, %c0_27] : memref<1x4x256xf32, #tpu.memory_space<vmem>>, vector<1x4x256xf32>
    %26 = vector.shape_cast %25 : vector<1x4x256xf32> to vector<4x256xf32>
    %27 = vector.shape_cast %24 : vector<4x256xf32> to vector<1x4x256xf32>
    tpu.vector_store %arg5[%c0_25, %c0_26, %c0_27], %27 {strides = array<i32>} : memref<1x4x256xf32, #tpu.memory_space<vmem>>, vector<1x4x256xf32>,
    return
  }
  func.func @transform_0(%arg0: i32) -> (i32, i32, i32, i32) {
    %c0_i32 = arith.constant 0 : i32
    %c0_i32_0 = arith.constant 0 : i32
    %c0_i32_1 = arith.constant 0 : i32
    %c0_i32_2 = arith.constant 0 : i32
    return %c0_i32, %arg0, %c0_i32_0, %c0_i32_1 : i32, i32, i32, i32
  }
  func.func @transform_1(%arg0: i32) -> (i32, i32, i32) {
    %c0_i32 = arith.constant 0 : i32
    %c0_i32_0 = arith.constant 0 : i32
    %c0_i32_1 = arith.constant 0 : i32
    %c0_i32_2 = arith.constant 0 : i32
    return %c0_i32, %c0_i32_0, %c0_i32_1 : i32, i32, i32
  }
  func.func @transform_2(%arg0: i32) -> (i32, i32) {
    %c0_i32 = arith.constant 0 : i32
    %c0_i32_0 = arith.constant 0 : i32
    %c0_i32_1 = arith.constant 0 : i32
    return %c0_i32, %c0_i32_0 : i32, i32
  }
  func.func @transform_3(%arg0: i32) -> (i32, i32) {
    %c0_i32 = arith.constant 0 : i32
    %c0_i32_0 = arith.constant 0 : i32
    %c0_i32_1 = arith.constant 0 : i32
    return %c0_i32, %c0_i32_0 : i32, i32
  }
  func.func @transform_4(%arg0: i32) -> (i32, i32, i32) {
    %c0_i32 = arith.constant 0 : i32
    %c0_i32_0 = arith.constant 0 : i32
    %c0_i32_1 = arith.constant 0 : i32
    return %arg0, %c0_i32, %c0_i32_0 : i32, i32, i32
  }
}

module attributes {stable_mosaic.version = 11 : i64} {
  func.func @_conv_bn_res_relu_kernel(%arg0: i32, %arg1: memref<3x1x4x256xbf16, #tpu.memory_space<vmem>>, %arg2: memref<3x256x256xbf16, #tpu.memory_space<vmem>>, %arg3: memref<1x256xf32, #tpu.memory_space<vmem>>, %arg4: memref<1x256xf32, #tpu.memory_space<vmem>>, %arg5: memref<1x4x256xf32, #tpu.memory_space<vmem>>, %arg6: memref<1x4x256xf32, #tpu.memory_space<vmem>>) attributes {dimension_semantics = [#tpu.dimension_semantics<parallel>], iteration_bounds = array<i64: 2>, scalar_prefetch = 0 : i64, scratch_operands = 0 : i64, tpu.core_type = #tpu.core_type<tc>, window_params = [{transform_indices = @transform_0, window_bounds = array<i64: 3, 1, 4, 256>}, {pipeline_mode = #tpu.pipeline_mode<synchronous>, transform_indices = @transform_1, window_bounds = array<i64: 3, 256, 256>}, {pipeline_mode = #tpu.pipeline_mode<synchronous>, transform_indices = @transform_2, window_bounds = array<i64: 1, 256>}, {pipeline_mode = #tpu.pipeline_mode<synchronous>, transform_indices = @transform_3, window_bounds = array<i64: 1, 256>}, {transform_indices = @transform_4, window_bounds = array<i64: 1, 4, 256>}, {transform_indices = @transform_5, window_bounds = array<i64: 1, 4, 256>}]} {
    %c0 = arith.constant 0 : index
    %c0_0 = arith.constant 0 : index
    %c0_1 = arith.constant 0 : index
    %c0_2 = arith.constant 0 : index
    %0 = vector.load %arg1[%c0, %c0_0, %c0_1, %c0_2] : memref<3x1x4x256xbf16, #tpu.memory_space<vmem>>, vector<1x1x4x256xbf16>
    %1 = vector.shape_cast %0 : vector<1x1x4x256xbf16> to vector<4x256xbf16>
    %c0_3 = arith.constant 0 : index
    %c0_4 = arith.constant 0 : index
    %c0_5 = arith.constant 0 : index
    %2 = vector.load %arg2[%c0_3, %c0_4, %c0_5] : memref<3x256x256xbf16, #tpu.memory_space<vmem>>, vector<1x256x256xbf16>
    %3 = vector.shape_cast %2 : vector<1x256x256xbf16> to vector<256x256xbf16>
    %cst = arith.constant dense<0.000000e+00> : vector<4x256xf32>
    %4 = tpu.matmul %1, %3, %cst {dimension_numbers = #tpu.dot_dimension_numbers<[1], [0], [0], [1], [0, 0, 1, 1], [], []>} : vector<4x256xbf16>, vector<256x256xbf16>, vector<4x256xf32> -> vector<4x256xf32>
    %c1 = arith.constant 1 : index
    %c0_6 = arith.constant 0 : index
    %c0_7 = arith.constant 0 : index
    %c0_8 = arith.constant 0 : index
    %5 = vector.load %arg1[%c1, %c0_6, %c0_7, %c0_8] : memref<3x1x4x256xbf16, #tpu.memory_space<vmem>>, vector<1x1x4x256xbf16>
    %6 = vector.shape_cast %5 : vector<1x1x4x256xbf16> to vector<4x256xbf16>
    %c1_9 = arith.constant 1 : index
    %c0_10 = arith.constant 0 : index
    %c0_11 = arith.constant 0 : index
    %7 = vector.load %arg2[%c1_9, %c0_10, %c0_11] : memref<3x256x256xbf16, #tpu.memory_space<vmem>>, vector<1x256x256xbf16>
    %8 = vector.shape_cast %7 : vector<1x256x256xbf16> to vector<256x256xbf16>
    %cst_12 = arith.constant dense<0.000000e+00> : vector<4x256xf32>
    %9 = tpu.matmul %6, %8, %cst_12 {dimension_numbers = #tpu.dot_dimension_numbers<[1], [0], [0], [1], [0, 0, 1, 1], [], []>} : vector<4x256xbf16>, vector<256x256xbf16>, vector<4x256xf32> -> vector<4x256xf32>
    %10 = arith.addf %4, %9 : vector<4x256xf32>
    %c2 = arith.constant 2 : index
    %c0_13 = arith.constant 0 : index
    %c0_14 = arith.constant 0 : index
    %c0_15 = arith.constant 0 : index
    %11 = vector.load %arg1[%c2, %c0_13, %c0_14, %c0_15] : memref<3x1x4x256xbf16, #tpu.memory_space<vmem>>, vector<1x1x4x256xbf16>
    %12 = vector.shape_cast %11 : vector<1x1x4x256xbf16> to vector<4x256xbf16>
    %c2_16 = arith.constant 2 : index
    %c0_17 = arith.constant 0 : index
    %c0_18 = arith.constant 0 : index
    %13 = vector.load %arg2[%c2_16, %c0_17, %c0_18] : memref<3x256x256xbf16, #tpu.memory_space<vmem>>, vector<1x256x256xbf16>
    %14 = vector.shape_cast %13 : vector<1x256x256xbf16> to vector<256x256xbf16>
    %cst_19 = arith.constant dense<0.000000e+00> : vector<4x256xf32>
    %15 = tpu.matmul %12, %14, %cst_19 {dimension_numbers = #tpu.dot_dimension_numbers<[1], [0], [0], [1], [0, 0, 1, 1], [], []>} : vector<4x256xbf16>, vector<256x256xbf16>, vector<4x256xf32> -> vector<4x256xf32>
    %16 = arith.addf %10, %15 : vector<4x256xf32>
    %c0_20 = arith.constant 0 : index
    %c0_21 = arith.constant 0 : index
    %c0_22 = arith.constant 0 : index
    %17 = vector.load %arg5[%c0_20, %c0_21, %c0_22] : memref<1x4x256xf32, #tpu.memory_space<vmem>>, vector<1x4x256xf32>
    %18 = vector.shape_cast %17 : vector<1x4x256xf32> to vector<4x256xf32>
    %c0_23 = arith.constant 0 : index
    %c0_24 = arith.constant 0 : index
    %19 = vector.load %arg3[%c0_23, %c0_24] : memref<1x256xf32, #tpu.memory_space<vmem>>, vector<1x256xf32>
    %20 = vector.broadcast %19 : vector<1x256xf32> to vector<4x256xf32>
    %21 = arith.mulf %16, %20 : vector<4x256xf32>
    %22 = arith.addf %18, %21 : vector<4x256xf32>
    %c0_25 = arith.constant 0 : index
    %c0_26 = arith.constant 0 : index
    %23 = vector.load %arg4[%c0_25, %c0_26] : memref<1x256xf32, #tpu.memory_space<vmem>>, vector<1x256xf32>
    %24 = vector.broadcast %23 : vector<1x256xf32> to vector<4x256xf32>
    %25 = arith.addf %22, %24 : vector<4x256xf32>
    %cst_27 = arith.constant 0.000000e+00 : f32
    %26 = vector.broadcast %cst_27 : f32 to vector<4x256xf32>
    %27 = arith.maximumf %25, %26 : vector<4x256xf32>
    %c0_28 = arith.constant 0 : index
    %c0_29 = arith.constant 0 : index
    %c0_30 = arith.constant 0 : index
    %28 = vector.load %arg6[%c0_28, %c0_29, %c0_30] : memref<1x4x256xf32, #tpu.memory_space<vmem>>, vector<1x4x256xf32>
    %29 = vector.shape_cast %28 : vector<1x4x256xf32> to vector<4x256xf32>
    %30 = vector.shape_cast %27 : vector<4x256xf32> to vector<1x4x256xf32>
    tpu.vector_store %arg6[%c0_28, %c0_29, %c0_30], %30 {strides = array<i32>} : memref<1x4x256xf32, #tpu.memory_space<vmem>>, vector<1x4x256xf32>,
    return
  }
  func.func @transform_0(%arg0: i32) -> (i32, i32, i32, i32) {
    %c0_i32 = arith.constant 0 : i32
    %c0_i32_0 = arith.constant 0 : i32
    %c0_i32_1 = arith.constant 0 : i32
    %c0_i32_2 = arith.constant 0 : i32
    return %c0_i32, %arg0, %c0_i32_0, %c0_i32_1 : i32, i32, i32, i32
  }
  func.func @transform_1(%arg0: i32) -> (i32, i32, i32) {
    %c0_i32 = arith.constant 0 : i32
    %c0_i32_0 = arith.constant 0 : i32
    %c0_i32_1 = arith.constant 0 : i32
    %c0_i32_2 = arith.constant 0 : i32
    return %c0_i32, %c0_i32_0, %c0_i32_1 : i32, i32, i32
  }
  func.func @transform_2(%arg0: i32) -> (i32, i32) {
    %c0_i32 = arith.constant 0 : i32
    %c0_i32_0 = arith.constant 0 : i32
    %c0_i32_1 = arith.constant 0 : i32
    return %c0_i32, %c0_i32_0 : i32, i32
  }
  func.func @transform_3(%arg0: i32) -> (i32, i32) {
    %c0_i32 = arith.constant 0 : i32
    %c0_i32_0 = arith.constant 0 : i32
    %c0_i32_1 = arith.constant 0 : i32
    return %c0_i32, %c0_i32_0 : i32, i32
  }
  func.func @transform_4(%arg0: i32) -> (i32, i32, i32) {
    %c0_i32 = arith.constant 0 : i32
    %c0_i32_0 = arith.constant 0 : i32
    %c0_i32_1 = arith.constant 0 : i32
    return %arg0, %c0_i32, %c0_i32_0 : i32, i32, i32
  }
  func.func @transform_5(%arg0: i32) -> (i32, i32, i32) {
    %c0_i32 = arith.constant 0 : i32
    %c0_i32_0 = arith.constant 0 : i32
    %c0_i32_1 = arith.constant 0 : i32
    return %arg0, %c0_i32, %c0_i32_0 : i32, i32, i32
  }
}

module attributes {stable_mosaic.version = 11 : i64} {
  func.func @_maxpool_kernel(%arg0: i32, %arg1: memref<8x256xf32, #tpu.memory_space<vmem>>, %arg2: memref<1x256xf32, #tpu.memory_space<vmem>>) attributes {dimension_semantics = [#tpu.dimension_semantics<parallel>], iteration_bounds = array<i64: 1>, scalar_prefetch = 0 : i64, scratch_operands = 0 : i64, tpu.core_type = #tpu.core_type<tc>, window_params = [{transform_indices = @transform_0, window_bounds = array<i64: 8, 256>}, {transform_indices = @transform_1, window_bounds = array<i64: 1, 256>}]} {
    %c0 = arith.constant 0 : index
    %c0_0 = arith.constant 0 : index
    %0 = vector.load %arg1[%c0, %c0_0] : memref<8x256xf32, #tpu.memory_space<vmem>>, vector<8x256xf32>
    %cst = arith.constant dense<0xFF800000> : vector<256xf32>
    %1 = vector.multi_reduction <maximumf>, %0, %cst [0] : vector<8x256xf32> to vector<256xf32>
    %2 = vector.shape_cast %1 : vector<256xf32> to vector<1x256xf32>
    %c0_1 = arith.constant 0 : index
    %c0_2 = arith.constant 0 : index
    %3 = vector.load %arg2[%c0_1, %c0_2] : memref<1x256xf32, #tpu.memory_space<vmem>>, vector<1x256xf32>
    tpu.vector_store %arg2[%c0_1, %c0_2], %2 {strides = array<i32>} : memref<1x256xf32, #tpu.memory_space<vmem>>, vector<1x256xf32>,
    return
  }
  func.func @transform_0(%arg0: i32) -> (i32, i32) {
    %c0_i32 = arith.constant 0 : i32
    %c0_i32_0 = arith.constant 0 : i32
    return %c0_i32, %arg0 : i32, i32
  }
  func.func @transform_1(%arg0: i32) -> (i32, i32) {
    %c0_i32 = arith.constant 0 : i32
    %c0_i32_0 = arith.constant 0 : i32
    return %c0_i32, %arg0 : i32, i32
  }
}

module attributes {stable_mosaic.version = 11 : i64} {
  func.func @_conv_bn_relu_kernel(%arg0: i32, %arg1: memref<3x1x2x64xbf16, #tpu.memory_space<vmem>>, %arg2: memref<3x64x128xbf16, #tpu.memory_space<vmem>>, %arg3: memref<1x128xf32, #tpu.memory_space<vmem>>, %arg4: memref<1x128xf32, #tpu.memory_space<vmem>>, %arg5: memref<1x2x128xf32, #tpu.memory_space<vmem>>) attributes {dimension_semantics = [#tpu.dimension_semantics<parallel>], iteration_bounds = array<i64: 2>, scalar_prefetch = 0 : i64, scratch_operands = 0 : i64, tpu.core_type = #tpu.core_type<tc>, window_params = [{transform_indices = @transform_0, window_bounds = array<i64: 3, 1, 2, 64>}, {pipeline_mode = #tpu.pipeline_mode<synchronous>, transform_indices = @transform_1, window_bounds = array<i64: 3, 64, 128>}, {pipeline_mode = #tpu.pipeline_mode<synchronous>, transform_indices = @transform_2, window_bounds = array<i64: 1, 128>}, {pipeline_mode = #tpu.pipeline_mode<synchronous>, transform_indices = @transform_3, window_bounds = array<i64: 1, 128>}, {transform_indices = @transform_4, window_bounds = array<i64: 1, 2, 128>}]} {
    %c0 = arith.constant 0 : index
    %c0_0 = arith.constant 0 : index
    %c0_1 = arith.constant 0 : index
    %c0_2 = arith.constant 0 : index
    %0 = vector.load %arg1[%c0, %c0_0, %c0_1, %c0_2] : memref<3x1x2x64xbf16, #tpu.memory_space<vmem>>, vector<1x1x2x64xbf16>
    %1 = vector.shape_cast %0 : vector<1x1x2x64xbf16> to vector<2x64xbf16>
    %c0_3 = arith.constant 0 : index
    %c0_4 = arith.constant 0 : index
    %c0_5 = arith.constant 0 : index
    %2 = vector.load %arg2[%c0_3, %c0_4, %c0_5] : memref<3x64x128xbf16, #tpu.memory_space<vmem>>, vector<1x64x128xbf16>
    %3 = vector.shape_cast %2 : vector<1x64x128xbf16> to vector<64x128xbf16>
    %cst = arith.constant dense<0.000000e+00> : vector<2x128xf32>
    %4 = tpu.matmul %1, %3, %cst {dimension_numbers = #tpu.dot_dimension_numbers<[1], [0], [0], [1], [0, 0, 1, 1], [], []>} : vector<2x64xbf16>, vector<64x128xbf16>, vector<2x128xf32> -> vector<2x128xf32>
    %c1 = arith.constant 1 : index
    %c0_6 = arith.constant 0 : index
    %c0_7 = arith.constant 0 : index
    %c0_8 = arith.constant 0 : index
    %5 = vector.load %arg1[%c1, %c0_6, %c0_7, %c0_8] : memref<3x1x2x64xbf16, #tpu.memory_space<vmem>>, vector<1x1x2x64xbf16>
    %6 = vector.shape_cast %5 : vector<1x1x2x64xbf16> to vector<2x64xbf16>
    %c1_9 = arith.constant 1 : index
    %c0_10 = arith.constant 0 : index
    %c0_11 = arith.constant 0 : index
    %7 = vector.load %arg2[%c1_9, %c0_10, %c0_11] : memref<3x64x128xbf16, #tpu.memory_space<vmem>>, vector<1x64x128xbf16>
    %8 = vector.shape_cast %7 : vector<1x64x128xbf16> to vector<64x128xbf16>
    %cst_12 = arith.constant dense<0.000000e+00> : vector<2x128xf32>
    %9 = tpu.matmul %6, %8, %cst_12 {dimension_numbers = #tpu.dot_dimension_numbers<[1], [0], [0], [1], [0, 0, 1, 1], [], []>} : vector<2x64xbf16>, vector<64x128xbf16>, vector<2x128xf32> -> vector<2x128xf32>
    %10 = arith.addf %4, %9 : vector<2x128xf32>
    %c2 = arith.constant 2 : index
    %c0_13 = arith.constant 0 : index
    %c0_14 = arith.constant 0 : index
    %c0_15 = arith.constant 0 : index
    %11 = vector.load %arg1[%c2, %c0_13, %c0_14, %c0_15] : memref<3x1x2x64xbf16, #tpu.memory_space<vmem>>, vector<1x1x2x64xbf16>
    %12 = vector.shape_cast %11 : vector<1x1x2x64xbf16> to vector<2x64xbf16>
    %c2_16 = arith.constant 2 : index
    %c0_17 = arith.constant 0 : index
    %c0_18 = arith.constant 0 : index
    %13 = vector.load %arg2[%c2_16, %c0_17, %c0_18] : memref<3x64x128xbf16, #tpu.memory_space<vmem>>, vector<1x64x128xbf16>
    %14 = vector.shape_cast %13 : vector<1x64x128xbf16> to vector<64x128xbf16>
    %cst_19 = arith.constant dense<0.000000e+00> : vector<2x128xf32>
    %15 = tpu.matmul %12, %14, %cst_19 {dimension_numbers = #tpu.dot_dimension_numbers<[1], [0], [0], [1], [0, 0, 1, 1], [], []>} : vector<2x64xbf16>, vector<64x128xbf16>, vector<2x128xf32> -> vector<2x128xf32>
    %16 = arith.addf %10, %15 : vector<2x128xf32>
    %c0_20 = arith.constant 0 : index
    %c0_21 = arith.constant 0 : index
    %17 = vector.load %arg3[%c0_20, %c0_21] : memref<1x128xf32, #tpu.memory_space<vmem>>, vector<1x128xf32>
    %18 = vector.broadcast %17 : vector<1x128xf32> to vector<2x128xf32>
    %19 = arith.mulf %16, %18 : vector<2x128xf32>
    %c0_22 = arith.constant 0 : index
    %c0_23 = arith.constant 0 : index
    %20 = vector.load %arg4[%c0_22, %c0_23] : memref<1x128xf32, #tpu.memory_space<vmem>>, vector<1x128xf32>
    %21 = vector.broadcast %20 : vector<1x128xf32> to vector<2x128xf32>
    %22 = arith.addf %19, %21 : vector<2x128xf32>
    %cst_24 = arith.constant 0.000000e+00 : f32
    %23 = vector.broadcast %cst_24 : f32 to vector<2x128xf32>
    %24 = arith.maximumf %22, %23 : vector<2x128xf32>
    %c0_25 = arith.constant 0 : index
    %c0_26 = arith.constant 0 : index
    %c0_27 = arith.constant 0 : index
    %25 = vector.load %arg5[%c0_25, %c0_26, %c0_27] : memref<1x2x128xf32, #tpu.memory_space<vmem>>, vector<1x2x128xf32>
    %26 = vector.shape_cast %25 : vector<1x2x128xf32> to vector<2x128xf32>
    %27 = vector.shape_cast %24 : vector<2x128xf32> to vector<1x2x128xf32>
    tpu.vector_store %arg5[%c0_25, %c0_26, %c0_27], %27 {strides = array<i32>} : memref<1x2x128xf32, #tpu.memory_space<vmem>>, vector<1x2x128xf32>,
    return
  }
  func.func @transform_0(%arg0: i32) -> (i32, i32, i32, i32) {
    %c0_i32 = arith.constant 0 : i32
    %c0_i32_0 = arith.constant 0 : i32
    %c0_i32_1 = arith.constant 0 : i32
    %c0_i32_2 = arith.constant 0 : i32
    return %c0_i32, %arg0, %c0_i32_0, %c0_i32_1 : i32, i32, i32, i32
  }
  func.func @transform_1(%arg0: i32) -> (i32, i32, i32) {
    %c0_i32 = arith.constant 0 : i32
    %c0_i32_0 = arith.constant 0 : i32
    %c0_i32_1 = arith.constant 0 : i32
    %c0_i32_2 = arith.constant 0 : i32
    return %c0_i32, %c0_i32_0, %c0_i32_1 : i32, i32, i32
  }
  func.func @transform_2(%arg0: i32) -> (i32, i32) {
    %c0_i32 = arith.constant 0 : i32
    %c0_i32_0 = arith.constant 0 : i32
    %c0_i32_1 = arith.constant 0 : i32
    return %c0_i32, %c0_i32_0 : i32, i32
  }
  func.func @transform_3(%arg0: i32) -> (i32, i32) {
    %c0_i32 = arith.constant 0 : i32
    %c0_i32_0 = arith.constant 0 : i32
    %c0_i32_1 = arith.constant 0 : i32
    return %c0_i32, %c0_i32_0 : i32, i32
  }
  func.func @transform_4(%arg0: i32) -> (i32, i32, i32) {
    %c0_i32 = arith.constant 0 : i32
    %c0_i32_0 = arith.constant 0 : i32
    %c0_i32_1 = arith.constant 0 : i32
    return %arg0, %c0_i32, %c0_i32_0 : i32, i32, i32
  }
}

module attributes {stable_mosaic.version = 11 : i64} {
  func.func @_conv_bn_res_relu_kernel(%arg0: i32, %arg1: memref<3x1x2x128xbf16, #tpu.memory_space<vmem>>, %arg2: memref<3x128x128xbf16, #tpu.memory_space<vmem>>, %arg3: memref<1x128xf32, #tpu.memory_space<vmem>>, %arg4: memref<1x128xf32, #tpu.memory_space<vmem>>, %arg5: memref<1x2x128xf32, #tpu.memory_space<vmem>>, %arg6: memref<1x2x128xf32, #tpu.memory_space<vmem>>) attributes {dimension_semantics = [#tpu.dimension_semantics<parallel>], iteration_bounds = array<i64: 2>, scalar_prefetch = 0 : i64, scratch_operands = 0 : i64, tpu.core_type = #tpu.core_type<tc>, window_params = [{transform_indices = @transform_0, window_bounds = array<i64: 3, 1, 2, 128>}, {pipeline_mode = #tpu.pipeline_mode<synchronous>, transform_indices = @transform_1, window_bounds = array<i64: 3, 128, 128>}, {pipeline_mode = #tpu.pipeline_mode<synchronous>, transform_indices = @transform_2, window_bounds = array<i64: 1, 128>}, {pipeline_mode = #tpu.pipeline_mode<synchronous>, transform_indices = @transform_3, window_bounds = array<i64: 1, 128>}, {transform_indices = @transform_4, window_bounds = array<i64: 1, 2, 128>}, {transform_indices = @transform_5, window_bounds = array<i64: 1, 2, 128>}]} {
    %c0 = arith.constant 0 : index
    %c0_0 = arith.constant 0 : index
    %c0_1 = arith.constant 0 : index
    %c0_2 = arith.constant 0 : index
    %0 = vector.load %arg1[%c0, %c0_0, %c0_1, %c0_2] : memref<3x1x2x128xbf16, #tpu.memory_space<vmem>>, vector<1x1x2x128xbf16>
    %1 = vector.shape_cast %0 : vector<1x1x2x128xbf16> to vector<2x128xbf16>
    %c0_3 = arith.constant 0 : index
    %c0_4 = arith.constant 0 : index
    %c0_5 = arith.constant 0 : index
    %2 = vector.load %arg2[%c0_3, %c0_4, %c0_5] : memref<3x128x128xbf16, #tpu.memory_space<vmem>>, vector<1x128x128xbf16>
    %3 = vector.shape_cast %2 : vector<1x128x128xbf16> to vector<128x128xbf16>
    %cst = arith.constant dense<0.000000e+00> : vector<2x128xf32>
    %4 = tpu.matmul %1, %3, %cst {dimension_numbers = #tpu.dot_dimension_numbers<[1], [0], [0], [1], [0, 0, 1, 1], [], []>} : vector<2x128xbf16>, vector<128x128xbf16>, vector<2x128xf32> -> vector<2x128xf32>
    %c1 = arith.constant 1 : index
    %c0_6 = arith.constant 0 : index
    %c0_7 = arith.constant 0 : index
    %c0_8 = arith.constant 0 : index
    %5 = vector.load %arg1[%c1, %c0_6, %c0_7, %c0_8] : memref<3x1x2x128xbf16, #tpu.memory_space<vmem>>, vector<1x1x2x128xbf16>
    %6 = vector.shape_cast %5 : vector<1x1x2x128xbf16> to vector<2x128xbf16>
    %c1_9 = arith.constant 1 : index
    %c0_10 = arith.constant 0 : index
    %c0_11 = arith.constant 0 : index
    %7 = vector.load %arg2[%c1_9, %c0_10, %c0_11] : memref<3x128x128xbf16, #tpu.memory_space<vmem>>, vector<1x128x128xbf16>
    %8 = vector.shape_cast %7 : vector<1x128x128xbf16> to vector<128x128xbf16>
    %cst_12 = arith.constant dense<0.000000e+00> : vector<2x128xf32>
    %9 = tpu.matmul %6, %8, %cst_12 {dimension_numbers = #tpu.dot_dimension_numbers<[1], [0], [0], [1], [0, 0, 1, 1], [], []>} : vector<2x128xbf16>, vector<128x128xbf16>, vector<2x128xf32> -> vector<2x128xf32>
    %10 = arith.addf %4, %9 : vector<2x128xf32>
    %c2 = arith.constant 2 : index
    %c0_13 = arith.constant 0 : index
    %c0_14 = arith.constant 0 : index
    %c0_15 = arith.constant 0 : index
    %11 = vector.load %arg1[%c2, %c0_13, %c0_14, %c0_15] : memref<3x1x2x128xbf16, #tpu.memory_space<vmem>>, vector<1x1x2x128xbf16>
    %12 = vector.shape_cast %11 : vector<1x1x2x128xbf16> to vector<2x128xbf16>
    %c2_16 = arith.constant 2 : index
    %c0_17 = arith.constant 0 : index
    %c0_18 = arith.constant 0 : index
    %13 = vector.load %arg2[%c2_16, %c0_17, %c0_18] : memref<3x128x128xbf16, #tpu.memory_space<vmem>>, vector<1x128x128xbf16>
    %14 = vector.shape_cast %13 : vector<1x128x128xbf16> to vector<128x128xbf16>
    %cst_19 = arith.constant dense<0.000000e+00> : vector<2x128xf32>
    %15 = tpu.matmul %12, %14, %cst_19 {dimension_numbers = #tpu.dot_dimension_numbers<[1], [0], [0], [1], [0, 0, 1, 1], [], []>} : vector<2x128xbf16>, vector<128x128xbf16>, vector<2x128xf32> -> vector<2x128xf32>
    %16 = arith.addf %10, %15 : vector<2x128xf32>
    %c0_20 = arith.constant 0 : index
    %c0_21 = arith.constant 0 : index
    %c0_22 = arith.constant 0 : index
    %17 = vector.load %arg5[%c0_20, %c0_21, %c0_22] : memref<1x2x128xf32, #tpu.memory_space<vmem>>, vector<1x2x128xf32>
    %18 = vector.shape_cast %17 : vector<1x2x128xf32> to vector<2x128xf32>
    %c0_23 = arith.constant 0 : index
    %c0_24 = arith.constant 0 : index
    %19 = vector.load %arg3[%c0_23, %c0_24] : memref<1x128xf32, #tpu.memory_space<vmem>>, vector<1x128xf32>
    %20 = vector.broadcast %19 : vector<1x128xf32> to vector<2x128xf32>
    %21 = arith.mulf %16, %20 : vector<2x128xf32>
    %22 = arith.addf %18, %21 : vector<2x128xf32>
    %c0_25 = arith.constant 0 : index
    %c0_26 = arith.constant 0 : index
    %23 = vector.load %arg4[%c0_25, %c0_26] : memref<1x128xf32, #tpu.memory_space<vmem>>, vector<1x128xf32>
    %24 = vector.broadcast %23 : vector<1x128xf32> to vector<2x128xf32>
    %25 = arith.addf %22, %24 : vector<2x128xf32>
    %cst_27 = arith.constant 0.000000e+00 : f32
    %26 = vector.broadcast %cst_27 : f32 to vector<2x128xf32>
    %27 = arith.maximumf %25, %26 : vector<2x128xf32>
    %c0_28 = arith.constant 0 : index
    %c0_29 = arith.constant 0 : index
    %c0_30 = arith.constant 0 : index
    %28 = vector.load %arg6[%c0_28, %c0_29, %c0_30] : memref<1x2x128xf32, #tpu.memory_space<vmem>>, vector<1x2x128xf32>
    %29 = vector.shape_cast %28 : vector<1x2x128xf32> to vector<2x128xf32>
    %30 = vector.shape_cast %27 : vector<2x128xf32> to vector<1x2x128xf32>
    tpu.vector_store %arg6[%c0_28, %c0_29, %c0_30], %30 {strides = array<i32>} : memref<1x2x128xf32, #tpu.memory_space<vmem>>, vector<1x2x128xf32>,
    return
  }
  func.func @transform_0(%arg0: i32) -> (i32, i32, i32, i32) {
    %c0_i32 = arith.constant 0 : i32
    %c0_i32_0 = arith.constant 0 : i32
    %c0_i32_1 = arith.constant 0 : i32
    %c0_i32_2 = arith.constant 0 : i32
    return %c0_i32, %arg0, %c0_i32_0, %c0_i32_1 : i32, i32, i32, i32
  }
  func.func @transform_1(%arg0: i32) -> (i32, i32, i32) {
    %c0_i32 = arith.constant 0 : i32
    %c0_i32_0 = arith.constant 0 : i32
    %c0_i32_1 = arith.constant 0 : i32
    %c0_i32_2 = arith.constant 0 : i32
    return %c0_i32, %c0_i32_0, %c0_i32_1 : i32, i32, i32
  }
  func.func @transform_2(%arg0: i32) -> (i32, i32) {
    %c0_i32 = arith.constant 0 : i32
    %c0_i32_0 = arith.constant 0 : i32
    %c0_i32_1 = arith.constant 0 : i32
    return %c0_i32, %c0_i32_0 : i32, i32
  }
  func.func @transform_3(%arg0: i32) -> (i32, i32) {
    %c0_i32 = arith.constant 0 : i32
    %c0_i32_0 = arith.constant 0 : i32
    %c0_i32_1 = arith.constant 0 : i32
    return %c0_i32, %c0_i32_0 : i32, i32
  }
  func.func @transform_4(%arg0: i32) -> (i32, i32, i32) {
    %c0_i32 = arith.constant 0 : i32
    %c0_i32_0 = arith.constant 0 : i32
    %c0_i32_1 = arith.constant 0 : i32
    return %arg0, %c0_i32, %c0_i32_0 : i32, i32, i32
  }
  func.func @transform_5(%arg0: i32) -> (i32, i32, i32) {
    %c0_i32 = arith.constant 0 : i32
    %c0_i32_0 = arith.constant 0 : i32
    %c0_i32_1 = arith.constant 0 : i32
    return %arg0, %c0_i32, %c0_i32_0 : i32, i32, i32
  }
}

module attributes {stable_mosaic.version = 11 : i64} {
  func.func @_maxpool_kernel(%arg0: i32, %arg1: memref<8x64xf32, #tpu.memory_space<vmem>>, %arg2: memref<1x64xf32, #tpu.memory_space<vmem>>) attributes {dimension_semantics = [#tpu.dimension_semantics<parallel>], iteration_bounds = array<i64: 1>, scalar_prefetch = 0 : i64, scratch_operands = 0 : i64, tpu.core_type = #tpu.core_type<tc>, window_params = [{transform_indices = @transform_0, window_bounds = array<i64: 8, 64>}, {transform_indices = @transform_1, window_bounds = array<i64: 1, 64>}]} {
    %c0 = arith.constant 0 : index
    %c0_0 = arith.constant 0 : index
    %0 = vector.load %arg1[%c0, %c0_0] : memref<8x64xf32, #tpu.memory_space<vmem>>, vector<8x64xf32>
    %cst = arith.constant dense<0xFF800000> : vector<64xf32>
    %1 = vector.multi_reduction <maximumf>, %0, %cst [0] : vector<8x64xf32> to vector<64xf32>
    %2 = vector.shape_cast %1 : vector<64xf32> to vector<1x64xf32>
    %c0_1 = arith.constant 0 : index
    %c0_2 = arith.constant 0 : index
    %3 = vector.load %arg2[%c0_1, %c0_2] : memref<1x64xf32, #tpu.memory_space<vmem>>, vector<1x64xf32>
    tpu.vector_store %arg2[%c0_1, %c0_2], %2 {strides = array<i32>} : memref<1x64xf32, #tpu.memory_space<vmem>>, vector<1x64xf32>,
    return
  }
  func.func @transform_0(%arg0: i32) -> (i32, i32) {
    %c0_i32 = arith.constant 0 : i32
    %c0_i32_0 = arith.constant 0 : i32
    return %c0_i32, %arg0 : i32, i32
  }
  func.func @transform_1(%arg0: i32) -> (i32, i32) {
    %c0_i32 = arith.constant 0 : i32
    %c0_i32_0 = arith.constant 0 : i32
    return %c0_i32, %arg0 : i32, i32
  }
}

module attributes {stable_mosaic.version = 11 : i64} {
  func.func @_head_kernel(%arg0: i32, %arg1: memref<2x32xf32, #tpu.memory_space<vmem>>, %arg2: memref<32x8xf32, #tpu.memory_space<vmem>>, %arg3: memref<1x8xf32, #tpu.memory_space<vmem>>, %arg4: memref<8x2xf32, #tpu.memory_space<vmem>>, %arg5: memref<1x2xf32, #tpu.memory_space<vmem>>, %arg6: memref<2x2xf32, #tpu.memory_space<vmem>>) attributes {dimension_semantics = [#tpu.dimension_semantics<arbitrary>], iteration_bounds = array<i64: 1>, scalar_prefetch = 0 : i64, scratch_operands = 0 : i64, tpu.core_type = #tpu.core_type<tc>, window_params = [{pipeline_mode = #tpu.pipeline_mode<synchronous>, transform_indices = @transform_0, window_bounds = array<i64: 2, 32>}, {pipeline_mode = #tpu.pipeline_mode<synchronous>, transform_indices = @transform_1, window_bounds = array<i64: 32, 8>}, {pipeline_mode = #tpu.pipeline_mode<synchronous>, transform_indices = @transform_2, window_bounds = array<i64: 1, 8>}, {pipeline_mode = #tpu.pipeline_mode<synchronous>, transform_indices = @transform_3, window_bounds = array<i64: 8, 2>}, {pipeline_mode = #tpu.pipeline_mode<synchronous>, transform_indices = @transform_4, window_bounds = array<i64: 1, 2>}, {pipeline_mode = #tpu.pipeline_mode<synchronous>, transform_indices = @transform_5, window_bounds = array<i64: 2, 2>}]} {
    %c0 = arith.constant 0 : index
    %c0_0 = arith.constant 0 : index
    %0 = vector.load %arg1[%c0, %c0_0] : memref<2x32xf32, #tpu.memory_space<vmem>>, vector<2x32xf32>
    %c0_1 = arith.constant 0 : index
    %c0_2 = arith.constant 0 : index
    %1 = vector.load %arg2[%c0_1, %c0_2] : memref<32x8xf32, #tpu.memory_space<vmem>>, vector<32x8xf32>
    %cst = arith.constant dense<0.000000e+00> : vector<2x8xf32>
    %2 = tpu.matmul %0, %1, %cst {dimension_numbers = #tpu.dot_dimension_numbers<[1], [0], [0], [1], [0, 0, 1, 1], [], []>} : vector<2x32xf32>, vector<32x8xf32>, vector<2x8xf32> -> vector<2x8xf32>
    %c0_3 = arith.constant 0 : index
    %c0_4 = arith.constant 0 : index
    %3 = vector.load %arg3[%c0_3, %c0_4] : memref<1x8xf32, #tpu.memory_space<vmem>>, vector<1x8xf32>
    %4 = vector.broadcast %3 : vector<1x8xf32> to vector<2x8xf32>
    %5 = arith.addf %2, %4 : vector<2x8xf32>
    %cst_5 = arith.constant 0.000000e+00 : f32
    %6 = vector.broadcast %cst_5 : f32 to vector<2x8xf32>
    %7 = arith.maximumf %5, %6 : vector<2x8xf32>
    %c0_6 = arith.constant 0 : index
    %c0_7 = arith.constant 0 : index
    %8 = vector.load %arg4[%c0_6, %c0_7] : memref<8x2xf32, #tpu.memory_space<vmem>>, vector<8x2xf32>
    %cst_8 = arith.constant dense<0.000000e+00> : vector<2x2xf32>
    %9 = tpu.matmul %7, %8, %cst_8 {dimension_numbers = #tpu.dot_dimension_numbers<[1], [0], [0], [1], [0, 0, 1, 1], [], []>} : vector<2x8xf32>, vector<8x2xf32>, vector<2x2xf32> -> vector<2x2xf32>
    %c0_9 = arith.constant 0 : index
    %c0_10 = arith.constant 0 : index
    %10 = vector.load %arg5[%c0_9, %c0_10] : memref<1x2xf32, #tpu.memory_space<vmem>>, vector<1x2xf32>
    %11 = vector.broadcast %10 : vector<1x2xf32> to vector<2x2xf32>
    %12 = arith.addf %9, %11 : vector<2x2xf32>
    %cst_11 = arith.constant dense<0xFF800000> : vector<2xf32>
    %13 = vector.multi_reduction <maximumf>, %12, %cst_11 [1] : vector<2x2xf32> to vector<2xf32>
    %14 = vector.shape_cast %13 : vector<2xf32> to vector<2x1xf32>
    %15 = vector.broadcast %14 : vector<2x1xf32> to vector<2x2xf32>
    %16 = arith.subf %12, %15 : vector<2x2xf32>
    %17 = math.exp %16 : vector<2x2xf32>
    %cst_12 = arith.constant dense<0.000000e+00> : vector<2xf32>
    %18 = vector.multi_reduction <add>, %17, %cst_12 [1] : vector<2x2xf32> to vector<2xf32>
    %19 = vector.shape_cast %18 : vector<2xf32> to vector<2x1xf32>
    %20 = vector.broadcast %19 : vector<2x1xf32> to vector<2x2xf32>
    %21 = arith.divf %17, %20 : vector<2x2xf32>
    %c0_13 = arith.constant 0 : index
    %c0_14 = arith.constant 0 : index
    %22 = vector.load %arg6[%c0_13, %c0_14] : memref<2x2xf32, #tpu.memory_space<vmem>>, vector<2x2xf32>
    tpu.vector_store %arg6[%c0_13, %c0_14], %21 {strides = array<i32>} : memref<2x2xf32, #tpu.memory_space<vmem>>, vector<2x2xf32>,
    return
  }
  func.func @transform_0(%arg0: i32) -> (i32, i32) {
    %c0_i32 = arith.constant 0 : i32
    %c0_i32_0 = arith.constant 0 : i32
    %c0_i32_1 = arith.constant 0 : i32
    return %c0_i32, %c0_i32_0 : i32, i32
  }
  func.func @transform_1(%arg0: i32) -> (i32, i32) {
    %c0_i32 = arith.constant 0 : i32
    %c0_i32_0 = arith.constant 0 : i32
    %c0_i32_1 = arith.constant 0 : i32
    return %c0_i32, %c0_i32_0 : i32, i32
  }
  func.func @transform_2(%arg0: i32) -> (i32, i32) {
    %c0_i32 = arith.constant 0 : i32
    %c0_i32_0 = arith.constant 0 : i32
    %c0_i32_1 = arith.constant 0 : i32
    return %c0_i32, %c0_i32_0 : i32, i32
  }
  func.func @transform_3(%arg0: i32) -> (i32, i32) {
    %c0_i32 = arith.constant 0 : i32
    %c0_i32_0 = arith.constant 0 : i32
    %c0_i32_1 = arith.constant 0 : i32
    return %c0_i32, %c0_i32_0 : i32, i32
  }
  func.func @transform_4(%arg0: i32) -> (i32, i32) {
    %c0_i32 = arith.constant 0 : i32
    %c0_i32_0 = arith.constant 0 : i32
    %c0_i32_1 = arith.constant 0 : i32
    return %c0_i32, %c0_i32_0 : i32, i32
  }
  func.func @transform_5(%arg0: i32) -> (i32, i32) {
    %c0_i32 = arith.constant 0 : i32
    %c0_i32_0 = arith.constant 0 : i32
    %c0_i32_1 = arith.constant 0 : i32
    return %c0_i32, %c0_i32_0 : i32, i32
  }
}

</mosaic_0001>

<bundles_post_ra>
// kernel: network_forward.13
= control target key start
LH: loop header
LB: loop body
LE: loop exit
PB: predicated region body
PF: predicated region fallthrough
CT: control target
= control target key end

     0   :  { %s268_s6 = smov 0   ;;  %s289_s0 = inlined_call_operand.vmem [shape: f32[8,4096], index: 0, kind: input, shape index: {}]   ;;  %s290_s1 = inlined_call_operand.vmem [shape: f32[1,4096], index: 1, kind: output, shape index: {}]  }
   0x1 LB: > { %s230_s7 = sadd.s32 4294967295, %s255_s6   ;;  %p234_p0 = scmp.ge.s32.totalorder %s255_s6, 1  ;;  %s255_s6 = sphi %s268_s6, %s11_s6  }
   0x2   : > { %p88_p1 = scmp.lt.s32.totalorder %s255_s6, 9 }
   0x4   : > { %p89_p2 = pnand %p234_p0, %p88_p1 }
   0x5   : > { %s235_s8 = sshll.u32 (!%p89_p2), %s230_s7, 2  ;;  %v155_v8 = vlaneseq (!%p89_p2)  ;;  %v257_v12 = vmov (!%p89_p2), 1966171168  }
   0x6   : > { %92 = sbr.rel (%p89_p2) target bundleno = 39 (0x27), region = 24  ;;  %p108_p3 = scmp.lt.s32.totalorder (!%p89_p2), %s235_s8, 31  ;;  %v153_v13 = vunpack.c.l.s4 (!%p89_p2), %v257_v12 }
   0x7   : > { %v156_v19 = vshrl.u32 (!%p89_p2), %v155_v8, 7  ;;  %vm177_vm0 = vcmp.lt.s32.totalorder (!%p89_p2), %v155_v8, 512 }
   0x8   : > { %v154_v23 = vunpack.c.0.s8 (!%p89_p2), %v153_v13 }
   0xa   : > { %v157_v32 = vsub.s32 (!%p89_p2), %v154_v23, %v156_v19 }
   0xd   : > { %s292_s8 = smov (!%p108_p3, %s235_s8), 31 }
   0xe   : > { %s236_s9 = sshll.u32 %s292_s8, 3  ;;  %s116_s15 = scalar_lea.vmem %s290_s1, %s292_s8 }
   0xf   : > { %s111_s12 = scalar_lea.vmem %s289_s0, %s236_s9 }
  0x10   : > { %v118_v0 = vld [vmem:[%s111_s12] sm:$0xff]  ;;  %v119_v1 = vld [vmem:[%s111_s12 + $0x8] sm:$0xff]  ;;  %v120_v2 = vld [vmem:[%s111_s12 + $0x10] sm:$0xff] }
  0x11   : > { %v121_v3 = vld [vmem:[%s111_s12 + $0x18] sm:$0xff]  ;;  %v122_v4 = vrot.slane %v118_v0, 4  ;;  %v128_v5 = vrot.slane %v119_v1, 4  ;;  %v134_v6 = vrot.slane %v120_v2, 4 }
  0x12   : > { %v140_v7 = vrot.slane %v121_v3, 4 }
  0x13   : > { %v123_v9 = vmax.f32 %v118_v0, %v122_v4  ;;  %v129_v10 = vmax.f32 %v119_v1, %v128_v5  ;;  %v135_v11 = vmax.f32 %v120_v2, %v134_v6 }
  0x14   : > { %v141_v14 = vmax.f32 %v121_v3, %v140_v7 }
  0x15   : > { %v124_v15 = vrot.slane %v123_v9, 2  ;;  %v130_v16 = vrot.slane %v129_v10, 2  ;;  %v136_v17 = vrot.slane %v135_v11, 2 }
  0x16   : > { %v142_v18 = vrot.slane %v141_v14, 2 }
  0x17   : > { %v125_v20 = vmax.f32 %v123_v9, %v124_v15  ;;  %v131_v21 = vmax.f32 %v129_v10, %v130_v16  ;;  %v137_v22 = vmax.f32 %v135_v11, %v136_v17 }
  0x18   : > { %v143_v24 = vmax.f32 %v141_v14, %v142_v18 }
  0x19   : > { %v126_v25 = vrot.slane %v125_v20, 1  ;;  %v132_v26 = vrot.slane %v131_v21, 1  ;;  %v138_v27 = vrot.slane %v137_v22, 1 }
  0x1a   : > { %v144_v28 = vrot.slane %v143_v24, 1 }
  0x1b   : > { %v127_v29 = vmax.f32 %v125_v20, %v126_v25  ;;  %v133_v30 = vmax.f32 %v131_v21, %v132_v26  ;;  %v139_v31 = vmax.f32 %v137_v22, %v138_v27 }
  0x1c   : > { %v145_v33 = vmax.f32 %v143_v24, %v144_v28 }
  0x1d   : > { %v150_v34 = vcombine.low %v127_v29, %v133_v30 }
  0x1e   : > { %v151_v35 = vcombine.low %v139_v31, %v145_v33 }
  0x1f   : > { %v158_v36 = vrot.slane %v150_v34, %v157_v32 }
  0x20   : > { %v165_v37 = vrot.slane %v151_v35, %v157_v32 }
  0x22   : > { %v166_v38 = vcombine.low %v158_v36, %v165_v37 }
  0x24   : > { %v173_v39 = vrot.slane %v166_v38, %v157_v32 }
  0x26   : > { %179 = vst.msk [vmem:[%s116_s15] sm:$0xf] %vm177_vm0, %v173_v39 }
  0x27 PF: > { %s11_s6 = sadd.s32 1, %s255_s6  }
  0x28   : > { %p8_p4 = scmp.ge.s32.totalorder %s11_s6, 10  }
  0x2a   :  { %10 = sbr.rel (!%p8_p4) target bundleno = 1 (0x1), region = 54 }

// kernel: network_forward.12
= control target key start
LH: loop header
LB: loop body
LE: loop exit
PB: predicated region body
PF: predicated region fallthrough
CT: control target
= control target key end

     0   :  { %9 = vsyncpa [#allocation4], 0  ;;  %s11191_s0 = inlined_call_operand.vmem [shape: bf16[9,2,16,256], index: 0, kind: input, shape index: {}]   ;;  %s11192_s1 = inlined_call_operand.hbm [shape: bf16[9,256,1024], index: 1, kind: input, shape index: {}]   ;;  %s11193_s2 = inlined_call_operand.hbm [shape: f32[1,1024], index: 2, kind: input, shape index: {}]   ;;  %s11194_s3 = inlined_call_operand.hbm [shape: f32[1,1024], index: 3, kind: input, shape index: {}]   ;;  %s11195_s4 = inlined_call_operand.vmem [shape: f32[2,16,1024], index: 4, kind: output, shape index: {}]  }
   0x1   :  { %10 = vsyncpa [#allocation6], 0  ;;  %s10842_s15 = smov 0   ;;  %s10844_s16 = smov 0  }
   0x2   :  { %s10846_s17 = smov 0  }
   0x3 LB: > { %s10858_s18 = sadd.s32 4294967295, %s10810_s17   ;;  %s10861_s19 = sadd.s32 1, %s10810_s17   ;;  %s10810_s17 = sphi %s10846_s17, %s11210_s17   ;;  %s10806_s16 = sphi %s10844_s16, %s11209_s16   ;;  %s10802_s15 = sphi %s10842_s15, %s11208_s15  }
   0x4   : > { %s20_s20 = ssub.s32 %s10810_s17, %s10861_s19  ;;  %s23_s21 = sadd.s32 1, %s10806_s16 }
   0x5   : > { %p21_p0 = scmp.eq.s32.totalorder %s20_s20, 0  ;;  %p30_p1 = scmp.ne.s32.totalorder %s10806_s16, %s10802_s15 }
   0x6   : > { %p31_p2 = scmp.eq.s32.totalorder %s10810_s17, 0  ;;  %p9279_p3 = scmp.ge.s32.totalorder %s10810_s17, 1 }
   0x7   : > { %s10871_s22 = scalar_select %p21_p0, %s10806_s16, %s23_s21  }
   0x8   : > { %p10873_p4 = por %p31_p2, %p30_p1  ;;  %p136_p5 = scmp.lt.s32.totalorder %s10810_s17, 3 }
   0x9   : > { %p11196_p6 = scmp.eq.s32.totalorder %s10858_s18, 0  ;;  %s10812_s25 = smov [#allocation5]  }
   0xa   : > { %s11198_s23 = scalar_select %p10873_p4, 1, 0 }
   0xb   : > { %p10879_p7 = pnand %p9279_p3, %p136_p5  ;;  %s162_s26 = sshll.u32 %s10812_s25, 4  ;;  %s163_s26 = int_to_ptr.vmem [resolvable:$true] %s162_s26 }
   0xc   : > { %s10813_s27 = smov [#allocation3]   ;;  %s10814_s30 = smov [#allocation7]  }
   0xd   : > { %s11199_s24 = scalar_select %p10879_p7, 1, 0 }
   0xe   : > { %p10624_p8 = pneg %p10879_p7  ;;  %s148_s28 = sshll.u32 %s10813_s27, 4  ;;  %s10891_s28 = int_to_ptr.vmem [resolvable:$true] %s148_s28 }
   0xf   : > { %s10893_s5 = sshll.u32 %s10814_s30, 4  ;;  %s10696_s8 = scalar_lea.hbm %s11193_s2, 128  ;;  %s174_s5 = int_to_ptr.vmem [resolvable:$true] %s10893_s5 }
  0x10   : > { %p10887_p9 = pnand %p11196_p6, %p10624_p8  ;;  %p10697_p10 = scmp.ne.s32.totalorder %s11193_s2, %s10696_s8 }
  0x11   : > { %p10703_p0 = scmp.lt.u32.totalorder %s10696_s8, %s11193_s2 }
  0x12   : > { %p10903_p11 = pneg %p10887_p9 }
  0x14   : > { %p10699_p12 = pnand %p10903_p11, %p10697_p10 }
  0x16   : > { %p10700_p13 = pneg %p10699_p12 }
  0x18   : > { %p10705_p1 = pnand %p10703_p0, %p10700_p13 }
  0x1a   : > { %10708 = shalt.err (!%p10705_p1)
}
  0x1b   : > { %s10709_s14 = scalar_lea.vmem %s163_s26, 128  ;;  %p10717_p8 = scmp.lt.s32.totalorder %s163_s26, %s163_s26 }
  0x1c   : > { %p10710_p2 = scmp.ne.s32.totalorder %s163_s26, %s10709_s14  ;;  %p10718_p6 = scmp.lt.s32.totalorder %s10709_s14, %s10709_s14 }
  0x1e   : > { %p10712_p3 = pnand %p10710_p2, %p10903_p11  ;;  %p10719_p7 = por %p10718_p6, %p10717_p8 }
  0x20   : > { %p10713_p5 = pneg %p10712_p3 }
  0x22   : > { %p10720_p4 = pnand %p10719_p7, %p10713_p5 }
  0x24   : > { %10723 = shalt.err (!%p10720_p4)
}
  0x25   : > { %10630 = dma.hbm_to_vmem [thread:$0]  (!%p10887_p9), %s11193_s2, 128, %s163_s26, [#allocation6]  }
  0x26   : > { %s10724_s30 = scalar_lea.hbm %s11192_s1, 147456 }
  0x27   : > { %p10725_p10 = scmp.ne.s32.totalorder %s11192_s1, %s10724_s30  ;;  %p10731_p4 = scmp.lt.u32.totalorder %s10724_s30, %s11192_s1 }
  0x29   : > { %p10727_p12 = pnand %p10725_p10, %p10903_p11 }
  0x2b   : > { %p10728_p6 = pneg %p10727_p12 }
  0x2d   : > { %p10733_p7 = pnand %p10731_p4, %p10728_p6 }
  0x2f   : > { %10736 = shalt.err (!%p10733_p7)
}
  0x30   : > { %s10737_s26 = scalar_lea.vmem %s10891_s28, 147456  ;;  %p10745_p2 = scmp.lt.s32.totalorder %s10891_s28, %s10891_s28 }
  0x31   : > { %p10738_p13 = scmp.ne.s32.totalorder %s10891_s28, %s10737_s26  ;;  %p10746_p3 = scmp.lt.s32.totalorder %s10737_s26, %s10737_s26 }
  0x33   : > { %p10740_p0 = pnand %p10738_p13, %p10903_p11  ;;  %p10747_p5 = por %p10746_p3, %p10745_p2 }
  0x35   : > { %p10741_p1 = pneg %p10740_p0 }
  0x37   : > { %p10748_p8 = pnand %p10747_p5, %p10741_p1 }
  0x39   : > { %10751 = shalt.err (!%p10748_p8)
}
  0x3a   : > { %s10815_s10 = smov 512   ;;  %s10816_s12 = smov 32  }
  0x3b   : > { %10627 = dma.hbm_to_vmem [thread:$0]  (!%p10887_p9), %s11192_s1, 147456, %s10891_s28, [#allocation4], %s10815_s10, %s10815_s10, %s10816_s12  }
  0x3c   : > { %s10752_s25 = scalar_lea.hbm %s11194_s3, 128 }
  0x3d   : > { %p10753_p10 = scmp.ne.s32.totalorder %s11194_s3, %s10752_s25  ;;  %p10759_p4 = scmp.lt.u32.totalorder %s10752_s25, %s11194_s3 }
  0x3f   : > { %p10755_p12 = pnand %p10753_p10, %p10903_p11 }
  0x41   : > { %p10756_p6 = pneg %p10755_p12 }
  0x43   : > { %p10761_p7 = pnand %p10759_p4, %p10756_p6 }
  0x45   : > { %10764 = shalt.err (!%p10761_p7)
}
  0x46   : > { %s10765_s8 = scalar_lea.vmem %s174_s5, 128  ;;  %p10773_p2 = scmp.lt.s32.totalorder %s174_s5, %s174_s5 }
  0x47   : > { %p10766_p13 = scmp.ne.s32.totalorder %s174_s5, %s10765_s8  ;;  %p10774_p3 = scmp.lt.s32.totalorder %s10765_s8, %s10765_s8 }
  0x49   : > { %p10768_p0 = pnand %p10766_p13, %p10903_p11  ;;  %p10775_p5 = por %p10774_p3, %p10773_p2 }
  0x4b   : > { %p10769_p1 = pneg %p10768_p0 }
  0x4d   : > { %p10776_p8 = pnand %p10775_p5, %p10769_p1 }
  0x4f   : > { %10779 = shalt.err (!%p10776_p8)
}
  0x50   : > { %10633 = dma.hbm_to_vmem [thread:$0]  (!%p10887_p9), %s11194_s3, 128, %s174_s5, [#allocation6]  }
  0x51   : > { %p9283_p10 = scmp.ge.s32.totalorder %s10810_s17, 2 }
  0x52   : > { %p11202_p12 = scmp.ne.s32.totalorder (!%p9283_p10), %s11198_s23, 0 }
  0x53   : > { %180 = sbr.rel (%p9283_p10) target bundleno = 103 (0x67), region = 28 }
  0x5a   : > { %183 = sbr.rel (!%p11202_p12) target bundleno = 103 (0x67), region = 32  ;;  %s185_s11 = sand.u32 (%p11202_p12), 1, %s10806_s16  }
  0x5b   : > { %s10480_s26 = sshll.u32 (%p11202_p12), %s10810_s17, 4  ;;  %s10610_s10 = smul.u32 (%p11202_p12), 144, %s185_s11 }
  0x5c   : > { %s10969_s14 = scalar_lea.vmem (%p11202_p12), %s11191_s0, %s10480_s26 }
  0x5d   : > { %v252_v0 = vld [vmem:[%s10969_s14] sm:$0xff] (%p11202_p12)  ;;  %v254_v1 = vld [vmem:[%s10969_s14 + $0x8] sm:$0xff] (%p11202_p12)  ;;  %s187_s17 = scalar_lea.vmem (%p11202_p12), [#allocation2], %s10610_s10 }
  0x5e   : > { %v256_v2 = vld [vmem:[%s10969_s14 + $0x20] sm:$0xff] (%p11202_p12)  ;;  %v258_v3 = vld [vmem:[%s10969_s14 + $0x28] sm:$0xff] (%p11202_p12)  ;;  %253 = vst [vmem:[%s187_s17] sm:$0xff] (%p11202_p12), %v252_v0  ;;  %255 = vst [vmem:[%s187_s17 + $0x8] sm:$0xff] (%p11202_p12), %v254_v1 }
  0x5f   : > { %v260_v4 = vld [vmem:[%s10969_s14 + $0x40] sm:$0xff] (%p11202_p12)  ;;  %v262_v5 = vld [vmem:[%s10969_s14 + $0x48] sm:$0xff] (%p11202_p12)  ;;  %257 = vst [vmem:[%s187_s17 + $0x10] sm:$0xff] (%p11202_p12), %v256_v2  ;;  %259 = vst [vmem:[%s187_s17 + $0x18] sm:$0xff] (%p11202_p12), %v258_v3 }
  0x60   : > { %261 = vst [vmem:[%s187_s17 + $0x20] sm:$0xff] (%p11202_p12), %v260_v4  ;;  %263 = vst [vmem:[%s187_s17 + $0x28] sm:$0xff] (%p11202_p12), %v262_v5  ;;  %v264_v6 = vld [vmem:[%s10969_s14 + $0x60] sm:$0xff] (%p11202_p12)  ;;  %v266_v7 = vld [vmem:[%s10969_s14 + $0x68] sm:$0xff] (%p11202_p12) }
  0x61   : > { %v268_v8 = vld [vmem:[%s10969_s14 + $0x80] sm:$0xff]  ;;  %265 = vst [vmem:[%s187_s17 + $0x30] sm:$0xff] %v264_v6  ;;  %267 = vst [vmem:[%s187_s17 + $0x38] sm:$0xff] %v266_v7  ;;  %v270_v9 = vld [vmem:[%s10969_s14 + $0x88] sm:$0xff] }
  0x62   : > { %269 = vst [vmem:[%s187_s17 + $0x40] sm:$0xff] %v268_v8  ;;  %v272_v10 = vld [vmem:[%s10969_s14 + $0xa0] sm:$0xff]  ;;  %v274_v11 = vld [vmem:[%s10969_s14 + $0xa8] sm:$0xff]  ;;  %271 = vst [vmem:[%s187_s17 + $0x48] sm:$0xff] %v270_v9 }
  0x63   : > { %273 = vst [vmem:[%s187_s17 + $0x50] sm:$0xff] %v272_v10  ;;  %275 = vst [vmem:[%s187_s17 + $0x58] sm:$0xff] %v274_v11  ;;  %v276_v12 = vld [vmem:[%s10969_s14 + $0xc0] sm:$0xff]  ;;  %v278_v13 = vld [vmem:[%s10969_s14 + $0xc8] sm:$0xff] }
  0x64   : > { %v280_v14 = vld [vmem:[%s10969_s14 + $0xe0] sm:$0xff]  ;;  %277 = vst [vmem:[%s187_s17 + $0x60] sm:$0xff] %v276_v12  ;;  %279 = vst [vmem:[%s187_s17 + $0x68] sm:$0xff] %v278_v13  ;;  %v282_v15 = vld [vmem:[%s10969_s14 + $0xe8] sm:$0xff] }
  0x65   : > { %281 = vst [vmem:[%s187_s17 + $0x70] sm:$0xff] %v280_v14  ;;  %v284_v16 = vld [vmem:[%s10969_s14 + $0x100] sm:$0xff]  ;;  %v286_v17 = vld [vmem:[%s10969_s14 + $0x108] sm:$0xff]  ;;  %283 = vst [vmem:[%s187_s17 + $0x78] sm:$0xff] %v282_v15 }
  0x66   : > { %285 = vst [vmem:[%s187_s17 + $0x80] sm:$0xff] %v284_v16  ;;  %287 = vst [vmem:[%s187_s17 + $0x88] sm:$0xff] %v286_v17 }
  0x67 PF: > { %p11203_p9 = scmp.ne.s32.totalorder %s11199_s24, 0 }
  0x68   : > { %s299_s23 = sand.u32 (!%p11203_p9), 1, %s10802_s15   ;;  %p11204_p11 = scmp.eq.s32.totalorder (!%p11203_p9), %s10858_s18, 0 }
  0x69   : > { %296 = sbr.rel (%p11203_p9) target bundleno = 1495 (0x5d7), region = 70 }
  0x6a   : > { %s10611_s29 = smul.u32 (!%p11203_p9), 144, %s299_s23 }
  0x6c   : > { %s10992_s5 = scalar_lea.vmem (!%p11203_p9), [#allocation2], %s10611_s29 }
  0x70   : > { %10793 = dma.done.wait (%p11204_p11), [#allocation4], 147456   ;;  %p11205_p6 = pmov %p11204_p11 }
  0x72   : > { %10795 = vsyncadd (%p11205_p6), [#allocation4], 4294819840  ;;  %p11206_p4 = pmov %p11205_p6 }
  0x74   : > { %10797 = dma.done.wait (%p11206_p4), [#allocation6], 256   ;;  %p11207_p7 = pmov %p11206_p4 }
  0x75   : > { %v475_v18 = vld [vmem:[#allocation3 + $0x400] sm:$0xff]  ;;  %v476_v20 = vld [vmem:[#allocation3 + $0x408] sm:$0xff]  ;;  %p336_p13 = scmp.lt.s32.totalorder %s10858_s18, 1 }
  0x76   : > { %10799 = vsyncadd (%p11207_p7), [#allocation6], 4294967040  ;;  %v479_v19 = vld [vmem:[#allocation3 + $0x420] sm:$0xff]  ;;  %v480_v22 = vld [vmem:[#allocation3 + $0x428] sm:$0xff] }
  0x77   : > { %v9297_v21 = vcombine.high %v475_v18, %v479_v19  ;;  %v9296_v23 = vcombine.low %v475_v18, %v479_v19  ;;  %v483_v24 = vld [vmem:[#allocation3 + $0x440] sm:$0xff]  ;;  %v9299_v26 = vcombine.high %v476_v20, %v480_v22  ;;  %v9298_v27 = vcombine.low %v476_v20, %v480_v22  ;;  %v484_v29 = vld [vmem:[#allocation3 + $0x448] sm:$0xff]  ;;  %s11212_s18 = smov (!%p336_p13, %s10858_s18), 1 }
  0x78   : > { %v487_v25 = vld [vmem:[#allocation3 + $0x460] sm:$0xff]  ;;  %v488_v30 = vld [vmem:[#allocation3 + $0x468] sm:$0xff]  ;;  %s10481_s15 = sshll.u32 %s11212_s18, 7 }
  0x79   : > { %v9305_v28 = vcombine.high %v483_v24, %v487_v25  ;;  %v491_v31 = vld [vmem:[#allocation3 + $0x480] sm:$0xff]  ;;  %1253 = vmatprep.subr.bf16.mxu0 %v9297_v21  ;;  %v9307_v32 = vcombine.high %v484_v29, %v488_v30  ;;  %v492_v34 = vld [vmem:[#allocation3 + $0x488] sm:$0xff]  ;;  %1296 = vmatprep.subr.bf16.mxu1 %v9299_v26  ;;  %v9304_v36 = vcombine.low %v483_v24, %v487_v25  ;;  %s11151_s21 = scalar_lea.vmem %s11195_s4, %s10481_s15 }
  0x7a   : > { %v495_v33 = vld [vmem:[#allocation3 + $0x4a0] sm:$0xff]  ;;  %v496_v35 = vld [vmem:[#allocation3 + $0x4a8] sm:$0xff]  ;;  %1254 = vmatpush1.bf16.msra.mxu0 %v9296_v23  ;;  %1297 = vmatpush1.bf16.msra.mxu1 %v9298_v27  ;;  %v9306_v37 = vcombine.low %v484_v29, %v488_v30 }
  0x7b   : > { %1255 = vmatprep.subr.bf16.mxu0 %v9305_v28  ;;  %v9313_v38 = vcombine.high %v491_v31, %v495_v33  ;;  %1298 = vmatprep.subr.bf16.mxu1 %v9307_v32  ;;  %v9315_v39 = vcombine.high %v492_v34, %v496_v35  ;;  %v499_v40 = vld [vmem:[#allocation3 + $0x4c0] sm:$0xff]  ;;  %v500_v42 = vld [vmem:[#allocation3 + $0x4c8] sm:$0xff]  ;;  %v9312_v44 = vcombine.low %v491_v31, %v495_v33 }
  0x7c   : > { %v503_v41 = vld [vmem:[#allocation3 + $0x4e0] sm:$0xff]  ;;  %v504_v43 = vld [vmem:[#allocation3 + $0x4e8] sm:$0xff]  ;;  %v9314_v45 = vcombine.low %v492_v34, %v496_v35 }
  0x7d   : > { %v9321_v46 = vcombine.high %v499_v40, %v503_v41  ;;  %v9323_v47 = vcombine.high %v500_v42, %v504_v43  ;;  %v507_v48 = vld [vmem:[#allocation3 + $0x500] sm:$0xff]  ;;  %v508_v50 = vld [vmem:[#allocation3 + $0x508] sm:$0xff]  ;;  %v9320_v52 = vcombine.low %v499_v40, %v503_v41  ;;  %v9322_v53 = vcombine.low %v500_v42, %v504_v43 }
  0x7e   : > { %1256 = vmatpush1.bf16.msra.mxu0 %v9304_v36  ;;  %1299 = vmatpush1.bf16.msra.mxu1 %v9306_v37  ;;  %v511_v49 = vld [vmem:[#allocation3 + $0x520] sm:$0xff]  ;;  %v512_v51 = vld [vmem:[#allocation3 + $0x528] sm:$0xff] }
  0x7f   : > { %1257 = vmatprep.subr.bf16.mxu0 %v9313_v38  ;;  %1300 = vmatprep.subr.bf16.mxu1 %v9315_v39  ;;  %v9329_v54 = vcombine.high %v507_v48, %v511_v49  ;;  %v9331_v55 = vcombine.high %v508_v50, %v512_v51  ;;  %v515_v56 = vld [vmem:[#allocation3 + $0x540] sm:$0xff]  ;;  %v516_v58 = vld [vmem:[#allocation3 + $0x548] sm:$0xff]  ;;  %v9328_v60 = vcombine.low %v507_v48, %v511_v49 }
  0x80   : > { %v519_v57 = vld [vmem:[#allocation3 + $0x560] sm:$0xff]  ;;  %v520_v59 = vld [vmem:[#allocation3 + $0x568] sm:$0xff]  ;;  %v9330_v61 = vcombine.low %v508_v50, %v512_v51 }
  0x81   : > { %v9337_v62 = vcombine.high %v515_v56, %v519_v57  ;;  %v9339_v63 = vcombine.high %v516_v58, %v520_v59  ;;  %v523_v0 = vld [vmem:[#allocation3 + $0x580] sm:$0xff]  ;;  %v524_v2 = vld [vmem:[#allocation3 + $0x588] sm:$0xff]  ;;  %v9336_v4 = vcombine.low %v515_v56, %v519_v57  ;;  %v9338_v5 = vcombine.low %v516_v58, %v520_v59 }
  0x82   : > { %1258 = vmatpush1.bf16.msra.mxu0 %v9312_v44  ;;  %1301 = vmatpush1.bf16.msra.mxu1 %v9314_v45  ;;  %v527_v1 = vld [vmem:[#allocation3 + $0x5a0] sm:$0xff]  ;;  %v528_v3 = vld [vmem:[#allocation3 + $0x5a8] sm:$0xff] }
  0x83   : > { %1259 = vmatprep.subr.bf16.mxu0 %v9321_v46  ;;  %1302 = vmatprep.subr.bf16.mxu1 %v9323_v47  ;;  %v9345_v6 = vcombine.high %v523_v0, %v527_v1  ;;  %v9347_v7 = vcombine.high %v524_v2, %v528_v3  ;;  %v531_v8 = vld [vmem:[#allocation3 + $0x5c0] sm:$0xff]  ;;  %v532_v11 = vld [vmem:[#allocation3 + $0x5c8] sm:$0xff]  ;;  %v9344_v13 = vcombine.low %v523_v0, %v527_v1 }
  0x84   : > { %v535_v9 = vld [vmem:[#allocation3 + $0x5e0] sm:$0xff]  ;;  %v536_v12 = vld [vmem:[#allocation3 + $0x5e8] sm:$0xff]  ;;  %v9346_v14 = vcombine.low %v524_v2, %v528_v3 }
  0x85   : > { %v11003_v10 = vld [vmem:[%s10992_s5 + $0x14] ss:$8 sps:$4 sm:$0xff]   ;;  %v9353_v15 = vcombine.high %v531_v8, %v535_v9  ;;  %v9355_v16 = vcombine.high %v532_v11, %v536_v12  ;;  %v9352_v21 = vcombine.low %v531_v8, %v535_v9  ;;  %v9354_v22 = vcombine.low %v532_v11, %v536_v12 }
  0x86   : > { %1260 = vmatpush1.bf16.msra.mxu0 %v9320_v52  ;;  %1303 = vmatpush1.bf16.msra.mxu1 %v9322_v53  ;;  %v539_v17 = vld [vmem:[#allocation3 + $0x600] sm:$0xff]  ;;  %v540_v19 = vld [vmem:[#allocation3 + $0x608] sm:$0xff] }
  0x87   : > { %1261 = vmatprep.subr.bf16.mxu0 %v9329_v54  ;;  %1304 = vmatprep.subr.bf16.mxu1 %v9331_v55  ;;  %v543_v18 = vld [vmem:[#allocation3 + $0x620] sm:$0xff]  ;;  %v544_v20 = vld [vmem:[#allocation3 + $0x628] sm:$0xff] }
  0x88   : > { %1285 = vmatprep.mubr.bf16.mxu0 %v11003_v10  ;;  %1328 = vmatprep.mubr.bf16.mxu1 %v11003_v10  ;;  %v9361_v23 = vcombine.high %v539_v17, %v543_v18  ;;  %v9363_v24 = vcombine.high %v540_v19, %v544_v20  ;;  %v547_v25 = vld [vmem:[#allocation3 + $0x640] sm:$0xff]  ;;  %v548_v27 = vld [vmem:[#allocation3 + $0x648] sm:$0xff]  ;;  %v9360_v29 = vcombine.low %v539_v17, %v543_v18  ;;  %v477_v18 = vld [vmem:[#allocation3 + $0x410] sm:$0xff] }
  0x89   : > { %v551_v26 = vld [vmem:[#allocation3 + $0x660] sm:$0xff]  ;;  %v552_v28 = vld [vmem:[#allocation3 + $0x668] sm:$0xff]  ;;  %v9362_v30 = vcombine.low %v540_v19, %v544_v20  ;;  %v481_v19 = vld [vmem:[#allocation3 + $0x430] sm:$0xff] }
  0x8a   : > { %1262 = vmatpush1.bf16.msra.mxu0 %v9328_v60  ;;  %1305 = vmatpush1.bf16.msra.mxu1 %v9330_v61  ;;  %v9369_v31 = vcombine.high %v547_v25, %v551_v26  ;;  %v9371_v32 = vcombine.high %v548_v27, %v552_v28  ;;  %v555_v33 = vld [vmem:[#allocation3 + $0x680] sm:$0xff]  ;;  %v556_v35 = vld [vmem:[#allocation3 + $0x688] sm:$0xff]  ;;  %v9368_v37 = vcombine.low %v547_v25, %v551_v26  ;;  %v478_v20 = vld [vmem:[#allocation3 + $0x418] sm:$0xff] }
  0x8b   : > { %1263 = vmatprep.subr.bf16.mxu0 %v9337_v62  ;;  %1306 = vmatprep.subr.bf16.mxu1 %v9339_v63  ;;  %v559_v34 = vld [vmem:[#allocation3 + $0x6a0] sm:$0xff]  ;;  %v560_v36 = vld [vmem:[#allocation3 + $0x6a8] sm:$0xff]  ;;  %v9370_v38 = vcombine.low %v548_v27, %v552_v28  ;;  %v485_v26 = vld [vmem:[#allocation3 + $0x450] sm:$0xff] }
  0x8c   : > { %v9377_v39 = vcombine.high %v555_v33, %v559_v34  ;;  %v9379_v40 = vcombine.high %v556_v35, %v560_v36  ;;  %v563_v41 = vld [vmem:[#allocation3 + $0x6c0] sm:$0xff]  ;;  %v564_v43 = vld [vmem:[#allocation3 + $0x6c8] sm:$0xff]  ;;  %v9376_v45 = vcombine.low %v555_v33, %v559_v34  ;;  %v9378_v46 = vcombine.low %v556_v35, %v560_v36  ;;  %v489_v27 = vld [vmem:[#allocation3 + $0x470] sm:$0xff] }
  0x8d   : > { %v567_v42 = vld [vmem:[#allocation3 + $0x6e0] sm:$0xff]  ;;  %v568_v44 = vld [vmem:[#allocation3 + $0x6e8] sm:$0xff]  ;;  %v9309_v33 = vcombine.high %v485_v26, %v489_v27  ;;  %v493_v35 = vld [vmem:[#allocation3 + $0x490] sm:$0xff] }
  0x8e   : > { %1264 = vmatpush1.bf16.msra.mxu0 %v9336_v4  ;;  %1307 = vmatpush1.bf16.msra.mxu1 %v9338_v5  ;;  %v9385_v47 = vcombine.high %v563_v41, %v567_v42  ;;  %v9387_v48 = vcombine.high %v564_v43, %v568_v44  ;;  %v571_v49 = vld [vmem:[#allocation3 + $0x700] sm:$0xff]  ;;  %v572_v51 = vld [vmem:[#allocation3 + $0x708] sm:$0xff]  ;;  %v9384_v53 = vcombine.low %v563_v41, %v567_v42  ;;  %v497_v36 = vld [vmem:[#allocation3 + $0x4b0] sm:$0xff] }
  0x8f   : > { %1265 = vmatprep.subr.bf16.mxu0 %v9345_v6  ;;  %1308 = vmatprep.subr.bf16.mxu1 %v9347_v7  ;;  %v575_v50 = vld [vmem:[#allocation3 + $0x720] sm:$0xff]  ;;  %v576_v52 = vld [vmem:[#allocation3 + $0x728] sm:$0xff]  ;;  %v9386_v54 = vcombine.low %v564_v43, %v568_v44  ;;  %v9317_v41 = vcombine.high %v493_v35, %v497_v36  ;;  %v501_v42 = vld [vmem:[#allocation3 + $0x4d0] sm:$0xff] }
  0x90   : > { %v9393_v55 = vcombine.high %v571_v49, %v575_v50  ;;  %v9395_v56 = vcombine.high %v572_v51, %v576_v52  ;;  %v579_v57 = vld [vmem:[#allocation3 + $0x740] sm:$0xff]  ;;  %v580_v59 = vld [vmem:[#allocation3 + $0x748] sm:$0xff]  ;;  %v9392_v61 = vcombine.low %v571_v49, %v575_v50  ;;  %v9394_v62 = vcombine.low %v572_v51, %v576_v52  ;;  %v505_v43 = vld [vmem:[#allocation3 + $0x4f0] sm:$0xff] }
  0x91   : > { %v583_v58 = vld [vmem:[#allocation3 + $0x760] sm:$0xff]  ;;  %v584_v60 = vld [vmem:[#allocation3 + $0x768] sm:$0xff]  ;;  %v502_v44 = vld [vmem:[#allocation3 + $0x4d8] sm:$0xff]  ;;  %v9325_v49 = vcombine.high %v501_v42, %v505_v43 }
  0x92   : > { %1266 = vmatpush1.bf16.msra.mxu0 %v9344_v13  ;;  %1309 = vmatpush1.bf16.msra.mxu1 %v9346_v14  ;;  %v9401_v63 = vcombine.high %v579_v57, %v583_v58  ;;  %v9403_v0 = vcombine.high %v580_v59, %v584_v60  ;;  %v587_v1 = vld [vmem:[#allocation3 + $0x780] sm:$0xff]  ;;  %v588_v3 = vld [vmem:[#allocation3 + $0x788] sm:$0xff]  ;;  %v9400_v5 = vcombine.low %v579_v57, %v583_v58  ;;  %v509_v50 = vld [vmem:[#allocation3 + $0x510] sm:$0xff] }
  0x93   : > { %1267 = vmatprep.subr.bf16.mxu0 %v9353_v15  ;;  %1310 = vmatprep.subr.bf16.mxu1 %v9355_v16  ;;  %v591_v2 = vld [vmem:[#allocation3 + $0x7a0] sm:$0xff]  ;;  %v592_v4 = vld [vmem:[#allocation3 + $0x7a8] sm:$0xff]  ;;  %v9402_v6 = vcombine.low %v580_v59, %v584_v60  ;;  %v513_v52 = vld [vmem:[#allocation3 + $0x530] sm:$0xff] }
  0x94   : > { %v9409_v7 = vcombine.high %v587_v1, %v591_v2  ;;  %v9411_v8 = vcombine.high %v588_v3, %v592_v4  ;;  %v595_v9 = vld [vmem:[#allocation3 + $0x7c0] sm:$0xff]  ;;  %v596_v12 = vld [vmem:[#allocation3 + $0x7c8] sm:$0xff]  ;;  %v9408_v14 = vcombine.low %v587_v1, %v591_v2  ;;  %v9410_v15 = vcombine.low %v588_v3, %v592_v4  ;;  %v517_v58 = vld [vmem:[#allocation3 + $0x550] sm:$0xff] }
  0x95   : > { %v599_v11 = vld [vmem:[#allocation3 + $0x7e0] sm:$0xff]  ;;  %v600_v13 = vld [vmem:[#allocation3 + $0x7e8] sm:$0xff]  ;;  %v9333_v57 = vcombine.high %v509_v50, %v513_v52  ;;  %v521_v59 = vld [vmem:[#allocation3 + $0x570] sm:$0xff] }
  0x96   : > { %1268 = vmatpush1.bf16.msra.mxu0 %v9352_v21  ;;  %1311 = vmatpush1.bf16.msra.mxu1 %v9354_v22  ;;  %v9417_v16 = vcombine.high %v595_v9, %v599_v11  ;;  %v9419_v17 = vcombine.high %v596_v12, %v600_v13  ;;  %v482_v21 = vld [vmem:[#allocation3 + $0x438] sm:$0xff]  ;;  %v9416_v22 = vcombine.low %v595_v9, %v599_v11  ;;  %v525_v2 = vld [vmem:[#allocation3 + $0x590] sm:$0xff] }
  0x97   : > { %1269 = vmatprep.subr.bf16.mxu0 %v9361_v23  ;;  %1312 = vmatprep.subr.bf16.mxu1 %v9363_v24  ;;  %v9418_v23 = vcombine.low %v596_v12, %v600_v13  ;;  %v9301_v24 = vcombine.high %v477_v18, %v481_v19  ;;  %v9303_v25 = vcombine.high %v478_v20, %v482_v21  ;;  %v11008_v28 = vld [vmem:[%s10992_s5 + $0x10] ss:$8 sps:$4 sm:$0xff]  }
  0x98   : > { %v518_v60 = vld [vmem:[#allocation3 + $0x558] sm:$0xff]  ;;  %v529_v3 = vld [vmem:[#allocation3 + $0x5b0] sm:$0xff] }
  0x99   : > { %v526_v4 = vld [vmem:[#allocation3 + $0x598] sm:$0xff]  ;;  %v533_v11 = vld [vmem:[#allocation3 + $0x5d0] sm:$0xff] }
  0x9a   : > { %1270 = vmatpush1.bf16.msra.mxu0 %v9360_v29  ;;  %1313 = vmatpush1.bf16.msra.mxu1 %v9362_v30  ;;  %v486_v29 = vld [vmem:[#allocation3 + $0x458] sm:$0xff]  ;;  %v537_v12 = vld [vmem:[#allocation3 + $0x5f0] sm:$0xff] }
  0x9b   : > { %1271 = vmatprep.subr.bf16.mxu0 %v9369_v31  ;;  %1314 = vmatprep.subr.bf16.mxu1 %v9371_v32  ;;  %v490_v30 = vld [vmem:[#allocation3 + $0x478] sm:$0xff]  ;;  %v9300_v31 = vcombine.low %v477_v18, %v481_v19  ;;  %v9302_v32 = vcombine.low %v478_v20, %v482_v21  ;;  %v541_v19 = vld [vmem:[#allocation3 + $0x610] sm:$0xff] }
  0x9c   : > { %v9311_v34 = vcombine.high %v486_v29, %v490_v30  ;;  %v534_v13 = vld [vmem:[#allocation3 + $0x5d8] sm:$0xff]  ;;  %v545_v20 = vld [vmem:[#allocation3 + $0x630] sm:$0xff] }
  0x9d   : > { %v542_v21 = vld [vmem:[#allocation3 + $0x618] sm:$0xff] }
  0x9e   : > { %1272 = vmatpush1.bf16.msra.mxu0 %v9368_v37  ;;  %1315 = vmatpush1.bf16.msra.mxu1 %v9370_v38  ;;  %v494_v37 = vld [vmem:[#allocation3 + $0x498] sm:$0xff] }
  0x9f   : > { %1273 = vmatprep.subr.bf16.mxu0 %v9377_v39  ;;  %1316 = vmatprep.subr.bf16.mxu1 %v9379_v40  ;;  %v498_v38 = vld [vmem:[#allocation3 + $0x4b8] sm:$0xff]  ;;  %v9308_v39 = vcombine.low %v485_v26, %v489_v27  ;;  %v9310_v40 = vcombine.low %v486_v29, %v490_v30  ;;  %v549_v27 = vld [vmem:[#allocation3 + $0x650] sm:$0xff] }
  0xa0   : > { %v553_v29 = vld [vmem:[#allocation3 + $0x670] sm:$0xff]  ;;  %v550_v30 = vld [vmem:[#allocation3 + $0x658] sm:$0xff] }
  0xa2   : > { %1274 = vmatpush1.bf16.msra.mxu0 %v9376_v45  ;;  %1317 = vmatpush1.bf16.msra.mxu1 %v9378_v46  ;;  %v9319_v45 = vcombine.high %v494_v37, %v498_v38  ;;  %v506_v46 = vld [vmem:[#allocation3 + $0x4f8] sm:$0xff] }
  0xa3   : > { %1275 = vmatprep.subr.bf16.mxu0 %v9385_v47  ;;  %1318 = vmatprep.subr.bf16.mxu1 %v9387_v48  ;;  %v9316_v47 = vcombine.low %v493_v35, %v497_v36  ;;  %v9318_v48 = vcombine.low %v494_v37, %v498_v38  ;;  %v9327_v51 = vcombine.high %v502_v44, %v506_v46  ;;  %v557_v36 = vld [vmem:[#allocation3 + $0x690] sm:$0xff]  ;;  %v558_v38 = vld [vmem:[#allocation3 + $0x698] sm:$0xff] }
  0xa4   : > { %v561_v37 = vld [vmem:[#allocation3 + $0x6b0] sm:$0xff] }
  0xa6   : > { %1276 = vmatpush1.bf16.msra.mxu0 %v9384_v53  ;;  %1319 = vmatpush1.bf16.msra.mxu1 %v9386_v54  ;;  %v510_v53 = vld [vmem:[#allocation3 + $0x518] sm:$0xff] }
  0xa7   : > { %1277 = vmatprep.subr.bf16.mxu0 %v9393_v55  ;;  %1320 = vmatprep.subr.bf16.mxu1 %v9395_v56  ;;  %v514_v54 = vld [vmem:[#allocation3 + $0x538] sm:$0xff]  ;;  %v9324_v55 = vcombine.low %v501_v42, %v505_v43  ;;  %v9326_v56 = vcombine.low %v502_v44, %v506_v46  ;;  %v9381_v42 = vcombine.high %v557_v36, %v561_v37  ;;  %v565_v44 = vld [vmem:[#allocation3 + $0x6d0] sm:$0xff] }
  0xa8   : > { %v566_v46 = vld [vmem:[#allocation3 + $0x6d8] sm:$0xff] }
  0xaa   : > { %1278 = vmatpush1.bf16.msra.mxu0 %v9392_v61  ;;  %1321 = vmatpush1.bf16.msra.mxu1 %v9394_v62  ;;  %v522_v61 = vld [vmem:[#allocation3 + $0x578] sm:$0xff]  ;;  %v9332_v62 = vcombine.low %v509_v50, %v513_v52  ;;  %v573_v52 = vld [vmem:[#allocation3 + $0x710] sm:$0xff] }
  0xab   : > { %1279 = vmatprep.subr.bf16.mxu0 %v9401_v63  ;;  %1322 = vmatprep.subr.bf16.mxu1 %v9403_v0  ;;  %v9334_v63 = vcombine.low %v510_v53, %v514_v54  ;;  %v9341_v0 = vcombine.high %v517_v58, %v521_v59  ;;  %v9343_v1 = vcombine.high %v518_v60, %v522_v61 }
  0xae   : > { %1280 = vmatpush1.bf16.msra.mxu0 %v9400_v5  ;;  %1323 = vmatpush1.bf16.msra.mxu1 %v9402_v6  ;;  %v530_v5 = vld [vmem:[#allocation3 + $0x5b8] sm:$0xff]  ;;  %v9340_v6 = vcombine.low %v517_v58, %v521_v59  ;;  %v581_v59 = vld [vmem:[#allocation3 + $0x750] sm:$0xff] }
  0xaf   : > { %1281 = vmatprep.subr.bf16.mxu0 %v9409_v7  ;;  %1324 = vmatprep.subr.bf16.mxu1 %v9411_v8  ;;  %v9342_v7 = vcombine.low %v518_v60, %v522_v61  ;;  %v9349_v8 = vcombine.high %v525_v2, %v529_v3  ;;  %v9351_v9 = vcombine.high %v526_v4, %v530_v5  ;;  %v585_v60 = vld [vmem:[#allocation3 + $0x770] sm:$0xff]  ;;  %v582_v61 = vld [vmem:[#allocation3 + $0x758] sm:$0xff] }
  0xb2   : > { %1282 = vmatpush1.bf16.msra.mxu0 %v9408_v14  ;;  %1325 = vmatpush1.bf16.msra.mxu1 %v9410_v15  ;;  %v538_v14 = vld [vmem:[#allocation3 + $0x5f8] sm:$0xff]  ;;  %v9348_v15 = vcombine.low %v525_v2, %v529_v3  ;;  %v589_v3 = vld [vmem:[#allocation3 + $0x790] sm:$0xff] }
  0xb3   : > { %1283 = vmatprep.subr.bf16.mxu0 %v9417_v16  ;;  %1326 = vmatprep.subr.bf16.mxu1 %v9419_v17  ;;  %v9350_v16 = vcombine.low %v526_v4, %v530_v5  ;;  %v9357_v17 = vcombine.high %v533_v11, %v537_v12  ;;  %v9359_v18 = vcombine.high %v534_v13, %v538_v14  ;;  %v593_v4 = vld [vmem:[#allocation3 + $0x7b0] sm:$0xff]  ;;  %v590_v5 = vld [vmem:[#allocation3 + $0x798] sm:$0xff] }
  0xb6   : > { %1284 = vmatpush1.bf16.msra.mxu0 %v9416_v22  ;;  %1327 = vmatpush1.bf16.msra.mxu1 %v9418_v23  ;;  %v546_v22 = vld [vmem:[#allocation3 + $0x638] sm:$0xff]  ;;  %v9356_v23 = vcombine.low %v533_v11, %v537_v12  ;;  %v597_v12 = vld [vmem:[#allocation3 + $0x7d0] sm:$0xff] }
  0xb7   : > { %1339 = vmatprep.subr.bf16.mxu0 %v9301_v24  ;;  %1382 = vmatprep.subr.bf16.mxu1 %v9303_v25  ;;  %v9358_v24 = vcombine.low %v534_v13, %v538_v14  ;;  %v9365_v25 = vcombine.high %v541_v19, %v545_v20  ;;  %v9367_v26 = vcombine.high %v542_v21, %v546_v22  ;;  %v601_v13 = vld [vmem:[#allocation3 + $0x7f0] sm:$0xff]  ;;  %v598_v14 = vld [vmem:[#allocation3 + $0x7d8] sm:$0xff] }
  0xb9   : > { %1286 = vmatmul.mubr.bf16.vlgmr.msra.gmra.mrb[0].mxu0 %v11008_v28  ;;  %1329 = vmatmul.mubr.bf16.vlgmr.msra.gmra.mrb[0].mxu1 %v11008_v28 }
  0xba   : > { %1340 = vmatpush1.bf16.msra.mxu0 %v9300_v31  ;;  %1383 = vmatpush1.bf16.msra.mxu1 %v9302_v32  ;;  %v554_v31 = vld [vmem:[#allocation3 + $0x678] sm:$0xff]  ;;  %v9364_v32 = vcombine.low %v541_v19, %v545_v20  ;;  %v343_v20 = vld [vmem:[#allocation3] sm:$0xff] }
  0xbb   : > { %1341 = vmatprep.subr.bf16.mxu0 %v9309_v33  ;;  %1384 = vmatprep.subr.bf16.mxu1 %v9311_v34  ;;  %v9366_v33 = vcombine.low %v542_v21, %v546_v22  ;;  %v9373_v34 = vcombine.high %v549_v27, %v553_v29  ;;  %v9375_v35 = vcombine.high %v550_v30, %v554_v31  ;;  %v347_v21 = vld [vmem:[#allocation3 + $0x20] sm:$0xff]  ;;  %v344_v22 = vld [vmem:[#allocation3 + $0x8] sm:$0xff] }
  0xbc   : > { %1371 = vmatprep.mubr.bf16.mxu0 %v11003_v10  ;;  %1414 = vmatprep.mubr.bf16.mxu1 %v11003_v10  ;;  %v9335_v10 = vcombine.high %v510_v53, %v514_v54  ;;  %v577_v53 = vld [vmem:[#allocation3 + $0x730] sm:$0xff]  ;;  %v574_v54 = vld [vmem:[#allocation3 + $0x718] sm:$0xff] }
  0xbe   : > { %1342 = vmatpush1.bf16.msra.mxu0 %v9308_v39  ;;  %1385 = vmatpush1.bf16.msra.mxu1 %v9310_v40  ;;  %v562_v39 = vld [vmem:[#allocation3 + $0x6b8] sm:$0xff]  ;;  %v9372_v40 = vcombine.low %v549_v27, %v553_v29  ;;  %v351_v29 = vld [vmem:[#allocation3 + $0x40] sm:$0xff] }
  0xbf   : > { %1343 = vmatprep.subr.bf16.mxu0 %v9317_v41  ;;  %1386 = vmatprep.subr.bf16.mxu1 %v9319_v45  ;;  %v9374_v41 = vcombine.low %v550_v30, %v554_v31  ;;  %v9383_v43 = vcombine.high %v558_v38, %v562_v39  ;;  %v569_v45 = vld [vmem:[#allocation3 + $0x6f0] sm:$0xff]  ;;  %v355_v30 = vld [vmem:[#allocation3 + $0x60] sm:$0xff]  ;;  %v352_v31 = vld [vmem:[#allocation3 + $0x48] sm:$0xff] }
  0xc0   : > { %v9389_v50 = vcombine.high %v565_v44, %v569_v45 }
  0xc2   : > { %1344 = vmatpush1.bf16.msra.mxu0 %v9316_v47  ;;  %1387 = vmatpush1.bf16.msra.mxu1 %v9318_v48  ;;  %v570_v47 = vld [vmem:[#allocation3 + $0x6f8] sm:$0xff]  ;;  %v9380_v48 = vcombine.low %v557_v36, %v561_v37  ;;  %v359_v37 = vld [vmem:[#allocation3 + $0x80] sm:$0xff] }
  0xc3   : > { %1345 = vmatprep.subr.bf16.mxu0 %v9325_v49  ;;  %1388 = vmatprep.subr.bf16.mxu1 %v9327_v51  ;;  %v9382_v49 = vcombine.low %v558_v38, %v562_v39  ;;  %v9391_v51 = vcombine.high %v566_v46, %v570_v47  ;;  %v363_v38 = vld [vmem:[#allocation3 + $0xa0] sm:$0xff] }
  0xc4   : > { %v11015_v39 = vld [vmem:[%s10992_s5 + $0x4] ss:$8 sps:$4 sm:$0xff]  }
  0xc6   : > { %1346 = vmatpush1.bf16.msra.mxu0 %v9324_v55  ;;  %1389 = vmatpush1.bf16.msra.mxu1 %v9326_v56  ;;  %v578_v55 = vld [vmem:[#allocation3 + $0x738] sm:$0xff]  ;;  %v9388_v56 = vcombine.low %v565_v44, %v569_v45  ;;  %v9443_v44 = vcombine.high %v359_v37, %v363_v38 }
  0xc7   : > { %1347 = vmatprep.subr.bf16.mxu0 %v9333_v57  ;;  %1390 = vmatprep.subr.bf16.mxu1 %v9335_v10  ;;  %v9390_v57 = vcombine.low %v566_v46, %v570_v47  ;;  %v9397_v10 = vcombine.high %v573_v52, %v577_v53  ;;  %v9399_v58 = vcombine.high %v574_v54, %v578_v55  ;;  %v367_v46 = vld [vmem:[#allocation3 + $0xc0] sm:$0xff] }
  0xc8   : > { %v371_v47 = vld [vmem:[#allocation3 + $0xe0] sm:$0xff] }
  0xca   : > { %1348 = vmatpush1.bf16.msra.mxu0 %v9332_v62  ;;  %1391 = vmatpush1.bf16.msra.mxu1 %v9334_v63  ;;  %v586_v62 = vld [vmem:[#allocation3 + $0x778] sm:$0xff]  ;;  %v9396_v63 = vcombine.low %v573_v52, %v577_v53  ;;  %v375_v53 = vld [vmem:[#allocation3 + $0x100] sm:$0xff] }
  0xcb   : > { %1349 = vmatprep.subr.bf16.mxu0 %v9341_v0  ;;  %1392 = vmatprep.subr.bf16.mxu1 %v9343_v1  ;;  %v9398_v0 = vcombine.low %v574_v54, %v578_v55  ;;  %v9405_v1 = vcombine.high %v581_v59, %v585_v60  ;;  %v9407_v2 = vcombine.high %v582_v61, %v586_v62  ;;  %v379_v54 = vld [vmem:[#allocation3 + $0x120] sm:$0xff]  ;;  %v376_v55 = vld [vmem:[#allocation3 + $0x108] sm:$0xff] }
  0xce   : > { %1350 = vmatpush1.bf16.msra.mxu0 %v9340_v6  ;;  %1393 = vmatpush1.bf16.msra.mxu1 %v9342_v7  ;;  %v594_v6 = vld [vmem:[#allocation3 + $0x7b8] sm:$0xff]  ;;  %v9404_v7 = vcombine.low %v581_v59, %v585_v60  ;;  %v383_v60 = vld [vmem:[#allocation3 + $0x140] sm:$0xff] }
  0xcf   : > { %1351 = vmatprep.subr.bf16.mxu0 %v9349_v8  ;;  %1394 = vmatprep.subr.bf16.mxu1 %v9351_v9  ;;  %v9406_v8 = vcombine.low %v582_v61, %v586_v62  ;;  %v9413_v9 = vcombine.high %v589_v3, %v593_v4  ;;  %v9415_v11 = vcombine.high %v590_v5, %v594_v6  ;;  %v387_v61 = vld [vmem:[#allocation3 + $0x160] sm:$0xff]  ;;  %v384_v62 = vld [vmem:[#allocation3 + $0x148] sm:$0xff] }
  0xd2   : > { %1352 = vmatpush1.bf16.msra.mxu0 %v9348_v15  ;;  %1395 = vmatpush1.bf16.msra.mxu1 %v9350_v16  ;;  %v602_v15 = vld [vmem:[#allocation3 + $0x7f8] sm:$0xff]  ;;  %v9412_v16 = vcombine.low %v589_v3, %v593_v4  ;;  %v391_v4 = vld [vmem:[#allocation3 + $0x180] sm:$0xff] }
  0xd3   : > { %1353 = vmatprep.subr.bf16.mxu0 %v9357_v17  ;;  %1396 = vmatprep.subr.bf16.mxu1 %v9359_v18  ;;  %v9414_v17 = vcombine.low %v590_v5, %v594_v6  ;;  %v9421_v18 = vcombine.high %v597_v12, %v601_v13  ;;  %v9423_v19 = vcombine.high %v598_v14, %v602_v15  ;;  %v395_v5 = vld [vmem:[#allocation3 + $0x1a0] sm:$0xff]  ;;  %v392_v6 = vld [vmem:[#allocation3 + $0x188] sm:$0xff] }
  0xd6   : > { %1354 = vmatpush1.bf16.msra.mxu0 %v9356_v23  ;;  %1397 = vmatpush1.bf16.msra.mxu1 %v9358_v24  ;;  %v348_v23 = vld [vmem:[#allocation3 + $0x28] sm:$0xff]  ;;  %v9420_v24 = vcombine.low %v597_v12, %v601_v13  ;;  %v399_v13 = vld [vmem:[#allocation3 + $0x1c0] sm:$0xff] }
  0xd7   : > { %1355 = vmatprep.subr.bf16.mxu0 %v9365_v25  ;;  %1398 = vmatprep.subr.bf16.mxu1 %v9367_v26  ;;  %v9422_v25 = vcombine.low %v598_v14, %v602_v15  ;;  %v9427_v26 = vcombine.high %v343_v20, %v347_v21  ;;  %v9429_v27 = vcombine.high %v344_v22, %v348_v23  ;;  %v403_v14 = vld [vmem:[#allocation3 + $0x1e0] sm:$0xff]  ;;  %v400_v15 = vld [vmem:[#allocation3 + $0x1c8] sm:$0xff] }
  0xda   : > { %1356 = vmatpush1.bf16.msra.mxu0 %v9364_v32  ;;  %1399 = vmatpush1.bf16.msra.mxu1 %v9366_v33  ;;  %v356_v32 = vld [vmem:[#allocation3 + $0x68] sm:$0xff]  ;;  %v9426_v33 = vcombine.low %v343_v20, %v347_v21  ;;  %v407_v21 = vld [vmem:[#allocation3 + $0x200] sm:$0xff] }
  0xdb   : > { %1357 = vmatprep.subr.bf16.mxu0 %v9373_v34  ;;  %1400 = vmatprep.subr.bf16.mxu1 %v9375_v35  ;;  %v9428_v34 = vcombine.low %v344_v22, %v348_v23  ;;  %v9435_v35 = vcombine.high %v351_v29, %v355_v30  ;;  %v9437_v36 = vcombine.high %v352_v31, %v356_v32  ;;  %v411_v22 = vld [vmem:[#allocation3 + $0x220] sm:$0xff]  ;;  %v408_v23 = vld [vmem:[#allocation3 + $0x208] sm:$0xff] }
  0xde   : > { %1358 = vmatpush1.bf16.msra.mxu0 %v9372_v40  ;;  %1401 = vmatpush1.bf16.msra.mxu1 %v9374_v41  ;;  %v360_v40 = vld [vmem:[#allocation3 + $0x88] sm:$0xff] }
  0xdf   : > { %1359 = vmatprep.subr.bf16.mxu0 %v9381_v42  ;;  %1402 = vmatprep.subr.bf16.mxu1 %v9383_v43  ;;  %v364_v41 = vld [vmem:[#allocation3 + $0xa8] sm:$0xff]  ;;  %v9434_v42 = vcombine.low %v351_v29, %v355_v30  ;;  %v9436_v43 = vcombine.low %v352_v31, %v356_v32  ;;  %v415_v30 = vld [vmem:[#allocation3 + $0x240] sm:$0xff] }
  0xe0   : > { %v9445_v45 = vcombine.high %v360_v40, %v364_v41  ;;  %v419_v31 = vld [vmem:[#allocation3 + $0x260] sm:$0xff]  ;;  %v416_v32 = vld [vmem:[#allocation3 + $0x248] sm:$0xff] }
  0xe2   : > { %1360 = vmatpush1.bf16.msra.mxu0 %v9380_v48  ;;  %1403 = vmatpush1.bf16.msra.mxu1 %v9382_v49  ;;  %v368_v48 = vld [vmem:[#allocation3 + $0xc8] sm:$0xff] }
  0xe3   : > { %1361 = vmatprep.subr.bf16.mxu0 %v9389_v50  ;;  %1404 = vmatprep.subr.bf16.mxu1 %v9391_v51  ;;  %v372_v49 = vld [vmem:[#allocation3 + $0xe8] sm:$0xff]  ;;  %v9442_v50 = vcombine.low %v359_v37, %v363_v38  ;;  %v9451_v51 = vcombine.high %v367_v46, %v371_v47  ;;  %v423_v38 = vld [vmem:[#allocation3 + $0x280] sm:$0xff] }
  0xe4   : > { %v9453_v52 = vcombine.high %v368_v48, %v372_v49 }
  0xe6   : > { %1362 = vmatpush1.bf16.msra.mxu0 %v9388_v56  ;;  %1405 = vmatpush1.bf16.msra.mxu1 %v9390_v57  ;;  %v380_v56 = vld [vmem:[#allocation3 + $0x128] sm:$0xff]  ;;  %v9450_v57 = vcombine.low %v367_v46, %v371_v47  ;;  %v431_v47 = vld [vmem:[#allocation3 + $0x2c0] sm:$0xff] }
  0xe7   : > { %1363 = vmatprep.subr.bf16.mxu0 %v9397_v10  ;;  %1406 = vmatprep.subr.bf16.mxu1 %v9399_v58  ;;  %v9452_v10 = vcombine.low %v368_v48, %v372_v49  ;;  %v9459_v58 = vcombine.high %v375_v53, %v379_v54  ;;  %v9461_v59 = vcombine.high %v376_v55, %v380_v56  ;;  %v435_v48 = vld [vmem:[#allocation3 + $0x2e0] sm:$0xff]  ;;  %v432_v49 = vld [vmem:[#allocation3 + $0x2c8] sm:$0xff] }
  0xea   : > { %1364 = vmatpush1.bf16.msra.mxu0 %v9396_v63  ;;  %1407 = vmatpush1.bf16.msra.mxu1 %v9398_v0  ;;  %v388_v63 = vld [vmem:[#allocation3 + $0x168] sm:$0xff]  ;;  %v9458_v0 = vcombine.low %v375_v53, %v379_v54  ;;  %v439_v54 = vld [vmem:[#allocation3 + $0x300] sm:$0xff] }
  0xeb   : > { %1365 = vmatprep.subr.bf16.mxu0 %v9405_v1  ;;  %1408 = vmatprep.subr.bf16.mxu1 %v9407_v2  ;;  %v9460_v1 = vcombine.low %v376_v55, %v380_v56  ;;  %v9467_v2 = vcombine.high %v383_v60, %v387_v61  ;;  %v9469_v3 = vcombine.high %v384_v62, %v388_v63  ;;  %v443_v55 = vld [vmem:[#allocation3 + $0x320] sm:$0xff]  ;;  %v440_v56 = vld [vmem:[#allocation3 + $0x308] sm:$0xff] }
  0xee   : > { %1366 = vmatpush1.bf16.msra.mxu0 %v9404_v7  ;;  %1409 = vmatpush1.bf16.msra.mxu1 %v9406_v8  ;;  %v396_v7 = vld [vmem:[#allocation3 + $0x1a8] sm:$0xff]  ;;  %v9466_v8 = vcombine.low %v383_v60, %v387_v61  ;;  %v447_v61 = vld [vmem:[#allocation3 + $0x340] sm:$0xff] }
  0xef   : > { %1367 = vmatprep.subr.bf16.mxu0 %v9413_v9  ;;  %1410 = vmatprep.subr.bf16.mxu1 %v9415_v11  ;;  %v9468_v9 = vcombine.low %v384_v62, %v388_v63  ;;  %v9475_v11 = vcombine.high %v391_v4, %v395_v5  ;;  %v9477_v12 = vcombine.high %v392_v6, %v396_v7  ;;  %v451_v62 = vld [vmem:[#allocation3 + $0x360] sm:$0xff]  ;;  %v448_v63 = vld [vmem:[#allocation3 + $0x348] sm:$0xff] }
  0xf2   : > { %1368 = vmatpush1.bf16.msra.mxu0 %v9412_v16  ;;  %1411 = vmatpush1.bf16.msra.mxu1 %v9414_v17  ;;  %v404_v16 = vld [vmem:[#allocation3 + $0x1e8] sm:$0xff]  ;;  %v9474_v17 = vcombine.low %v391_v4, %v395_v5  ;;  %v455_v5 = vld [vmem:[#allocation3 + $0x380] sm:$0xff] }
  0xf3   : > { %1369 = vmatprep.subr.bf16.mxu0 %v9421_v18  ;;  %1412 = vmatprep.subr.bf16.mxu1 %v9423_v19  ;;  %v9476_v18 = vcombine.low %v392_v6, %v396_v7  ;;  %v9483_v19 = vcombine.high %v399_v13, %v403_v14  ;;  %v9485_v20 = vcombine.high %v400_v15, %v404_v16  ;;  %v459_v6 = vld [vmem:[#allocation3 + $0x3a0] sm:$0xff]  ;;  %v456_v7 = vld [vmem:[#allocation3 + $0x388] sm:$0xff] }
  0xf6   : > { %1370 = vmatpush1.bf16.msra.mxu0 %v9420_v24  ;;  %1413 = vmatpush1.bf16.msra.mxu1 %v9422_v25  ;;  %v412_v24 = vld [vmem:[#allocation3 + $0x228] sm:$0xff]  ;;  %v9482_v25 = vcombine.low %v399_v13, %v403_v14  ;;  %v463_v14 = vld [vmem:[#allocation3 + $0x3c0] sm:$0xff] }
  0xf7   : > { %2075 = vmatprep.subr.bf16.mxu0 %v9427_v26  ;;  %2118 = vmatprep.subr.bf16.mxu1 %v9429_v27  ;;  %v9484_v26 = vcombine.low %v400_v15, %v404_v16  ;;  %v9491_v27 = vcombine.high %v407_v21, %v411_v22  ;;  %v9493_v29 = vcombine.high %v408_v23, %v412_v24  ;;  %v467_v15 = vld [vmem:[#allocation3 + $0x3e0] sm:$0xff]  ;;  %v464_v16 = vld [vmem:[#allocation3 + $0x3c8] sm:$0xff] }
  0xf9   : > { %1372 = vmatmul.mubr.bf16.vlgmr.msra.gmra.mrb[4].mxu0 %v11008_v28  ;;  %1415 = vmatmul.mubr.bf16.vlgmr.msra.gmra.mrb[4].mxu1 %v11008_v28  ;;  %v9444_v28 = vcombine.low %v360_v40, %v364_v41  ;;  %v427_v40 = vld [vmem:[#allocation3 + $0x2a0] sm:$0xff]  ;;  %v424_v41 = vld [vmem:[#allocation3 + $0x288] sm:$0xff] }
  0xfa   : > { %2076 = vmatpush1.bf16.msra.mxu0 %v9426_v33  ;;  %2119 = vmatpush1.bf16.msra.mxu1 %v9428_v34  ;;  %v420_v33 = vld [vmem:[#allocation3 + $0x268] sm:$0xff]  ;;  %v9490_v34 = vcombine.low %v407_v21, %v411_v22  ;;  %v345_v22 = vld [vmem:[#allocation3 + $0x10] sm:$0xff] }
  0xfb   : > { %2077 = vmatprep.subr.bf16.mxu0 %v9435_v35  ;;  %2120 = vmatprep.subr.bf16.mxu1 %v9437_v36  ;;  %v9492_v35 = vcombine.low %v408_v23, %v412_v24  ;;  %v9499_v36 = vcombine.high %v415_v30, %v419_v31  ;;  %v9501_v37 = vcombine.high %v416_v32, %v420_v33  ;;  %v349_v23 = vld [vmem:[#allocation3 + $0x30] sm:$0xff]  ;;  %v346_v24 = vld [vmem:[#allocation3 + $0x18] sm:$0xff] }
  0xfc   : > { %2107 = vmatprep.mubr.bf16.mxu0 %v11015_v39  ;;  %2150 = vmatprep.mubr.bf16.mxu1 %v11015_v39 }
  0xfe   : > { %2078 = vmatpush1.bf16.msra.mxu0 %v9434_v42  ;;  %2121 = vmatpush1.bf16.msra.mxu1 %v9436_v43  ;;  %v428_v42 = vld [vmem:[#allocation3 + $0x2a8] sm:$0xff]  ;;  %v9498_v43 = vcombine.low %v415_v30, %v419_v31  ;;  %v353_v31 = vld [vmem:[#allocation3 + $0x50] sm:$0xff] }
  0xff   : > { %2079 = vmatprep.subr.bf16.mxu0 %v9443_v44  ;;  %2122 = vmatprep.subr.bf16.mxu1 %v9445_v45  ;;  %v9500_v44 = vcombine.low %v416_v32, %v420_v33  ;;  %v9507_v45 = vcombine.high %v423_v38, %v427_v40  ;;  %v9509_v46 = vcombine.high %v424_v41, %v428_v42  ;;  %v357_v32 = vld [vmem:[#allocation3 + $0x70] sm:$0xff] }
 0x100   : > { %v11022_v33 = vld [vmem:[%s10992_s5] ss:$8 sps:$4 sm:$0xff]  }
 0x102   : > { %2080 = vmatpush1.bf16.msra.mxu0 %v9442_v50  ;;  %2123 = vmatpush1.bf16.msra.mxu1 %v9444_v28  ;;  %v436_v50 = vld [vmem:[#allocation3 + $0x2e8] sm:$0xff]  ;;  %v9506_v28 = vcombine.low %v423_v38, %v427_v40  ;;  %v9439_v38 = vcombine.high %v353_v31, %v357_v32 }
 0x103   : > { %2081 = vmatprep.subr.bf16.mxu0 %v9451_v51  ;;  %2124 = vmatprep.subr.bf16.mxu1 %v9453_v52  ;;  %v9508_v51 = vcombine.low %v424_v41, %v428_v42  ;;  %v9515_v52 = vcombine.high %v431_v47, %v435_v48  ;;  %v9517_v53 = vcombine.high %v432_v49, %v436_v50  ;;  %v361_v41 = vld [vmem:[#allocation3 + $0x90] sm:$0xff] }
 0x104   : > { %v365_v42 = vld [vmem:[#allocation3 + $0xb0] sm:$0xff] }
 0x106   : > { %2082 = vmatpush1.bf16.msra.mxu0 %v9450_v57  ;;  %2125 = vmatpush1.bf16.msra.mxu1 %v9452_v10  ;;  %v444_v57 = vld [vmem:[#allocation3 + $0x328] sm:$0xff]  ;;  %v9514_v10 = vcombine.low %v431_v47, %v435_v48  ;;  %v9447_v47 = vcombine.high %v361_v41, %v365_v42 }
 0x107   : > { %2083 = vmatprep.subr.bf16.mxu0 %v9459_v58  ;;  %2126 = vmatprep.subr.bf16.mxu1 %v9461_v59  ;;  %v9516_v58 = vcombine.low %v432_v49, %v436_v50  ;;  %v9523_v59 = vcombine.high %v439_v54, %v443_v55  ;;  %v9525_v60 = vcombine.high %v440_v56, %v444_v57  ;;  %v369_v49 = vld [vmem:[#allocation3 + $0xd0] sm:$0xff] }
 0x108   : > { %v373_v50 = vld [vmem:[#allocation3 + $0xf0] sm:$0xff] }
 0x10a   : > { %2084 = vmatpush1.bf16.msra.mxu0 %v9458_v0  ;;  %2127 = vmatpush1.bf16.msra.mxu1 %v9460_v1  ;;  %v452_v0 = vld [vmem:[#allocation3 + $0x368] sm:$0xff]  ;;  %v9522_v1 = vcombine.low %v439_v54, %v443_v55  ;;  %v9455_v54 = vcombine.high %v369_v49, %v373_v50 }
 0x10b   : > { %2085 = vmatprep.subr.bf16.mxu0 %v9467_v2  ;;  %2128 = vmatprep.subr.bf16.mxu1 %v9469_v3  ;;  %v9524_v2 = vcombine.low %v440_v56, %v444_v57  ;;  %v9531_v3 = vcombine.high %v447_v61, %v451_v62  ;;  %v9533_v4 = vcombine.high %v448_v63, %v452_v0  ;;  %v377_v56 = vld [vmem:[#allocation3 + $0x110] sm:$0xff] }
 0x10c   : > { %v381_v57 = vld [vmem:[#allocation3 + $0x130] sm:$0xff] }
 0x10e   : > { %2086 = vmatpush1.bf16.msra.mxu0 %v9466_v8  ;;  %2129 = vmatpush1.bf16.msra.mxu1 %v9468_v9  ;;  %v460_v8 = vld [vmem:[#allocation3 + $0x3a8] sm:$0xff]  ;;  %v9530_v9 = vcombine.low %v447_v61, %v451_v62  ;;  %v9463_v61 = vcombine.high %v377_v56, %v381_v57  ;;  %v385_v62 = vld [vmem:[#allocation3 + $0x150] sm:$0xff] }
 0x10f   : > { %2087 = vmatprep.subr.bf16.mxu0 %v9475_v11  ;;  %2130 = vmatprep.subr.bf16.mxu1 %v9477_v12  ;;  %v9532_v11 = vcombine.low %v448_v63, %v452_v0  ;;  %v9539_v12 = vcombine.high %v455_v5, %v459_v6  ;;  %v9541_v13 = vcombine.high %v456_v7, %v460_v8  ;;  %v389_v63 = vld [vmem:[#allocation3 + $0x170] sm:$0xff]  ;;  %v386_v0 = vld [vmem:[#allocation3 + $0x158] sm:$0xff] }
 0x112   : > { %2088 = vmatpush1.bf16.msra.mxu0 %v9474_v17  ;;  %2131 = vmatpush1.bf16.msra.mxu1 %v9476_v18  ;;  %v468_v17 = vld [vmem:[#allocation3 + $0x3e8] sm:$0xff]  ;;  %v9538_v18 = vcombine.low %v455_v5, %v459_v6  ;;  %v393_v6 = vld [vmem:[#allocation3 + $0x190] sm:$0xff] }
 0x113   : > { %2089 = vmatprep.subr.bf16.mxu0 %v9483_v19  ;;  %2132 = vmatprep.subr.bf16.mxu1 %v9485_v20  ;;  %v9540_v19 = vcombine.low %v456_v7, %v460_v8  ;;  %v9547_v20 = vcombine.high %v463_v14, %v467_v15  ;;  %v9549_v21 = vcombine.high %v464_v16, %v468_v17  ;;  %v397_v7 = vld [vmem:[#allocation3 + $0x1b0] sm:$0xff]  ;;  %v394_v8 = vld [vmem:[#allocation3 + $0x198] sm:$0xff] }
 0x116   : > { %2090 = vmatpush1.bf16.msra.mxu0 %v9482_v25  ;;  %2133 = vmatpush1.bf16.msra.mxu1 %v9484_v26  ;;  %v350_v25 = vld [vmem:[#allocation3 + $0x38] sm:$0xff]  ;;  %v9546_v26 = vcombine.low %v463_v14, %v467_v15  ;;  %v401_v15 = vld [vmem:[#allocation3 + $0x1d0] sm:$0xff] }
 0x117   : > { %2091 = vmatprep.subr.bf16.mxu0 %v9491_v27  ;;  %2134 = vmatprep.subr.bf16.mxu1 %v9493_v29  ;;  %v9548_v27 = vcombine.low %v464_v16, %v468_v17  ;;  %v9431_v29 = vcombine.high %v345_v22, %v349_v23  ;;  %v9433_v30 = vcombine.high %v346_v24, %v350_v25  ;;  %v405_v16 = vld [vmem:[#allocation3 + $0x1f0] sm:$0xff]  ;;  %v402_v17 = vld [vmem:[#allocation3 + $0x1d8] sm:$0xff] }
 0x11a   : > { %2092 = vmatpush1.bf16.msra.mxu0 %v9490_v34  ;;  %2135 = vmatpush1.bf16.msra.mxu1 %v9492_v35  ;;  %v354_v34 = vld [vmem:[#allocation3 + $0x58] sm:$0xff] }
 0x11b   : > { %2093 = vmatprep.subr.bf16.mxu0 %v9499_v36  ;;  %2136 = vmatprep.subr.bf16.mxu1 %v9501_v37  ;;  %v358_v35 = vld [vmem:[#allocation3 + $0x78] sm:$0xff]  ;;  %v9430_v36 = vcombine.low %v345_v22, %v349_v23  ;;  %v9432_v37 = vcombine.low %v346_v24, %v350_v25  ;;  %v409_v23 = vld [vmem:[#allocation3 + $0x210] sm:$0xff] }
 0x11c   : > { %v9441_v40 = vcombine.high %v354_v34, %v358_v35  ;;  %v413_v24 = vld [vmem:[#allocation3 + $0x230] sm:$0xff]  ;;  %v410_v25 = vld [vmem:[#allocation3 + $0x218] sm:$0xff] }
 0x11e   : > { %2094 = vmatpush1.bf16.msra.mxu0 %v9498_v43  ;;  %2137 = vmatpush1.bf16.msra.mxu1 %v9500_v44  ;;  %v362_v43 = vld [vmem:[#allocation3 + $0x98] sm:$0xff] }
 0x11f   : > { %2095 = vmatprep.subr.bf16.mxu0 %v9507_v45  ;;  %2138 = vmatprep.subr.bf16.mxu1 %v9509_v46  ;;  %v366_v44 = vld [vmem:[#allocation3 + $0xb8] sm:$0xff]  ;;  %v9438_v45 = vcombine.low %v353_v31, %v357_v32  ;;  %v9440_v46 = vcombine.low %v354_v34, %v358_v35  ;;  %v417_v32 = vld [vmem:[#allocation3 + $0x250] sm:$0xff] }
 0x120   : > { %v9449_v48 = vcombine.high %v362_v43, %v366_v44  ;;  %v421_v34 = vld [vmem:[#allocation3 + $0x270] sm:$0xff]  ;;  %v418_v35 = vld [vmem:[#allocation3 + $0x258] sm:$0xff] }
 0x122   : > { %2096 = vmatpush1.bf16.msra.mxu0 %v9506_v28  ;;  %2139 = vmatpush1.bf16.msra.mxu1 %v9508_v51  ;;  %v370_v28 = vld [vmem:[#allocation3 + $0xd8] sm:$0xff] }
 0x123   : > { %2097 = vmatprep.subr.bf16.mxu0 %v9515_v52  ;;  %2140 = vmatprep.subr.bf16.mxu1 %v9517_v53  ;;  %v374_v51 = vld [vmem:[#allocation3 + $0xf8] sm:$0xff]  ;;  %v9446_v52 = vcombine.low %v361_v41, %v365_v42  ;;  %v9448_v53 = vcombine.low %v362_v43, %v366_v44  ;;  %v425_v42 = vld [vmem:[#allocation3 + $0x290] sm:$0xff] }
 0x124   : > { %v9457_v55 = vcombine.high %v370_v28, %v374_v51  ;;  %v429_v43 = vld [vmem:[#allocation3 + $0x2b0] sm:$0xff]  ;;  %v426_v44 = vld [vmem:[#allocation3 + $0x298] sm:$0xff] }
 0x126   : > { %2098 = vmatpush1.bf16.msra.mxu0 %v9514_v10  ;;  %2141 = vmatpush1.bf16.msra.mxu1 %v9516_v58  ;;  %v378_v10 = vld [vmem:[#allocation3 + $0x118] sm:$0xff] }
 0x127   : > { %2099 = vmatprep.subr.bf16.mxu0 %v9523_v59  ;;  %2142 = vmatprep.subr.bf16.mxu1 %v9525_v60  ;;  %v382_v58 = vld [vmem:[#allocation3 + $0x138] sm:$0xff]  ;;  %v9454_v59 = vcombine.low %v369_v49, %v373_v50  ;;  %v9456_v60 = vcombine.low %v370_v28, %v374_v51  ;;  %v433_v50 = vld [vmem:[#allocation3 + $0x2d0] sm:$0xff] }
 0x128   : > { %v437_v28 = vld [vmem:[#allocation3 + $0x2f0] sm:$0xff]  ;;  %v434_v51 = vld [vmem:[#allocation3 + $0x2d8] sm:$0xff] }
 0x12a   : > { %2100 = vmatpush1.bf16.msra.mxu0 %v9522_v1  ;;  %2143 = vmatpush1.bf16.msra.mxu1 %v9524_v2  ;;  %v390_v1 = vld [vmem:[#allocation3 + $0x178] sm:$0xff]  ;;  %v9462_v2 = vcombine.low %v377_v56, %v381_v57  ;;  %v441_v57 = vld [vmem:[#allocation3 + $0x310] sm:$0xff] }
 0x12b   : > { %2101 = vmatprep.subr.bf16.mxu0 %v9531_v3  ;;  %2144 = vmatprep.subr.bf16.mxu1 %v9533_v4  ;;  %v9464_v3 = vcombine.low %v378_v10, %v382_v58  ;;  %v9471_v4 = vcombine.high %v385_v62, %v389_v63  ;;  %v9473_v5 = vcombine.high %v386_v0, %v390_v1 }
 0x12e   : > { %2102 = vmatpush1.bf16.msra.mxu0 %v9530_v9  ;;  %2145 = vmatpush1.bf16.msra.mxu1 %v9532_v11  ;;  %v398_v9 = vld [vmem:[#allocation3 + $0x1b8] sm:$0xff]  ;;  %v9470_v11 = vcombine.low %v385_v62, %v389_v63  ;;  %v449_v63 = vld [vmem:[#allocation3 + $0x350] sm:$0xff] }
 0x12f   : > { %2103 = vmatprep.subr.bf16.mxu0 %v9539_v12  ;;  %2146 = vmatprep.subr.bf16.mxu1 %v9541_v13  ;;  %v9472_v12 = vcombine.low %v386_v0, %v390_v1  ;;  %v9479_v13 = vcombine.high %v393_v6, %v397_v7  ;;  %v9481_v14 = vcombine.high %v394_v8, %v398_v9  ;;  %v453_v0 = vld [vmem:[#allocation3 + $0x370] sm:$0xff]  ;;  %v450_v1 = vld [vmem:[#allocation3 + $0x358] sm:$0xff] }
 0x132   : > { %2104 = vmatpush1.bf16.msra.mxu0 %v9538_v18  ;;  %2147 = vmatpush1.bf16.msra.mxu1 %v9540_v19  ;;  %v406_v18 = vld [vmem:[#allocation3 + $0x1f8] sm:$0xff]  ;;  %v9478_v19 = vcombine.low %v393_v6, %v397_v7  ;;  %v457_v7 = vld [vmem:[#allocation3 + $0x390] sm:$0xff] }
 0x133   : > { %2105 = vmatprep.subr.bf16.mxu0 %v9547_v20  ;;  %2148 = vmatprep.subr.bf16.mxu1 %v9549_v21  ;;  %v9480_v20 = vcombine.low %v394_v8, %v398_v9  ;;  %v9487_v21 = vcombine.high %v401_v15, %v405_v16  ;;  %v9489_v22 = vcombine.high %v402_v17, %v406_v18  ;;  %v461_v8 = vld [vmem:[#allocation3 + $0x3b0] sm:$0xff]  ;;  %v458_v9 = vld [vmem:[#allocation3 + $0x398] sm:$0xff] }
 0x136   : > { %2106 = vmatpush1.bf16.msra.mxu0 %v9546_v26  ;;  %2149 = vmatpush1.bf16.msra.mxu1 %v9548_v27  ;;  %v414_v26 = vld [vmem:[#allocation3 + $0x238] sm:$0xff]  ;;  %v9486_v27 = vcombine.low %v401_v15, %v405_v16  ;;  %v465_v16 = vld [vmem:[#allocation3 + $0x3d0] sm:$0xff] }
 0x137   : > { %2161 = vmatprep.subr.bf16.mxu0 %v9431_v29  ;;  %2204 = vmatprep.subr.bf16.mxu1 %v9433_v30  ;;  %v9488_v29 = vcombine.low %v402_v17, %v406_v18  ;;  %v9495_v30 = vcombine.high %v409_v23, %v413_v24  ;;  %v9497_v31 = vcombine.high %v410_v25, %v414_v26  ;;  %v469_v17 = vld [vmem:[#allocation3 + $0x3f0] sm:$0xff]  ;;  %v466_v18 = vld [vmem:[#allocation3 + $0x3d8] sm:$0xff] }
 0x139   : > { %2108 = vmatmul.mubr.bf16.vlgmr.msra.gmra.mrb[0].mxu0 %v11022_v33  ;;  %2151 = vmatmul.mubr.bf16.vlgmr.msra.gmra.mrb[0].mxu1 %v11022_v33 }
 0x13a   : > { %2162 = vmatpush1.bf16.msra.mxu0 %v9430_v36  ;;  %2205 = vmatpush1.bf16.msra.mxu1 %v9432_v37  ;;  %v422_v36 = vld [vmem:[#allocation3 + $0x278] sm:$0xff]  ;;  %v9494_v37 = vcombine.low %v409_v23, %v413_v24  ;;  %v2251_v24 = vld [vmem:[#allocation3 + $0x800] sm:$0xff] }
 0x13b   : > { %2163 = vmatprep.subr.bf16.mxu0 %v9439_v38  ;;  %2206 = vmatprep.subr.bf16.mxu1 %v9441_v40  ;;  %v9496_v38 = vcombine.low %v410_v25, %v414_v26  ;;  %v9503_v40 = vcombine.high %v417_v32, %v421_v34  ;;  %v9505_v41 = vcombine.high %v418_v35, %v422_v36  ;;  %v2255_v25 = vld [vmem:[#allocation3 + $0x820] sm:$0xff]  ;;  %v2252_v26 = vld [vmem:[#allocation3 + $0x808] sm:$0xff] }
 0x13c   : > { %2193 = vmatprep.mubr.bf16.mxu0 %v11015_v39  ;;  %2236 = vmatprep.mubr.bf16.mxu1 %v11015_v39  ;;  %v9465_v39 = vcombine.high %v378_v10, %v382_v58  ;;  %v445_v10 = vld [vmem:[#allocation3 + $0x330] sm:$0xff]  ;;  %v442_v58 = vld [vmem:[#allocation3 + $0x318] sm:$0xff] }
 0x13e   : > { %2164 = vmatpush1.bf16.msra.mxu0 %v9438_v45  ;;  %2207 = vmatpush1.bf16.msra.mxu1 %v9440_v46  ;;  %v430_v45 = vld [vmem:[#allocation3 + $0x2b8] sm:$0xff]  ;;  %v9502_v46 = vcombine.low %v417_v32, %v421_v34  ;;  %v2259_v34 = vld [vmem:[#allocation3 + $0x840] sm:$0xff] }
 0x13f   : > { %2165 = vmatprep.subr.bf16.mxu0 %v9447_v47  ;;  %2208 = vmatprep.subr.bf16.mxu1 %v9449_v48  ;;  %v9504_v47 = vcombine.low %v418_v35, %v422_v36  ;;  %v9511_v48 = vcombine.high %v425_v42, %v429_v43  ;;  %v9513_v49 = vcombine.high %v426_v44, %v430_v45  ;;  %v2263_v35 = vld [vmem:[#allocation3 + $0x860] sm:$0xff]  ;;  %v2260_v36 = vld [vmem:[#allocation3 + $0x848] sm:$0xff] }
 0x142   : > { %2166 = vmatpush1.bf16.msra.mxu0 %v9446_v52  ;;  %2209 = vmatpush1.bf16.msra.mxu1 %v9448_v53  ;;  %v438_v52 = vld [vmem:[#allocation3 + $0x2f8] sm:$0xff]  ;;  %v9510_v53 = vcombine.low %v425_v42, %v429_v43  ;;  %v2267_v43 = vld [vmem:[#allocation3 + $0x880] sm:$0xff] }
 0x143   : > { %2167 = vmatprep.subr.bf16.mxu0 %v9455_v54  ;;  %2210 = vmatprep.subr.bf16.mxu1 %v9457_v55  ;;  %v9512_v54 = vcombine.low %v426_v44, %v430_v45  ;;  %v9519_v55 = vcombine.high %v433_v50, %v437_v28  ;;  %v9521_v56 = vcombine.high %v434_v51, %v438_v52  ;;  %v2271_v44 = vld [vmem:[#allocation3 + $0x8a0] sm:$0xff] }
 0x144   : > { %v11029_v45 = vld [vmem:[%s10992_s5 + $0x24] ss:$8 sps:$4 sm:$0xff]  }
 0x146   : > { %2168 = vmatpush1.bf16.msra.mxu0 %v9454_v59  ;;  %2211 = vmatpush1.bf16.msra.mxu1 %v9456_v60  ;;  %v446_v59 = vld [vmem:[#allocation3 + $0x338] sm:$0xff]  ;;  %v9518_v60 = vcombine.low %v433_v50, %v437_v28  ;;  %v9575_v50 = vcombine.high %v2267_v43, %v2271_v44 }
 0x147   : > { %2169 = vmatprep.subr.bf16.mxu0 %v9463_v61  ;;  %2212 = vmatprep.subr.bf16.mxu1 %v9465_v39  ;;  %v9520_v61 = vcombine.low %v434_v51, %v438_v52  ;;  %v9527_v39 = vcombine.high %v441_v57, %v445_v10  ;;  %v9529_v62 = vcombine.high %v442_v58, %v446_v59  ;;  %v2275_v51 = vld [vmem:[#allocation3 + $0x8c0] sm:$0xff] }
 0x148   : > { %v2279_v52 = vld [vmem:[#allocation3 + $0x8e0] sm:$0xff] }
 0x14a   : > { %2170 = vmatpush1.bf16.msra.mxu0 %v9462_v2  ;;  %2213 = vmatpush1.bf16.msra.mxu1 %v9464_v3  ;;  %v454_v2 = vld [vmem:[#allocation3 + $0x378] sm:$0xff]  ;;  %v9526_v3 = vcombine.low %v441_v57, %v445_v10  ;;  %v2283_v10 = vld [vmem:[#allocation3 + $0x900] sm:$0xff] }
 0x14b   : > { %2171 = vmatprep.subr.bf16.mxu0 %v9471_v4  ;;  %2214 = vmatprep.subr.bf16.mxu1 %v9473_v5  ;;  %v9528_v4 = vcombine.low %v442_v58, %v446_v59  ;;  %v9535_v5 = vcombine.high %v449_v63, %v453_v0  ;;  %v9537_v6 = vcombine.high %v450_v1, %v454_v2  ;;  %v2287_v58 = vld [vmem:[#allocation3 + $0x920] sm:$0xff]  ;;  %v2284_v59 = vld [vmem:[#allocation3 + $0x908] sm:$0xff] }
 0x14e   : > { %2172 = vmatpush1.bf16.msra.mxu0 %v9470_v11  ;;  %2215 = vmatpush1.bf16.msra.mxu1 %v9472_v12  ;;  %v462_v11 = vld [vmem:[#allocation3 + $0x3b8] sm:$0xff]  ;;  %v9534_v12 = vcombine.low %v449_v63, %v453_v0  ;;  %v2291_v0 = vld [vmem:[#allocation3 + $0x940] sm:$0xff] }
 0x14f   : > { %2173 = vmatprep.subr.bf16.mxu0 %v9479_v13  ;;  %2216 = vmatprep.subr.bf16.mxu1 %v9481_v14  ;;  %v9536_v13 = vcombine.low %v450_v1, %v454_v2  ;;  %v9543_v14 = vcombine.high %v457_v7, %v461_v8  ;;  %v9545_v15 = vcombine.high %v458_v9, %v462_v11  ;;  %v2295_v1 = vld [vmem:[#allocation3 + $0x960] sm:$0xff]  ;;  %v2292_v2 = vld [vmem:[#allocation3 + $0x948] sm:$0xff] }
 0x152   : > { %2174 = vmatpush1.bf16.msra.mxu0 %v9478_v19  ;;  %2217 = vmatpush1.bf16.msra.mxu1 %v9480_v20  ;;  %v470_v19 = vld [vmem:[#allocation3 + $0x3f8] sm:$0xff]  ;;  %v9542_v20 = vcombine.low %v457_v7, %v461_v8  ;;  %v2299_v8 = vld [vmem:[#allocation3 + $0x980] sm:$0xff] }
 0x153   : > { %2175 = vmatprep.subr.bf16.mxu0 %v9487_v21  ;;  %2218 = vmatprep.subr.bf16.mxu1 %v9489_v22  ;;  %v9544_v21 = vcombine.low %v458_v9, %v462_v11  ;;  %v9551_v22 = vcombine.high %v465_v16, %v469_v17  ;;  %v9553_v23 = vcombine.high %v466_v18, %v470_v19  ;;  %v2303_v9 = vld [vmem:[#allocation3 + $0x9a0] sm:$0xff]  ;;  %v2300_v11 = vld [vmem:[#allocation3 + $0x988] sm:$0xff] }
 0x156   : > { %2176 = vmatpush1.bf16.msra.mxu0 %v9486_v27  ;;  %2219 = vmatpush1.bf16.msra.mxu1 %v9488_v29  ;;  %v2256_v27 = vld [vmem:[#allocation3 + $0x828] sm:$0xff]  ;;  %v9550_v29 = vcombine.low %v465_v16, %v469_v17  ;;  %v2307_v17 = vld [vmem:[#allocation3 + $0x9c0] sm:$0xff] }
 0x157   : > { %2177 = vmatprep.subr.bf16.mxu0 %v9495_v30  ;;  %2220 = vmatprep.subr.bf16.mxu1 %v9497_v31  ;;  %v9552_v30 = vcombine.low %v466_v18, %v470_v19  ;;  %v9559_v31 = vcombine.high %v2251_v24, %v2255_v25  ;;  %v9561_v32 = vcombine.high %v2252_v26, %v2256_v27  ;;  %v2311_v18 = vld [vmem:[#allocation3 + $0x9e0] sm:$0xff]  ;;  %v2308_v19 = vld [vmem:[#allocation3 + $0x9c8] sm:$0xff] }
 0x15a   : > { %2178 = vmatpush1.bf16.msra.mxu0 %v9494_v37  ;;  %2221 = vmatpush1.bf16.msra.mxu1 %v9496_v38  ;;  %v2264_v37 = vld [vmem:[#allocation3 + $0x868] sm:$0xff]  ;;  %v9558_v38 = vcombine.low %v2251_v24, %v2255_v25  ;;  %v2315_v25 = vld [vmem:[#allocation3 + $0xa00] sm:$0xff] }
 0x15b   : > { %2179 = vmatprep.subr.bf16.mxu0 %v9503_v40  ;;  %2222 = vmatprep.subr.bf16.mxu1 %v9505_v41  ;;  %v9560_v40 = vcombine.low %v2252_v26, %v2256_v27  ;;  %v9567_v41 = vcombine.high %v2259_v34, %v2263_v35  ;;  %v9569_v42 = vcombine.high %v2260_v36, %v2264_v37  ;;  %v2319_v26 = vld [vmem:[#allocation3 + $0xa20] sm:$0xff]  ;;  %v2316_v27 = vld [vmem:[#allocation3 + $0xa08] sm:$0xff] }
 0x15e   : > { %2180 = vmatpush1.bf16.msra.mxu0 %v9502_v46  ;;  %2223 = vmatpush1.bf16.msra.mxu1 %v9504_v47  ;;  %v2268_v46 = vld [vmem:[#allocation3 + $0x888] sm:$0xff] }
 0x15f   : > { %2181 = vmatprep.subr.bf16.mxu0 %v9511_v48  ;;  %2224 = vmatprep.subr.bf16.mxu1 %v9513_v49  ;;  %v2272_v47 = vld [vmem:[#allocation3 + $0x8a8] sm:$0xff]  ;;  %v9566_v48 = vcombine.low %v2259_v34, %v2263_v35  ;;  %v9568_v49 = vcombine.low %v2260_v36, %v2264_v37  ;;  %v2323_v35 = vld [vmem:[#allocation3 + $0xa40] sm:$0xff] }
 0x160   : > { %v9577_v28 = vcombine.high %v2268_v46, %v2272_v47  ;;  %v2327_v36 = vld [vmem:[#allocation3 + $0xa60] sm:$0xff]  ;;  %v2324_v37 = vld [vmem:[#allocation3 + $0xa48] sm:$0xff] }
 0x162   : > { %2182 = vmatpush1.bf16.msra.mxu0 %v9510_v53  ;;  %2225 = vmatpush1.bf16.msra.mxu1 %v9512_v54  ;;  %v2276_v53 = vld [vmem:[#allocation3 + $0x8c8] sm:$0xff] }
 0x163   : > { %2183 = vmatprep.subr.bf16.mxu0 %v9519_v55  ;;  %2226 = vmatprep.subr.bf16.mxu1 %v9521_v56  ;;  %v2280_v54 = vld [vmem:[#allocation3 + $0x8e8] sm:$0xff]  ;;  %v9574_v55 = vcombine.low %v2267_v43, %v2271_v44  ;;  %v9583_v56 = vcombine.high %v2275_v51, %v2279_v52  ;;  %v2331_v44 = vld [vmem:[#allocation3 + $0xa80] sm:$0xff] }
 0x164   : > { %v9585_v57 = vcombine.high %v2276_v53, %v2280_v54 }
 0x166   : > { %2184 = vmatpush1.bf16.msra.mxu0 %v9518_v60  ;;  %2227 = vmatpush1.bf16.msra.mxu1 %v9520_v61  ;;  %v2288_v60 = vld [vmem:[#allocation3 + $0x928] sm:$0xff]  ;;  %v9582_v61 = vcombine.low %v2275_v51, %v2279_v52  ;;  %v2339_v52 = vld [vmem:[#allocation3 + $0xac0] sm:$0xff] }
 0x167   : > { %2185 = vmatprep.subr.bf16.mxu0 %v9527_v39  ;;  %2228 = vmatprep.subr.bf16.mxu1 %v9529_v62  ;;  %v9584_v39 = vcombine.low %v2276_v53, %v2280_v54  ;;  %v9591_v62 = vcombine.high %v2283_v10, %v2287_v58  ;;  %v9593_v63 = vcombine.high %v2284_v59, %v2288_v60  ;;  %v2343_v53 = vld [vmem:[#allocation3 + $0xae0] sm:$0xff]  ;;  %v2340_v54 = vld [vmem:[#allocation3 + $0xac8] sm:$0xff] }
 0x16a   : > { %2186 = vmatpush1.bf16.msra.mxu0 %v9526_v3  ;;  %2229 = vmatpush1.bf16.msra.mxu1 %v9528_v4  ;;  %v2296_v3 = vld [vmem:[#allocation3 + $0x968] sm:$0xff]  ;;  %v9590_v4 = vcombine.low %v2283_v10, %v2287_v58  ;;  %v2347_v58 = vld [vmem:[#allocation3 + $0xb00] sm:$0xff] }
 0x16b   : > { %2187 = vmatprep.subr.bf16.mxu0 %v9535_v5  ;;  %2230 = vmatprep.subr.bf16.mxu1 %v9537_v6  ;;  %v9592_v5 = vcombine.low %v2284_v59, %v2288_v60  ;;  %v9599_v6 = vcombine.high %v2291_v0, %v2295_v1  ;;  %v9601_v7 = vcombine.high %v2292_v2, %v2296_v3  ;;  %v2351_v59 = vld [vmem:[#allocation3 + $0xb20] sm:$0xff]  ;;  %v2348_v60 = vld [vmem:[#allocation3 + $0xb08] sm:$0xff] }
 0x16e   : > { %2188 = vmatpush1.bf16.msra.mxu0 %v9534_v12  ;;  %2231 = vmatpush1.bf16.msra.mxu1 %v9536_v13  ;;  %v2304_v12 = vld [vmem:[#allocation3 + $0x9a8] sm:$0xff]  ;;  %v9598_v13 = vcombine.low %v2291_v0, %v2295_v1  ;;  %v2355_v1 = vld [vmem:[#allocation3 + $0xb40] sm:$0xff] }
 0x16f   : > { %2189 = vmatprep.subr.bf16.mxu0 %v9543_v14  ;;  %2232 = vmatprep.subr.bf16.mxu1 %v9545_v15  ;;  %v9600_v14 = vcombine.low %v2292_v2, %v2296_v3  ;;  %v9607_v15 = vcombine.high %v2299_v8, %v2303_v9  ;;  %v9609_v16 = vcombine.high %v2300_v11, %v2304_v12  ;;  %v2359_v2 = vld [vmem:[#allocation3 + $0xb60] sm:$0xff]  ;;  %v2356_v3 = vld [vmem:[#allocation3 + $0xb48] sm:$0xff] }
 0x172   : > { %2190 = vmatpush1.bf16.msra.mxu0 %v9542_v20  ;;  %2233 = vmatpush1.bf16.msra.mxu1 %v9544_v21  ;;  %v2312_v20 = vld [vmem:[#allocation3 + $0x9e8] sm:$0xff]  ;;  %v9606_v21 = vcombine.low %v2299_v8, %v2303_v9  ;;  %v2363_v9 = vld [vmem:[#allocation3 + $0xb80] sm:$0xff] }
 0x173   : > { %2191 = vmatprep.subr.bf16.mxu0 %v9551_v22  ;;  %2234 = vmatprep.subr.bf16.mxu1 %v9553_v23  ;;  %v9608_v22 = vcombine.low %v2300_v11, %v2304_v12  ;;  %v9615_v23 = vcombine.high %v2307_v17, %v2311_v18  ;;  %v9617_v24 = vcombine.high %v2308_v19, %v2312_v20  ;;  %v2367_v11 = vld [vmem:[#allocation3 + $0xba0] sm:$0xff]  ;;  %v2364_v12 = vld [vmem:[#allocation3 + $0xb88] sm:$0xff] }
 0x176   : > { %2192 = vmatpush1.bf16.msra.mxu0 %v9550_v29  ;;  %2235 = vmatpush1.bf16.msra.mxu1 %v9552_v30  ;;  %v2320_v29 = vld [vmem:[#allocation3 + $0xa28] sm:$0xff]  ;;  %v9614_v30 = vcombine.low %v2307_v17, %v2311_v18  ;;  %v2371_v18 = vld [vmem:[#allocation3 + $0xbc0] sm:$0xff] }
 0x177   : > { %3029 = vmatprep.subr.bf16.mxu0 %v9559_v31  ;;  %3072 = vmatprep.subr.bf16.mxu1 %v9561_v32  ;;  %v9616_v31 = vcombine.low %v2308_v19, %v2312_v20  ;;  %v9623_v32 = vcombine.high %v2315_v25, %v2319_v26  ;;  %v9625_v34 = vcombine.high %v2316_v27, %v2320_v29  ;;  %v2375_v19 = vld [vmem:[#allocation3 + $0xbe0] sm:$0xff]  ;;  %v2372_v20 = vld [vmem:[#allocation3 + $0xbc8] sm:$0xff] }
 0x179   : > { %2194 = vmatmul.mubr.bf16.vlgmr.msra.gmra.mrb[4].mxu0 %v11022_v33  ;;  %2237 = vmatmul.mubr.bf16.vlgmr.msra.gmra.mrb[4].mxu1 %v11022_v33  ;;  %v9576_v33 = vcombine.low %v2268_v46, %v2272_v47  ;;  %v2335_v46 = vld [vmem:[#allocation3 + $0xaa0] sm:$0xff]  ;;  %v2332_v47 = vld [vmem:[#allocation3 + $0xa88] sm:$0xff] }
 0x17a   : > { %3030 = vmatpush1.bf16.msra.mxu0 %v9558_v38  ;;  %3073 = vmatpush1.bf16.msra.mxu1 %v9560_v40  ;;  %v2328_v38 = vld [vmem:[#allocation3 + $0xa68] sm:$0xff]  ;;  %v9622_v40 = vcombine.low %v2315_v25, %v2319_v26  ;;  %v2253_v26 = vld [vmem:[#allocation3 + $0x810] sm:$0xff] }
 0x17b   : > { %3031 = vmatprep.subr.bf16.mxu0 %v9567_v41  ;;  %3074 = vmatprep.subr.bf16.mxu1 %v9569_v42  ;;  %v9624_v41 = vcombine.low %v2316_v27, %v2320_v29  ;;  %v9631_v42 = vcombine.high %v2323_v35, %v2327_v36  ;;  %v9633_v43 = vcombine.high %v2324_v37, %v2328_v38  ;;  %v2257_v27 = vld [vmem:[#allocation3 + $0x830] sm:$0xff]  ;;  %v2254_v29 = vld [vmem:[#allocation3 + $0x818] sm:$0xff] }
 0x17c   : > { %3061 = vmatprep.mubr.bf16.mxu0 %v11029_v45  ;;  %3104 = vmatprep.mubr.bf16.mxu1 %v11029_v45 }
 0x17e   : > { %3032 = vmatpush1.bf16.msra.mxu0 %v9566_v48  ;;  %3075 = vmatpush1.bf16.msra.mxu1 %v9568_v49  ;;  %v2336_v48 = vld [vmem:[#allocation3 + $0xaa8] sm:$0xff]  ;;  %v9630_v49 = vcombine.low %v2323_v35, %v2327_v36  ;;  %v2261_v36 = vld [vmem:[#allocation3 + $0x850] sm:$0xff] }
 0x17f   : > { %3033 = vmatprep.subr.bf16.mxu0 %v9575_v50  ;;  %3076 = vmatprep.subr.bf16.mxu1 %v9577_v28  ;;  %v9632_v50 = vcombine.low %v2324_v37, %v2328_v38  ;;  %v9639_v28 = vcombine.high %v2331_v44, %v2335_v46  ;;  %v9641_v51 = vcombine.high %v2332_v47, %v2336_v48  ;;  %v2265_v37 = vld [vmem:[#allocation3 + $0x870] sm:$0xff] }
 0x180   : > { %v11036_v38 = vld [vmem:[%s10992_s5 + $0x20] ss:$8 sps:$4 sm:$0xff]  }
 0x182   : > { %3034 = vmatpush1.bf16.msra.mxu0 %v9574_v55  ;;  %3077 = vmatpush1.bf16.msra.mxu1 %v9576_v33  ;;  %v2344_v55 = vld [vmem:[#allocation3 + $0xae8] sm:$0xff]  ;;  %v9638_v33 = vcombine.low %v2331_v44, %v2335_v46  ;;  %v9571_v44 = vcombine.high %v2261_v36, %v2265_v37 }
 0x183   : > { %3035 = vmatprep.subr.bf16.mxu0 %v9583_v56  ;;  %3078 = vmatprep.subr.bf16.mxu1 %v9585_v57  ;;  %v9640_v56 = vcombine.low %v2332_v47, %v2336_v48  ;;  %v9647_v57 = vcombine.high %v2339_v52, %v2343_v53  ;;  %v9649_v10 = vcombine.high %v2340_v54, %v2344_v55  ;;  %v2269_v47 = vld [vmem:[#allocation3 + $0x890] sm:$0xff] }
 0x184   : > { %v2273_v48 = vld [vmem:[#allocation3 + $0x8b0] sm:$0xff] }
 0x186   : > { %3036 = vmatpush1.bf16.msra.mxu0 %v9582_v61  ;;  %3079 = vmatpush1.bf16.msra.mxu1 %v9584_v39  ;;  %v2352_v61 = vld [vmem:[#allocation3 + $0xb28] sm:$0xff]  ;;  %v9646_v39 = vcombine.low %v2339_v52, %v2343_v53  ;;  %v9579_v52 = vcombine.high %v2269_v47, %v2273_v48 }
 0x187   : > { %3037 = vmatprep.subr.bf16.mxu0 %v9591_v62  ;;  %3080 = vmatprep.subr.bf16.mxu1 %v9593_v63  ;;  %v9648_v62 = vcombine.low %v2340_v54, %v2344_v55  ;;  %v9655_v63 = vcombine.high %v2347_v58, %v2351_v59  ;;  %v9657_v0 = vcombine.high %v2348_v60, %v2352_v61  ;;  %v2277_v54 = vld [vmem:[#allocation3 + $0x8d0] sm:$0xff] }
 0x188   : > { %v2281_v55 = vld [vmem:[#allocation3 + $0x8f0] sm:$0xff] }
 0x18a   : > { %3038 = vmatpush1.bf16.msra.mxu0 %v9590_v4  ;;  %3081 = vmatpush1.bf16.msra.mxu1 %v9592_v5  ;;  %v2360_v4 = vld [vmem:[#allocation3 + $0xb68] sm:$0xff]  ;;  %v9654_v5 = vcombine.low %v2347_v58, %v2351_v59  ;;  %v9587_v58 = vcombine.high %v2277_v54, %v2281_v55 }
 0x18b   : > { %3039 = vmatprep.subr.bf16.mxu0 %v9599_v6  ;;  %3082 = vmatprep.subr.bf16.mxu1 %v9601_v7  ;;  %v9656_v6 = vcombine.low %v2348_v60, %v2352_v61  ;;  %v9663_v7 = vcombine.high %v2355_v1, %v2359_v2  ;;  %v9665_v8 = vcombine.high %v2356_v3, %v2360_v4  ;;  %v2285_v60 = vld [vmem:[#allocation3 + $0x910] sm:$0xff] }
 0x18c   : > { %v2289_v61 = vld [vmem:[#allocation3 + $0x930] sm:$0xff] }
 0x18e   : > { %3040 = vmatpush1.bf16.msra.mxu0 %v9598_v13  ;;  %3083 = vmatpush1.bf16.msra.mxu1 %v9600_v14  ;;  %v2368_v13 = vld [vmem:[#allocation3 + $0xba8] sm:$0xff]  ;;  %v9662_v14 = vcombine.low %v2355_v1, %v2359_v2  ;;  %v9595_v1 = vcombine.high %v2285_v60, %v2289_v61  ;;  %v2293_v2 = vld [vmem:[#allocation3 + $0x950] sm:$0xff] }
 0x18f   : > { %3041 = vmatprep.subr.bf16.mxu0 %v9607_v15  ;;  %3084 = vmatprep.subr.bf16.mxu1 %v9609_v16  ;;  %v9664_v15 = vcombine.low %v2356_v3, %v2360_v4  ;;  %v9671_v16 = vcombine.high %v2363_v9, %v2367_v11  ;;  %v9673_v17 = vcombine.high %v2364_v12, %v2368_v13  ;;  %v2297_v3 = vld [vmem:[#allocation3 + $0x970] sm:$0xff]  ;;  %v2294_v4 = vld [vmem:[#allocation3 + $0x958] sm:$0xff] }
 0x192   : > { %3042 = vmatpush1.bf16.msra.mxu0 %v9606_v21  ;;  %3085 = vmatpush1.bf16.msra.mxu1 %v9608_v22  ;;  %v2376_v21 = vld [vmem:[#allocation3 + $0xbe8] sm:$0xff]  ;;  %v9670_v22 = vcombine.low %v2363_v9, %v2367_v11  ;;  %v2301_v11 = vld [vmem:[#allocation3 + $0x990] sm:$0xff] }
 0x193   : > { %3043 = vmatprep.subr.bf16.mxu0 %v9615_v23  ;;  %3086 = vmatprep.subr.bf16.mxu1 %v9617_v24  ;;  %v9672_v23 = vcombine.low %v2364_v12, %v2368_v13  ;;  %v9679_v24 = vcombine.high %v2371_v18, %v2375_v19  ;;  %v9681_v25 = vcombine.high %v2372_v20, %v2376_v21  ;;  %v2305_v12 = vld [vmem:[#allocation3 + $0x9b0] sm:$0xff]  ;;  %v2302_v13 = vld [vmem:[#allocation3 + $0x998] sm:$0xff] }
 0x196   : > { %3044 = vmatpush1.bf16.msra.mxu0 %v9614_v30  ;;  %3087 = vmatpush1.bf16.msra.mxu1 %v9616_v31  ;;  %v2258_v30 = vld [vmem:[#allocation3 + $0x838] sm:$0xff]  ;;  %v9678_v31 = vcombine.low %v2371_v18, %v2375_v19  ;;  %v2309_v19 = vld [vmem:[#allocation3 + $0x9d0] sm:$0xff] }
 0x197   : > { %3045 = vmatprep.subr.bf16.mxu0 %v9623_v32  ;;  %3088 = vmatprep.subr.bf16.mxu1 %v9625_v34  ;;  %v9680_v32 = vcombine.low %v2372_v20, %v2376_v21  ;;  %v9563_v34 = vcombine.high %v2253_v26, %v2257_v27  ;;  %v9565_v35 = vcombine.high %v2254_v29, %v2258_v30  ;;  %v2313_v20 = vld [vmem:[#allocation3 + $0x9f0] sm:$0xff]  ;;  %v2310_v21 = vld [vmem:[#allocation3 + $0x9d8] sm:$0xff] }
 0x19a   : > { %3046 = vmatpush1.bf16.msra.mxu0 %v9622_v40  ;;  %3089 = vmatpush1.bf16.msra.mxu1 %v9624_v41  ;;  %v2262_v40 = vld [vmem:[#allocation3 + $0x858] sm:$0xff] }
 0x19b   : > { %3047 = vmatprep.subr.bf16.mxu0 %v9631_v42  ;;  %3090 = vmatprep.subr.bf16.mxu1 %v9633_v43  ;;  %v2266_v41 = vld [vmem:[#allocation3 + $0x878] sm:$0xff]  ;;  %v9562_v42 = vcombine.low %v2253_v26, %v2257_v27  ;;  %v9564_v43 = vcombine.low %v2254_v29, %v2258_v30  ;;  %v2317_v27 = vld [vmem:[#allocation3 + $0xa10] sm:$0xff] }
 0x19c   : > { %v9573_v46 = vcombine.high %v2262_v40, %v2266_v41  ;;  %v2321_v29 = vld [vmem:[#allocation3 + $0xa30] sm:$0xff]  ;;  %v2318_v30 = vld [vmem:[#allocation3 + $0xa18] sm:$0xff] }
 0x19e   : > { %3048 = vmatpush1.bf16.msra.mxu0 %v9630_v49  ;;  %3091 = vmatpush1.bf16.msra.mxu1 %v9632_v50  ;;  %v2270_v49 = vld [vmem:[#allocation3 + $0x898] sm:$0xff] }
 0x19f   : > { %3049 = vmatprep.subr.bf16.mxu0 %v9639_v28  ;;  %3092 = vmatprep.subr.bf16.mxu1 %v9641_v51  ;;  %v2274_v50 = vld [vmem:[#allocation3 + $0x8b8] sm:$0xff]  ;;  %v9570_v28 = vcombine.low %v2261_v36, %v2265_v37  ;;  %v9572_v51 = vcombine.low %v2262_v40, %v2266_v41  ;;  %v2325_v37 = vld [vmem:[#allocation3 + $0xa50] sm:$0xff] }
 0x1a0   : > { %v9581_v53 = vcombine.high %v2270_v49, %v2274_v50  ;;  %v2329_v40 = vld [vmem:[#allocation3 + $0xa70] sm:$0xff]  ;;  %v2326_v41 = vld [vmem:[#allocation3 + $0xa58] sm:$0xff] }
 0x1a2   : > { %3050 = vmatpush1.bf16.msra.mxu0 %v9638_v33  ;;  %3093 = vmatpush1.bf16.msra.mxu1 %v9640_v56  ;;  %v2278_v33 = vld [vmem:[#allocation3 + $0x8d8] sm:$0xff] }
 0x1a3   : > { %3051 = vmatprep.subr.bf16.mxu0 %v9647_v57  ;;  %3094 = vmatprep.subr.bf16.mxu1 %v9649_v10  ;;  %v2282_v56 = vld [vmem:[#allocation3 + $0x8f8] sm:$0xff]  ;;  %v9578_v57 = vcombine.low %v2269_v47, %v2273_v48  ;;  %v9580_v10 = vcombine.low %v2270_v49, %v2274_v50  ;;  %v2333_v48 = vld [vmem:[#allocation3 + $0xa90] sm:$0xff] }
 0x1a4   : > { %v9589_v59 = vcombine.high %v2278_v33, %v2282_v56  ;;  %v2337_v49 = vld [vmem:[#allocation3 + $0xab0] sm:$0xff]  ;;  %v2334_v50 = vld [vmem:[#allocation3 + $0xa98] sm:$0xff] }
 0x1a6   : > { %3052 = vmatpush1.bf16.msra.mxu0 %v9646_v39  ;;  %3095 = vmatpush1.bf16.msra.mxu1 %v9648_v62  ;;  %v2286_v39 = vld [vmem:[#allocation3 + $0x918] sm:$0xff] }
 0x1a7   : > { %3053 = vmatprep.subr.bf16.mxu0 %v9655_v63  ;;  %3096 = vmatprep.subr.bf16.mxu1 %v9657_v0  ;;  %v2290_v62 = vld [vmem:[#allocation3 + $0x938] sm:$0xff]  ;;  %v9586_v63 = vcombine.low %v2277_v54, %v2281_v55  ;;  %v9588_v0 = vcombine.low %v2278_v33, %v2282_v56  ;;  %v2341_v55 = vld [vmem:[#allocation3 + $0xad0] sm:$0xff] }
 0x1a8   : > { %v2345_v33 = vld [vmem:[#allocation3 + $0xaf0] sm:$0xff]  ;;  %v2342_v56 = vld [vmem:[#allocation3 + $0xad8] sm:$0xff] }
 0x1aa   : > { %3054 = vmatpush1.bf16.msra.mxu0 %v9654_v5  ;;  %3097 = vmatpush1.bf16.msra.mxu1 %v9656_v6  ;;  %v2298_v5 = vld [vmem:[#allocation3 + $0x978] sm:$0xff]  ;;  %v9594_v6 = vcombine.low %v2285_v60, %v2289_v61  ;;  %v2349_v61 = vld [vmem:[#allocation3 + $0xb10] sm:$0xff] }
 0x1ab   : > { %3055 = vmatprep.subr.bf16.mxu0 %v9663_v7  ;;  %3098 = vmatprep.subr.bf16.mxu1 %v9665_v8  ;;  %v9596_v7 = vcombine.low %v2286_v39, %v2290_v62  ;;  %v9603_v8 = vcombine.high %v2293_v2, %v2297_v3  ;;  %v9605_v9 = vcombine.high %v2294_v4, %v2298_v5 }
 0x1ae   : > { %3056 = vmatpush1.bf16.msra.mxu0 %v9662_v14  ;;  %3099 = vmatpush1.bf16.msra.mxu1 %v9664_v15  ;;  %v2306_v14 = vld [vmem:[#allocation3 + $0x9b8] sm:$0xff]  ;;  %v9602_v15 = vcombine.low %v2293_v2, %v2297_v3  ;;  %v2357_v3 = vld [vmem:[#allocation3 + $0xb50] sm:$0xff] }
 0x1af   : > { %3057 = vmatprep.subr.bf16.mxu0 %v9671_v16  ;;  %3100 = vmatprep.subr.bf16.mxu1 %v9673_v17  ;;  %v9604_v16 = vcombine.low %v2294_v4, %v2298_v5  ;;  %v9611_v17 = vcombine.high %v2301_v11, %v2305_v12  ;;  %v9613_v18 = vcombine.high %v2302_v13, %v2306_v14  ;;  %v2361_v4 = vld [vmem:[#allocation3 + $0xb70] sm:$0xff]  ;;  %v2358_v5 = vld [vmem:[#allocation3 + $0xb58] sm:$0xff] }
 0x1b2   : > { %3058 = vmatpush1.bf16.msra.mxu0 %v9670_v22  ;;  %3101 = vmatpush1.bf16.msra.mxu1 %v9672_v23  ;;  %v2314_v22 = vld [vmem:[#allocation3 + $0x9f8] sm:$0xff]  ;;  %v9610_v23 = vcombine.low %v2301_v11, %v2305_v12  ;;  %v2365_v12 = vld [vmem:[#allocation3 + $0xb90] sm:$0xff] }
 0x1b3   : > { %3059 = vmatprep.subr.bf16.mxu0 %v9679_v24  ;;  %3102 = vmatprep.subr.bf16.mxu1 %v9681_v25  ;;  %v9612_v24 = vcombine.low %v2302_v13, %v2306_v14  ;;  %v9619_v25 = vcombine.high %v2309_v19, %v2313_v20  ;;  %v9621_v26 = vcombine.high %v2310_v21, %v2314_v22  ;;  %v2369_v13 = vld [vmem:[#allocation3 + $0xbb0] sm:$0xff]  ;;  %v2366_v14 = vld [vmem:[#allocation3 + $0xb98] sm:$0xff] }
 0x1b6   : > { %3060 = vmatpush1.bf16.msra.mxu0 %v9678_v31  ;;  %3103 = vmatpush1.bf16.msra.mxu1 %v9680_v32  ;;  %v2322_v31 = vld [vmem:[#allocation3 + $0xa38] sm:$0xff]  ;;  %v9618_v32 = vcombine.low %v2309_v19, %v2313_v20  ;;  %v2373_v20 = vld [vmem:[#allocation3 + $0xbd0] sm:$0xff] }
 0x1b7   : > { %3115 = vmatprep.subr.bf16.mxu0 %v9563_v34  ;;  %3158 = vmatprep.subr.bf16.mxu1 %v9565_v35  ;;  %v9620_v34 = vcombine.low %v2310_v21, %v2314_v22  ;;  %v9627_v35 = vcombine.high %v2317_v27, %v2321_v29  ;;  %v9629_v36 = vcombine.high %v2318_v30, %v2322_v31  ;;  %v2377_v21 = vld [vmem:[#allocation3 + $0xbf0] sm:$0xff]  ;;  %v2374_v22 = vld [vmem:[#allocation3 + $0xbd8] sm:$0xff] }
 0x1b9   : > { %3062 = vmatmul.mubr.bf16.vlgmr.msra.gmra.mrb[0].mxu0 %v11036_v38  ;;  %3105 = vmatmul.mubr.bf16.vlgmr.msra.gmra.mrb[0].mxu1 %v11036_v38 }
 0x1ba   : > { %3116 = vmatpush1.bf16.msra.mxu0 %v9562_v42  ;;  %3159 = vmatpush1.bf16.msra.mxu1 %v9564_v43  ;;  %v2330_v42 = vld [vmem:[#allocation3 + $0xa78] sm:$0xff]  ;;  %v9626_v43 = vcombine.low %v2317_v27, %v2321_v29  ;;  %v3221_v29 = vld [vmem:[#allocation3 + $0xc00] sm:$0xff] }
 0x1bb   : > { %3117 = vmatprep.subr.bf16.mxu0 %v9571_v44  ;;  %3160 = vmatprep.subr.bf16.mxu1 %v9573_v46  ;;  %v9628_v44 = vcombine.low %v2318_v30, %v2322_v31  ;;  %v9635_v46 = vcombine.high %v2325_v37, %v2329_v40  ;;  %v9637_v47 = vcombine.high %v2326_v41, %v2330_v42  ;;  %v3225_v30 = vld [vmem:[#allocation3 + $0xc20] sm:$0xff]  ;;  %v3222_v31 = vld [vmem:[#allocation3 + $0xc08] sm:$0xff] }
 0x1bc   : > { %3147 = vmatprep.mubr.bf16.mxu0 %v11029_v45  ;;  %3190 = vmatprep.mubr.bf16.mxu1 %v11029_v45  ;;  %v9597_v45 = vcombine.high %v2286_v39, %v2290_v62  ;;  %v2353_v39 = vld [vmem:[#allocation3 + $0xb30] sm:$0xff]  ;;  %v2350_v62 = vld [vmem:[#allocation3 + $0xb18] sm:$0xff] }
 0x1be   : > { %3118 = vmatpush1.bf16.msra.mxu0 %v9570_v28  ;;  %3161 = vmatpush1.bf16.msra.mxu1 %v9572_v51  ;;  %v2338_v28 = vld [vmem:[#allocation3 + $0xab8] sm:$0xff]  ;;  %v9634_v51 = vcombine.low %v2325_v37, %v2329_v40  ;;  %v3229_v40 = vld [vmem:[#allocation3 + $0xc40] sm:$0xff] }
 0x1bf   : > { %3119 = vmatprep.subr.bf16.mxu0 %v9579_v52  ;;  %3162 = vmatprep.subr.bf16.mxu1 %v9581_v53  ;;  %v9636_v52 = vcombine.low %v2326_v41, %v2330_v42  ;;  %v9643_v53 = vcombine.high %v2333_v48, %v2337_v49  ;;  %v9645_v54 = vcombine.high %v2334_v50, %v2338_v28  ;;  %v3233_v41 = vld [vmem:[#allocation3 + $0xc60] sm:$0xff]  ;;  %v3230_v42 = vld [vmem:[#allocation3 + $0xc48] sm:$0xff] }
 0x1c2   : > { %3120 = vmatpush1.bf16.msra.mxu0 %v9578_v57  ;;  %3163 = vmatpush1.bf16.msra.mxu1 %v9580_v10  ;;  %v2346_v57 = vld [vmem:[#allocation3 + $0xaf8] sm:$0xff]  ;;  %v9642_v10 = vcombine.low %v2333_v48, %v2337_v49  ;;  %v3237_v49 = vld [vmem:[#allocation3 + $0xc80] sm:$0xff] }
 0x1c3   : > { %3121 = vmatprep.subr.bf16.mxu0 %v9587_v58  ;;  %3164 = vmatprep.subr.bf16.mxu1 %v9589_v59  ;;  %v9644_v58 = vcombine.low %v2334_v50, %v2338_v28  ;;  %v9651_v59 = vcombine.high %v2341_v55, %v2345_v33  ;;  %v9653_v60 = vcombine.high %v2342_v56, %v2346_v57  ;;  %v3241_v50 = vld [vmem:[#allocation3 + $0xca0] sm:$0xff] }
 0x1c4   : > { %v11043_v28 = vld [vmem:[%s10992_s5 + $0x34] ss:$8 sps:$4 sm:$0xff]  }
 0x1c6   : > { %3122 = vmatpush1.bf16.msra.mxu0 %v9586_v63  ;;  %3165 = vmatpush1.bf16.msra.mxu1 %v9588_v0  ;;  %v2354_v63 = vld [vmem:[#allocation3 + $0xb38] sm:$0xff]  ;;  %v9650_v0 = vcombine.low %v2341_v55, %v2345_v33  ;;  %v9707_v55 = vcombine.high %v3237_v49, %v3241_v50 }
 0x1c7   : > { %3123 = vmatprep.subr.bf16.mxu0 %v9595_v1  ;;  %3166 = vmatprep.subr.bf16.mxu1 %v9597_v45  ;;  %v9652_v1 = vcombine.low %v2342_v56, %v2346_v57  ;;  %v9659_v45 = vcombine.high %v2349_v61, %v2353_v39  ;;  %v9661_v2 = vcombine.high %v2350_v62, %v2354_v63  ;;  %v3245_v56 = vld [vmem:[#allocation3 + $0xcc0] sm:$0xff] }
 0x1c8   : > { %v3249_v57 = vld [vmem:[#allocation3 + $0xce0] sm:$0xff] }
 0x1ca   : > { %3124 = vmatpush1.bf16.msra.mxu0 %v9594_v6  ;;  %3167 = vmatpush1.bf16.msra.mxu1 %v9596_v7  ;;  %v2362_v6 = vld [vmem:[#allocation3 + $0xb78] sm:$0xff]  ;;  %v9658_v7 = vcombine.low %v2349_v61, %v2353_v39  ;;  %v3253_v39 = vld [vmem:[#allocation3 + $0xd00] sm:$0xff] }
 0x1cb   : > { %3125 = vmatprep.subr.bf16.mxu0 %v9603_v8  ;;  %3168 = vmatprep.subr.bf16.mxu1 %v9605_v9  ;;  %v9660_v8 = vcombine.low %v2350_v62, %v2354_v63  ;;  %v9667_v9 = vcombine.high %v2357_v3, %v2361_v4  ;;  %v9669_v11 = vcombine.high %v2358_v5, %v2362_v6  ;;  %v3257_v62 = vld [vmem:[#allocation3 + $0xd20] sm:$0xff]  ;;  %v3254_v63 = vld [vmem:[#allocation3 + $0xd08] sm:$0xff] }
 0x1ce   : > { %3126 = vmatpush1.bf16.msra.mxu0 %v9602_v15  ;;  %3169 = vmatpush1.bf16.msra.mxu1 %v9604_v16  ;;  %v2370_v15 = vld [vmem:[#allocation3 + $0xbb8] sm:$0xff]  ;;  %v9666_v16 = vcombine.low %v2357_v3, %v2361_v4  ;;  %v3261_v4 = vld [vmem:[#allocation3 + $0xd40] sm:$0xff] }
 0x1cf   : > { %3127 = vmatprep.subr.bf16.mxu0 %v9611_v17  ;;  %3170 = vmatprep.subr.bf16.mxu1 %v9613_v18  ;;  %v9668_v17 = vcombine.low %v2358_v5, %v2362_v6  ;;  %v9675_v18 = vcombine.high %v2365_v12, %v2369_v13  ;;  %v9677_v19 = vcombine.high %v2366_v14, %v2370_v15  ;;  %v3265_v5 = vld [vmem:[#allocation3 + $0xd60] sm:$0xff]  ;;  %v3262_v6 = vld [vmem:[#allocation3 + $0xd48] sm:$0xff] }
 0x1d2   : > { %3128 = vmatpush1.bf16.msra.mxu0 %v9610_v23  ;;  %3171 = vmatpush1.bf16.msra.mxu1 %v9612_v24  ;;  %v2378_v23 = vld [vmem:[#allocation3 + $0xbf8] sm:$0xff]  ;;  %v9674_v24 = vcombine.low %v2365_v12, %v2369_v13  ;;  %v3269_v13 = vld [vmem:[#allocation3 + $0xd80] sm:$0xff] }
 0x1d3   : > { %3129 = vmatprep.subr.bf16.mxu0 %v9619_v25  ;;  %3172 = vmatprep.subr.bf16.mxu1 %v9621_v26  ;;  %v9676_v25 = vcombine.low %v2366_v14, %v2370_v15  ;;  %v9683_v26 = vcombine.high %v2373_v20, %v2377_v21  ;;  %v9685_v27 = vcombine.high %v2374_v22, %v2378_v23  ;;  %v3273_v14 = vld [vmem:[#allocation3 + $0xda0] sm:$0xff]  ;;  %v3270_v15 = vld [vmem:[#allocation3 + $0xd88] sm:$0xff] }
 0x1d6   : > { %3130 = vmatpush1.bf16.msra.mxu0 %v9618_v32  ;;  %3173 = vmatpush1.bf16.msra.mxu1 %v9620_v34  ;;  %v3226_v32 = vld [vmem:[#allocation3 + $0xc28] sm:$0xff]  ;;  %v9682_v34 = vcombine.low %v2373_v20, %v2377_v21  ;;  %v3277_v21 = vld [vmem:[#allocation3 + $0xdc0] sm:$0xff] }
 0x1d7   : > { %3131 = vmatprep.subr.bf16.mxu0 %v9627_v35  ;;  %3174 = vmatprep.subr.bf16.mxu1 %v9629_v36  ;;  %v9684_v35 = vcombine.low %v2374_v22, %v2378_v23  ;;  %v9691_v36 = vcombine.high %v3221_v29, %v3225_v30  ;;  %v9693_v37 = vcombine.high %v3222_v31, %v3226_v32  ;;  %v3281_v22 = vld [vmem:[#allocation3 + $0xde0] sm:$0xff]  ;;  %v3278_v23 = vld [vmem:[#allocation3 + $0xdc8] sm:$0xff] }
 0x1da   : > { %3132 = vmatpush1.bf16.msra.mxu0 %v9626_v43  ;;  %3175 = vmatpush1.bf16.msra.mxu1 %v9628_v44  ;;  %v3234_v43 = vld [vmem:[#allocation3 + $0xc68] sm:$0xff]  ;;  %v9690_v44 = vcombine.low %v3221_v29, %v3225_v30  ;;  %v3285_v30 = vld [vmem:[#allocation3 + $0xe00] sm:$0xff] }
 0x1db   : > { %3133 = vmatprep.subr.bf16.mxu0 %v9635_v46  ;;  %3176 = vmatprep.subr.bf16.mxu1 %v9637_v47  ;;  %v9692_v46 = vcombine.low %v3222_v31, %v3226_v32  ;;  %v9699_v47 = vcombine.high %v3229_v40, %v3233_v41  ;;  %v9701_v48 = vcombine.high %v3230_v42, %v3234_v43  ;;  %v3289_v31 = vld [vmem:[#allocation3 + $0xe20] sm:$0xff]  ;;  %v3286_v32 = vld [vmem:[#allocation3 + $0xe08] sm:$0xff] }
 0x1de   : > { %3134 = vmatpush1.bf16.msra.mxu0 %v9634_v51  ;;  %3177 = vmatpush1.bf16.msra.mxu1 %v9636_v52  ;;  %v3238_v51 = vld [vmem:[#allocation3 + $0xc88] sm:$0xff] }
 0x1df   : > { %3135 = vmatprep.subr.bf16.mxu0 %v9643_v53  ;;  %3178 = vmatprep.subr.bf16.mxu1 %v9645_v54  ;;  %v3242_v52 = vld [vmem:[#allocation3 + $0xca8] sm:$0xff]  ;;  %v9698_v53 = vcombine.low %v3229_v40, %v3233_v41  ;;  %v9700_v54 = vcombine.low %v3230_v42, %v3234_v43  ;;  %v3293_v41 = vld [vmem:[#allocation3 + $0xe40] sm:$0xff] }
 0x1e0   : > { %v9709_v33 = vcombine.high %v3238_v51, %v3242_v52  ;;  %v3297_v42 = vld [vmem:[#allocation3 + $0xe60] sm:$0xff]  ;;  %v3294_v43 = vld [vmem:[#allocation3 + $0xe48] sm:$0xff] }
 0x1e2   : > { %3136 = vmatpush1.bf16.msra.mxu0 %v9642_v10  ;;  %3179 = vmatpush1.bf16.msra.mxu1 %v9644_v58  ;;  %v3246_v10 = vld [vmem:[#allocation3 + $0xcc8] sm:$0xff] }
 0x1e3   : > { %3137 = vmatprep.subr.bf16.mxu0 %v9651_v59  ;;  %3180 = vmatprep.subr.bf16.mxu1 %v9653_v60  ;;  %v3250_v58 = vld [vmem:[#allocation3 + $0xce8] sm:$0xff]  ;;  %v9706_v59 = vcombine.low %v3237_v49, %v3241_v50  ;;  %v9715_v60 = vcombine.high %v3245_v56, %v3249_v57  ;;  %v3301_v50 = vld [vmem:[#allocation3 + $0xe80] sm:$0xff] }
 0x1e4   : > { %v9717_v61 = vcombine.high %v3246_v10, %v3250_v58 }
 0x1e6   : > { %3138 = vmatpush1.bf16.msra.mxu0 %v9650_v0  ;;  %3181 = vmatpush1.bf16.msra.mxu1 %v9652_v1  ;;  %v3258_v0 = vld [vmem:[#allocation3 + $0xd28] sm:$0xff]  ;;  %v9714_v1 = vcombine.low %v3245_v56, %v3249_v57  ;;  %v3309_v57 = vld [vmem:[#allocation3 + $0xec0] sm:$0xff] }
 0x1e7   : > { %3139 = vmatprep.subr.bf16.mxu0 %v9659_v45  ;;  %3182 = vmatprep.subr.bf16.mxu1 %v9661_v2  ;;  %v9716_v45 = vcombine.low %v3246_v10, %v3250_v58  ;;  %v9723_v2 = vcombine.high %v3253_v39, %v3257_v62  ;;  %v9725_v3 = vcombine.high %v3254_v63, %v3258_v0  ;;  %v3313_v10 = vld [vmem:[#allocation3 + $0xee0] sm:$0xff]  ;;  %v3310_v58 = vld [vmem:[#allocation3 + $0xec8] sm:$0xff] }
 0x1ea   : > { %3140 = vmatpush1.bf16.msra.mxu0 %v9658_v7  ;;  %3183 = vmatpush1.bf16.msra.mxu1 %v9660_v8  ;;  %v3266_v7 = vld [vmem:[#allocation3 + $0xd68] sm:$0xff]  ;;  %v9722_v8 = vcombine.low %v3253_v39, %v3257_v62  ;;  %v3317_v62 = vld [vmem:[#allocation3 + $0xf00] sm:$0xff] }
 0x1eb   : > { %3141 = vmatprep.subr.bf16.mxu0 %v9667_v9  ;;  %3184 = vmatprep.subr.bf16.mxu1 %v9669_v11  ;;  %v9724_v9 = vcombine.low %v3254_v63, %v3258_v0  ;;  %v9731_v11 = vcombine.high %v3261_v4, %v3265_v5  ;;  %v9733_v12 = vcombine.high %v3262_v6, %v3266_v7  ;;  %v3321_v63 = vld [vmem:[#allocation3 + $0xf20] sm:$0xff]  ;;  %v3318_v0 = vld [vmem:[#allocation3 + $0xf08] sm:$0xff] }
 0x1ee   : > { %3142 = vmatpush1.bf16.msra.mxu0 %v9666_v16  ;;  %3185 = vmatpush1.bf16.msra.mxu1 %v9668_v17  ;;  %v3274_v16 = vld [vmem:[#allocation3 + $0xda8] sm:$0xff]  ;;  %v9730_v17 = vcombine.low %v3261_v4, %v3265_v5  ;;  %v3325_v5 = vld [vmem:[#allocation3 + $0xf40] sm:$0xff] }
 0x1ef   : > { %3143 = vmatprep.subr.bf16.mxu0 %v9675_v18  ;;  %3186 = vmatprep.subr.bf16.mxu1 %v9677_v19  ;;  %v9732_v18 = vcombine.low %v3262_v6, %v3266_v7  ;;  %v9739_v19 = vcombine.high %v3269_v13, %v3273_v14  ;;  %v9741_v20 = vcombine.high %v3270_v15, %v3274_v16  ;;  %v3329_v6 = vld [vmem:[#allocation3 + $0xf60] sm:$0xff]  ;;  %v3326_v7 = vld [vmem:[#allocation3 + $0xf48] sm:$0xff] }
 0x1f2   : > { %3144 = vmatpush1.bf16.msra.mxu0 %v9674_v24  ;;  %3187 = vmatpush1.bf16.msra.mxu1 %v9676_v25  ;;  %v3282_v24 = vld [vmem:[#allocation3 + $0xde8] sm:$0xff]  ;;  %v9738_v25 = vcombine.low %v3269_v13, %v3273_v14  ;;  %v3333_v14 = vld [vmem:[#allocation3 + $0xf80] sm:$0xff] }
 0x1f3   : > { %3145 = vmatprep.subr.bf16.mxu0 %v9683_v26  ;;  %3188 = vmatprep.subr.bf16.mxu1 %v9685_v27  ;;  %v9740_v26 = vcombine.low %v3270_v15, %v3274_v16  ;;  %v9747_v27 = vcombine.high %v3277_v21, %v3281_v22  ;;  %v9749_v29 = vcombine.high %v3278_v23, %v3282_v24  ;;  %v3337_v15 = vld [vmem:[#allocation3 + $0xfa0] sm:$0xff]  ;;  %v3334_v16 = vld [vmem:[#allocation3 + $0xf88] sm:$0xff] }
 0x1f6   : > { %3146 = vmatpush1.bf16.msra.mxu0 %v9682_v34  ;;  %3189 = vmatpush1.bf16.msra.mxu1 %v9684_v35  ;;  %v3290_v34 = vld [vmem:[#allocation3 + $0xe28] sm:$0xff]  ;;  %v9746_v35 = vcombine.low %v3277_v21, %v3281_v22  ;;  %v3341_v22 = vld [vmem:[#allocation3 + $0xfc0] sm:$0xff] }
 0x1f7   : > { %3999 = vmatprep.subr.bf16.mxu0 %v9691_v36  ;;  %4042 = vmatprep.subr.bf16.mxu1 %v9693_v37  ;;  %v9748_v36 = vcombine.low %v3278_v23, %v3282_v24  ;;  %v9755_v37 = vcombine.high %v3285_v30, %v3289_v31  ;;  %v9757_v40 = vcombine.high %v3286_v32, %v3290_v34  ;;  %v3345_v23 = vld [vmem:[#allocation3 + $0xfe0] sm:$0xff]  ;;  %v3342_v24 = vld [vmem:[#allocation3 + $0xfc8] sm:$0xff] }
 0x1f9   : > { %3148 = vmatmul.mubr.bf16.vlgmr.msra.gmra.mrb[4].mxu0 %v11036_v38  ;;  %3191 = vmatmul.mubr.bf16.vlgmr.msra.gmra.mrb[4].mxu1 %v11036_v38  ;;  %v9708_v38 = vcombine.low %v3238_v51, %v3242_v52  ;;  %v3305_v51 = vld [vmem:[#allocation3 + $0xea0] sm:$0xff]  ;;  %v3302_v52 = vld [vmem:[#allocation3 + $0xe88] sm:$0xff] }
 0x1fa   : > { %4000 = vmatpush1.bf16.msra.mxu0 %v9690_v44  ;;  %4043 = vmatpush1.bf16.msra.mxu1 %v9692_v46  ;;  %v3298_v44 = vld [vmem:[#allocation3 + $0xe68] sm:$0xff]  ;;  %v9754_v46 = vcombine.low %v3285_v30, %v3289_v31  ;;  %v3223_v31 = vld [vmem:[#allocation3 + $0xc10] sm:$0xff] }
 0x1fb   : > { %4001 = vmatprep.subr.bf16.mxu0 %v9699_v47  ;;  %4044 = vmatprep.subr.bf16.mxu1 %v9701_v48  ;;  %v9756_v47 = vcombine.low %v3286_v32, %v3290_v34  ;;  %v9763_v48 = vcombine.high %v3293_v41, %v3297_v42  ;;  %v9765_v49 = vcombine.high %v3294_v43, %v3298_v44  ;;  %v3227_v32 = vld [vmem:[#allocation3 + $0xc30] sm:$0xff]  ;;  %v3224_v34 = vld [vmem:[#allocation3 + $0xc18] sm:$0xff] }
 0x1fc   : > { %4031 = vmatprep.mubr.bf16.mxu0 %v11043_v28  ;;  %4074 = vmatprep.mubr.bf16.mxu1 %v11043_v28 }
 0x1fe   : > { %4002 = vmatpush1.bf16.msra.mxu0 %v9698_v53  ;;  %4045 = vmatpush1.bf16.msra.mxu1 %v9700_v54  ;;  %v3306_v53 = vld [vmem:[#allocation3 + $0xea8] sm:$0xff]  ;;  %v9762_v54 = vcombine.low %v3293_v41, %v3297_v42  ;;  %v3231_v42 = vld [vmem:[#allocation3 + $0xc50] sm:$0xff] }
 0x1ff   : > { %4003 = vmatprep.subr.bf16.mxu0 %v9707_v55  ;;  %4046 = vmatprep.subr.bf16.mxu1 %v9709_v33  ;;  %v9764_v55 = vcombine.low %v3294_v43, %v3298_v44  ;;  %v9771_v33 = vcombine.high %v3301_v50, %v3305_v51  ;;  %v9773_v56 = vcombine.high %v3302_v52, %v3306_v53  ;;  %v3235_v43 = vld [vmem:[#allocation3 + $0xc70] sm:$0xff] }
 0x200   : > { %v11050_v44 = vld [vmem:[%s10992_s5 + $0x30] ss:$8 sps:$4 sm:$0xff]  }
 0x202   : > { %4004 = vmatpush1.bf16.msra.mxu0 %v9706_v59  ;;  %4047 = vmatpush1.bf16.msra.mxu1 %v9708_v38  ;;  %v3314_v59 = vld [vmem:[#allocation3 + $0xee8] sm:$0xff]  ;;  %v9770_v38 = vcombine.low %v3301_v50, %v3305_v51  ;;  %v9703_v50 = vcombine.high %v3231_v42, %v3235_v43 }
 0x203   : > { %4005 = vmatprep.subr.bf16.mxu0 %v9715_v60  ;;  %4048 = vmatprep.subr.bf16.mxu1 %v9717_v61  ;;  %v9772_v60 = vcombine.low %v3302_v52, %v3306_v53  ;;  %v9779_v61 = vcombine.high %v3309_v57, %v3313_v10  ;;  %v9781_v39 = vcombine.high %v3310_v58, %v3314_v59  ;;  %v3239_v52 = vld [vmem:[#allocation3 + $0xc90] sm:$0xff] }
 0x204   : > { %v3243_v53 = vld [vmem:[#allocation3 + $0xcb0] sm:$0xff] }
 0x206   : > { %4006 = vmatpush1.bf16.msra.mxu0 %v9714_v1  ;;  %4049 = vmatpush1.bf16.msra.mxu1 %v9716_v45  ;;  %v3322_v1 = vld [vmem:[#allocation3 + $0xf28] sm:$0xff]  ;;  %v9778_v45 = vcombine.low %v3309_v57, %v3313_v10  ;;  %v9711_v57 = vcombine.high %v3239_v52, %v3243_v53 }
 0x207   : > { %4007 = vmatprep.subr.bf16.mxu0 %v9723_v2  ;;  %4050 = vmatprep.subr.bf16.mxu1 %v9725_v3  ;;  %v9780_v2 = vcombine.low %v3310_v58, %v3314_v59  ;;  %v9787_v3 = vcombine.high %v3317_v62, %v3321_v63  ;;  %v9789_v4 = vcombine.high %v3318_v0, %v3322_v1  ;;  %v3247_v58 = vld [vmem:[#allocation3 + $0xcd0] sm:$0xff] }
 0x208   : > { %v3251_v59 = vld [vmem:[#allocation3 + $0xcf0] sm:$0xff] }
 0x20a   : > { %4008 = vmatpush1.bf16.msra.mxu0 %v9722_v8  ;;  %4051 = vmatpush1.bf16.msra.mxu1 %v9724_v9  ;;  %v3330_v8 = vld [vmem:[#allocation3 + $0xf68] sm:$0xff]  ;;  %v9786_v9 = vcombine.low %v3317_v62, %v3321_v63  ;;  %v9719_v62 = vcombine.high %v3247_v58, %v3251_v59 }
 0x20b   : > { %4009 = vmatprep.subr.bf16.mxu0 %v9731_v11  ;;  %4052 = vmatprep.subr.bf16.mxu1 %v9733_v12  ;;  %v9788_v11 = vcombine.low %v3318_v0, %v3322_v1  ;;  %v9795_v12 = vcombine.high %v3325_v5, %v3329_v6  ;;  %v9797_v13 = vcombine.high %v3326_v7, %v3330_v8  ;;  %v3255_v0 = vld [vmem:[#allocation3 + $0xd10] sm:$0xff] }
 0x20c   : > { %v3259_v1 = vld [vmem:[#allocation3 + $0xd30] sm:$0xff] }
 0x20e   : > { %4010 = vmatpush1.bf16.msra.mxu0 %v9730_v17  ;;  %4053 = vmatpush1.bf16.msra.mxu1 %v9732_v18  ;;  %v3338_v17 = vld [vmem:[#allocation3 + $0xfa8] sm:$0xff]  ;;  %v9794_v18 = vcombine.low %v3325_v5, %v3329_v6  ;;  %v9727_v5 = vcombine.high %v3255_v0, %v3259_v1  ;;  %v3263_v6 = vld [vmem:[#allocation3 + $0xd50] sm:$0xff] }
 0x20f   : > { %4011 = vmatprep.subr.bf16.mxu0 %v9739_v19  ;;  %4054 = vmatprep.subr.bf16.mxu1 %v9741_v20  ;;  %v9796_v19 = vcombine.low %v3326_v7, %v3330_v8  ;;  %v9803_v20 = vcombine.high %v3333_v14, %v3337_v15  ;;  %v9805_v21 = vcombine.high %v3334_v16, %v3338_v17  ;;  %v3267_v7 = vld [vmem:[#allocation3 + $0xd70] sm:$0xff]  ;;  %v3264_v8 = vld [vmem:[#allocation3 + $0xd58] sm:$0xff] }
 0x212   : > { %4012 = vmatpush1.bf16.msra.mxu0 %v9738_v25  ;;  %4055 = vmatpush1.bf16.msra.mxu1 %v9740_v26  ;;  %v3346_v25 = vld [vmem:[#allocation3 + $0xfe8] sm:$0xff]  ;;  %v9802_v26 = vcombine.low %v3333_v14, %v3337_v15  ;;  %v3271_v15 = vld [vmem:[#allocation3 + $0xd90] sm:$0xff] }
 0x213   : > { %4013 = vmatprep.subr.bf16.mxu0 %v9747_v27  ;;  %4056 = vmatprep.subr.bf16.mxu1 %v9749_v29  ;;  %v9804_v27 = vcombine.low %v3334_v16, %v3338_v17  ;;  %v9811_v29 = vcombine.high %v3341_v22, %v3345_v23  ;;  %v9813_v30 = vcombine.high %v3342_v24, %v3346_v25  ;;  %v3275_v16 = vld [vmem:[#allocation3 + $0xdb0] sm:$0xff]  ;;  %v3272_v17 = vld [vmem:[#allocation3 + $0xd98] sm:$0xff] }
 0x216   : > { %4014 = vmatpush1.bf16.msra.mxu0 %v9746_v35  ;;  %4057 = vmatpush1.bf16.msra.mxu1 %v9748_v36  ;;  %v3228_v35 = vld [vmem:[#allocation3 + $0xc38] sm:$0xff]  ;;  %v9810_v36 = vcombine.low %v3341_v22, %v3345_v23  ;;  %v3279_v23 = vld [vmem:[#allocation3 + $0xdd0] sm:$0xff] }
 0x217   : > { %4015 = vmatprep.subr.bf16.mxu0 %v9755_v37  ;;  %4058 = vmatprep.subr.bf16.mxu1 %v9757_v40  ;;  %v9812_v37 = vcombine.low %v3342_v24, %v3346_v25  ;;  %v9695_v40 = vcombine.high %v3223_v31, %v3227_v32  ;;  %v9697_v41 = vcombine.high %v3224_v34, %v3228_v35  ;;  %v3283_v24 = vld [vmem:[#allocation3 + $0xdf0] sm:$0xff]  ;;  %v3280_v25 = vld [vmem:[#allocation3 + $0xdd8] sm:$0xff] }
 0x21a   : > { %4016 = vmatpush1.bf16.msra.mxu0 %v9754_v46  ;;  %4059 = vmatpush1.bf16.msra.mxu1 %v9756_v47  ;;  %v3232_v46 = vld [vmem:[#allocation3 + $0xc58] sm:$0xff] }
 0x21b   : > { %4017 = vmatprep.subr.bf16.mxu0 %v9763_v48  ;;  %4060 = vmatprep.subr.bf16.mxu1 %v9765_v49  ;;  %v3236_v47 = vld [vmem:[#allocation3 + $0xc78] sm:$0xff]  ;;  %v9694_v48 = vcombine.low %v3223_v31, %v3227_v32  ;;  %v9696_v49 = vcombine.low %v3224_v34, %v3228_v35  ;;  %v3287_v32 = vld [vmem:[#allocation3 + $0xe10] sm:$0xff] }
 0x21c   : > { %v9705_v51 = vcombine.high %v3232_v46, %v3236_v47  ;;  %v3291_v34 = vld [vmem:[#allocation3 + $0xe30] sm:$0xff]  ;;  %v3288_v35 = vld [vmem:[#allocation3 + $0xe18] sm:$0xff] }
 0x21e   : > { %4018 = vmatpush1.bf16.msra.mxu0 %v9762_v54  ;;  %4061 = vmatpush1.bf16.msra.mxu1 %v9764_v55  ;;  %v3240_v54 = vld [vmem:[#allocation3 + $0xc98] sm:$0xff] }
 0x21f   : > { %4019 = vmatprep.subr.bf16.mxu0 %v9771_v33  ;;  %4062 = vmatprep.subr.bf16.mxu1 %v9773_v56  ;;  %v3244_v55 = vld [vmem:[#allocation3 + $0xcb8] sm:$0xff]  ;;  %v9702_v33 = vcombine.low %v3231_v42, %v3235_v43  ;;  %v9704_v56 = vcombine.low %v3232_v46, %v3236_v47  ;;  %v3295_v43 = vld [vmem:[#allocation3 + $0xe50] sm:$0xff] }
 0x220   : > { %v9713_v10 = vcombine.high %v3240_v54, %v3244_v55  ;;  %v3299_v46 = vld [vmem:[#allocation3 + $0xe70] sm:$0xff]  ;;  %v3296_v47 = vld [vmem:[#allocation3 + $0xe58] sm:$0xff] }
 0x222   : > { %4020 = vmatpush1.bf16.msra.mxu0 %v9770_v38  ;;  %4063 = vmatpush1.bf16.msra.mxu1 %v9772_v60  ;;  %v3248_v38 = vld [vmem:[#allocation3 + $0xcd8] sm:$0xff] }
 0x223   : > { %4021 = vmatprep.subr.bf16.mxu0 %v9779_v61  ;;  %4064 = vmatprep.subr.bf16.mxu1 %v9781_v39  ;;  %v3252_v60 = vld [vmem:[#allocation3 + $0xcf8] sm:$0xff]  ;;  %v9710_v61 = vcombine.low %v3239_v52, %v3243_v53  ;;  %v9712_v39 = vcombine.low %v3240_v54, %v3244_v55  ;;  %v3303_v53 = vld [vmem:[#allocation3 + $0xe90] sm:$0xff] }
 0x224   : > { %v9721_v63 = vcombine.high %v3248_v38, %v3252_v60  ;;  %v3307_v54 = vld [vmem:[#allocation3 + $0xeb0] sm:$0xff]  ;;  %v3304_v55 = vld [vmem:[#allocation3 + $0xe98] sm:$0xff] }
 0x226   : > { %4022 = vmatpush1.bf16.msra.mxu0 %v9778_v45  ;;  %4065 = vmatpush1.bf16.msra.mxu1 %v9780_v2  ;;  %v3256_v45 = vld [vmem:[#allocation3 + $0xd18] sm:$0xff] }
 0x227   : > { %4023 = vmatprep.subr.bf16.mxu0 %v9787_v3  ;;  %4066 = vmatprep.subr.bf16.mxu1 %v9789_v4  ;;  %v3260_v2 = vld [vmem:[#allocation3 + $0xd38] sm:$0xff]  ;;  %v9718_v3 = vcombine.low %v3247_v58, %v3251_v59  ;;  %v9720_v4 = vcombine.low %v3248_v38, %v3252_v60  ;;  %v3311_v59 = vld [vmem:[#allocation3 + $0xed0] sm:$0xff] }
 0x228   : > { %v3315_v38 = vld [vmem:[#allocation3 + $0xef0] sm:$0xff]  ;;  %v3312_v60 = vld [vmem:[#allocation3 + $0xed8] sm:$0xff] }
 0x22a   : > { %4024 = vmatpush1.bf16.msra.mxu0 %v9786_v9  ;;  %4067 = vmatpush1.bf16.msra.mxu1 %v9788_v11  ;;  %v3268_v9 = vld [vmem:[#allocation3 + $0xd78] sm:$0xff]  ;;  %v9726_v11 = vcombine.low %v3255_v0, %v3259_v1  ;;  %v3319_v1 = vld [vmem:[#allocation3 + $0xf10] sm:$0xff] }
 0x22b   : > { %4025 = vmatprep.subr.bf16.mxu0 %v9795_v12  ;;  %4068 = vmatprep.subr.bf16.mxu1 %v9797_v13  ;;  %v9728_v12 = vcombine.low %v3256_v45, %v3260_v2  ;;  %v9735_v13 = vcombine.high %v3263_v6, %v3267_v7  ;;  %v9737_v14 = vcombine.high %v3264_v8, %v3268_v9 }
 0x22e   : > { %4026 = vmatpush1.bf16.msra.mxu0 %v9794_v18  ;;  %4069 = vmatpush1.bf16.msra.mxu1 %v9796_v19  ;;  %v3276_v18 = vld [vmem:[#allocation3 + $0xdb8] sm:$0xff]  ;;  %v9734_v19 = vcombine.low %v3263_v6, %v3267_v7  ;;  %v3327_v7 = vld [vmem:[#allocation3 + $0xf50] sm:$0xff] }
 0x22f   : > { %4027 = vmatprep.subr.bf16.mxu0 %v9803_v20  ;;  %4070 = vmatprep.subr.bf16.mxu1 %v9805_v21  ;;  %v9736_v20 = vcombine.low %v3264_v8, %v3268_v9  ;;  %v9743_v21 = vcombine.high %v3271_v15, %v3275_v16  ;;  %v9745_v22 = vcombine.high %v3272_v17, %v3276_v18  ;;  %v3331_v8 = vld [vmem:[#allocation3 + $0xf70] sm:$0xff]  ;;  %v3328_v9 = vld [vmem:[#allocation3 + $0xf58] sm:$0xff] }
 0x232   : > { %4028 = vmatpush1.bf16.msra.mxu0 %v9802_v26  ;;  %4071 = vmatpush1.bf16.msra.mxu1 %v9804_v27  ;;  %v3284_v26 = vld [vmem:[#allocation3 + $0xdf8] sm:$0xff]  ;;  %v9742_v27 = vcombine.low %v3271_v15, %v3275_v16  ;;  %v3335_v16 = vld [vmem:[#allocation3 + $0xf90] sm:$0xff] }
 0x233   : > { %4029 = vmatprep.subr.bf16.mxu0 %v9811_v29  ;;  %4072 = vmatprep.subr.bf16.mxu1 %v9813_v30  ;;  %v9744_v29 = vcombine.low %v3272_v17, %v3276_v18  ;;  %v9751_v30 = vcombine.high %v3279_v23, %v3283_v24  ;;  %v9753_v31 = vcombine.high %v3280_v25, %v3284_v26  ;;  %v3339_v17 = vld [vmem:[#allocation3 + $0xfb0] sm:$0xff]  ;;  %v3336_v18 = vld [vmem:[#allocation3 + $0xf98] sm:$0xff] }
 0x236   : > { %4030 = vmatpush1.bf16.msra.mxu0 %v9810_v36  ;;  %4073 = vmatpush1.bf16.msra.mxu1 %v9812_v37  ;;  %v3292_v36 = vld [vmem:[#allocation3 + $0xe38] sm:$0xff]  ;;  %v9750_v37 = vcombine.low %v3279_v23, %v3283_v24  ;;  %v3343_v24 = vld [vmem:[#allocation3 + $0xfd0] sm:$0xff] }
 0x237   : > { %4085 = vmatprep.subr.bf16.mxu0 %v9695_v40  ;;  %4128 = vmatprep.subr.bf16.mxu1 %v9697_v41  ;;  %v9752_v40 = vcombine.low %v3280_v25, %v3284_v26  ;;  %v9759_v41 = vcombine.high %v3287_v32, %v3291_v34  ;;  %v9761_v42 = vcombine.high %v3288_v35, %v3292_v36  ;;  %v3347_v25 = vld [vmem:[#allocation3 + $0xff0] sm:$0xff]  ;;  %v3344_v26 = vld [vmem:[#allocation3 + $0xfd8] sm:$0xff] }
 0x239   : > { %4032 = vmatmul.mubr.bf16.vlgmr.msra.gmra.mrb[0].mxu0 %v11050_v44  ;;  %4075 = vmatmul.mubr.bf16.vlgmr.msra.gmra.mrb[0].mxu1 %v11050_v44 }
 0x23a   : > { %4086 = vmatpush1.bf16.msra.mxu0 %v9694_v48  ;;  %4129 = vmatpush1.bf16.msra.mxu1 %v9696_v49  ;;  %v3300_v48 = vld [vmem:[#allocation3 + $0xe78] sm:$0xff]  ;;  %v9758_v49 = vcombine.low %v3287_v32, %v3291_v34  ;;  %v4191_v34 = vld [vmem:[#allocation3 + $0x1000] sm:$0xff] }
 0x23b   : > { %4087 = vmatprep.subr.bf16.mxu0 %v9703_v50  ;;  %4130 = vmatprep.subr.bf16.mxu1 %v9705_v51  ;;  %v9760_v50 = vcombine.low %v3288_v35, %v3292_v36  ;;  %v9767_v51 = vcombine.high %v3295_v43, %v3299_v46  ;;  %v9769_v52 = vcombine.high %v3296_v47, %v3300_v48  ;;  %v4195_v35 = vld [vmem:[#allocation3 + $0x1020] sm:$0xff]  ;;  %v4192_v36 = vld [vmem:[#allocation3 + $0x1008] sm:$0xff] }
 0x23c   : > { %4117 = vmatprep.mubr.bf16.mxu0 %v11043_v28  ;;  %4160 = vmatprep.mubr.bf16.mxu1 %v11043_v28  ;;  %v9729_v28 = vcombine.high %v3256_v45, %v3260_v2  ;;  %v3323_v45 = vld [vmem:[#allocation3 + $0xf30] sm:$0xff]  ;;  %v3320_v2 = vld [vmem:[#allocation3 + $0xf18] sm:$0xff] }
 0x23e   : > { %4088 = vmatpush1.bf16.msra.mxu0 %v9702_v33  ;;  %4131 = vmatpush1.bf16.msra.mxu1 %v9704_v56  ;;  %v3308_v33 = vld [vmem:[#allocation3 + $0xeb8] sm:$0xff]  ;;  %v9766_v56 = vcombine.low %v3295_v43, %v3299_v46  ;;  %v4199_v46 = vld [vmem:[#allocation3 + $0x1040] sm:$0xff] }
 0x23f   : > { %4089 = vmatprep.subr.bf16.mxu0 %v9711_v57  ;;  %4132 = vmatprep.subr.bf16.mxu1 %v9713_v10  ;;  %v9768_v57 = vcombine.low %v3296_v47, %v3300_v48  ;;  %v9775_v10 = vcombine.high %v3303_v53, %v3307_v54  ;;  %v9777_v58 = vcombine.high %v3304_v55, %v3308_v33  ;;  %v4203_v47 = vld [vmem:[#allocation3 + $0x1060] sm:$0xff]  ;;  %v4200_v48 = vld [vmem:[#allocation3 + $0x1048] sm:$0xff] }
 0x242   : > { %4090 = vmatpush1.bf16.msra.mxu0 %v9710_v61  ;;  %4133 = vmatpush1.bf16.msra.mxu1 %v9712_v39  ;;  %v3316_v61 = vld [vmem:[#allocation3 + $0xef8] sm:$0xff]  ;;  %v9774_v39 = vcombine.low %v3303_v53, %v3307_v54  ;;  %v4207_v54 = vld [vmem:[#allocation3 + $0x1080] sm:$0xff] }
 0x243   : > { %4091 = vmatprep.subr.bf16.mxu0 %v9719_v62  ;;  %4134 = vmatprep.subr.bf16.mxu1 %v9721_v63  ;;  %v9776_v62 = vcombine.low %v3304_v55, %v3308_v33  ;;  %v9783_v63 = vcombine.high %v3311_v59, %v3315_v38  ;;  %v9785_v0 = vcombine.high %v3312_v60, %v3316_v61  ;;  %v4211_v55 = vld [vmem:[#allocation3 + $0x10a0] sm:$0xff] }
 0x244   : > { %v11057_v33 = vld [vmem:[%s10992_s5 + $0x44] ss:$8 sps:$4 sm:$0xff]  }
 0x246   : > { %4092 = vmatpush1.bf16.msra.mxu0 %v9718_v3  ;;  %4135 = vmatpush1.bf16.msra.mxu1 %v9720_v4  ;;  %v3324_v3 = vld [vmem:[#allocation3 + $0xf38] sm:$0xff]  ;;  %v9782_v4 = vcombine.low %v3311_v59, %v3315_v38  ;;  %v9839_v59 = vcombine.high %v4207_v54, %v4211_v55 }
 0x247   : > { %4093 = vmatprep.subr.bf16.mxu0 %v9727_v5  ;;  %4136 = vmatprep.subr.bf16.mxu1 %v9729_v28  ;;  %v9784_v5 = vcombine.low %v3312_v60, %v3316_v61  ;;  %v9791_v28 = vcombine.high %v3319_v1, %v3323_v45  ;;  %v9793_v6 = vcombine.high %v3320_v2, %v3324_v3  ;;  %v4215_v60 = vld [vmem:[#allocation3 + $0x10c0] sm:$0xff] }
 0x248   : > { %v4219_v61 = vld [vmem:[#allocation3 + $0x10e0] sm:$0xff] }
 0x24a   : > { %4094 = vmatpush1.bf16.msra.mxu0 %v9726_v11  ;;  %4137 = vmatpush1.bf16.msra.mxu1 %v9728_v12  ;;  %v3332_v11 = vld [vmem:[#allocation3 + $0xf78] sm:$0xff]  ;;  %v9790_v12 = vcombine.low %v3319_v1, %v3323_v45  ;;  %v4223_v45 = vld [vmem:[#allocation3 + $0x1100] sm:$0xff] }
 0x24b   : > { %4095 = vmatprep.subr.bf16.mxu0 %v9735_v13  ;;  %4138 = vmatprep.subr.bf16.mxu1 %v9737_v14  ;;  %v9792_v13 = vcombine.low %v3320_v2, %v3324_v3  ;;  %v9799_v14 = vcombine.high %v3327_v7, %v3331_v8  ;;  %v9801_v15 = vcombine.high %v3328_v9, %v3332_v11  ;;  %v4227_v2 = vld [vmem:[#allocation3 + $0x1120] sm:$0xff]  ;;  %v4224_v3 = vld [vmem:[#allocation3 + $0x1108] sm:$0xff] }
 0x24e   : > { %4096 = vmatpush1.bf16.msra.mxu0 %v9734_v19  ;;  %4139 = vmatpush1.bf16.msra.mxu1 %v9736_v20  ;;  %v3340_v19 = vld [vmem:[#allocation3 + $0xfb8] sm:$0xff]  ;;  %v9798_v20 = vcombine.low %v3327_v7, %v3331_v8  ;;  %v4231_v8 = vld [vmem:[#allocation3 + $0x1140] sm:$0xff] }
 0x24f   : > { %4097 = vmatprep.subr.bf16.mxu0 %v9743_v21  ;;  %4140 = vmatprep.subr.bf16.mxu1 %v9745_v22  ;;  %v9800_v21 = vcombine.low %v3328_v9, %v3332_v11  ;;  %v9807_v22 = vcombine.high %v3335_v16, %v3339_v17  ;;  %v9809_v23 = vcombine.high %v3336_v18, %v3340_v19  ;;  %v4235_v9 = vld [vmem:[#allocation3 + $0x1160] sm:$0xff]  ;;  %v4232_v11 = vld [vmem:[#allocation3 + $0x1148] sm:$0xff] }
 0x252   : > { %4098 = vmatpush1.bf16.msra.mxu0 %v9742_v27  ;;  %4141 = vmatpush1.bf16.msra.mxu1 %v9744_v29  ;;  %v3348_v27 = vld [vmem:[#allocation3 + $0xff8] sm:$0xff]  ;;  %v9806_v29 = vcombine.low %v3335_v16, %v3339_v17  ;;  %v4239_v17 = vld [vmem:[#allocation3 + $0x1180] sm:$0xff] }
 0x253   : > { %4099 = vmatprep.subr.bf16.mxu0 %v9751_v30  ;;  %4142 = vmatprep.subr.bf16.mxu1 %v9753_v31  ;;  %v9808_v30 = vcombine.low %v3336_v18, %v3340_v19  ;;  %v9815_v31 = vcombine.high %v3343_v24, %v3347_v25  ;;  %v9817_v32 = vcombine.high %v3344_v26, %v3348_v27  ;;  %v4243_v18 = vld [vmem:[#allocation3 + $0x11a0] sm:$0xff]  ;;  %v4240_v19 = vld [vmem:[#allocation3 + $0x1188] sm:$0xff] }
 0x256   : > { %4100 = vmatpush1.bf16.msra.mxu0 %v9750_v37  ;;  %4143 = vmatpush1.bf16.msra.mxu1 %v9752_v40  ;;  %v4196_v37 = vld [vmem:[#allocation3 + $0x1028] sm:$0xff]  ;;  %v9814_v40 = vcombine.low %v3343_v24, %v3347_v25  ;;  %v4247_v25 = vld [vmem:[#allocation3 + $0x11c0] sm:$0xff] }
 0x257   : > { %4101 = vmatprep.subr.bf16.mxu0 %v9759_v41  ;;  %4144 = vmatprep.subr.bf16.mxu1 %v9761_v42  ;;  %v9816_v41 = vcombine.low %v3344_v26, %v3348_v27  ;;  %v9823_v42 = vcombine.high %v4191_v34, %v4195_v35  ;;  %v9825_v43 = vcombine.high %v4192_v36, %v4196_v37  ;;  %v4251_v26 = vld [vmem:[#allocation3 + $0x11e0] sm:$0xff]  ;;  %v4248_v27 = vld [vmem:[#allocation3 + $0x11c8] sm:$0xff] }
 0x25a   : > { %4102 = vmatpush1.bf16.msra.mxu0 %v9758_v49  ;;  %4145 = vmatpush1.bf16.msra.mxu1 %v9760_v50  ;;  %v4204_v49 = vld [vmem:[#allocation3 + $0x1068] sm:$0xff]  ;;  %v9822_v50 = vcombine.low %v4191_v34, %v4195_v35  ;;  %v4255_v35 = vld [vmem:[#allocation3 + $0x1200] sm:$0xff] }
 0x25b   : > { %4103 = vmatprep.subr.bf16.mxu0 %v9767_v51  ;;  %4146 = vmatprep.subr.bf16.mxu1 %v9769_v52  ;;  %v9824_v51 = vcombine.low %v4192_v36, %v4196_v37  ;;  %v9831_v52 = vcombine.high %v4199_v46, %v4203_v47  ;;  %v9833_v53 = vcombine.high %v4200_v48, %v4204_v49  ;;  %v4259_v36 = vld [vmem:[#allocation3 + $0x1220] sm:$0xff]  ;;  %v4256_v37 = vld [vmem:[#allocation3 + $0x1208] sm:$0xff] }
 0x25e   : > { %4104 = vmatpush1.bf16.msra.mxu0 %v9766_v56  ;;  %4147 = vmatpush1.bf16.msra.mxu1 %v9768_v57  ;;  %v4208_v56 = vld [vmem:[#allocation3 + $0x1088] sm:$0xff] }
 0x25f   : > { %4105 = vmatprep.subr.bf16.mxu0 %v9775_v10  ;;  %4148 = vmatprep.subr.bf16.mxu1 %v9777_v58  ;;  %v4212_v57 = vld [vmem:[#allocation3 + $0x10a8] sm:$0xff]  ;;  %v9830_v10 = vcombine.low %v4199_v46, %v4203_v47  ;;  %v9832_v58 = vcombine.low %v4200_v48, %v4204_v49  ;;  %v4263_v47 = vld [vmem:[#allocation3 + $0x1240] sm:$0xff] }
 0x260   : > { %v9841_v38 = vcombine.high %v4208_v56, %v4212_v57  ;;  %v4267_v48 = vld [vmem:[#allocation3 + $0x1260] sm:$0xff]  ;;  %v4264_v49 = vld [vmem:[#allocation3 + $0x1248] sm:$0xff] }
 0x262   : > { %4106 = vmatpush1.bf16.msra.mxu0 %v9774_v39  ;;  %4149 = vmatpush1.bf16.msra.mxu1 %v9776_v62  ;;  %v4216_v39 = vld [vmem:[#allocation3 + $0x10c8] sm:$0xff] }
 0x263   : > { %4107 = vmatprep.subr.bf16.mxu0 %v9783_v63  ;;  %4150 = vmatprep.subr.bf16.mxu1 %v9785_v0  ;;  %v4220_v62 = vld [vmem:[#allocation3 + $0x10e8] sm:$0xff]  ;;  %v9838_v63 = vcombine.low %v4207_v54, %v4211_v55  ;;  %v9847_v0 = vcombine.high %v4215_v60, %v4219_v61  ;;  %v4271_v55 = vld [vmem:[#allocation3 + $0x1280] sm:$0xff] }
 0x264   : > { %v9849_v1 = vcombine.high %v4216_v39, %v4220_v62 }
 0x266   : > { %4108 = vmatpush1.bf16.msra.mxu0 %v9782_v4  ;;  %4151 = vmatpush1.bf16.msra.mxu1 %v9784_v5  ;;  %v4228_v4 = vld [vmem:[#allocation3 + $0x1128] sm:$0xff]  ;;  %v9846_v5 = vcombine.low %v4215_v60, %v4219_v61  ;;  %v4279_v61 = vld [vmem:[#allocation3 + $0x12c0] sm:$0xff] }
 0x267   : > { %4109 = vmatprep.subr.bf16.mxu0 %v9791_v28  ;;  %4152 = vmatprep.subr.bf16.mxu1 %v9793_v6  ;;  %v9848_v28 = vcombine.low %v4216_v39, %v4220_v62  ;;  %v9855_v6 = vcombine.high %v4223_v45, %v4227_v2  ;;  %v9857_v7 = vcombine.high %v4224_v3, %v4228_v4  ;;  %v4283_v39 = vld [vmem:[#allocation3 + $0x12e0] sm:$0xff]  ;;  %v4280_v62 = vld [vmem:[#allocation3 + $0x12c8] sm:$0xff] }
 0x26a   : > { %4110 = vmatpush1.bf16.msra.mxu0 %v9790_v12  ;;  %4153 = vmatpush1.bf16.msra.mxu1 %v9792_v13  ;;  %v4236_v12 = vld [vmem:[#allocation3 + $0x1168] sm:$0xff]  ;;  %v9854_v13 = vcombine.low %v4223_v45, %v4227_v2  ;;  %v4287_v2 = vld [vmem:[#allocation3 + $0x1300] sm:$0xff] }
 0x26b   : > { %4111 = vmatprep.subr.bf16.mxu0 %v9799_v14  ;;  %4154 = vmatprep.subr.bf16.mxu1 %v9801_v15  ;;  %v9856_v14 = vcombine.low %v4224_v3, %v4228_v4  ;;  %v9863_v15 = vcombine.high %v4231_v8, %v4235_v9  ;;  %v9865_v16 = vcombine.high %v4232_v11, %v4236_v12  ;;  %v4291_v3 = vld [vmem:[#allocation3 + $0x1320] sm:$0xff]  ;;  %v4288_v4 = vld [vmem:[#allocation3 + $0x1308] sm:$0xff] }
 0x26e   : > { %4112 = vmatpush1.bf16.msra.mxu0 %v9798_v20  ;;  %4155 = vmatpush1.bf16.msra.mxu1 %v9800_v21  ;;  %v4244_v20 = vld [vmem:[#allocation3 + $0x11a8] sm:$0xff]  ;;  %v9862_v21 = vcombine.low %v4231_v8, %v4235_v9  ;;  %v4295_v9 = vld [vmem:[#allocation3 + $0x1340] sm:$0xff] }
 0x26f   : > { %4113 = vmatprep.subr.bf16.mxu0 %v9807_v22  ;;  %4156 = vmatprep.subr.bf16.mxu1 %v9809_v23  ;;  %v9864_v22 = vcombine.low %v4232_v11, %v4236_v12  ;;  %v9871_v23 = vcombine.high %v4239_v17, %v4243_v18  ;;  %v9873_v24 = vcombine.high %v4240_v19, %v4244_v20  ;;  %v4299_v11 = vld [vmem:[#allocation3 + $0x1360] sm:$0xff]  ;;  %v4296_v12 = vld [vmem:[#allocation3 + $0x1348] sm:$0xff] }
 0x272   : > { %4114 = vmatpush1.bf16.msra.mxu0 %v9806_v29  ;;  %4157 = vmatpush1.bf16.msra.mxu1 %v9808_v30  ;;  %v4252_v29 = vld [vmem:[#allocation3 + $0x11e8] sm:$0xff]  ;;  %v9870_v30 = vcombine.low %v4239_v17, %v4243_v18  ;;  %v4303_v18 = vld [vmem:[#allocation3 + $0x1380] sm:$0xff] }
 0x273   : > { %4115 = vmatprep.subr.bf16.mxu0 %v9815_v31  ;;  %4158 = vmatprep.subr.bf16.mxu1 %v9817_v32  ;;  %v9872_v31 = vcombine.low %v4240_v19, %v4244_v20  ;;  %v9879_v32 = vcombine.high %v4247_v25, %v4251_v26  ;;  %v9881_v34 = vcombine.high %v4248_v27, %v4252_v29  ;;  %v4307_v19 = vld [vmem:[#allocation3 + $0x13a0] sm:$0xff]  ;;  %v4304_v20 = vld [vmem:[#allocation3 + $0x1388] sm:$0xff] }
 0x276   : > { %4116 = vmatpush1.bf16.msra.mxu0 %v9814_v40  ;;  %4159 = vmatpush1.bf16.msra.mxu1 %v9816_v41  ;;  %v4260_v40 = vld [vmem:[#allocation3 + $0x1228] sm:$0xff]  ;;  %v9878_v41 = vcombine.low %v4247_v25, %v4251_v26  ;;  %v4311_v26 = vld [vmem:[#allocation3 + $0x13c0] sm:$0xff] }
 0x277   : > { %4969 = vmatprep.subr.bf16.mxu0 %v9823_v42  ;;  %5012 = vmatprep.subr.bf16.mxu1 %v9825_v43  ;;  %v9880_v42 = vcombine.low %v4248_v27, %v4252_v29  ;;  %v9887_v43 = vcombine.high %v4255_v35, %v4259_v36  ;;  %v9889_v46 = vcombine.high %v4256_v37, %v4260_v40  ;;  %v4315_v27 = vld [vmem:[#allocation3 + $0x13e0] sm:$0xff]  ;;  %v4312_v29 = vld [vmem:[#allocation3 + $0x13c8] sm:$0xff] }
 0x279   : > { %4118 = vmatmul.mubr.bf16.vlgmr.msra.gmra.mrb[4].mxu0 %v11050_v44  ;;  %4161 = vmatmul.mubr.bf16.vlgmr.msra.gmra.mrb[4].mxu1 %v11050_v44  ;;  %v9840_v44 = vcombine.low %v4208_v56, %v4212_v57  ;;  %v4275_v56 = vld [vmem:[#allocation3 + $0x12a0] sm:$0xff]  ;;  %v4272_v57 = vld [vmem:[#allocation3 + $0x1288] sm:$0xff] }
 0x27a   : > { %4970 = vmatpush1.bf16.msra.mxu0 %v9822_v50  ;;  %5013 = vmatpush1.bf16.msra.mxu1 %v9824_v51  ;;  %v4268_v50 = vld [vmem:[#allocation3 + $0x1268] sm:$0xff]  ;;  %v9886_v51 = vcombine.low %v4255_v35, %v4259_v36  ;;  %v4193_v36 = vld [vmem:[#allocation3 + $0x1010] sm:$0xff] }
 0x27b   : > { %4971 = vmatprep.subr.bf16.mxu0 %v9831_v52  ;;  %5014 = vmatprep.subr.bf16.mxu1 %v9833_v53  ;;  %v9888_v52 = vcombine.low %v4256_v37, %v4260_v40  ;;  %v9895_v53 = vcombine.high %v4263_v47, %v4267_v48  ;;  %v9897_v54 = vcombine.high %v4264_v49, %v4268_v50  ;;  %v4197_v37 = vld [vmem:[#allocation3 + $0x1030] sm:$0xff]  ;;  %v4194_v40 = vld [vmem:[#allocation3 + $0x1018] sm:$0xff] }
 0x27c   : > { %5001 = vmatprep.mubr.bf16.mxu0 %v11057_v33  ;;  %5044 = vmatprep.mubr.bf16.mxu1 %v11057_v33 }
 0x27e   : > { %4972 = vmatpush1.bf16.msra.mxu0 %v9830_v10  ;;  %5015 = vmatpush1.bf16.msra.mxu1 %v9832_v58  ;;  %v4276_v10 = vld [vmem:[#allocation3 + $0x12a8] sm:$0xff]  ;;  %v9894_v58 = vcombine.low %v4263_v47, %v4267_v48  ;;  %v4201_v48 = vld [vmem:[#allocation3 + $0x1050] sm:$0xff] }
 0x27f   : > { %4973 = vmatprep.subr.bf16.mxu0 %v9839_v59  ;;  %5016 = vmatprep.subr.bf16.mxu1 %v9841_v38  ;;  %v9896_v59 = vcombine.low %v4264_v49, %v4268_v50  ;;  %v9903_v38 = vcombine.high %v4271_v55, %v4275_v56  ;;  %v9905_v60 = vcombine.high %v4272_v57, %v4276_v10  ;;  %v4205_v49 = vld [vmem:[#allocation3 + $0x1070] sm:$0xff] }
 0x280   : > { %v11064_v50 = vld [vmem:[%s10992_s5 + $0x40] ss:$8 sps:$4 sm:$0xff]  }
 0x282   : > { %4974 = vmatpush1.bf16.msra.mxu0 %v9838_v63  ;;  %5017 = vmatpush1.bf16.msra.mxu1 %v9840_v44  ;;  %v4284_v63 = vld [vmem:[#allocation3 + $0x12e8] sm:$0xff]  ;;  %v9902_v44 = vcombine.low %v4271_v55, %v4275_v56  ;;  %v9835_v55 = vcombine.high %v4201_v48, %v4205_v49 }
 0x283   : > { %4975 = vmatprep.subr.bf16.mxu0 %v9847_v0  ;;  %5018 = vmatprep.subr.bf16.mxu1 %v9849_v1  ;;  %v9904_v0 = vcombine.low %v4272_v57, %v4276_v10  ;;  %v9911_v1 = vcombine.high %v4279_v61, %v4283_v39  ;;  %v9913_v45 = vcombine.high %v4280_v62, %v4284_v63  ;;  %v4209_v57 = vld [vmem:[#allocation3 + $0x1090] sm:$0xff] }
 0x284   : > { %v4213_v10 = vld [vmem:[#allocation3 + $0x10b0] sm:$0xff] }
 0x286   : > { %4976 = vmatpush1.bf16.msra.mxu0 %v9846_v5  ;;  %5019 = vmatpush1.bf16.msra.mxu1 %v9848_v28  ;;  %v4292_v5 = vld [vmem:[#allocation3 + $0x1328] sm:$0xff]  ;;  %v9910_v28 = vcombine.low %v4279_v61, %v4283_v39  ;;  %v9843_v61 = vcombine.high %v4209_v57, %v4213_v10 }
 0x287   : > { %4977 = vmatprep.subr.bf16.mxu0 %v9855_v6  ;;  %5020 = vmatprep.subr.bf16.mxu1 %v9857_v7  ;;  %v9912_v6 = vcombine.low %v4280_v62, %v4284_v63  ;;  %v9919_v7 = vcombine.high %v4287_v2, %v4291_v3  ;;  %v9921_v8 = vcombine.high %v4288_v4, %v4292_v5  ;;  %v4217_v62 = vld [vmem:[#allocation3 + $0x10d0] sm:$0xff] }
 0x288   : > { %v4221_v63 = vld [vmem:[#allocation3 + $0x10f0] sm:$0xff] }
 0x28a   : > { %4978 = vmatpush1.bf16.msra.mxu0 %v9854_v13  ;;  %5021 = vmatpush1.bf16.msra.mxu1 %v9856_v14  ;;  %v4300_v13 = vld [vmem:[#allocation3 + $0x1368] sm:$0xff]  ;;  %v9918_v14 = vcombine.low %v4287_v2, %v4291_v3  ;;  %v9851_v2 = vcombine.high %v4217_v62, %v4221_v63 }
 0x28b   : > { %4979 = vmatprep.subr.bf16.mxu0 %v9863_v15  ;;  %5022 = vmatprep.subr.bf16.mxu1 %v9865_v16  ;;  %v9920_v15 = vcombine.low %v4288_v4, %v4292_v5  ;;  %v9927_v16 = vcombine.high %v4295_v9, %v4299_v11  ;;  %v9929_v17 = vcombine.high %v4296_v12, %v4300_v13  ;;  %v4225_v4 = vld [vmem:[#allocation3 + $0x1110] sm:$0xff] }
 0x28c   : > { %v4229_v5 = vld [vmem:[#allocation3 + $0x1130] sm:$0xff] }
 0x28e   : > { %4980 = vmatpush1.bf16.msra.mxu0 %v9862_v21  ;;  %5023 = vmatpush1.bf16.msra.mxu1 %v9864_v22  ;;  %v4308_v21 = vld [vmem:[#allocation3 + $0x13a8] sm:$0xff]  ;;  %v9926_v22 = vcombine.low %v4295_v9, %v4299_v11  ;;  %v9859_v9 = vcombine.high %v4225_v4, %v4229_v5  ;;  %v4233_v11 = vld [vmem:[#allocation3 + $0x1150] sm:$0xff] }
 0x28f   : > { %4981 = vmatprep.subr.bf16.mxu0 %v9871_v23  ;;  %5024 = vmatprep.subr.bf16.mxu1 %v9873_v24  ;;  %v9928_v23 = vcombine.low %v4296_v12, %v4300_v13  ;;  %v9935_v24 = vcombine.high %v4303_v18, %v4307_v19  ;;  %v9937_v25 = vcombine.high %v4304_v20, %v4308_v21  ;;  %v4237_v12 = vld [vmem:[#allocation3 + $0x1170] sm:$0xff]  ;;  %v4234_v13 = vld [vmem:[#allocation3 + $0x1158] sm:$0xff] }
 0x292   : > { %4982 = vmatpush1.bf16.msra.mxu0 %v9870_v30  ;;  %5025 = vmatpush1.bf16.msra.mxu1 %v9872_v31  ;;  %v4316_v30 = vld [vmem:[#allocation3 + $0x13e8] sm:$0xff]  ;;  %v9934_v31 = vcombine.low %v4303_v18, %v4307_v19  ;;  %v4241_v19 = vld [vmem:[#allocation3 + $0x1190] sm:$0xff] }
 0x293   : > { %4983 = vmatprep.subr.bf16.mxu0 %v9879_v32  ;;  %5026 = vmatprep.subr.bf16.mxu1 %v9881_v34  ;;  %v9936_v32 = vcombine.low %v4304_v20, %v4308_v21  ;;  %v9943_v34 = vcombine.high %v4311_v26, %v4315_v27  ;;  %v9945_v35 = vcombine.high %v4312_v29, %v4316_v30  ;;  %v4245_v20 = vld [vmem:[#allocation3 + $0x11b0] sm:$0xff]  ;;  %v4242_v21 = vld [vmem:[#allocation3 + $0x1198] sm:$0xff] }
 0x296   : > { %4984 = vmatpush1.bf16.msra.mxu0 %v9878_v41  ;;  %5027 = vmatpush1.bf16.msra.mxu1 %v9880_v42  ;;  %v4198_v41 = vld [vmem:[#allocation3 + $0x1038] sm:$0xff]  ;;  %v9942_v42 = vcombine.low %v4311_v26, %v4315_v27  ;;  %v4249_v27 = vld [vmem:[#allocation3 + $0x11d0] sm:$0xff] }
 0x297   : > { %4985 = vmatprep.subr.bf16.mxu0 %v9887_v43  ;;  %5028 = vmatprep.subr.bf16.mxu1 %v9889_v46  ;;  %v9944_v43 = vcombine.low %v4312_v29, %v4316_v30  ;;  %v9827_v46 = vcombine.high %v4193_v36, %v4197_v37  ;;  %v9829_v47 = vcombine.high %v4194_v40, %v4198_v41  ;;  %v4253_v29 = vld [vmem:[#allocation3 + $0x11f0] sm:$0xff]  ;;  %v4250_v30 = vld [vmem:[#allocation3 + $0x11d8] sm:$0xff] }
 0x29a   : > { %4986 = vmatpush1.bf16.msra.mxu0 %v9886_v51  ;;  %5029 = vmatpush1.bf16.msra.mxu1 %v9888_v52  ;;  %v4202_v51 = vld [vmem:[#allocation3 + $0x1058] sm:$0xff] }
 0x29b   : > { %4987 = vmatprep.subr.bf16.mxu0 %v9895_v53  ;;  %5030 = vmatprep.subr.bf16.mxu1 %v9897_v54  ;;  %v4206_v52 = vld [vmem:[#allocation3 + $0x1078] sm:$0xff]  ;;  %v9826_v53 = vcombine.low %v4193_v36, %v4197_v37  ;;  %v9828_v54 = vcombine.low %v4194_v40, %v4198_v41  ;;  %v4257_v37 = vld [vmem:[#allocation3 + $0x1210] sm:$0xff] }
 0x29c   : > { %v9837_v56 = vcombine.high %v4202_v51, %v4206_v52  ;;  %v4261_v40 = vld [vmem:[#allocation3 + $0x1230] sm:$0xff]  ;;  %v4258_v41 = vld [vmem:[#allocation3 + $0x1218] sm:$0xff] }
 0x29e   : > { %4988 = vmatpush1.bf16.msra.mxu0 %v9894_v58  ;;  %5031 = vmatpush1.bf16.msra.mxu1 %v9896_v59  ;;  %v4210_v58 = vld [vmem:[#allocation3 + $0x1098] sm:$0xff] }
 0x29f   : > { %4989 = vmatprep.subr.bf16.mxu0 %v9903_v38  ;;  %5032 = vmatprep.subr.bf16.mxu1 %v9905_v60  ;;  %v4214_v59 = vld [vmem:[#allocation3 + $0x10b8] sm:$0xff]  ;;  %v9834_v38 = vcombine.low %v4201_v48, %v4205_v49  ;;  %v9836_v60 = vcombine.low %v4202_v51, %v4206_v52  ;;  %v4265_v49 = vld [vmem:[#allocation3 + $0x1250] sm:$0xff] }
 0x2a0   : > { %v9845_v39 = vcombine.high %v4210_v58, %v4214_v59  ;;  %v4269_v51 = vld [vmem:[#allocation3 + $0x1270] sm:$0xff]  ;;  %v4266_v52 = vld [vmem:[#allocation3 + $0x1258] sm:$0xff] }
 0x2a2   : > { %4990 = vmatpush1.bf16.msra.mxu0 %v9902_v44  ;;  %5033 = vmatpush1.bf16.msra.mxu1 %v9904_v0  ;;  %v4218_v44 = vld [vmem:[#allocation3 + $0x10d8] sm:$0xff] }
 0x2a3   : > { %4991 = vmatprep.subr.bf16.mxu0 %v9911_v1  ;;  %5034 = vmatprep.subr.bf16.mxu1 %v9913_v45  ;;  %v4222_v0 = vld [vmem:[#allocation3 + $0x10f8] sm:$0xff]  ;;  %v9842_v1 = vcombine.low %v4209_v57, %v4213_v10  ;;  %v9844_v45 = vcombine.low %v4210_v58, %v4214_v59  ;;  %v4273_v10 = vld [vmem:[#allocation3 + $0x1290] sm:$0xff] }
 0x2a4   : > { %v9853_v3 = vcombine.high %v4218_v44, %v4222_v0  ;;  %v4277_v58 = vld [vmem:[#allocation3 + $0x12b0] sm:$0xff]  ;;  %v4274_v59 = vld [vmem:[#allocation3 + $0x1298] sm:$0xff] }
 0x2a6   : > { %4992 = vmatpush1.bf16.msra.mxu0 %v9910_v28  ;;  %5035 = vmatpush1.bf16.msra.mxu1 %v9912_v6  ;;  %v4226_v28 = vld [vmem:[#allocation3 + $0x1118] sm:$0xff] }
 0x2a7   : > { %4993 = vmatprep.subr.bf16.mxu0 %v9919_v7  ;;  %5036 = vmatprep.subr.bf16.mxu1 %v9921_v8  ;;  %v4230_v6 = vld [vmem:[#allocation3 + $0x1138] sm:$0xff]  ;;  %v9850_v7 = vcombine.low %v4217_v62, %v4221_v63  ;;  %v9852_v8 = vcombine.low %v4218_v44, %v4222_v0  ;;  %v4281_v63 = vld [vmem:[#allocation3 + $0x12d0] sm:$0xff] }
 0x2a8   : > { %v4285_v44 = vld [vmem:[#allocation3 + $0x12f0] sm:$0xff]  ;;  %v4282_v0 = vld [vmem:[#allocation3 + $0x12d8] sm:$0xff] }
 0x2aa   : > { %4994 = vmatpush1.bf16.msra.mxu0 %v9918_v14  ;;  %5037 = vmatpush1.bf16.msra.mxu1 %v9920_v15  ;;  %v4238_v14 = vld [vmem:[#allocation3 + $0x1178] sm:$0xff]  ;;  %v9858_v15 = vcombine.low %v4225_v4, %v4229_v5  ;;  %v4289_v5 = vld [vmem:[#allocation3 + $0x1310] sm:$0xff] }
 0x2ab   : > { %4995 = vmatprep.subr.bf16.mxu0 %v9927_v16  ;;  %5038 = vmatprep.subr.bf16.mxu1 %v9929_v17  ;;  %v9860_v16 = vcombine.low %v4226_v28, %v4230_v6  ;;  %v9867_v17 = vcombine.high %v4233_v11, %v4237_v12  ;;  %v9869_v18 = vcombine.high %v4234_v13, %v4238_v14 }
 0x2ae   : > { %4996 = vmatpush1.bf16.msra.mxu0 %v9926_v22  ;;  %5039 = vmatpush1.bf16.msra.mxu1 %v9928_v23  ;;  %v4246_v22 = vld [vmem:[#allocation3 + $0x11b8] sm:$0xff]  ;;  %v9866_v23 = vcombine.low %v4233_v11, %v4237_v12  ;;  %v4297_v12 = vld [vmem:[#allocation3 + $0x1350] sm:$0xff] }
 0x2af   : > { %4997 = vmatprep.subr.bf16.mxu0 %v9935_v24  ;;  %5040 = vmatprep.subr.bf16.mxu1 %v9937_v25  ;;  %v9868_v24 = vcombine.low %v4234_v13, %v4238_v14  ;;  %v9875_v25 = vcombine.high %v4241_v19, %v4245_v20  ;;  %v9877_v26 = vcombine.high %v4242_v21, %v4246_v22  ;;  %v4301_v13 = vld [vmem:[#allocation3 + $0x1370] sm:$0xff]  ;;  %v4298_v14 = vld [vmem:[#allocation3 + $0x1358] sm:$0xff] }
 0x2b2   : > { %4998 = vmatpush1.bf16.msra.mxu0 %v9934_v31  ;;  %5041 = vmatpush1.bf16.msra.mxu1 %v9936_v32  ;;  %v4254_v31 = vld [vmem:[#allocation3 + $0x11f8] sm:$0xff]  ;;  %v9874_v32 = vcombine.low %v4241_v19, %v4245_v20  ;;  %v4305_v20 = vld [vmem:[#allocation3 + $0x1390] sm:$0xff] }
 0x2b3   : > { %4999 = vmatprep.subr.bf16.mxu0 %v9943_v34  ;;  %5042 = vmatprep.subr.bf16.mxu1 %v9945_v35  ;;  %v9876_v34 = vcombine.low %v4242_v21, %v4246_v22  ;;  %v9883_v35 = vcombine.high %v4249_v27, %v4253_v29  ;;  %v9885_v36 = vcombine.high %v4250_v30, %v4254_v31  ;;  %v4309_v21 = vld [vmem:[#allocation3 + $0x13b0] sm:$0xff]  ;;  %v4306_v22 = vld [vmem:[#allocation3 + $0x1398] sm:$0xff] }
 0x2b6   : > { %5000 = vmatpush1.bf16.msra.mxu0 %v9942_v42  ;;  %5043 = vmatpush1.bf16.msra.mxu1 %v9944_v43  ;;  %v4262_v42 = vld [vmem:[#allocation3 + $0x1238] sm:$0xff]  ;;  %v9882_v43 = vcombine.low %v4249_v27, %v4253_v29  ;;  %v4313_v29 = vld [vmem:[#allocation3 + $0x13d0] sm:$0xff] }
 0x2b7   : > { %5055 = vmatprep.subr.bf16.mxu0 %v9827_v46  ;;  %5098 = vmatprep.subr.bf16.mxu1 %v9829_v47  ;;  %v9884_v46 = vcombine.low %v4250_v30, %v4254_v31  ;;  %v9891_v47 = vcombine.high %v4257_v37, %v4261_v40  ;;  %v9893_v48 = vcombine.high %v4258_v41, %v4262_v42  ;;  %v4317_v30 = vld [vmem:[#allocation3 + $0x13f0] sm:$0xff]  ;;  %v4314_v31 = vld [vmem:[#allocation3 + $0x13d8] sm:$0xff] }
 0x2b9   : > { %5002 = vmatmul.mubr.bf16.vlgmr.msra.gmra.mrb[0].mxu0 %v11064_v50  ;;  %5045 = vmatmul.mubr.bf16.vlgmr.msra.gmra.mrb[0].mxu1 %v11064_v50 }
 0x2ba   : > { %5056 = vmatpush1.bf16.msra.mxu0 %v9826_v53  ;;  %5099 = vmatpush1.bf16.msra.mxu1 %v9828_v54  ;;  %v4270_v53 = vld [vmem:[#allocation3 + $0x1278] sm:$0xff]  ;;  %v9890_v54 = vcombine.low %v4257_v37, %v4261_v40  ;;  %v5161_v40 = vld [vmem:[#allocation3 + $0x1400] sm:$0xff] }
 0x2bb   : > { %5057 = vmatprep.subr.bf16.mxu0 %v9835_v55  ;;  %5100 = vmatprep.subr.bf16.mxu1 %v9837_v56  ;;  %v9892_v55 = vcombine.low %v4258_v41, %v4262_v42  ;;  %v9899_v56 = vcombine.high %v4265_v49, %v4269_v51  ;;  %v9901_v57 = vcombine.high %v4266_v52, %v4270_v53  ;;  %v5165_v41 = vld [vmem:[#allocation3 + $0x1420] sm:$0xff]  ;;  %v5162_v42 = vld [vmem:[#allocation3 + $0x1408] sm:$0xff] }
 0x2bc   : > { %5087 = vmatprep.mubr.bf16.mxu0 %v11057_v33  ;;  %5130 = vmatprep.mubr.bf16.mxu1 %v11057_v33  ;;  %v9861_v33 = vcombine.high %v4226_v28, %v4230_v6  ;;  %v4293_v28 = vld [vmem:[#allocation3 + $0x1330] sm:$0xff]  ;;  %v4290_v6 = vld [vmem:[#allocation3 + $0x1318] sm:$0xff] }
 0x2be   : > { %5058 = vmatpush1.bf16.msra.mxu0 %v9834_v38  ;;  %5101 = vmatpush1.bf16.msra.mxu1 %v9836_v60  ;;  %v4278_v38 = vld [vmem:[#allocation3 + $0x12b8] sm:$0xff]  ;;  %v9898_v60 = vcombine.low %v4265_v49, %v4269_v51  ;;  %v5169_v51 = vld [vmem:[#allocation3 + $0x1440] sm:$0xff] }
 0x2bf   : > { %5059 = vmatprep.subr.bf16.mxu0 %v9843_v61  ;;  %5102 = vmatprep.subr.bf16.mxu1 %v9845_v39  ;;  %v9900_v61 = vcombine.low %v4266_v52, %v4270_v53  ;;  %v9907_v39 = vcombine.high %v4273_v10, %v4277_v58  ;;  %v9909_v62 = vcombine.high %v4274_v59, %v4278_v38  ;;  %v5173_v52 = vld [vmem:[#allocation3 + $0x1460] sm:$0xff]  ;;  %v5170_v53 = vld [vmem:[#allocation3 + $0x1448] sm:$0xff] }
 0x2c2   : > { %5060 = vmatpush1.bf16.msra.mxu0 %v9842_v1  ;;  %5103 = vmatpush1.bf16.msra.mxu1 %v9844_v45  ;;  %v4286_v1 = vld [vmem:[#allocation3 + $0x12f8] sm:$0xff]  ;;  %v9906_v45 = vcombine.low %v4273_v10, %v4277_v58  ;;  %v5177_v58 = vld [vmem:[#allocation3 + $0x1480] sm:$0xff] }
 0x2c3   : > { %5061 = vmatprep.subr.bf16.mxu0 %v9851_v2  ;;  %5104 = vmatprep.subr.bf16.mxu1 %v9853_v3  ;;  %v9908_v2 = vcombine.low %v4274_v59, %v4278_v38  ;;  %v9915_v3 = vcombine.high %v4281_v63, %v4285_v44  ;;  %v9917_v4 = vcombine.high %v4282_v0, %v4286_v1  ;;  %v5181_v59 = vld [vmem:[#allocation3 + $0x14a0] sm:$0xff] }
 0x2c4   : > { %v11071_v38 = vld [vmem:[%s10992_s5 + $0x54] ss:$8 sps:$4 sm:$0xff]  }
 0x2c6   : > { %5062 = vmatpush1.bf16.msra.mxu0 %v9850_v7  ;;  %5105 = vmatpush1.bf16.msra.mxu1 %v9852_v8  ;;  %v4294_v7 = vld [vmem:[#allocation3 + $0x1338] sm:$0xff]  ;;  %v9914_v8 = vcombine.low %v4281_v63, %v4285_v44  ;;  %v9971_v63 = vcombine.high %v5177_v58, %v5181_v59 }
 0x2c7   : > { %5063 = vmatprep.subr.bf16.mxu0 %v9859_v9  ;;  %5106 = vmatprep.subr.bf16.mxu1 %v9861_v33  ;;  %v9916_v9 = vcombine.low %v4282_v0, %v4286_v1  ;;  %v9923_v33 = vcombine.high %v4289_v5, %v4293_v28  ;;  %v9925_v11 = vcombine.high %v4290_v6, %v4294_v7  ;;  %v5185_v0 = vld [vmem:[#allocation3 + $0x14c0] sm:$0xff] }
 0x2c8   : > { %v5189_v1 = vld [vmem:[#allocation3 + $0x14e0] sm:$0xff] }
 0x2ca   : > { %5064 = vmatpush1.bf16.msra.mxu0 %v9858_v15  ;;  %5107 = vmatpush1.bf16.msra.mxu1 %v9860_v16  ;;  %v4302_v15 = vld [vmem:[#allocation3 + $0x1378] sm:$0xff]  ;;  %v9922_v16 = vcombine.low %v4289_v5, %v4293_v28  ;;  %v5193_v28 = vld [vmem:[#allocation3 + $0x1500] sm:$0xff] }
 0x2cb   : > { %5065 = vmatprep.subr.bf16.mxu0 %v9867_v17  ;;  %5108 = vmatprep.subr.bf16.mxu1 %v9869_v18  ;;  %v9924_v17 = vcombine.low %v4290_v6, %v4294_v7  ;;  %v9931_v18 = vcombine.high %v4297_v12, %v4301_v13  ;;  %v9933_v19 = vcombine.high %v4298_v14, %v4302_v15  ;;  %v5197_v6 = vld [vmem:[#allocation3 + $0x1520] sm:$0xff]  ;;  %v5194_v7 = vld [vmem:[#allocation3 + $0x1508] sm:$0xff] }
 0x2ce   : > { %5066 = vmatpush1.bf16.msra.mxu0 %v9866_v23  ;;  %5109 = vmatpush1.bf16.msra.mxu1 %v9868_v24  ;;  %v4310_v23 = vld [vmem:[#allocation3 + $0x13b8] sm:$0xff]  ;;  %v9930_v24 = vcombine.low %v4297_v12, %v4301_v13  ;;  %v5201_v13 = vld [vmem:[#allocation3 + $0x1540] sm:$0xff] }
 0x2cf   : > { %5067 = vmatprep.subr.bf16.mxu0 %v9875_v25  ;;  %5110 = vmatprep.subr.bf16.mxu1 %v9877_v26  ;;  %v9932_v25 = vcombine.low %v4298_v14, %v4302_v15  ;;  %v9939_v26 = vcombine.high %v4305_v20, %v4309_v21  ;;  %v9941_v27 = vcombine.high %v4306_v22, %v4310_v23  ;;  %v5205_v14 = vld [vmem:[#allocation3 + $0x1560] sm:$0xff]  ;;  %v5202_v15 = vld [vmem:[#allocation3 + $0x1548] sm:$0xff] }
 0x2d2   : > { %5068 = vmatpush1.bf16.msra.mxu0 %v9874_v32  ;;  %5111 = vmatpush1.bf16.msra.mxu1 %v9876_v34  ;;  %v4318_v32 = vld [vmem:[#allocation3 + $0x13f8] sm:$0xff]  ;;  %v9938_v34 = vcombine.low %v4305_v20, %v4309_v21  ;;  %v5209_v21 = vld [vmem:[#allocation3 + $0x1580] sm:$0xff] }
 0x2d3   : > { %5069 = vmatprep.subr.bf16.mxu0 %v9883_v35  ;;  %5112 = vmatprep.subr.bf16.mxu1 %v9885_v36  ;;  %v9940_v35 = vcombine.low %v4306_v22, %v4310_v23  ;;  %v9947_v36 = vcombine.high %v4313_v29, %v4317_v30  ;;  %v9949_v37 = vcombine.high %v4314_v31, %v4318_v32  ;;  %v5213_v22 = vld [vmem:[#allocation3 + $0x15a0] sm:$0xff]  ;;  %v5210_v23 = vld [vmem:[#allocation3 + $0x1588] sm:$0xff] }
 0x2d6   : > { %5070 = vmatpush1.bf16.msra.mxu0 %v9882_v43  ;;  %5113 = vmatpush1.bf16.msra.mxu1 %v9884_v46  ;;  %v5166_v43 = vld [vmem:[#allocation3 + $0x1428] sm:$0xff]  ;;  %v9946_v46 = vcombine.low %v4313_v29, %v4317_v30  ;;  %v5217_v30 = vld [vmem:[#allocation3 + $0x15c0] sm:$0xff] }
 0x2d7   : > { %5071 = vmatprep.subr.bf16.mxu0 %v9891_v47  ;;  %5114 = vmatprep.subr.bf16.mxu1 %v9893_v48  ;;  %v9948_v47 = vcombine.low %v4314_v31, %v4318_v32  ;;  %v9955_v48 = vcombine.high %v5161_v40, %v5165_v41  ;;  %v9957_v49 = vcombine.high %v5162_v42, %v5166_v43  ;;  %v5221_v31 = vld [vmem:[#allocation3 + $0x15e0] sm:$0xff]  ;;  %v5218_v32 = vld [vmem:[#allocation3 + $0x15c8] sm:$0xff] }
 0x2da   : > { %5072 = vmatpush1.bf16.msra.mxu0 %v9890_v54  ;;  %5115 = vmatpush1.bf16.msra.mxu1 %v9892_v55  ;;  %v5174_v54 = vld [vmem:[#allocation3 + $0x1468] sm:$0xff]  ;;  %v9954_v55 = vcombine.low %v5161_v40, %v5165_v41  ;;  %v5225_v41 = vld [vmem:[#allocation3 + $0x1600] sm:$0xff] }
 0x2db   : > { %5073 = vmatprep.subr.bf16.mxu0 %v9899_v56  ;;  %5116 = vmatprep.subr.bf16.mxu1 %v9901_v57  ;;  %v9956_v56 = vcombine.low %v5162_v42, %v5166_v43  ;;  %v9963_v57 = vcombine.high %v5169_v51, %v5173_v52  ;;  %v9965_v10 = vcombine.high %v5170_v53, %v5174_v54  ;;  %v5229_v42 = vld [vmem:[#allocation3 + $0x1620] sm:$0xff]  ;;  %v5226_v43 = vld [vmem:[#allocation3 + $0x1608] sm:$0xff] }
 0x2de   : > { %5074 = vmatpush1.bf16.msra.mxu0 %v9898_v60  ;;  %5117 = vmatpush1.bf16.msra.mxu1 %v9900_v61  ;;  %v5178_v60 = vld [vmem:[#allocation3 + $0x1488] sm:$0xff] }
 0x2df   : > { %5075 = vmatprep.subr.bf16.mxu0 %v9907_v39  ;;  %5118 = vmatprep.subr.bf16.mxu1 %v9909_v62  ;;  %v5182_v61 = vld [vmem:[#allocation3 + $0x14a8] sm:$0xff]  ;;  %v9962_v39 = vcombine.low %v5169_v51, %v5173_v52  ;;  %v9964_v62 = vcombine.low %v5170_v53, %v5174_v54  ;;  %v5233_v52 = vld [vmem:[#allocation3 + $0x1640] sm:$0xff] }
 0x2e0   : > { %v9973_v44 = vcombine.high %v5178_v60, %v5182_v61  ;;  %v5237_v53 = vld [vmem:[#allocation3 + $0x1660] sm:$0xff]  ;;  %v5234_v54 = vld [vmem:[#allocation3 + $0x1648] sm:$0xff] }
 0x2e2   : > { %5076 = vmatpush1.bf16.msra.mxu0 %v9906_v45  ;;  %5119 = vmatpush1.bf16.msra.mxu1 %v9908_v2  ;;  %v5186_v45 = vld [vmem:[#allocation3 + $0x14c8] sm:$0xff] }
 0x2e3   : > { %5077 = vmatprep.subr.bf16.mxu0 %v9915_v3  ;;  %5120 = vmatprep.subr.bf16.mxu1 %v9917_v4  ;;  %v5190_v2 = vld [vmem:[#allocation3 + $0x14e8] sm:$0xff]  ;;  %v9970_v3 = vcombine.low %v5177_v58, %v5181_v59  ;;  %v9979_v4 = vcombine.high %v5185_v0, %v5189_v1  ;;  %v5241_v59 = vld [vmem:[#allocation3 + $0x1680] sm:$0xff] }
 0x2e4   : > { %v9981_v5 = vcombine.high %v5186_v45, %v5190_v2 }
 0x2e6   : > { %5078 = vmatpush1.bf16.msra.mxu0 %v9914_v8  ;;  %5121 = vmatpush1.bf16.msra.mxu1 %v9916_v9  ;;  %v5198_v8 = vld [vmem:[#allocation3 + $0x1528] sm:$0xff]  ;;  %v9978_v9 = vcombine.low %v5185_v0, %v5189_v1  ;;  %v5249_v1 = vld [vmem:[#allocation3 + $0x16c0] sm:$0xff] }
 0x2e7   : > { %5079 = vmatprep.subr.bf16.mxu0 %v9923_v33  ;;  %5122 = vmatprep.subr.bf16.mxu1 %v9925_v11  ;;  %v9980_v33 = vcombine.low %v5186_v45, %v5190_v2  ;;  %v9987_v11 = vcombine.high %v5193_v28, %v5197_v6  ;;  %v9989_v12 = vcombine.high %v5194_v7, %v5198_v8  ;;  %v5253_v45 = vld [vmem:[#allocation3 + $0x16e0] sm:$0xff]  ;;  %v5250_v2 = vld [vmem:[#allocation3 + $0x16c8] sm:$0xff] }
 0x2ea   : > { %5080 = vmatpush1.bf16.msra.mxu0 %v9922_v16  ;;  %5123 = vmatpush1.bf16.msra.mxu1 %v9924_v17  ;;  %v5206_v16 = vld [vmem:[#allocation3 + $0x1568] sm:$0xff]  ;;  %v9986_v17 = vcombine.low %v5193_v28, %v5197_v6  ;;  %v5257_v6 = vld [vmem:[#allocation3 + $0x1700] sm:$0xff] }
 0x2eb   : > { %5081 = vmatprep.subr.bf16.mxu0 %v9931_v18  ;;  %5124 = vmatprep.subr.bf16.mxu1 %v9933_v19  ;;  %v9988_v18 = vcombine.low %v5194_v7, %v5198_v8  ;;  %v9995_v19 = vcombine.high %v5201_v13, %v5205_v14  ;;  %v9997_v20 = vcombine.high %v5202_v15, %v5206_v16  ;;  %v5261_v7 = vld [vmem:[#allocation3 + $0x1720] sm:$0xff]  ;;  %v5258_v8 = vld [vmem:[#allocation3 + $0x1708] sm:$0xff] }
 0x2ee   : > { %5082 = vmatpush1.bf16.msra.mxu0 %v9930_v24  ;;  %5125 = vmatpush1.bf16.msra.mxu1 %v9932_v25  ;;  %v5214_v24 = vld [vmem:[#allocation3 + $0x15a8] sm:$0xff]  ;;  %v9994_v25 = vcombine.low %v5201_v13, %v5205_v14  ;;  %v5265_v14 = vld [vmem:[#allocation3 + $0x1740] sm:$0xff] }
 0x2ef   : > { %5083 = vmatprep.subr.bf16.mxu0 %v9939_v26  ;;  %5126 = vmatprep.subr.bf16.mxu1 %v9941_v27  ;;  %v9996_v26 = vcombine.low %v5202_v15, %v5206_v16  ;;  %v10003_v27 = vcombine.high %v5209_v21, %v5213_v22  ;;  %v10005_v29 = vcombine.high %v5210_v23, %v5214_v24  ;;  %v5269_v15 = vld [vmem:[#allocation3 + $0x1760] sm:$0xff]  ;;  %v5266_v16 = vld [vmem:[#allocation3 + $0x1748] sm:$0xff] }
 0x2f2   : > { %5084 = vmatpush1.bf16.msra.mxu0 %v9938_v34  ;;  %5127 = vmatpush1.bf16.msra.mxu1 %v9940_v35  ;;  %v5222_v34 = vld [vmem:[#allocation3 + $0x15e8] sm:$0xff]  ;;  %v10002_v35 = vcombine.low %v5209_v21, %v5213_v22  ;;  %v5273_v22 = vld [vmem:[#allocation3 + $0x1780] sm:$0xff] }
 0x2f3   : > { %5085 = vmatprep.subr.bf16.mxu0 %v9947_v36  ;;  %5128 = vmatprep.subr.bf16.mxu1 %v9949_v37  ;;  %v10004_v36 = vcombine.low %v5210_v23, %v5214_v24  ;;  %v10011_v37 = vcombine.high %v5217_v30, %v5221_v31  ;;  %v10013_v40 = vcombine.high %v5218_v32, %v5222_v34  ;;  %v5277_v23 = vld [vmem:[#allocation3 + $0x17a0] sm:$0xff]  ;;  %v5274_v24 = vld [vmem:[#allocation3 + $0x1788] sm:$0xff] }
 0x2f6   : > { %5086 = vmatpush1.bf16.msra.mxu0 %v9946_v46  ;;  %5129 = vmatpush1.bf16.msra.mxu1 %v9948_v47  ;;  %v5230_v46 = vld [vmem:[#allocation3 + $0x1628] sm:$0xff]  ;;  %v10010_v47 = vcombine.low %v5217_v30, %v5221_v31  ;;  %v5281_v31 = vld [vmem:[#allocation3 + $0x17c0] sm:$0xff] }
 0x2f7   : > { %5939 = vmatprep.subr.bf16.mxu0 %v9955_v48  ;;  %5982 = vmatprep.subr.bf16.mxu1 %v9957_v49  ;;  %v10012_v48 = vcombine.low %v5218_v32, %v5222_v34  ;;  %v10019_v49 = vcombine.high %v5225_v41, %v5229_v42  ;;  %v10021_v51 = vcombine.high %v5226_v43, %v5230_v46  ;;  %v5285_v32 = vld [vmem:[#allocation3 + $0x17e0] sm:$0xff]  ;;  %v5282_v34 = vld [vmem:[#allocation3 + $0x17c8] sm:$0xff] }
 0x2f9   : > { %5088 = vmatmul.mubr.bf16.vlgmr.msra.gmra.mrb[4].mxu0 %v11064_v50  ;;  %5131 = vmatmul.mubr.bf16.vlgmr.msra.gmra.mrb[4].mxu1 %v11064_v50  ;;  %v9972_v50 = vcombine.low %v5178_v60, %v5182_v61  ;;  %v5245_v60 = vld [vmem:[#allocation3 + $0x16a0] sm:$0xff]  ;;  %v5242_v61 = vld [vmem:[#allocation3 + $0x1688] sm:$0xff] }
 0x2fa   : > { %5940 = vmatpush1.bf16.msra.mxu0 %v9954_v55  ;;  %5983 = vmatpush1.bf16.msra.mxu1 %v9956_v56  ;;  %v5238_v55 = vld [vmem:[#allocation3 + $0x1668] sm:$0xff]  ;;  %v10018_v56 = vcombine.low %v5225_v41, %v5229_v42  ;;  %v5163_v42 = vld [vmem:[#allocation3 + $0x1410] sm:$0xff] }
 0x2fb   : > { %5941 = vmatprep.subr.bf16.mxu0 %v9963_v57  ;;  %5984 = vmatprep.subr.bf16.mxu1 %v9965_v10  ;;  %v10020_v57 = vcombine.low %v5226_v43, %v5230_v46  ;;  %v10027_v10 = vcombine.high %v5233_v52, %v5237_v53  ;;  %v10029_v58 = vcombine.high %v5234_v54, %v5238_v55  ;;  %v5167_v43 = vld [vmem:[#allocation3 + $0x1430] sm:$0xff]  ;;  %v5164_v46 = vld [vmem:[#allocation3 + $0x1418] sm:$0xff] }
 0x2fc   : > { %5971 = vmatprep.mubr.bf16.mxu0 %v11071_v38  ;;  %6014 = vmatprep.mubr.bf16.mxu1 %v11071_v38 }
 0x2fe   : > { %5942 = vmatpush1.bf16.msra.mxu0 %v9962_v39  ;;  %5985 = vmatpush1.bf16.msra.mxu1 %v9964_v62  ;;  %v5246_v39 = vld [vmem:[#allocation3 + $0x16a8] sm:$0xff]  ;;  %v10026_v62 = vcombine.low %v5233_v52, %v5237_v53  ;;  %v5171_v53 = vld [vmem:[#allocation3 + $0x1450] sm:$0xff] }
 0x2ff   : > { %5943 = vmatprep.subr.bf16.mxu0 %v9971_v63  ;;  %5986 = vmatprep.subr.bf16.mxu1 %v9973_v44  ;;  %v10028_v63 = vcombine.low %v5234_v54, %v5238_v55  ;;  %v10035_v44 = vcombine.high %v5241_v59, %v5245_v60  ;;  %v10037_v0 = vcombine.high %v5242_v61, %v5246_v39  ;;  %v5175_v54 = vld [vmem:[#allocation3 + $0x1470] sm:$0xff] }
 0x300   : > { %v11078_v55 = vld [vmem:[%s10992_s5 + $0x50] ss:$8 sps:$4 sm:$0xff]  }
 0x302   : > { %5944 = vmatpush1.bf16.msra.mxu0 %v9970_v3  ;;  %5987 = vmatpush1.bf16.msra.mxu1 %v9972_v50  ;;  %v5254_v3 = vld [vmem:[#allocation3 + $0x16e8] sm:$0xff]  ;;  %v10034_v50 = vcombine.low %v5241_v59, %v5245_v60  ;;  %v9967_v59 = vcombine.high %v5171_v53, %v5175_v54 }
 0x303   : > { %5945 = vmatprep.subr.bf16.mxu0 %v9979_v4  ;;  %5988 = vmatprep.subr.bf16.mxu1 %v9981_v5  ;;  %v10036_v4 = vcombine.low %v5242_v61, %v5246_v39  ;;  %v10043_v5 = vcombine.high %v5249_v1, %v5253_v45  ;;  %v10045_v28 = vcombine.high %v5250_v2, %v5254_v3  ;;  %v5179_v61 = vld [vmem:[#allocation3 + $0x1490] sm:$0xff] }
 0x304   : > { %v5183_v39 = vld [vmem:[#allocation3 + $0x14b0] sm:$0xff] }
 0x306   : > { %5946 = vmatpush1.bf16.msra.mxu0 %v9978_v9  ;;  %5989 = vmatpush1.bf16.msra.mxu1 %v9980_v33  ;;  %v5262_v9 = vld [vmem:[#allocation3 + $0x1728] sm:$0xff]  ;;  %v10042_v33 = vcombine.low %v5249_v1, %v5253_v45  ;;  %v9975_v1 = vcombine.high %v5179_v61, %v5183_v39 }
 0x307   : > { %5947 = vmatprep.subr.bf16.mxu0 %v9987_v11  ;;  %5990 = vmatprep.subr.bf16.mxu1 %v9989_v12  ;;  %v10044_v11 = vcombine.low %v5250_v2, %v5254_v3  ;;  %v10051_v12 = vcombine.high %v5257_v6, %v5261_v7  ;;  %v10053_v13 = vcombine.high %v5258_v8, %v5262_v9  ;;  %v5187_v2 = vld [vmem:[#allocation3 + $0x14d0] sm:$0xff] }
 0x308   : > { %v5191_v3 = vld [vmem:[#allocation3 + $0x14f0] sm:$0xff] }
 0x30a   : > { %5948 = vmatpush1.bf16.msra.mxu0 %v9986_v17  ;;  %5991 = vmatpush1.bf16.msra.mxu1 %v9988_v18  ;;  %v5270_v17 = vld [vmem:[#allocation3 + $0x1768] sm:$0xff]  ;;  %v10050_v18 = vcombine.low %v5257_v6, %v5261_v7  ;;  %v9983_v6 = vcombine.high %v5187_v2, %v5191_v3 }
 0x30b   : > { %5949 = vmatprep.subr.bf16.mxu0 %v9995_v19  ;;  %5992 = vmatprep.subr.bf16.mxu1 %v9997_v20  ;;  %v10052_v19 = vcombine.low %v5258_v8, %v5262_v9  ;;  %v10059_v20 = vcombine.high %v5265_v14, %v5269_v15  ;;  %v10061_v21 = vcombine.high %v5266_v16, %v5270_v17  ;;  %v5195_v8 = vld [vmem:[#allocation3 + $0x1510] sm:$0xff] }
 0x30c   : > { %v5199_v9 = vld [vmem:[#allocation3 + $0x1530] sm:$0xff] }
 0x30e   : > { %5950 = vmatpush1.bf16.msra.mxu0 %v9994_v25  ;;  %5993 = vmatpush1.bf16.msra.mxu1 %v9996_v26  ;;  %v5278_v25 = vld [vmem:[#allocation3 + $0x17a8] sm:$0xff]  ;;  %v10058_v26 = vcombine.low %v5265_v14, %v5269_v15  ;;  %v9991_v14 = vcombine.high %v5195_v8, %v5199_v9  ;;  %v5203_v15 = vld [vmem:[#allocation3 + $0x1550] sm:$0xff] }
 0x30f   : > { %5951 = vmatprep.subr.bf16.mxu0 %v10003_v27  ;;  %5994 = vmatprep.subr.bf16.mxu1 %v10005_v29  ;;  %v10060_v27 = vcombine.low %v5266_v16, %v5270_v17  ;;  %v10067_v29 = vcombine.high %v5273_v22, %v5277_v23  ;;  %v10069_v30 = vcombine.high %v5274_v24, %v5278_v25  ;;  %v5207_v16 = vld [vmem:[#allocation3 + $0x1570] sm:$0xff]  ;;  %v5204_v17 = vld [vmem:[#allocation3 + $0x1558] sm:$0xff] }
 0x312   : > { %5952 = vmatpush1.bf16.msra.mxu0 %v10002_v35  ;;  %5995 = vmatpush1.bf16.msra.mxu1 %v10004_v36  ;;  %v5286_v35 = vld [vmem:[#allocation3 + $0x17e8] sm:$0xff]  ;;  %v10066_v36 = vcombine.low %v5273_v22, %v5277_v23  ;;  %v5211_v23 = vld [vmem:[#allocation3 + $0x1590] sm:$0xff] }
 0x313   : > { %5953 = vmatprep.subr.bf16.mxu0 %v10011_v37  ;;  %5996 = vmatprep.subr.bf16.mxu1 %v10013_v40  ;;  %v10068_v37 = vcombine.low %v5274_v24, %v5278_v25  ;;  %v10075_v40 = vcombine.high %v5281_v31, %v5285_v32  ;;  %v10077_v41 = vcombine.high %v5282_v34, %v5286_v35  ;;  %v5215_v24 = vld [vmem:[#allocation3 + $0x15b0] sm:$0xff]  ;;  %v5212_v25 = vld [vmem:[#allocation3 + $0x1598] sm:$0xff] }
 0x316   : > { %5954 = vmatpush1.bf16.msra.mxu0 %v10010_v47  ;;  %5997 = vmatpush1.bf16.msra.mxu1 %v10012_v48  ;;  %v5168_v47 = vld [vmem:[#allocation3 + $0x1438] sm:$0xff]  ;;  %v10074_v48 = vcombine.low %v5281_v31, %v5285_v32  ;;  %v5219_v32 = vld [vmem:[#allocation3 + $0x15d0] sm:$0xff] }
 0x317   : > { %5955 = vmatprep.subr.bf16.mxu0 %v10019_v49  ;;  %5998 = vmatprep.subr.bf16.mxu1 %v10021_v51  ;;  %v10076_v49 = vcombine.low %v5282_v34, %v5286_v35  ;;  %v9959_v51 = vcombine.high %v5163_v42, %v5167_v43  ;;  %v9961_v52 = vcombine.high %v5164_v46, %v5168_v47  ;;  %v5223_v34 = vld [vmem:[#allocation3 + $0x15f0] sm:$0xff]  ;;  %v5220_v35 = vld [vmem:[#allocation3 + $0x15d8] sm:$0xff] }
 0x31a   : > { %5956 = vmatpush1.bf16.msra.mxu0 %v10018_v56  ;;  %5999 = vmatpush1.bf16.msra.mxu1 %v10020_v57  ;;  %v5172_v56 = vld [vmem:[#allocation3 + $0x1458] sm:$0xff] }
 0x31b   : > { %5957 = vmatprep.subr.bf16.mxu0 %v10027_v10  ;;  %6000 = vmatprep.subr.bf16.mxu1 %v10029_v58  ;;  %v5176_v57 = vld [vmem:[#allocation3 + $0x1478] sm:$0xff]  ;;  %v9958_v10 = vcombine.low %v5163_v42, %v5167_v43  ;;  %v9960_v58 = vcombine.low %v5164_v46, %v5168_v47  ;;  %v5227_v43 = vld [vmem:[#allocation3 + $0x1610] sm:$0xff] }
 0x31c   : > { %v9969_v60 = vcombine.high %v5172_v56, %v5176_v57  ;;  %v5231_v46 = vld [vmem:[#allocation3 + $0x1630] sm:$0xff]  ;;  %v5228_v47 = vld [vmem:[#allocation3 + $0x1618] sm:$0xff] }
 0x31e   : > { %5958 = vmatpush1.bf16.msra.mxu0 %v10026_v62  ;;  %6001 = vmatpush1.bf16.msra.mxu1 %v10028_v63  ;;  %v5180_v62 = vld [vmem:[#allocation3 + $0x1498] sm:$0xff] }
 0x31f   : > { %5959 = vmatprep.subr.bf16.mxu0 %v10035_v44  ;;  %6002 = vmatprep.subr.bf16.mxu1 %v10037_v0  ;;  %v5184_v63 = vld [vmem:[#allocation3 + $0x14b8] sm:$0xff]  ;;  %v9966_v44 = vcombine.low %v5171_v53, %v5175_v54  ;;  %v9968_v0 = vcombine.low %v5172_v56, %v5176_v57  ;;  %v5235_v54 = vld [vmem:[#allocation3 + $0x1650] sm:$0xff] }
 0x320   : > { %v9977_v45 = vcombine.high %v5180_v62, %v5184_v63  ;;  %v5239_v56 = vld [vmem:[#allocation3 + $0x1670] sm:$0xff]  ;;  %v5236_v57 = vld [vmem:[#allocation3 + $0x1658] sm:$0xff] }
 0x322   : > { %5960 = vmatpush1.bf16.msra.mxu0 %v10034_v50  ;;  %6003 = vmatpush1.bf16.msra.mxu1 %v10036_v4  ;;  %v5188_v50 = vld [vmem:[#allocation3 + $0x14d8] sm:$0xff] }
 0x323   : > { %5961 = vmatprep.subr.bf16.mxu0 %v10043_v5  ;;  %6004 = vmatprep.subr.bf16.mxu1 %v10045_v28  ;;  %v5192_v4 = vld [vmem:[#allocation3 + $0x14f8] sm:$0xff]  ;;  %v9974_v5 = vcombine.low %v5179_v61, %v5183_v39  ;;  %v9976_v28 = vcombine.low %v5180_v62, %v5184_v63  ;;  %v5243_v39 = vld [vmem:[#allocation3 + $0x1690] sm:$0xff] }
 0x324   : > { %v9985_v7 = vcombine.high %v5188_v50, %v5192_v4  ;;  %v5247_v62 = vld [vmem:[#allocation3 + $0x16b0] sm:$0xff]  ;;  %v5244_v63 = vld [vmem:[#allocation3 + $0x1698] sm:$0xff] }
 0x326   : > { %5962 = vmatpush1.bf16.msra.mxu0 %v10042_v33  ;;  %6005 = vmatpush1.bf16.msra.mxu1 %v10044_v11  ;;  %v5196_v33 = vld [vmem:[#allocation3 + $0x1518] sm:$0xff] }
 0x327   : > { %5963 = vmatprep.subr.bf16.mxu0 %v10051_v12  ;;  %6006 = vmatprep.subr.bf16.mxu1 %v10053_v13  ;;  %v5200_v11 = vld [vmem:[#allocation3 + $0x1538] sm:$0xff]  ;;  %v9982_v12 = vcombine.low %v5187_v2, %v5191_v3  ;;  %v9984_v13 = vcombine.low %v5188_v50, %v5192_v4  ;;  %v5251_v3 = vld [vmem:[#allocation3 + $0x16d0] sm:$0xff] }
 0x328   : > { %v5255_v50 = vld [vmem:[#allocation3 + $0x16f0] sm:$0xff]  ;;  %v5252_v4 = vld [vmem:[#allocation3 + $0x16d8] sm:$0xff] }
 0x32a   : > { %5964 = vmatpush1.bf16.msra.mxu0 %v10050_v18  ;;  %6007 = vmatpush1.bf16.msra.mxu1 %v10052_v19  ;;  %v5208_v18 = vld [vmem:[#allocation3 + $0x1578] sm:$0xff]  ;;  %v9990_v19 = vcombine.low %v5195_v8, %v5199_v9  ;;  %v5259_v9 = vld [vmem:[#allocation3 + $0x1710] sm:$0xff] }
 0x32b   : > { %5965 = vmatprep.subr.bf16.mxu0 %v10059_v20  ;;  %6008 = vmatprep.subr.bf16.mxu1 %v10061_v21  ;;  %v9992_v20 = vcombine.low %v5196_v33, %v5200_v11  ;;  %v9999_v21 = vcombine.high %v5203_v15, %v5207_v16  ;;  %v10001_v22 = vcombine.high %v5204_v17, %v5208_v18 }
 0x32e   : > { %5966 = vmatpush1.bf16.msra.mxu0 %v10058_v26  ;;  %6009 = vmatpush1.bf16.msra.mxu1 %v10060_v27  ;;  %v5216_v26 = vld [vmem:[#allocation3 + $0x15b8] sm:$0xff]  ;;  %v9998_v27 = vcombine.low %v5203_v15, %v5207_v16  ;;  %v5267_v16 = vld [vmem:[#allocation3 + $0x1750] sm:$0xff] }
 0x32f   : > { %5967 = vmatprep.subr.bf16.mxu0 %v10067_v29  ;;  %6010 = vmatprep.subr.bf16.mxu1 %v10069_v30  ;;  %v10000_v29 = vcombine.low %v5204_v17, %v5208_v18  ;;  %v10007_v30 = vcombine.high %v5211_v23, %v5215_v24  ;;  %v10009_v31 = vcombine.high %v5212_v25, %v5216_v26  ;;  %v5271_v17 = vld [vmem:[#allocation3 + $0x1770] sm:$0xff]  ;;  %v5268_v18 = vld [vmem:[#allocation3 + $0x1758] sm:$0xff] }
 0x332   : > { %5968 = vmatpush1.bf16.msra.mxu0 %v10066_v36  ;;  %6011 = vmatpush1.bf16.msra.mxu1 %v10068_v37  ;;  %v5224_v36 = vld [vmem:[#allocation3 + $0x15f8] sm:$0xff]  ;;  %v10006_v37 = vcombine.low %v5211_v23, %v5215_v24  ;;  %v5275_v24 = vld [vmem:[#allocation3 + $0x1790] sm:$0xff] }
 0x333   : > { %5969 = vmatprep.subr.bf16.mxu0 %v10075_v40  ;;  %6012 = vmatprep.subr.bf16.mxu1 %v10077_v41  ;;  %v10008_v40 = vcombine.low %v5212_v25, %v5216_v26  ;;  %v10015_v41 = vcombine.high %v5219_v32, %v5223_v34  ;;  %v10017_v42 = vcombine.high %v5220_v35, %v5224_v36  ;;  %v5279_v25 = vld [vmem:[#allocation3 + $0x17b0] sm:$0xff]  ;;  %v5276_v26 = vld [vmem:[#allocation3 + $0x1798] sm:$0xff] }
 0x336   : > { %5970 = vmatpush1.bf16.msra.mxu0 %v10074_v48  ;;  %6013 = vmatpush1.bf16.msra.mxu1 %v10076_v49  ;;  %v5232_v48 = vld [vmem:[#allocation3 + $0x1638] sm:$0xff]  ;;  %v10014_v49 = vcombine.low %v5219_v32, %v5223_v34  ;;  %v5283_v34 = vld [vmem:[#allocation3 + $0x17d0] sm:$0xff] }
 0x337   : > { %6025 = vmatprep.subr.bf16.mxu0 %v9959_v51  ;;  %6068 = vmatprep.subr.bf16.mxu1 %v9961_v52  ;;  %v10016_v51 = vcombine.low %v5220_v35, %v5224_v36  ;;  %v10023_v52 = vcombine.high %v5227_v43, %v5231_v46  ;;  %v10025_v53 = vcombine.high %v5228_v47, %v5232_v48  ;;  %v5287_v35 = vld [vmem:[#allocation3 + $0x17f0] sm:$0xff]  ;;  %v5284_v36 = vld [vmem:[#allocation3 + $0x17d8] sm:$0xff] }
 0x339   : > { %5972 = vmatmul.mubr.bf16.vlgmr.msra.gmra.mrb[0].mxu0 %v11078_v55  ;;  %6015 = vmatmul.mubr.bf16.vlgmr.msra.gmra.mrb[0].mxu1 %v11078_v55 }
 0x33a   : > { %6026 = vmatpush1.bf16.msra.mxu0 %v9958_v10  ;;  %6069 = vmatpush1.bf16.msra.mxu1 %v9960_v58  ;;  %v5240_v10 = vld [vmem:[#allocation3 + $0x1678] sm:$0xff]  ;;  %v10022_v58 = vcombine.low %v5227_v43, %v5231_v46  ;;  %v6131_v46 = vld [vmem:[#allocation3 + $0x1800] sm:$0xff] }
 0x33b   : > { %6027 = vmatprep.subr.bf16.mxu0 %v9967_v59  ;;  %6070 = vmatprep.subr.bf16.mxu1 %v9969_v60  ;;  %v10024_v59 = vcombine.low %v5228_v47, %v5232_v48  ;;  %v10031_v60 = vcombine.high %v5235_v54, %v5239_v56  ;;  %v10033_v61 = vcombine.high %v5236_v57, %v5240_v10  ;;  %v6135_v47 = vld [vmem:[#allocation3 + $0x1820] sm:$0xff]  ;;  %v6132_v48 = vld [vmem:[#allocation3 + $0x1808] sm:$0xff] }
 0x33c   : > { %6057 = vmatprep.mubr.bf16.mxu0 %v11071_v38  ;;  %6100 = vmatprep.mubr.bf16.mxu1 %v11071_v38  ;;  %v9993_v38 = vcombine.high %v5196_v33, %v5200_v11  ;;  %v5263_v33 = vld [vmem:[#allocation3 + $0x1730] sm:$0xff]  ;;  %v5260_v11 = vld [vmem:[#allocation3 + $0x1718] sm:$0xff] }
 0x33e   : > { %6028 = vmatpush1.bf16.msra.mxu0 %v9966_v44  ;;  %6071 = vmatpush1.bf16.msra.mxu1 %v9968_v0  ;;  %v5248_v44 = vld [vmem:[#allocation3 + $0x16b8] sm:$0xff]  ;;  %v10030_v0 = vcombine.low %v5235_v54, %v5239_v56  ;;  %v6139_v56 = vld [vmem:[#allocation3 + $0x1840] sm:$0xff] }
 0x33f   : > { %6029 = vmatprep.subr.bf16.mxu0 %v9975_v1  ;;  %6072 = vmatprep.subr.bf16.mxu1 %v9977_v45  ;;  %v10032_v1 = vcombine.low %v5236_v57, %v5240_v10  ;;  %v10039_v45 = vcombine.high %v5243_v39, %v5247_v62  ;;  %v10041_v2 = vcombine.high %v5244_v63, %v5248_v44  ;;  %v6143_v57 = vld [vmem:[#allocation3 + $0x1860] sm:$0xff]  ;;  %v6140_v10 = vld [vmem:[#allocation3 + $0x1848] sm:$0xff] }
 0x342   : > { %6030 = vmatpush1.bf16.msra.mxu0 %v9974_v5  ;;  %6073 = vmatpush1.bf16.msra.mxu1 %v9976_v28  ;;  %v5256_v5 = vld [vmem:[#allocation3 + $0x16f8] sm:$0xff]  ;;  %v10038_v28 = vcombine.low %v5243_v39, %v5247_v62  ;;  %v6147_v62 = vld [vmem:[#allocation3 + $0x1880] sm:$0xff] }
 0x343   : > { %6031 = vmatprep.subr.bf16.mxu0 %v9983_v6  ;;  %6074 = vmatprep.subr.bf16.mxu1 %v9985_v7  ;;  %v10040_v6 = vcombine.low %v5244_v63, %v5248_v44  ;;  %v10047_v7 = vcombine.high %v5251_v3, %v5255_v50  ;;  %v10049_v8 = vcombine.high %v5252_v4, %v5256_v5  ;;  %v6151_v63 = vld [vmem:[#allocation3 + $0x18a0] sm:$0xff] }
 0x344   : > { %v11085_v44 = vld [vmem:[%s10992_s5 + $0x64] ss:$8 sps:$4 sm:$0xff]  }
 0x346   : > { %6032 = vmatpush1.bf16.msra.mxu0 %v9982_v12  ;;  %6075 = vmatpush1.bf16.msra.mxu1 %v9984_v13  ;;  %v5264_v12 = vld [vmem:[#allocation3 + $0x1738] sm:$0xff]  ;;  %v10046_v13 = vcombine.low %v5251_v3, %v5255_v50  ;;  %v10103_v3 = vcombine.high %v6147_v62, %v6151_v63 }
 0x347   : > { %6033 = vmatprep.subr.bf16.mxu0 %v9991_v14  ;;  %6076 = vmatprep.subr.bf16.mxu1 %v9993_v38  ;;  %v10048_v14 = vcombine.low %v5252_v4, %v5256_v5  ;;  %v10055_v38 = vcombine.high %v5259_v9, %v5263_v33  ;;  %v10057_v15 = vcombine.high %v5260_v11, %v5264_v12  ;;  %v6155_v4 = vld [vmem:[#allocation3 + $0x18c0] sm:$0xff] }
 0x348   : > { %v6159_v5 = vld [vmem:[#allocation3 + $0x18e0] sm:$0xff] }
 0x34a   : > { %6034 = vmatpush1.bf16.msra.mxu0 %v9990_v19  ;;  %6077 = vmatpush1.bf16.msra.mxu1 %v9992_v20  ;;  %v5272_v19 = vld [vmem:[#allocation3 + $0x1778] sm:$0xff]  ;;  %v10054_v20 = vcombine.low %v5259_v9, %v5263_v33  ;;  %v6163_v33 = vld [vmem:[#allocation3 + $0x1900] sm:$0xff] }
 0x34b   : > { %6035 = vmatprep.subr.bf16.mxu0 %v9999_v21  ;;  %6078 = vmatprep.subr.bf16.mxu1 %v10001_v22  ;;  %v10056_v21 = vcombine.low %v5260_v11, %v5264_v12  ;;  %v10063_v22 = vcombine.high %v5267_v16, %v5271_v17  ;;  %v10065_v23 = vcombine.high %v5268_v18, %v5272_v19  ;;  %v6167_v11 = vld [vmem:[#allocation3 + $0x1920] sm:$0xff]  ;;  %v6164_v12 = vld [vmem:[#allocation3 + $0x1908] sm:$0xff] }
 0x34e   : > { %6036 = vmatpush1.bf16.msra.mxu0 %v9998_v27  ;;  %6079 = vmatpush1.bf16.msra.mxu1 %v10000_v29  ;;  %v5280_v27 = vld [vmem:[#allocation3 + $0x17b8] sm:$0xff]  ;;  %v10062_v29 = vcombine.low %v5267_v16, %v5271_v17  ;;  %v6171_v17 = vld [vmem:[#allocation3 + $0x1940] sm:$0xff] }
 0x34f   : > { %6037 = vmatprep.subr.bf16.mxu0 %v10007_v30  ;;  %6080 = vmatprep.subr.bf16.mxu1 %v10009_v31  ;;  %v10064_v30 = vcombine.low %v5268_v18, %v5272_v19  ;;  %v10071_v31 = vcombine.high %v5275_v24, %v5279_v25  ;;  %v10073_v32 = vcombine.high %v5276_v26, %v5280_v27  ;;  %v6175_v18 = vld [vmem:[#allocation3 + $0x1960] sm:$0xff]  ;;  %v6172_v19 = vld [vmem:[#allocation3 + $0x1948] sm:$0xff] }
 0x352   : > { %6038 = vmatpush1.bf16.msra.mxu0 %v10006_v37  ;;  %6081 = vmatpush1.bf16.msra.mxu1 %v10008_v40  ;;  %v5288_v37 = vld [vmem:[#allocation3 + $0x17f8] sm:$0xff]  ;;  %v10070_v40 = vcombine.low %v5275_v24, %v5279_v25  ;;  %v6179_v25 = vld [vmem:[#allocation3 + $0x1980] sm:$0xff] }
 0x353   : > { %6039 = vmatprep.subr.bf16.mxu0 %v10015_v41  ;;  %6082 = vmatprep.subr.bf16.mxu1 %v10017_v42  ;;  %v10072_v41 = vcombine.low %v5276_v26, %v5280_v27  ;;  %v10079_v42 = vcombine.high %v5283_v34, %v5287_v35  ;;  %v10081_v43 = vcombine.high %v5284_v36, %v5288_v37  ;;  %v6183_v26 = vld [vmem:[#allocation3 + $0x19a0] sm:$0xff]  ;;  %v6180_v27 = vld [vmem:[#allocation3 + $0x1988] sm:$0xff] }
 0x356   : > { %6040 = vmatpush1.bf16.msra.mxu0 %v10014_v49  ;;  %6083 = vmatpush1.bf16.msra.mxu1 %v10016_v51  ;;  %v6136_v49 = vld [vmem:[#allocation3 + $0x1828] sm:$0xff]  ;;  %v10078_v51 = vcombine.low %v5283_v34, %v5287_v35  ;;  %v6187_v35 = vld [vmem:[#allocation3 + $0x19c0] sm:$0xff] }
 0x357   : > { %6041 = vmatprep.subr.bf16.mxu0 %v10023_v52  ;;  %6084 = vmatprep.subr.bf16.mxu1 %v10025_v53  ;;  %v10080_v52 = vcombine.low %v5284_v36, %v5288_v37  ;;  %v10087_v53 = vcombine.high %v6131_v46, %v6135_v47  ;;  %v10089_v54 = vcombine.high %v6132_v48, %v6136_v49  ;;  %v6191_v36 = vld [vmem:[#allocation3 + $0x19e0] sm:$0xff]  ;;  %v6188_v37 = vld [vmem:[#allocation3 + $0x19c8] sm:$0xff] }
 0x35a   : > { %6042 = vmatpush1.bf16.msra.mxu0 %v10022_v58  ;;  %6085 = vmatpush1.bf16.msra.mxu1 %v10024_v59  ;;  %v6144_v58 = vld [vmem:[#allocation3 + $0x1868] sm:$0xff]  ;;  %v10086_v59 = vcombine.low %v6131_v46, %v6135_v47  ;;  %v6195_v47 = vld [vmem:[#allocation3 + $0x1a00] sm:$0xff] }
 0x35b   : > { %6043 = vmatprep.subr.bf16.mxu0 %v10031_v60  ;;  %6086 = vmatprep.subr.bf16.mxu1 %v10033_v61  ;;  %v10088_v60 = vcombine.low %v6132_v48, %v6136_v49  ;;  %v10095_v61 = vcombine.high %v6139_v56, %v6143_v57  ;;  %v10097_v39 = vcombine.high %v6140_v10, %v6144_v58  ;;  %v6199_v48 = vld [vmem:[#allocation3 + $0x1a20] sm:$0xff]  ;;  %v6196_v49 = vld [vmem:[#allocation3 + $0x1a08] sm:$0xff] }
 0x35e   : > { %6044 = vmatpush1.bf16.msra.mxu0 %v10030_v0  ;;  %6087 = vmatpush1.bf16.msra.mxu1 %v10032_v1  ;;  %v6148_v0 = vld [vmem:[#allocation3 + $0x1888] sm:$0xff] }
 0x35f   : > { %6045 = vmatprep.subr.bf16.mxu0 %v10039_v45  ;;  %6088 = vmatprep.subr.bf16.mxu1 %v10041_v2  ;;  %v6152_v1 = vld [vmem:[#allocation3 + $0x18a8] sm:$0xff]  ;;  %v10094_v45 = vcombine.low %v6139_v56, %v6143_v57  ;;  %v10096_v2 = vcombine.low %v6140_v10, %v6144_v58  ;;  %v6203_v57 = vld [vmem:[#allocation3 + $0x1a40] sm:$0xff] }
 0x360   : > { %v10105_v50 = vcombine.high %v6148_v0, %v6152_v1  ;;  %v6207_v10 = vld [vmem:[#allocation3 + $0x1a60] sm:$0xff]  ;;  %v6204_v58 = vld [vmem:[#allocation3 + $0x1a48] sm:$0xff] }
 0x362   : > { %6046 = vmatpush1.bf16.msra.mxu0 %v10038_v28  ;;  %6089 = vmatpush1.bf16.msra.mxu1 %v10040_v6  ;;  %v6156_v28 = vld [vmem:[#allocation3 + $0x18c8] sm:$0xff] }
 0x363   : > { %6047 = vmatprep.subr.bf16.mxu0 %v10047_v7  ;;  %6090 = vmatprep.subr.bf16.mxu1 %v10049_v8  ;;  %v6160_v6 = vld [vmem:[#allocation3 + $0x18e8] sm:$0xff]  ;;  %v10102_v7 = vcombine.low %v6147_v62, %v6151_v63  ;;  %v10111_v8 = vcombine.high %v6155_v4, %v6159_v5  ;;  %v6211_v63 = vld [vmem:[#allocation3 + $0x1a80] sm:$0xff] }
 0x364   : > { %v10113_v9 = vcombine.high %v6156_v28, %v6160_v6 }
 0x366   : > { %6048 = vmatpush1.bf16.msra.mxu0 %v10046_v13  ;;  %6091 = vmatpush1.bf16.msra.mxu1 %v10048_v14  ;;  %v6168_v13 = vld [vmem:[#allocation3 + $0x1928] sm:$0xff]  ;;  %v10110_v14 = vcombine.low %v6155_v4, %v6159_v5  ;;  %v6219_v5 = vld [vmem:[#allocation3 + $0x1ac0] sm:$0xff] }
 0x367   : > { %6049 = vmatprep.subr.bf16.mxu0 %v10055_v38  ;;  %6092 = vmatprep.subr.bf16.mxu1 %v10057_v15  ;;  %v10112_v38 = vcombine.low %v6156_v28, %v6160_v6  ;;  %v10119_v15 = vcombine.high %v6163_v33, %v6167_v11  ;;  %v10121_v16 = vcombine.high %v6164_v12, %v6168_v13  ;;  %v6223_v28 = vld [vmem:[#allocation3 + $0x1ae0] sm:$0xff]  ;;  %v6220_v6 = vld [vmem:[#allocation3 + $0x1ac8] sm:$0xff] }
 0x36a   : > { %6050 = vmatpush1.bf16.msra.mxu0 %v10054_v20  ;;  %6093 = vmatpush1.bf16.msra.mxu1 %v10056_v21  ;;  %v6176_v20 = vld [vmem:[#allocation3 + $0x1968] sm:$0xff]  ;;  %v10118_v21 = vcombine.low %v6163_v33, %v6167_v11  ;;  %v6227_v11 = vld [vmem:[#allocation3 + $0x1b00] sm:$0xff] }
 0x36b   : > { %6051 = vmatprep.subr.bf16.mxu0 %v10063_v22  ;;  %6094 = vmatprep.subr.bf16.mxu1 %v10065_v23  ;;  %v10120_v22 = vcombine.low %v6164_v12, %v6168_v13  ;;  %v10127_v23 = vcombine.high %v6171_v17, %v6175_v18  ;;  %v10129_v24 = vcombine.high %v6172_v19, %v6176_v20  ;;  %v6231_v12 = vld [vmem:[#allocation3 + $0x1b20] sm:$0xff]  ;;  %v6228_v13 = vld [vmem:[#allocation3 + $0x1b08] sm:$0xff] }
 0x36e   : > { %6052 = vmatpush1.bf16.msra.mxu0 %v10062_v29  ;;  %6095 = vmatpush1.bf16.msra.mxu1 %v10064_v30  ;;  %v6184_v29 = vld [vmem:[#allocation3 + $0x19a8] sm:$0xff]  ;;  %v10126_v30 = vcombine.low %v6171_v17, %v6175_v18  ;;  %v6235_v18 = vld [vmem:[#allocation3 + $0x1b40] sm:$0xff] }
 0x36f   : > { %6053 = vmatprep.subr.bf16.mxu0 %v10071_v31  ;;  %6096 = vmatprep.subr.bf16.mxu1 %v10073_v32  ;;  %v10128_v31 = vcombine.low %v6172_v19, %v6176_v20  ;;  %v10135_v32 = vcombine.high %v6179_v25, %v6183_v26  ;;  %v10137_v34 = vcombine.high %v6180_v27, %v6184_v29  ;;  %v6239_v19 = vld [vmem:[#allocation3 + $0x1b60] sm:$0xff]  ;;  %v6236_v20 = vld [vmem:[#allocation3 + $0x1b48] sm:$0xff] }
 0x372   : > { %6054 = vmatpush1.bf16.msra.mxu0 %v10070_v40  ;;  %6097 = vmatpush1.bf16.msra.mxu1 %v10072_v41  ;;  %v6192_v40 = vld [vmem:[#allocation3 + $0x19e8] sm:$0xff]  ;;  %v10134_v41 = vcombine.low %v6179_v25, %v6183_v26  ;;  %v6243_v26 = vld [vmem:[#allocation3 + $0x1b80] sm:$0xff] }
 0x373   : > { %6055 = vmatprep.subr.bf16.mxu0 %v10079_v42  ;;  %6098 = vmatprep.subr.bf16.mxu1 %v10081_v43  ;;  %v10136_v42 = vcombine.low %v6180_v27, %v6184_v29  ;;  %v10143_v43 = vcombine.high %v6187_v35, %v6191_v36  ;;  %v10145_v46 = vcombine.high %v6188_v37, %v6192_v40  ;;  %v6247_v27 = vld [vmem:[#allocation3 + $0x1ba0] sm:$0xff]  ;;  %v6244_v29 = vld [vmem:[#allocation3 + $0x1b88] sm:$0xff] }
 0x376   : > { %6056 = vmatpush1.bf16.msra.mxu0 %v10078_v51  ;;  %6099 = vmatpush1.bf16.msra.mxu1 %v10080_v52  ;;  %v6200_v51 = vld [vmem:[#allocation3 + $0x1a28] sm:$0xff]  ;;  %v10142_v52 = vcombine.low %v6187_v35, %v6191_v36  ;;  %v6251_v36 = vld [vmem:[#allocation3 + $0x1bc0] sm:$0xff] }
 0x377   : > { %6909 = vmatprep.subr.bf16.mxu0 %v10087_v53  ;;  %6952 = vmatprep.subr.bf16.mxu1 %v10089_v54  ;;  %v10144_v53 = vcombine.low %v6188_v37, %v6192_v40  ;;  %v10151_v54 = vcombine.high %v6195_v47, %v6199_v48  ;;  %v10153_v56 = vcombine.high %v6196_v49, %v6200_v51  ;;  %v6255_v37 = vld [vmem:[#allocation3 + $0x1be0] sm:$0xff]  ;;  %v6252_v40 = vld [vmem:[#allocation3 + $0x1bc8] sm:$0xff] }
 0x379   : > { %6058 = vmatmul.mubr.bf16.vlgmr.msra.gmra.mrb[4].mxu0 %v11078_v55  ;;  %6101 = vmatmul.mubr.bf16.vlgmr.msra.gmra.mrb[4].mxu1 %v11078_v55  ;;  %v10104_v55 = vcombine.low %v6148_v0, %v6152_v1  ;;  %v6215_v0 = vld [vmem:[#allocation3 + $0x1aa0] sm:$0xff]  ;;  %v6212_v1 = vld [vmem:[#allocation3 + $0x1a88] sm:$0xff] }
 0x37a   : > { %6910 = vmatpush1.bf16.msra.mxu0 %v10086_v59  ;;  %6953 = vmatpush1.bf16.msra.mxu1 %v10088_v60  ;;  %v6208_v59 = vld [vmem:[#allocation3 + $0x1a68] sm:$0xff]  ;;  %v10150_v60 = vcombine.low %v6195_v47, %v6199_v48  ;;  %v6133_v48 = vld [vmem:[#allocation3 + $0x1810] sm:$0xff] }
 0x37b   : > { %6911 = vmatprep.subr.bf16.mxu0 %v10095_v61  ;;  %6954 = vmatprep.subr.bf16.mxu1 %v10097_v39  ;;  %v10152_v61 = vcombine.low %v6196_v49, %v6200_v51  ;;  %v10159_v39 = vcombine.high %v6203_v57, %v6207_v10  ;;  %v10161_v62 = vcombine.high %v6204_v58, %v6208_v59  ;;  %v6137_v49 = vld [vmem:[#allocation3 + $0x1830] sm:$0xff]  ;;  %v6134_v51 = vld [vmem:[#allocation3 + $0x1818] sm:$0xff] }
 0x37c   : > { %6941 = vmatprep.mubr.bf16.mxu0 %v11085_v44  ;;  %6984 = vmatprep.mubr.bf16.mxu1 %v11085_v44 }
 0x37e   : > { %6912 = vmatpush1.bf16.msra.mxu0 %v10094_v45  ;;  %6955 = vmatpush1.bf16.msra.mxu1 %v10096_v2  ;;  %v6216_v45 = vld [vmem:[#allocation3 + $0x1aa8] sm:$0xff]  ;;  %v10158_v2 = vcombine.low %v6203_v57, %v6207_v10  ;;  %v6141_v10 = vld [vmem:[#allocation3 + $0x1850] sm:$0xff] }
 0x37f   : > { %6913 = vmatprep.subr.bf16.mxu0 %v10103_v3  ;;  %6956 = vmatprep.subr.bf16.mxu1 %v10105_v50  ;;  %v10160_v3 = vcombine.low %v6204_v58, %v6208_v59  ;;  %v10167_v50 = vcombine.high %v6211_v63, %v6215_v0  ;;  %v10169_v4 = vcombine.high %v6212_v1, %v6216_v45  ;;  %v6145_v58 = vld [vmem:[#allocation3 + $0x1870] sm:$0xff] }
 0x380   : > { %v11092_v59 = vld [vmem:[%s10992_s5 + $0x60] ss:$8 sps:$4 sm:$0xff]  }
 0x382   : > { %6914 = vmatpush1.bf16.msra.mxu0 %v10102_v7  ;;  %6957 = vmatpush1.bf16.msra.mxu1 %v10104_v55  ;;  %v6224_v7 = vld [vmem:[#allocation3 + $0x1ae8] sm:$0xff]  ;;  %v10166_v55 = vcombine.low %v6211_v63, %v6215_v0  ;;  %v10099_v63 = vcombine.high %v6141_v10, %v6145_v58 }
 0x383   : > { %6915 = vmatprep.subr.bf16.mxu0 %v10111_v8  ;;  %6958 = vmatprep.subr.bf16.mxu1 %v10113_v9  ;;  %v10168_v8 = vcombine.low %v6212_v1, %v6216_v45  ;;  %v10175_v9 = vcombine.high %v6219_v5, %v6223_v28  ;;  %v10177_v33 = vcombine.high %v6220_v6, %v6224_v7  ;;  %v6149_v1 = vld [vmem:[#allocation3 + $0x1890] sm:$0xff] }
 0x384   : > { %v6153_v45 = vld [vmem:[#allocation3 + $0x18b0] sm:$0xff] }
 0x386   : > { %6916 = vmatpush1.bf16.msra.mxu0 %v10110_v14  ;;  %6959 = vmatpush1.bf16.msra.mxu1 %v10112_v38  ;;  %v6232_v14 = vld [vmem:[#allocation3 + $0x1b28] sm:$0xff]  ;;  %v10174_v38 = vcombine.low %v6219_v5, %v6223_v28  ;;  %v10107_v5 = vcombine.high %v6149_v1, %v6153_v45 }
 0x387   : > { %6917 = vmatprep.subr.bf16.mxu0 %v10119_v15  ;;  %6960 = vmatprep.subr.bf16.mxu1 %v10121_v16  ;;  %v10176_v15 = vcombine.low %v6220_v6, %v6224_v7  ;;  %v10183_v16 = vcombine.high %v6227_v11, %v6231_v12  ;;  %v10185_v17 = vcombine.high %v6228_v13, %v6232_v14  ;;  %v6157_v6 = vld [vmem:[#allocation3 + $0x18d0] sm:$0xff] }
 0x388   : > { %v6161_v7 = vld [vmem:[#allocation3 + $0x18f0] sm:$0xff] }
 0x38a   : > { %6918 = vmatpush1.bf16.msra.mxu0 %v10118_v21  ;;  %6961 = vmatpush1.bf16.msra.mxu1 %v10120_v22  ;;  %v6240_v21 = vld [vmem:[#allocation3 + $0x1b68] sm:$0xff]  ;;  %v10182_v22 = vcombine.low %v6227_v11, %v6231_v12  ;;  %v10115_v11 = vcombine.high %v6157_v6, %v6161_v7 }
 0x38b   : > { %6919 = vmatprep.subr.bf16.mxu0 %v10127_v23  ;;  %6962 = vmatprep.subr.bf16.mxu1 %v10129_v24  ;;  %v10184_v23 = vcombine.low %v6228_v13, %v6232_v14  ;;  %v10191_v24 = vcombine.high %v6235_v18, %v6239_v19  ;;  %v10193_v25 = vcombine.high %v6236_v20, %v6240_v21  ;;  %v6165_v13 = vld [vmem:[#allocation3 + $0x1910] sm:$0xff] }
 0x38c   : > { %v6169_v14 = vld [vmem:[#allocation3 + $0x1930] sm:$0xff] }
 0x38e   : > { %6920 = vmatpush1.bf16.msra.mxu0 %v10126_v30  ;;  %6963 = vmatpush1.bf16.msra.mxu1 %v10128_v31  ;;  %v6248_v30 = vld [vmem:[#allocation3 + $0x1ba8] sm:$0xff]  ;;  %v10190_v31 = vcombine.low %v6235_v18, %v6239_v19  ;;  %v10123_v18 = vcombine.high %v6165_v13, %v6169_v14  ;;  %v6173_v19 = vld [vmem:[#allocation3 + $0x1950] sm:$0xff] }
 0x38f   : > { %6921 = vmatprep.subr.bf16.mxu0 %v10135_v32  ;;  %6964 = vmatprep.subr.bf16.mxu1 %v10137_v34  ;;  %v10192_v32 = vcombine.low %v6236_v20, %v6240_v21  ;;  %v10199_v34 = vcombine.high %v6243_v26, %v6247_v27  ;;  %v10201_v35 = vcombine.high %v6244_v29, %v6248_v30  ;;  %v6177_v20 = vld [vmem:[#allocation3 + $0x1970] sm:$0xff]  ;;  %v6174_v21 = vld [vmem:[#allocation3 + $0x1958] sm:$0xff] }
 0x392   : > { %6922 = vmatpush1.bf16.msra.mxu0 %v10134_v41  ;;  %6965 = vmatpush1.bf16.msra.mxu1 %v10136_v42  ;;  %v6256_v41 = vld [vmem:[#allocation3 + $0x1be8] sm:$0xff]  ;;  %v10198_v42 = vcombine.low %v6243_v26, %v6247_v27  ;;  %v6181_v27 = vld [vmem:[#allocation3 + $0x1990] sm:$0xff] }
 0x393   : > { %6923 = vmatprep.subr.bf16.mxu0 %v10143_v43  ;;  %6966 = vmatprep.subr.bf16.mxu1 %v10145_v46  ;;  %v10200_v43 = vcombine.low %v6244_v29, %v6248_v30  ;;  %v10207_v46 = vcombine.high %v6251_v36, %v6255_v37  ;;  %v10209_v47 = vcombine.high %v6252_v40, %v6256_v41  ;;  %v6185_v29 = vld [vmem:[#allocation3 + $0x19b0] sm:$0xff]  ;;  %v6182_v30 = vld [vmem:[#allocation3 + $0x1998] sm:$0xff] }
 0x396   : > { %6924 = vmatpush1.bf16.msra.mxu0 %v10142_v52  ;;  %6967 = vmatpush1.bf16.msra.mxu1 %v10144_v53  ;;  %v6138_v52 = vld [vmem:[#allocation3 + $0x1838] sm:$0xff]  ;;  %v10206_v53 = vcombine.low %v6251_v36, %v6255_v37  ;;  %v6189_v37 = vld [vmem:[#allocation3 + $0x19d0] sm:$0xff] }
 0x397   : > { %6925 = vmatprep.subr.bf16.mxu0 %v10151_v54  ;;  %6968 = vmatprep.subr.bf16.mxu1 %v10153_v56  ;;  %v10208_v54 = vcombine.low %v6252_v40, %v6256_v41  ;;  %v10091_v56 = vcombine.high %v6133_v48, %v6137_v49  ;;  %v10093_v57 = vcombine.high %v6134_v51, %v6138_v52  ;;  %v6193_v40 = vld [vmem:[#allocation3 + $0x19f0] sm:$0xff]  ;;  %v6190_v41 = vld [vmem:[#allocation3 + $0x19d8] sm:$0xff] }
 0x39a   : > { %6926 = vmatpush1.bf16.msra.mxu0 %v10150_v60  ;;  %6969 = vmatpush1.bf16.msra.mxu1 %v10152_v61  ;;  %v6142_v60 = vld [vmem:[#allocation3 + $0x1858] sm:$0xff] }
 0x39b   : > { %6927 = vmatprep.subr.bf16.mxu0 %v10159_v39  ;;  %6970 = vmatprep.subr.bf16.mxu1 %v10161_v62  ;;  %v6146_v61 = vld [vmem:[#allocation3 + $0x1878] sm:$0xff]  ;;  %v10090_v39 = vcombine.low %v6133_v48, %v6137_v49  ;;  %v10092_v62 = vcombine.low %v6134_v51, %v6138_v52  ;;  %v6197_v49 = vld [vmem:[#allocation3 + $0x1a10] sm:$0xff] }
 0x39c   : > { %v10101_v0 = vcombine.high %v6142_v60, %v6146_v61  ;;  %v6201_v51 = vld [vmem:[#allocation3 + $0x1a30] sm:$0xff]  ;;  %v6198_v52 = vld [vmem:[#allocation3 + $0x1a18] sm:$0xff] }
 0x39e   : > { %6928 = vmatpush1.bf16.msra.mxu0 %v10158_v2  ;;  %6971 = vmatpush1.bf16.msra.mxu1 %v10160_v3  ;;  %v6150_v2 = vld [vmem:[#allocation3 + $0x1898] sm:$0xff] }
 0x39f   : > { %6929 = vmatprep.subr.bf16.mxu0 %v10167_v50  ;;  %6972 = vmatprep.subr.bf16.mxu1 %v10169_v4  ;;  %v6154_v3 = vld [vmem:[#allocation3 + $0x18b8] sm:$0xff]  ;;  %v10098_v50 = vcombine.low %v6141_v10, %v6145_v58  ;;  %v10100_v4 = vcombine.low %v6142_v60, %v6146_v61  ;;  %v6205_v58 = vld [vmem:[#allocation3 + $0x1a50] sm:$0xff] }
 0x3a0   : > { %v10109_v28 = vcombine.high %v6150_v2, %v6154_v3  ;;  %v6209_v60 = vld [vmem:[#allocation3 + $0x1a70] sm:$0xff]  ;;  %v6206_v61 = vld [vmem:[#allocation3 + $0x1a58] sm:$0xff] }
 0x3a2   : > { %6930 = vmatpush1.bf16.msra.mxu0 %v10166_v55  ;;  %6973 = vmatpush1.bf16.msra.mxu1 %v10168_v8  ;;  %v6158_v55 = vld [vmem:[#allocation3 + $0x18d8] sm:$0xff] }
 0x3a3   : > { %6931 = vmatprep.subr.bf16.mxu0 %v10175_v9  ;;  %6974 = vmatprep.subr.bf16.mxu1 %v10177_v33  ;;  %v6162_v8 = vld [vmem:[#allocation3 + $0x18f8] sm:$0xff]  ;;  %v10106_v9 = vcombine.low %v6149_v1, %v6153_v45  ;;  %v10108_v33 = vcombine.low %v6150_v2, %v6154_v3  ;;  %v6213_v45 = vld [vmem:[#allocation3 + $0x1a90] sm:$0xff] }
 0x3a4   : > { %v10117_v12 = vcombine.high %v6158_v55, %v6162_v8  ;;  %v6217_v2 = vld [vmem:[#allocation3 + $0x1ab0] sm:$0xff]  ;;  %v6214_v3 = vld [vmem:[#allocation3 + $0x1a98] sm:$0xff] }
 0x3a6   : > { %6932 = vmatpush1.bf16.msra.mxu0 %v10174_v38  ;;  %6975 = vmatpush1.bf16.msra.mxu1 %v10176_v15  ;;  %v6166_v38 = vld [vmem:[#allocation3 + $0x1918] sm:$0xff] }
 0x3a7   : > { %6933 = vmatprep.subr.bf16.mxu0 %v10183_v16  ;;  %6976 = vmatprep.subr.bf16.mxu1 %v10185_v17  ;;  %v6170_v15 = vld [vmem:[#allocation3 + $0x1938] sm:$0xff]  ;;  %v10114_v16 = vcombine.low %v6157_v6, %v6161_v7  ;;  %v10116_v17 = vcombine.low %v6158_v55, %v6162_v8  ;;  %v6221_v7 = vld [vmem:[#allocation3 + $0x1ad0] sm:$0xff] }
 0x3a8   : > { %v6225_v55 = vld [vmem:[#allocation3 + $0x1af0] sm:$0xff]  ;;  %v6222_v8 = vld [vmem:[#allocation3 + $0x1ad8] sm:$0xff] }
 0x3aa   : > { %6934 = vmatpush1.bf16.msra.mxu0 %v10182_v22  ;;  %6977 = vmatpush1.bf16.msra.mxu1 %v10184_v23  ;;  %v6178_v22 = vld [vmem:[#allocation3 + $0x1978] sm:$0xff]  ;;  %v10122_v23 = vcombine.low %v6165_v13, %v6169_v14  ;;  %v6229_v14 = vld [vmem:[#allocation3 + $0x1b10] sm:$0xff] }
 0x3ab   : > { %6935 = vmatprep.subr.bf16.mxu0 %v10191_v24  ;;  %6978 = vmatprep.subr.bf16.mxu1 %v10193_v25  ;;  %v10124_v24 = vcombine.low %v6166_v38, %v6170_v15  ;;  %v10131_v25 = vcombine.high %v6173_v19, %v6177_v20  ;;  %v10133_v26 = vcombine.high %v6174_v21, %v6178_v22 }
 0x3ae   : > { %6936 = vmatpush1.bf16.msra.mxu0 %v10190_v31  ;;  %6979 = vmatpush1.bf16.msra.mxu1 %v10192_v32  ;;  %v6186_v31 = vld [vmem:[#allocation3 + $0x19b8] sm:$0xff]  ;;  %v10130_v32 = vcombine.low %v6173_v19, %v6177_v20  ;;  %v6237_v20 = vld [vmem:[#allocation3 + $0x1b50] sm:$0xff] }
 0x3af   : > { %6937 = vmatprep.subr.bf16.mxu0 %v10199_v34  ;;  %6980 = vmatprep.subr.bf16.mxu1 %v10201_v35  ;;  %v10132_v34 = vcombine.low %v6174_v21, %v6178_v22  ;;  %v10139_v35 = vcombine.high %v6181_v27, %v6185_v29  ;;  %v10141_v36 = vcombine.high %v6182_v30, %v6186_v31  ;;  %v6241_v21 = vld [vmem:[#allocation3 + $0x1b70] sm:$0xff]  ;;  %v6238_v22 = vld [vmem:[#allocation3 + $0x1b58] sm:$0xff] }
 0x3b2   : > { %6938 = vmatpush1.bf16.msra.mxu0 %v10198_v42  ;;  %6981 = vmatpush1.bf16.msra.mxu1 %v10200_v43  ;;  %v6194_v42 = vld [vmem:[#allocation3 + $0x19f8] sm:$0xff]  ;;  %v10138_v43 = vcombine.low %v6181_v27, %v6185_v29  ;;  %v6245_v29 = vld [vmem:[#allocation3 + $0x1b90] sm:$0xff] }
 0x3b3   : > { %6939 = vmatprep.subr.bf16.mxu0 %v10207_v46  ;;  %6982 = vmatprep.subr.bf16.mxu1 %v10209_v47  ;;  %v10140_v46 = vcombine.low %v6182_v30, %v6186_v31  ;;  %v10147_v47 = vcombine.high %v6189_v37, %v6193_v40  ;;  %v10149_v48 = vcombine.high %v6190_v41, %v6194_v42  ;;  %v6249_v30 = vld [vmem:[#allocation3 + $0x1bb0] sm:$0xff]  ;;  %v6246_v31 = vld [vmem:[#allocation3 + $0x1b98] sm:$0xff] }
 0x3b6   : > { %6940 = vmatpush1.bf16.msra.mxu0 %v10206_v53  ;;  %6983 = vmatpush1.bf16.msra.mxu1 %v10208_v54  ;;  %v6202_v53 = vld [vmem:[#allocation3 + $0x1a38] sm:$0xff]  ;;  %v10146_v54 = vcombine.low %v6189_v37, %v6193_v40  ;;  %v6253_v40 = vld [vmem:[#allocation3 + $0x1bd0] sm:$0xff] }
 0x3b7   : > { %6995 = vmatprep.subr.bf16.mxu0 %v10091_v56  ;;  %7038 = vmatprep.subr.bf16.mxu1 %v10093_v57  ;;  %v10148_v56 = vcombine.low %v6190_v41, %v6194_v42  ;;  %v10155_v57 = vcombine.high %v6197_v49, %v6201_v51  ;;  %v10157_v10 = vcombine.high %v6198_v52, %v6202_v53  ;;  %v6257_v41 = vld [vmem:[#allocation3 + $0x1bf0] sm:$0xff]  ;;  %v6254_v42 = vld [vmem:[#allocation3 + $0x1bd8] sm:$0xff] }
 0x3b9   : > { %6942 = vmatmul.mubr.bf16.vlgmr.msra.gmra.mrb[0].mxu0 %v11092_v59  ;;  %6985 = vmatmul.mubr.bf16.vlgmr.msra.gmra.mrb[0].mxu1 %v11092_v59 }
 0x3ba   : > { %6996 = vmatpush1.bf16.msra.mxu0 %v10090_v39  ;;  %7039 = vmatpush1.bf16.msra.mxu1 %v10092_v62  ;;  %v6210_v39 = vld [vmem:[#allocation3 + $0x1a78] sm:$0xff]  ;;  %v10154_v62 = vcombine.low %v6197_v49, %v6201_v51  ;;  %v7101_v51 = vld [vmem:[#allocation3 + $0x1c00] sm:$0xff] }
 0x3bb   : > { %6997 = vmatprep.subr.bf16.mxu0 %v10099_v63  ;;  %7040 = vmatprep.subr.bf16.mxu1 %v10101_v0  ;;  %v10156_v63 = vcombine.low %v6198_v52, %v6202_v53  ;;  %v10163_v0 = vcombine.high %v6205_v58, %v6209_v60  ;;  %v10165_v1 = vcombine.high %v6206_v61, %v6210_v39  ;;  %v7105_v52 = vld [vmem:[#allocation3 + $0x1c20] sm:$0xff]  ;;  %v7102_v53 = vld [vmem:[#allocation3 + $0x1c08] sm:$0xff] }
 0x3bc   : > { %7027 = vmatprep.mubr.bf16.mxu0 %v11085_v44  ;;  %7070 = vmatprep.mubr.bf16.mxu1 %v11085_v44  ;;  %v10125_v44 = vcombine.high %v6166_v38, %v6170_v15  ;;  %v6233_v38 = vld [vmem:[#allocation3 + $0x1b30] sm:$0xff]  ;;  %v6230_v15 = vld [vmem:[#allocation3 + $0x1b18] sm:$0xff] }
 0x3be   : > { %6998 = vmatpush1.bf16.msra.mxu0 %v10098_v50  ;;  %7041 = vmatpush1.bf16.msra.mxu1 %v10100_v4  ;;  %v6218_v50 = vld [vmem:[#allocation3 + $0x1ab8] sm:$0xff]  ;;  %v10162_v4 = vcombine.low %v6205_v58, %v6209_v60  ;;  %v7109_v60 = vld [vmem:[#allocation3 + $0x1c40] sm:$0xff] }
 0x3bf   : > { %6999 = vmatprep.subr.bf16.mxu0 %v10107_v5  ;;  %7042 = vmatprep.subr.bf16.mxu1 %v10109_v28  ;;  %v10164_v5 = vcombine.low %v6206_v61, %v6210_v39  ;;  %v10171_v28 = vcombine.high %v6213_v45, %v6217_v2  ;;  %v10173_v6 = vcombine.high %v6214_v3, %v6218_v50  ;;  %v7113_v61 = vld [vmem:[#allocation3 + $0x1c60] sm:$0xff]  ;;  %v7110_v39 = vld [vmem:[#allocation3 + $0x1c48] sm:$0xff] }
 0x3c2   : > { %7000 = vmatpush1.bf16.msra.mxu0 %v10106_v9  ;;  %7043 = vmatpush1.bf16.msra.mxu1 %v10108_v33  ;;  %v6226_v9 = vld [vmem:[#allocation3 + $0x1af8] sm:$0xff]  ;;  %v10170_v33 = vcombine.low %v6213_v45, %v6217_v2  ;;  %v7117_v2 = vld [vmem:[#allocation3 + $0x1c80] sm:$0xff] }
 0x3c3   : > { %7001 = vmatprep.subr.bf16.mxu0 %v10115_v11  ;;  %7044 = vmatprep.subr.bf16.mxu1 %v10117_v12  ;;  %v10172_v11 = vcombine.low %v6214_v3, %v6218_v50  ;;  %v10179_v12 = vcombine.high %v6221_v7, %v6225_v55  ;;  %v10181_v13 = vcombine.high %v6222_v8, %v6226_v9  ;;  %v7121_v3 = vld [vmem:[#allocation3 + $0x1ca0] sm:$0xff] }
 0x3c4   : > { %v11099_v50 = vld [vmem:[%s10992_s5 + $0x74] ss:$8 sps:$4 sm:$0xff]  }
 0x3c6   : > { %7002 = vmatpush1.bf16.msra.mxu0 %v10114_v16  ;;  %7045 = vmatpush1.bf16.msra.mxu1 %v10116_v17  ;;  %v6234_v16 = vld [vmem:[#allocation3 + $0x1b38] sm:$0xff]  ;;  %v10178_v17 = vcombine.low %v6221_v7, %v6225_v55  ;;  %v10235_v7 = vcombine.high %v7117_v2, %v7121_v3 }
 0x3c7   : > { %7003 = vmatprep.subr.bf16.mxu0 %v10123_v18  ;;  %7046 = vmatprep.subr.bf16.mxu1 %v10125_v44  ;;  %v10180_v18 = vcombine.low %v6222_v8, %v6226_v9  ;;  %v10187_v44 = vcombine.high %v6229_v14, %v6233_v38  ;;  %v10189_v19 = vcombine.high %v6230_v15, %v6234_v16  ;;  %v7125_v8 = vld [vmem:[#allocation3 + $0x1cc0] sm:$0xff] }
 0x3c8   : > { %v7129_v9 = vld [vmem:[#allocation3 + $0x1ce0] sm:$0xff] }
 0x3ca   : > { %7004 = vmatpush1.bf16.msra.mxu0 %v10122_v23  ;;  %7047 = vmatpush1.bf16.msra.mxu1 %v10124_v24  ;;  %v6242_v23 = vld [vmem:[#allocation3 + $0x1b78] sm:$0xff]  ;;  %v10186_v24 = vcombine.low %v6229_v14, %v6233_v38  ;;  %v7133_v38 = vld [vmem:[#allocation3 + $0x1d00] sm:$0xff] }
 0x3cb   : > { %7005 = vmatprep.subr.bf16.mxu0 %v10131_v25  ;;  %7048 = vmatprep.subr.bf16.mxu1 %v10133_v26  ;;  %v10188_v25 = vcombine.low %v6230_v15, %v6234_v16  ;;  %v10195_v26 = vcombine.high %v6237_v20, %v6241_v21  ;;  %v10197_v27 = vcombine.high %v6238_v22, %v6242_v23  ;;  %v7137_v15 = vld [vmem:[#allocation3 + $0x1d20] sm:$0xff]  ;;  %v7134_v16 = vld [vmem:[#allocation3 + $0x1d08] sm:$0xff] }
 0x3ce   : > { %7006 = vmatpush1.bf16.msra.mxu0 %v10130_v32  ;;  %7049 = vmatpush1.bf16.msra.mxu1 %v10132_v34  ;;  %v6250_v32 = vld [vmem:[#allocation3 + $0x1bb8] sm:$0xff]  ;;  %v10194_v34 = vcombine.low %v6237_v20, %v6241_v21  ;;  %v7141_v21 = vld [vmem:[#allocation3 + $0x1d40] sm:$0xff] }
 0x3cf   : > { %7007 = vmatprep.subr.bf16.mxu0 %v10139_v35  ;;  %7050 = vmatprep.subr.bf16.mxu1 %v10141_v36  ;;  %v10196_v35 = vcombine.low %v6238_v22, %v6242_v23  ;;  %v10203_v36 = vcombine.high %v6245_v29, %v6249_v30  ;;  %v10205_v37 = vcombine.high %v6246_v31, %v6250_v32  ;;  %v7145_v22 = vld [vmem:[#allocation3 + $0x1d60] sm:$0xff]  ;;  %v7142_v23 = vld [vmem:[#allocation3 + $0x1d48] sm:$0xff] }
 0x3d2   : > { %7008 = vmatpush1.bf16.msra.mxu0 %v10138_v43  ;;  %7051 = vmatpush1.bf16.msra.mxu1 %v10140_v46  ;;  %v6258_v43 = vld [vmem:[#allocation3 + $0x1bf8] sm:$0xff]  ;;  %v10202_v46 = vcombine.low %v6245_v29, %v6249_v30  ;;  %v7149_v30 = vld [vmem:[#allocation3 + $0x1d80] sm:$0xff] }
 0x3d3   : > { %7009 = vmatprep.subr.bf16.mxu0 %v10147_v47  ;;  %7052 = vmatprep.subr.bf16.mxu1 %v10149_v48  ;;  %v10204_v47 = vcombine.low %v6246_v31, %v6250_v32  ;;  %v10211_v48 = vcombine.high %v6253_v40, %v6257_v41  ;;  %v10213_v49 = vcombine.high %v6254_v42, %v6258_v43  ;;  %v7153_v31 = vld [vmem:[#allocation3 + $0x1da0] sm:$0xff]  ;;  %v7150_v32 = vld [vmem:[#allocation3 + $0x1d88] sm:$0xff] }
 0x3d6   : > { %7010 = vmatpush1.bf16.msra.mxu0 %v10146_v54  ;;  %7053 = vmatpush1.bf16.msra.mxu1 %v10148_v56  ;;  %v7106_v54 = vld [vmem:[#allocation3 + $0x1c28] sm:$0xff]  ;;  %v10210_v56 = vcombine.low %v6253_v40, %v6257_v41  ;;  %v7157_v41 = vld [vmem:[#allocation3 + $0x1dc0] sm:$0xff] }
 0x3d7   : > { %7011 = vmatprep.subr.bf16.mxu0 %v10155_v57  ;;  %7054 = vmatprep.subr.bf16.mxu1 %v10157_v10  ;;  %v10212_v57 = vcombine.low %v6254_v42, %v6258_v43  ;;  %v10219_v10 = vcombine.high %v7101_v51, %v7105_v52  ;;  %v10221_v58 = vcombine.high %v7102_v53, %v7106_v54  ;;  %v7161_v42 = vld [vmem:[#allocation3 + $0x1de0] sm:$0xff]  ;;  %v7158_v43 = vld [vmem:[#allocation3 + $0x1dc8] sm:$0xff] }
 0x3da   : > { %7012 = vmatpush1.bf16.msra.mxu0 %v10154_v62  ;;  %7055 = vmatpush1.bf16.msra.mxu1 %v10156_v63  ;;  %v7114_v62 = vld [vmem:[#allocation3 + $0x1c68] sm:$0xff]  ;;  %v10218_v63 = vcombine.low %v7101_v51, %v7105_v52  ;;  %v7165_v52 = vld [vmem:[#allocation3 + $0x1e00] sm:$0xff] }
 0x3db   : > { %7013 = vmatprep.subr.bf16.mxu0 %v10163_v0  ;;  %7056 = vmatprep.subr.bf16.mxu1 %v10165_v1  ;;  %v10220_v0 = vcombine.low %v7102_v53, %v7106_v54  ;;  %v10227_v1 = vcombine.high %v7109_v60, %v7113_v61  ;;  %v10229_v45 = vcombine.high %v7110_v39, %v7114_v62  ;;  %v7169_v53 = vld [vmem:[#allocation3 + $0x1e20] sm:$0xff]  ;;  %v7166_v54 = vld [vmem:[#allocation3 + $0x1e08] sm:$0xff] }
 0x3de   : > { %7014 = vmatpush1.bf16.msra.mxu0 %v10162_v4  ;;  %7057 = vmatpush1.bf16.msra.mxu1 %v10164_v5  ;;  %v7118_v4 = vld [vmem:[#allocation3 + $0x1c88] sm:$0xff] }
 0x3df   : > { %7015 = vmatprep.subr.bf16.mxu0 %v10171_v28  ;;  %7058 = vmatprep.subr.bf16.mxu1 %v10173_v6  ;;  %v7122_v5 = vld [vmem:[#allocation3 + $0x1ca8] sm:$0xff]  ;;  %v10226_v28 = vcombine.low %v7109_v60, %v7113_v61  ;;  %v10228_v6 = vcombine.low %v7110_v39, %v7114_v62  ;;  %v7173_v61 = vld [vmem:[#allocation3 + $0x1e40] sm:$0xff] }
 0x3e0   : > { %v10237_v55 = vcombine.high %v7118_v4, %v7122_v5  ;;  %v7177_v39 = vld [vmem:[#allocation3 + $0x1e60] sm:$0xff]  ;;  %v7174_v62 = vld [vmem:[#allocation3 + $0x1e48] sm:$0xff] }
 0x3e2   : > { %7016 = vmatpush1.bf16.msra.mxu0 %v10170_v33  ;;  %7059 = vmatpush1.bf16.msra.mxu1 %v10172_v11  ;;  %v7126_v33 = vld [vmem:[#allocation3 + $0x1cc8] sm:$0xff] }
 0x3e3   : > { %7017 = vmatprep.subr.bf16.mxu0 %v10179_v12  ;;  %7060 = vmatprep.subr.bf16.mxu1 %v10181_v13  ;;  %v7130_v11 = vld [vmem:[#allocation3 + $0x1ce8] sm:$0xff]  ;;  %v10234_v12 = vcombine.low %v7117_v2, %v7121_v3  ;;  %v10243_v13 = vcombine.high %v7125_v8, %v7129_v9  ;;  %v7181_v3 = vld [vmem:[#allocation3 + $0x1e80] sm:$0xff] }
 0x3e4   : > { %v10245_v14 = vcombine.high %v7126_v33, %v7130_v11 }
 0x3e6   : > { %7018 = vmatpush1.bf16.msra.mxu0 %v10178_v17  ;;  %7061 = vmatpush1.bf16.msra.mxu1 %v10180_v18  ;;  %v7138_v17 = vld [vmem:[#allocation3 + $0x1d28] sm:$0xff]  ;;  %v10242_v18 = vcombine.low %v7125_v8, %v7129_v9  ;;  %v7189_v9 = vld [vmem:[#allocation3 + $0x1ec0] sm:$0xff] }
 0x3e7   : > { %7019 = vmatprep.subr.bf16.mxu0 %v10187_v44  ;;  %7062 = vmatprep.subr.bf16.mxu1 %v10189_v19  ;;  %v10244_v44 = vcombine.low %v7126_v33, %v7130_v11  ;;  %v10251_v19 = vcombine.high %v7133_v38, %v7137_v15  ;;  %v10253_v20 = vcombine.high %v7134_v16, %v7138_v17  ;;  %v7193_v33 = vld [vmem:[#allocation3 + $0x1ee0] sm:$0xff]  ;;  %v7190_v11 = vld [vmem:[#allocation3 + $0x1ec8] sm:$0xff] }
 0x3ea   : > { %7020 = vmatpush1.bf16.msra.mxu0 %v10186_v24  ;;  %7063 = vmatpush1.bf16.msra.mxu1 %v10188_v25  ;;  %v7146_v24 = vld [vmem:[#allocation3 + $0x1d68] sm:$0xff]  ;;  %v10250_v25 = vcombine.low %v7133_v38, %v7137_v15  ;;  %v7197_v15 = vld [vmem:[#allocation3 + $0x1f00] sm:$0xff] }
 0x3eb   : > { %7021 = vmatprep.subr.bf16.mxu0 %v10195_v26  ;;  %7064 = vmatprep.subr.bf16.mxu1 %v10197_v27  ;;  %v10252_v26 = vcombine.low %v7134_v16, %v7138_v17  ;;  %v10259_v27 = vcombine.high %v7141_v21, %v7145_v22  ;;  %v10261_v29 = vcombine.high %v7142_v23, %v7146_v24  ;;  %v7201_v16 = vld [vmem:[#allocation3 + $0x1f20] sm:$0xff]  ;;  %v7198_v17 = vld [vmem:[#allocation3 + $0x1f08] sm:$0xff] }
 0x3ee   : > { %7022 = vmatpush1.bf16.msra.mxu0 %v10194_v34  ;;  %7065 = vmatpush1.bf16.msra.mxu1 %v10196_v35  ;;  %v7154_v34 = vld [vmem:[#allocation3 + $0x1da8] sm:$0xff]  ;;  %v10258_v35 = vcombine.low %v7141_v21, %v7145_v22  ;;  %v7205_v22 = vld [vmem:[#allocation3 + $0x1f40] sm:$0xff] }
 0x3ef   : > { %7023 = vmatprep.subr.bf16.mxu0 %v10203_v36  ;;  %7066 = vmatprep.subr.bf16.mxu1 %v10205_v37  ;;  %v10260_v36 = vcombine.low %v7142_v23, %v7146_v24  ;;  %v10267_v37 = vcombine.high %v7149_v30, %v7153_v31  ;;  %v10269_v40 = vcombine.high %v7150_v32, %v7154_v34  ;;  %v7209_v23 = vld [vmem:[#allocation3 + $0x1f60] sm:$0xff]  ;;  %v7206_v24 = vld [vmem:[#allocation3 + $0x1f48] sm:$0xff] }
 0x3f2   : > { %7024 = vmatpush1.bf16.msra.mxu0 %v10202_v46  ;;  %7067 = vmatpush1.bf16.msra.mxu1 %v10204_v47  ;;  %v7162_v46 = vld [vmem:[#allocation3 + $0x1de8] sm:$0xff]  ;;  %v10266_v47 = vcombine.low %v7149_v30, %v7153_v31  ;;  %v7213_v31 = vld [vmem:[#allocation3 + $0x1f80] sm:$0xff] }
 0x3f3   : > { %7025 = vmatprep.subr.bf16.mxu0 %v10211_v48  ;;  %7068 = vmatprep.subr.bf16.mxu1 %v10213_v49  ;;  %v10268_v48 = vcombine.low %v7150_v32, %v7154_v34  ;;  %v10275_v49 = vcombine.high %v7157_v41, %v7161_v42  ;;  %v10277_v51 = vcombine.high %v7158_v43, %v7162_v46  ;;  %v7217_v32 = vld [vmem:[#allocation3 + $0x1fa0] sm:$0xff]  ;;  %v7214_v34 = vld [vmem:[#allocation3 + $0x1f88] sm:$0xff] }
 0x3f6   : > { %7026 = vmatpush1.bf16.msra.mxu0 %v10210_v56  ;;  %7069 = vmatpush1.bf16.msra.mxu1 %v10212_v57  ;;  %v7170_v56 = vld [vmem:[#allocation3 + $0x1e28] sm:$0xff]  ;;  %v10274_v57 = vcombine.low %v7157_v41, %v7161_v42  ;;  %v7221_v42 = vld [vmem:[#allocation3 + $0x1fc0] sm:$0xff] }
 0x3f7   : > { %7879 = vmatprep.subr.bf16.mxu0 %v10219_v10  ;;  %7922 = vmatprep.subr.bf16.mxu1 %v10221_v58  ;;  %v10276_v10 = vcombine.low %v7158_v43, %v7162_v46  ;;  %v10283_v58 = vcombine.high %v7165_v52, %v7169_v53  ;;  %v10285_v60 = vcombine.high %v7166_v54, %v7170_v56  ;;  %v7225_v43 = vld [vmem:[#allocation3 + $0x1fe0] sm:$0xff]  ;;  %v7222_v46 = vld [vmem:[#allocation3 + $0x1fc8] sm:$0xff] }
 0x3f9   : > { %7028 = vmatmul.mubr.bf16.vlgmr.msra.gmra.mrb[4].mxu0 %v11092_v59  ;;  %7071 = vmatmul.mubr.bf16.vlgmr.msra.gmra.mrb[4].mxu1 %v11092_v59  ;;  %v10236_v59 = vcombine.low %v7118_v4, %v7122_v5  ;;  %v7185_v4 = vld [vmem:[#allocation3 + $0x1ea0] sm:$0xff]  ;;  %v7182_v5 = vld [vmem:[#allocation3 + $0x1e88] sm:$0xff] }
 0x3fa   : > { %7880 = vmatpush1.bf16.msra.mxu0 %v10218_v63  ;;  %7923 = vmatpush1.bf16.msra.mxu1 %v10220_v0  ;;  %v7178_v63 = vld [vmem:[#allocation3 + $0x1e68] sm:$0xff]  ;;  %v10282_v0 = vcombine.low %v7165_v52, %v7169_v53  ;;  %v7103_v53 = vld [vmem:[#allocation3 + $0x1c10] sm:$0xff] }
 0x3fb   : > { %7881 = vmatprep.subr.bf16.mxu0 %v10227_v1  ;;  %7924 = vmatprep.subr.bf16.mxu1 %v10229_v45  ;;  %v10284_v1 = vcombine.low %v7166_v54, %v7170_v56  ;;  %v10291_v45 = vcombine.high %v7173_v61, %v7177_v39  ;;  %v10293_v2 = vcombine.high %v7174_v62, %v7178_v63  ;;  %v7107_v54 = vld [vmem:[#allocation3 + $0x1c30] sm:$0xff]  ;;  %v7104_v56 = vld [vmem:[#allocation3 + $0x1c18] sm:$0xff] }
 0x3fc   : > { %7911 = vmatprep.mubr.bf16.mxu0 %v11099_v50  ;;  %7954 = vmatprep.mubr.bf16.mxu1 %v11099_v50 }
 0x3fe   : > { %7882 = vmatpush1.bf16.msra.mxu0 %v10226_v28  ;;  %7925 = vmatpush1.bf16.msra.mxu1 %v10228_v6  ;;  %v7186_v28 = vld [vmem:[#allocation3 + $0x1ea8] sm:$0xff]  ;;  %v10290_v6 = vcombine.low %v7173_v61, %v7177_v39  ;;  %v7111_v39 = vld [vmem:[#allocation3 + $0x1c50] sm:$0xff] }
 0x3ff   : > { %7883 = vmatprep.subr.bf16.mxu0 %v10235_v7  ;;  %7926 = vmatprep.subr.bf16.mxu1 %v10237_v55  ;;  %v10292_v7 = vcombine.low %v7174_v62, %v7178_v63  ;;  %v10299_v55 = vcombine.high %v7181_v3, %v7185_v4  ;;  %v10301_v8 = vcombine.high %v7182_v5, %v7186_v28  ;;  %v7115_v62 = vld [vmem:[#allocation3 + $0x1c70] sm:$0xff] }
 0x400   : > { %v11106_v63 = vld [vmem:[%s10992_s5 + $0x70] ss:$8 sps:$4 sm:$0xff]  }
 0x402   : > { %7884 = vmatpush1.bf16.msra.mxu0 %v10234_v12  ;;  %7927 = vmatpush1.bf16.msra.mxu1 %v10236_v59  ;;  %v7194_v12 = vld [vmem:[#allocation3 + $0x1ee8] sm:$0xff]  ;;  %v10298_v59 = vcombine.low %v7181_v3, %v7185_v4  ;;  %v10231_v3 = vcombine.high %v7111_v39, %v7115_v62 }
 0x403   : > { %7885 = vmatprep.subr.bf16.mxu0 %v10243_v13  ;;  %7928 = vmatprep.subr.bf16.mxu1 %v10245_v14  ;;  %v10300_v13 = vcombine.low %v7182_v5, %v7186_v28  ;;  %v10307_v14 = vcombine.high %v7189_v9, %v7193_v33  ;;  %v10309_v38 = vcombine.high %v7190_v11, %v7194_v12  ;;  %v7119_v5 = vld [vmem:[#allocation3 + $0x1c90] sm:$0xff] }
 0x404   : > { %v7123_v28 = vld [vmem:[#allocation3 + $0x1cb0] sm:$0xff] }
 0x406   : > { %7886 = vmatpush1.bf16.msra.mxu0 %v10242_v18  ;;  %7929 = vmatpush1.bf16.msra.mxu1 %v10244_v44  ;;  %v7202_v18 = vld [vmem:[#allocation3 + $0x1f28] sm:$0xff]  ;;  %v10306_v44 = vcombine.low %v7189_v9, %v7193_v33  ;;  %v10239_v9 = vcombine.high %v7119_v5, %v7123_v28 }
 0x407   : > { %7887 = vmatprep.subr.bf16.mxu0 %v10251_v19  ;;  %7930 = vmatprep.subr.bf16.mxu1 %v10253_v20  ;;  %v10308_v19 = vcombine.low %v7190_v11, %v7194_v12  ;;  %v10315_v20 = vcombine.high %v7197_v15, %v7201_v16  ;;  %v10317_v21 = vcombine.high %v7198_v17, %v7202_v18  ;;  %v7127_v11 = vld [vmem:[#allocation3 + $0x1cd0] sm:$0xff] }
 0x408   : > { %v7131_v12 = vld [vmem:[#allocation3 + $0x1cf0] sm:$0xff] }
 0x40a   : > { %7888 = vmatpush1.bf16.msra.mxu0 %v10250_v25  ;;  %7931 = vmatpush1.bf16.msra.mxu1 %v10252_v26  ;;  %v7210_v25 = vld [vmem:[#allocation3 + $0x1f68] sm:$0xff]  ;;  %v10314_v26 = vcombine.low %v7197_v15, %v7201_v16  ;;  %v10247_v15 = vcombine.high %v7127_v11, %v7131_v12 }
 0x40b   : > { %7889 = vmatprep.subr.bf16.mxu0 %v10259_v27  ;;  %7932 = vmatprep.subr.bf16.mxu1 %v10261_v29  ;;  %v10316_v27 = vcombine.low %v7198_v17, %v7202_v18  ;;  %v10323_v29 = vcombine.high %v7205_v22, %v7209_v23  ;;  %v10325_v30 = vcombine.high %v7206_v24, %v7210_v25  ;;  %v7135_v17 = vld [vmem:[#allocation3 + $0x1d10] sm:$0xff] }
 0x40c   : > { %v7139_v18 = vld [vmem:[#allocation3 + $0x1d30] sm:$0xff] }
 0x40e   : > { %7890 = vmatpush1.bf16.msra.mxu0 %v10258_v35  ;;  %7933 = vmatpush1.bf16.msra.mxu1 %v10260_v36  ;;  %v7218_v35 = vld [vmem:[#allocation3 + $0x1fa8] sm:$0xff]  ;;  %v10322_v36 = vcombine.low %v7205_v22, %v7209_v23  ;;  %v10255_v22 = vcombine.high %v7135_v17, %v7139_v18  ;;  %v7143_v23 = vld [vmem:[#allocation3 + $0x1d50] sm:$0xff] }
 0x40f   : > { %7891 = vmatprep.subr.bf16.mxu0 %v10267_v37  ;;  %7934 = vmatprep.subr.bf16.mxu1 %v10269_v40  ;;  %v10324_v37 = vcombine.low %v7206_v24, %v7210_v25  ;;  %v10331_v40 = vcombine.high %v7213_v31, %v7217_v32  ;;  %v10333_v41 = vcombine.high %v7214_v34, %v7218_v35  ;;  %v7147_v24 = vld [vmem:[#allocation3 + $0x1d70] sm:$0xff]  ;;  %v7144_v25 = vld [vmem:[#allocation3 + $0x1d58] sm:$0xff] }
 0x412   : > { %7892 = vmatpush1.bf16.msra.mxu0 %v10266_v47  ;;  %7935 = vmatpush1.bf16.msra.mxu1 %v10268_v48  ;;  %v7226_v47 = vld [vmem:[#allocation3 + $0x1fe8] sm:$0xff]  ;;  %v10330_v48 = vcombine.low %v7213_v31, %v7217_v32  ;;  %v7151_v32 = vld [vmem:[#allocation3 + $0x1d90] sm:$0xff] }
 0x413   : > { %7893 = vmatprep.subr.bf16.mxu0 %v10275_v49  ;;  %7936 = vmatprep.subr.bf16.mxu1 %v10277_v51  ;;  %v10332_v49 = vcombine.low %v7214_v34, %v7218_v35  ;;  %v10339_v51 = vcombine.high %v7221_v42, %v7225_v43  ;;  %v10341_v52 = vcombine.high %v7222_v46, %v7226_v47  ;;  %v7155_v34 = vld [vmem:[#allocation3 + $0x1db0] sm:$0xff]  ;;  %v7152_v35 = vld [vmem:[#allocation3 + $0x1d98] sm:$0xff] }
 0x416   : > { %7894 = vmatpush1.bf16.msra.mxu0 %v10274_v57  ;;  %7937 = vmatpush1.bf16.msra.mxu1 %v10276_v10  ;;  %v7108_v57 = vld [vmem:[#allocation3 + $0x1c38] sm:$0xff]  ;;  %v10338_v10 = vcombine.low %v7221_v42, %v7225_v43  ;;  %v7159_v43 = vld [vmem:[#allocation3 + $0x1dd0] sm:$0xff] }
 0x417   : > { %7895 = vmatprep.subr.bf16.mxu0 %v10283_v58  ;;  %7938 = vmatprep.subr.bf16.mxu1 %v10285_v60  ;;  %v10340_v58 = vcombine.low %v7222_v46, %v7226_v47  ;;  %v10223_v60 = vcombine.high %v7103_v53, %v7107_v54  ;;  %v10225_v61 = vcombine.high %v7104_v56, %v7108_v57  ;;  %v7163_v46 = vld [vmem:[#allocation3 + $0x1df0] sm:$0xff]  ;;  %v7160_v47 = vld [vmem:[#allocation3 + $0x1dd8] sm:$0xff] }
 0x41a   : > { %7896 = vmatpush1.bf16.msra.mxu0 %v10282_v0  ;;  %7939 = vmatpush1.bf16.msra.mxu1 %v10284_v1  ;;  %v7112_v0 = vld [vmem:[#allocation3 + $0x1c58] sm:$0xff] }
 0x41b   : > { %7897 = vmatprep.subr.bf16.mxu0 %v10291_v45  ;;  %7940 = vmatprep.subr.bf16.mxu1 %v10293_v2  ;;  %v7116_v1 = vld [vmem:[#allocation3 + $0x1c78] sm:$0xff]  ;;  %v10222_v45 = vcombine.low %v7103_v53, %v7107_v54  ;;  %v10224_v2 = vcombine.low %v7104_v56, %v7108_v57  ;;  %v7167_v54 = vld [vmem:[#allocation3 + $0x1e10] sm:$0xff] }
 0x41c   : > { %v10233_v4 = vcombine.high %v7112_v0, %v7116_v1  ;;  %v7171_v56 = vld [vmem:[#allocation3 + $0x1e30] sm:$0xff]  ;;  %v7168_v57 = vld [vmem:[#allocation3 + $0x1e18] sm:$0xff] }
 0x41e   : > { %7898 = vmatpush1.bf16.msra.mxu0 %v10290_v6  ;;  %7941 = vmatpush1.bf16.msra.mxu1 %v10292_v7  ;;  %v7120_v6 = vld [vmem:[#allocation3 + $0x1c98] sm:$0xff] }
 0x41f   : > { %7899 = vmatprep.subr.bf16.mxu0 %v10299_v55  ;;  %7942 = vmatprep.subr.bf16.mxu1 %v10301_v8  ;;  %v7124_v7 = vld [vmem:[#allocation3 + $0x1cb8] sm:$0xff]  ;;  %v10230_v55 = vcombine.low %v7111_v39, %v7115_v62  ;;  %v10232_v8 = vcombine.low %v7112_v0, %v7116_v1  ;;  %v7175_v62 = vld [vmem:[#allocation3 + $0x1e50] sm:$0xff] }
 0x420   : > { %v10241_v33 = vcombine.high %v7120_v6, %v7124_v7  ;;  %v7179_v0 = vld [vmem:[#allocation3 + $0x1e70] sm:$0xff]  ;;  %v7176_v1 = vld [vmem:[#allocation3 + $0x1e58] sm:$0xff] }
 0x422   : > { %7900 = vmatpush1.bf16.msra.mxu0 %v10298_v59  ;;  %7943 = vmatpush1.bf16.msra.mxu1 %v10300_v13  ;;  %v7128_v59 = vld [vmem:[#allocation3 + $0x1cd8] sm:$0xff] }
 0x423   : > { %7901 = vmatprep.subr.bf16.mxu0 %v10307_v14  ;;  %7944 = vmatprep.subr.bf16.mxu1 %v10309_v38  ;;  %v7132_v13 = vld [vmem:[#allocation3 + $0x1cf8] sm:$0xff]  ;;  %v10238_v14 = vcombine.low %v7119_v5, %v7123_v28  ;;  %v10240_v38 = vcombine.low %v7120_v6, %v7124_v7  ;;  %v7183_v28 = vld [vmem:[#allocation3 + $0x1e90] sm:$0xff] }
 0x424   : > { %v10249_v16 = vcombine.high %v7128_v59, %v7132_v13  ;;  %v7187_v6 = vld [vmem:[#allocation3 + $0x1eb0] sm:$0xff]  ;;  %v7184_v7 = vld [vmem:[#allocation3 + $0x1e98] sm:$0xff] }
 0x426   : > { %7902 = vmatpush1.bf16.msra.mxu0 %v10306_v44  ;;  %7945 = vmatpush1.bf16.msra.mxu1 %v10308_v19  ;;  %v7136_v44 = vld [vmem:[#allocation3 + $0x1d18] sm:$0xff] }
 0x427   : > { %7903 = vmatprep.subr.bf16.mxu0 %v10315_v20  ;;  %7946 = vmatprep.subr.bf16.mxu1 %v10317_v21  ;;  %v7140_v19 = vld [vmem:[#allocation3 + $0x1d38] sm:$0xff]  ;;  %v10246_v20 = vcombine.low %v7127_v11, %v7131_v12  ;;  %v10248_v21 = vcombine.low %v7128_v59, %v7132_v13  ;;  %v7191_v12 = vld [vmem:[#allocation3 + $0x1ed0] sm:$0xff] }
 0x428   : > { %v7195_v59 = vld [vmem:[#allocation3 + $0x1ef0] sm:$0xff]  ;;  %v7192_v13 = vld [vmem:[#allocation3 + $0x1ed8] sm:$0xff] }
 0x42a   : > { %7904 = vmatpush1.bf16.msra.mxu0 %v10314_v26  ;;  %7947 = vmatpush1.bf16.msra.mxu1 %v10316_v27  ;;  %v7148_v26 = vld [vmem:[#allocation3 + $0x1d78] sm:$0xff]  ;;  %v10254_v27 = vcombine.low %v7135_v17, %v7139_v18  ;;  %v7199_v18 = vld [vmem:[#allocation3 + $0x1f10] sm:$0xff] }
 0x42b   : > { %7905 = vmatprep.subr.bf16.mxu0 %v10323_v29  ;;  %7948 = vmatprep.subr.bf16.mxu1 %v10325_v30  ;;  %v10256_v29 = vcombine.low %v7136_v44, %v7140_v19  ;;  %v10263_v30 = vcombine.high %v7143_v23, %v7147_v24  ;;  %v10265_v31 = vcombine.high %v7144_v25, %v7148_v26 }
 0x42e   : > { %7906 = vmatpush1.bf16.msra.mxu0 %v10322_v36  ;;  %7949 = vmatpush1.bf16.msra.mxu1 %v10324_v37  ;;  %v7156_v36 = vld [vmem:[#allocation3 + $0x1db8] sm:$0xff]  ;;  %v10262_v37 = vcombine.low %v7143_v23, %v7147_v24  ;;  %v7207_v24 = vld [vmem:[#allocation3 + $0x1f50] sm:$0xff] }
 0x42f   : > { %7907 = vmatprep.subr.bf16.mxu0 %v10331_v40  ;;  %7950 = vmatprep.subr.bf16.mxu1 %v10333_v41  ;;  %v10264_v40 = vcombine.low %v7144_v25, %v7148_v26  ;;  %v10271_v41 = vcombine.high %v7151_v32, %v7155_v34  ;;  %v10273_v42 = vcombine.high %v7152_v35, %v7156_v36  ;;  %v7211_v25 = vld [vmem:[#allocation3 + $0x1f70] sm:$0xff]  ;;  %v7208_v26 = vld [vmem:[#allocation3 + $0x1f58] sm:$0xff] }
 0x432   : > { %7908 = vmatpush1.bf16.msra.mxu0 %v10330_v48  ;;  %7951 = vmatpush1.bf16.msra.mxu1 %v10332_v49  ;;  %v7164_v48 = vld [vmem:[#allocation3 + $0x1df8] sm:$0xff]  ;;  %v10270_v49 = vcombine.low %v7151_v32, %v7155_v34  ;;  %v7215_v34 = vld [vmem:[#allocation3 + $0x1f90] sm:$0xff] }
 0x433   : > { %7909 = vmatprep.subr.bf16.mxu0 %v10339_v51  ;;  %7952 = vmatprep.subr.bf16.mxu1 %v10341_v52  ;;  %v10272_v51 = vcombine.low %v7152_v35, %v7156_v36  ;;  %v10279_v52 = vcombine.high %v7159_v43, %v7163_v46  ;;  %v10281_v53 = vcombine.high %v7160_v47, %v7164_v48  ;;  %v7219_v35 = vld [vmem:[#allocation3 + $0x1fb0] sm:$0xff]  ;;  %v7216_v36 = vld [vmem:[#allocation3 + $0x1f98] sm:$0xff] }
 0x436   : > { %7910 = vmatpush1.bf16.msra.mxu0 %v10338_v10  ;;  %7953 = vmatpush1.bf16.msra.mxu1 %v10340_v58  ;;  %v7172_v10 = vld [vmem:[#allocation3 + $0x1e38] sm:$0xff]  ;;  %v10278_v58 = vcombine.low %v7159_v43, %v7163_v46  ;;  %v7223_v46 = vld [vmem:[#allocation3 + $0x1fd0] sm:$0xff] }
 0x437   : > { %7965 = vmatprep.subr.bf16.mxu0 %v10223_v60  ;;  %8008 = vmatprep.subr.bf16.mxu1 %v10225_v61  ;;  %v10280_v60 = vcombine.low %v7160_v47, %v7164_v48  ;;  %v10287_v61 = vcombine.high %v7167_v54, %v7171_v56  ;;  %v10289_v39 = vcombine.high %v7168_v57, %v7172_v10  ;;  %v7227_v47 = vld [vmem:[#allocation3 + $0x1ff0] sm:$0xff]  ;;  %v7224_v48 = vld [vmem:[#allocation3 + $0x1fd8] sm:$0xff] }
 0x439   : > { %7912 = vmatmul.mubr.bf16.vlgmr.msra.gmra.mrb[0].mxu0 %v11106_v63  ;;  %7955 = vmatmul.mubr.bf16.vlgmr.msra.gmra.mrb[0].mxu1 %v11106_v63 }
 0x43a   : > { %7966 = vmatpush1.bf16.msra.mxu0 %v10222_v45  ;;  %8009 = vmatpush1.bf16.msra.mxu1 %v10224_v2  ;;  %v7180_v45 = vld [vmem:[#allocation3 + $0x1e78] sm:$0xff]  ;;  %v10286_v2 = vcombine.low %v7167_v54, %v7171_v56  ;;  %v8071_v56 = vld [vmem:[#allocation3 + $0x2000] sm:$0xff] }
 0x43b   : > { %7967 = vmatprep.subr.bf16.mxu0 %v10231_v3  ;;  %8010 = vmatprep.subr.bf16.mxu1 %v10233_v4  ;;  %v10288_v3 = vcombine.low %v7168_v57, %v7172_v10  ;;  %v10295_v4 = vcombine.high %v7175_v62, %v7179_v0  ;;  %v10297_v5 = vcombine.high %v7176_v1, %v7180_v45  ;;  %v8075_v57 = vld [vmem:[#allocation3 + $0x2020] sm:$0xff]  ;;  %v8072_v10 = vld [vmem:[#allocation3 + $0x2008] sm:$0xff] }
 0x43c   : > { %7997 = vmatprep.mubr.bf16.mxu0 %v11099_v50  ;;  %8040 = vmatprep.mubr.bf16.mxu1 %v11099_v50  ;;  %v10257_v50 = vcombine.high %v7136_v44, %v7140_v19  ;;  %v7203_v44 = vld [vmem:[#allocation3 + $0x1f30] sm:$0xff]  ;;  %v7200_v19 = vld [vmem:[#allocation3 + $0x1f18] sm:$0xff] }
 0x43e   : > { %7968 = vmatpush1.bf16.msra.mxu0 %v10230_v55  ;;  %8011 = vmatpush1.bf16.msra.mxu1 %v10232_v8  ;;  %v7188_v55 = vld [vmem:[#allocation3 + $0x1eb8] sm:$0xff]  ;;  %v10294_v8 = vcombine.low %v7175_v62, %v7179_v0  ;;  %v8079_v0 = vld [vmem:[#allocation3 + $0x2040] sm:$0xff] }
 0x43f   : > { %7969 = vmatprep.subr.bf16.mxu0 %v10239_v9  ;;  %8012 = vmatprep.subr.bf16.mxu1 %v10241_v33  ;;  %v10296_v9 = vcombine.low %v7176_v1, %v7180_v45  ;;  %v10303_v33 = vcombine.high %v7183_v28, %v7187_v6  ;;  %v10305_v11 = vcombine.high %v7184_v7, %v7188_v55  ;;  %v8083_v1 = vld [vmem:[#allocation3 + $0x2060] sm:$0xff]  ;;  %v8080_v45 = vld [vmem:[#allocation3 + $0x2048] sm:$0xff] }
 0x442   : > { %7970 = vmatpush1.bf16.msra.mxu0 %v10238_v14  ;;  %8013 = vmatpush1.bf16.msra.mxu1 %v10240_v38  ;;  %v7196_v14 = vld [vmem:[#allocation3 + $0x1ef8] sm:$0xff]  ;;  %v10302_v38 = vcombine.low %v7183_v28, %v7187_v6  ;;  %v8087_v6 = vld [vmem:[#allocation3 + $0x2080] sm:$0xff] }
 0x443   : > { %7971 = vmatprep.subr.bf16.mxu0 %v10247_v15  ;;  %8014 = vmatprep.subr.bf16.mxu1 %v10249_v16  ;;  %v10304_v15 = vcombine.low %v7184_v7, %v7188_v55  ;;  %v10311_v16 = vcombine.high %v7191_v12, %v7195_v59  ;;  %v10313_v17 = vcombine.high %v7192_v13, %v7196_v14  ;;  %v8091_v7 = vld [vmem:[#allocation3 + $0x20a0] sm:$0xff] }
 0x444   : > { %v11113_v55 = vld [vmem:[%s10992_s5 + $0x84] ss:$8 sps:$4 sm:$0xff]  }
 0x446   : > { %7972 = vmatpush1.bf16.msra.mxu0 %v10246_v20  ;;  %8015 = vmatpush1.bf16.msra.mxu1 %v10248_v21  ;;  %v7204_v20 = vld [vmem:[#allocation3 + $0x1f38] sm:$0xff]  ;;  %v10310_v21 = vcombine.low %v7191_v12, %v7195_v59  ;;  %v10367_v12 = vcombine.high %v8087_v6, %v8091_v7 }
 0x447   : > { %7973 = vmatprep.subr.bf16.mxu0 %v10255_v22  ;;  %8016 = vmatprep.subr.bf16.mxu1 %v10257_v50  ;;  %v10312_v22 = vcombine.low %v7192_v13, %v7196_v14  ;;  %v10319_v50 = vcombine.high %v7199_v18, %v7203_v44  ;;  %v10321_v23 = vcombine.high %v7200_v19, %v7204_v20  ;;  %v8095_v13 = vld [vmem:[#allocation3 + $0x20c0] sm:$0xff] }
 0x448   : > { %v8099_v14 = vld [vmem:[#allocation3 + $0x20e0] sm:$0xff] }
 0x44a   : > { %7974 = vmatpush1.bf16.msra.mxu0 %v10254_v27  ;;  %8017 = vmatpush1.bf16.msra.mxu1 %v10256_v29  ;;  %v7212_v27 = vld [vmem:[#allocation3 + $0x1f78] sm:$0xff]  ;;  %v10318_v29 = vcombine.low %v7199_v18, %v7203_v44  ;;  %v8103_v44 = vld [vmem:[#allocation3 + $0x2100] sm:$0xff] }
 0x44b   : > { %7975 = vmatprep.subr.bf16.mxu0 %v10263_v30  ;;  %8018 = vmatprep.subr.bf16.mxu1 %v10265_v31  ;;  %v10320_v30 = vcombine.low %v7200_v19, %v7204_v20  ;;  %v10327_v31 = vcombine.high %v7207_v24, %v7211_v25  ;;  %v10329_v32 = vcombine.high %v7208_v26, %v7212_v27  ;;  %v8107_v19 = vld [vmem:[#allocation3 + $0x2120] sm:$0xff]  ;;  %v8104_v20 = vld [vmem:[#allocation3 + $0x2108] sm:$0xff] }
 0x44e   : > { %7976 = vmatpush1.bf16.msra.mxu0 %v10262_v37  ;;  %8019 = vmatpush1.bf16.msra.mxu1 %v10264_v40  ;;  %v7220_v37 = vld [vmem:[#allocation3 + $0x1fb8] sm:$0xff]  ;;  %v10326_v40 = vcombine.low %v7207_v24, %v7211_v25  ;;  %v8111_v25 = vld [vmem:[#allocation3 + $0x2140] sm:$0xff] }
 0x44f   : > { %7977 = vmatprep.subr.bf16.mxu0 %v10271_v41  ;;  %8020 = vmatprep.subr.bf16.mxu1 %v10273_v42  ;;  %v10328_v41 = vcombine.low %v7208_v26, %v7212_v27  ;;  %v10335_v42 = vcombine.high %v7215_v34, %v7219_v35  ;;  %v10337_v43 = vcombine.high %v7216_v36, %v7220_v37  ;;  %v8115_v26 = vld [vmem:[#allocation3 + $0x2160] sm:$0xff]  ;;  %v8112_v27 = vld [vmem:[#allocation3 + $0x2148] sm:$0xff] }
 0x452   : > { %7978 = vmatpush1.bf16.msra.mxu0 %v10270_v49  ;;  %8021 = vmatpush1.bf16.msra.mxu1 %v10272_v51  ;;  %v7228_v49 = vld [vmem:[#allocation3 + $0x1ff8] sm:$0xff]  ;;  %v10334_v51 = vcombine.low %v7215_v34, %v7219_v35  ;;  %v8119_v35 = vld [vmem:[#allocation3 + $0x2180] sm:$0xff] }
 0x453   : > { %7979 = vmatprep.subr.bf16.mxu0 %v10279_v52  ;;  %8022 = vmatprep.subr.bf16.mxu1 %v10281_v53  ;;  %v10336_v52 = vcombine.low %v7216_v36, %v7220_v37  ;;  %v10343_v53 = vcombine.high %v7223_v46, %v7227_v47  ;;  %v10345_v54 = vcombine.high %v7224_v48, %v7228_v49  ;;  %v8123_v36 = vld [vmem:[#allocation3 + $0x21a0] sm:$0xff]  ;;  %v8120_v37 = vld [vmem:[#allocation3 + $0x2188] sm:$0xff] }
 0x456   : > { %7980 = vmatpush1.bf16.msra.mxu0 %v10278_v58  ;;  %8023 = vmatpush1.bf16.msra.mxu1 %v10280_v60  ;;  %v8076_v58 = vld [vmem:[#allocation3 + $0x2028] sm:$0xff]  ;;  %v10342_v60 = vcombine.low %v7223_v46, %v7227_v47  ;;  %v8127_v47 = vld [vmem:[#allocation3 + $0x21c0] sm:$0xff] }
 0x457   : > { %7981 = vmatprep.subr.bf16.mxu0 %v10287_v61  ;;  %8024 = vmatprep.subr.bf16.mxu1 %v10289_v39  ;;  %v10344_v61 = vcombine.low %v7224_v48, %v7228_v49  ;;  %v10351_v39 = vcombine.high %v8071_v56, %v8075_v57  ;;  %v10353_v62 = vcombine.high %v8072_v10, %v8076_v58  ;;  %v8131_v48 = vld [vmem:[#allocation3 + $0x21e0] sm:$0xff]  ;;  %v8128_v49 = vld [vmem:[#allocation3 + $0x21c8] sm:$0xff] }
 0x45a   : > { %7982 = vmatpush1.bf16.msra.mxu0 %v10286_v2  ;;  %8025 = vmatpush1.bf16.msra.mxu1 %v10288_v3  ;;  %v8084_v2 = vld [vmem:[#allocation3 + $0x2068] sm:$0xff]  ;;  %v10350_v3 = vcombine.low %v8071_v56, %v8075_v57  ;;  %v8135_v57 = vld [vmem:[#allocation3 + $0x2200] sm:$0xff] }
 0x45b   : > { %7983 = vmatprep.subr.bf16.mxu0 %v10295_v4  ;;  %8026 = vmatprep.subr.bf16.mxu1 %v10297_v5  ;;  %v10352_v4 = vcombine.low %v8072_v10, %v8076_v58  ;;  %v10359_v5 = vcombine.high %v8079_v0, %v8083_v1  ;;  %v10361_v28 = vcombine.high %v8080_v45, %v8084_v2  ;;  %v8139_v10 = vld [vmem:[#allocation3 + $0x2220] sm:$0xff]  ;;  %v8136_v58 = vld [vmem:[#allocation3 + $0x2208] sm:$0xff] }
 0x45e   : > { %7984 = vmatpush1.bf16.msra.mxu0 %v10294_v8  ;;  %8027 = vmatpush1.bf16.msra.mxu1 %v10296_v9  ;;  %v8088_v8 = vld [vmem:[#allocation3 + $0x2088] sm:$0xff] }
 0x45f   : > { %7985 = vmatprep.subr.bf16.mxu0 %v10303_v33  ;;  %8028 = vmatprep.subr.bf16.mxu1 %v10305_v11  ;;  %v8092_v9 = vld [vmem:[#allocation3 + $0x20a8] sm:$0xff]  ;;  %v10358_v33 = vcombine.low %v8079_v0, %v8083_v1  ;;  %v10360_v11 = vcombine.low %v8080_v45, %v8084_v2  ;;  %v8143_v1 = vld [vmem:[#allocation3 + $0x2240] sm:$0xff] }
 0x460   : > { %v10369_v59 = vcombine.high %v8088_v8, %v8092_v9  ;;  %v8147_v45 = vld [vmem:[#allocation3 + $0x2260] sm:$0xff]  ;;  %v8144_v2 = vld [vmem:[#allocation3 + $0x2248] sm:$0xff] }
 0x462   : > { %7986 = vmatpush1.bf16.msra.mxu0 %v10302_v38  ;;  %8029 = vmatpush1.bf16.msra.mxu1 %v10304_v15  ;;  %v8096_v38 = vld [vmem:[#allocation3 + $0x20c8] sm:$0xff] }
 0x463   : > { %7987 = vmatprep.subr.bf16.mxu0 %v10311_v16  ;;  %8030 = vmatprep.subr.bf16.mxu1 %v10313_v17  ;;  %v8100_v15 = vld [vmem:[#allocation3 + $0x20e8] sm:$0xff]  ;;  %v10366_v16 = vcombine.low %v8087_v6, %v8091_v7  ;;  %v10375_v17 = vcombine.high %v8095_v13, %v8099_v14  ;;  %v8151_v7 = vld [vmem:[#allocation3 + $0x2280] sm:$0xff] }
 0x464   : > { %v10377_v18 = vcombine.high %v8096_v38, %v8100_v15 }
 0x466   : > { %7988 = vmatpush1.bf16.msra.mxu0 %v10310_v21  ;;  %8031 = vmatpush1.bf16.msra.mxu1 %v10312_v22  ;;  %v8108_v21 = vld [vmem:[#allocation3 + $0x2128] sm:$0xff]  ;;  %v10374_v22 = vcombine.low %v8095_v13, %v8099_v14  ;;  %v8159_v14 = vld [vmem:[#allocation3 + $0x22c0] sm:$0xff] }
 0x467   : > { %7989 = vmatprep.subr.bf16.mxu0 %v10319_v50  ;;  %8032 = vmatprep.subr.bf16.mxu1 %v10321_v23  ;;  %v10376_v50 = vcombine.low %v8096_v38, %v8100_v15  ;;  %v10383_v23 = vcombine.high %v8103_v44, %v8107_v19  ;;  %v10385_v24 = vcombine.high %v8104_v20, %v8108_v21  ;;  %v8163_v38 = vld [vmem:[#allocation3 + $0x22e0] sm:$0xff]  ;;  %v8160_v15 = vld [vmem:[#allocation3 + $0x22c8] sm:$0xff] }
 0x46a   : > { %7990 = vmatpush1.bf16.msra.mxu0 %v10318_v29  ;;  %8033 = vmatpush1.bf16.msra.mxu1 %v10320_v30  ;;  %v8116_v29 = vld [vmem:[#allocation3 + $0x2168] sm:$0xff]  ;;  %v10382_v30 = vcombine.low %v8103_v44, %v8107_v19  ;;  %v8167_v19 = vld [vmem:[#allocation3 + $0x2300] sm:$0xff] }
 0x46b   : > { %7991 = vmatprep.subr.bf16.mxu0 %v10327_v31  ;;  %8034 = vmatprep.subr.bf16.mxu1 %v10329_v32  ;;  %v10384_v31 = vcombine.low %v8104_v20, %v8108_v21  ;;  %v10391_v32 = vcombine.high %v8111_v25, %v8115_v26  ;;  %v10393_v34 = vcombine.high %v8112_v27, %v8116_v29  ;;  %v8171_v20 = vld [vmem:[#allocation3 + $0x2320] sm:$0xff]  ;;  %v8168_v21 = vld [vmem:[#allocation3 + $0x2308] sm:$0xff] }
 0x46e   : > { %7992 = vmatpush1.bf16.msra.mxu0 %v10326_v40  ;;  %8035 = vmatpush1.bf16.msra.mxu1 %v10328_v41  ;;  %v8124_v40 = vld [vmem:[#allocation3 + $0x21a8] sm:$0xff]  ;;  %v10390_v41 = vcombine.low %v8111_v25, %v8115_v26  ;;  %v8175_v26 = vld [vmem:[#allocation3 + $0x2340] sm:$0xff] }
 0x46f   : > { %7993 = vmatprep.subr.bf16.mxu0 %v10335_v42  ;;  %8036 = vmatprep.subr.bf16.mxu1 %v10337_v43  ;;  %v10392_v42 = vcombine.low %v8112_v27, %v8116_v29  ;;  %v10399_v43 = vcombine.high %v8119_v35, %v8123_v36  ;;  %v10401_v46 = vcombine.high %v8120_v37, %v8124_v40  ;;  %v8179_v27 = vld [vmem:[#allocation3 + $0x2360] sm:$0xff]  ;;  %v8176_v29 = vld [vmem:[#allocation3 + $0x2348] sm:$0xff] }
 0x472   : > { %7994 = vmatpush1.bf16.msra.mxu0 %v10334_v51  ;;  %8037 = vmatpush1.bf16.msra.mxu1 %v10336_v52  ;;  %v8132_v51 = vld [vmem:[#allocation3 + $0x21e8] sm:$0xff]  ;;  %v10398_v52 = vcombine.low %v8119_v35, %v8123_v36  ;;  %v8183_v36 = vld [vmem:[#allocation3 + $0x2380] sm:$0xff] }
 0x473   : > { %7995 = vmatprep.subr.bf16.mxu0 %v10343_v53  ;;  %8038 = vmatprep.subr.bf16.mxu1 %v10345_v54  ;;  %v10400_v53 = vcombine.low %v8120_v37, %v8124_v40  ;;  %v10407_v54 = vcombine.high %v8127_v47, %v8131_v48  ;;  %v10409_v56 = vcombine.high %v8128_v49, %v8132_v51  ;;  %v8187_v37 = vld [vmem:[#allocation3 + $0x23a0] sm:$0xff]  ;;  %v8184_v40 = vld [vmem:[#allocation3 + $0x2388] sm:$0xff] }
 0x476   : > { %7996 = vmatpush1.bf16.msra.mxu0 %v10342_v60  ;;  %8039 = vmatpush1.bf16.msra.mxu1 %v10344_v61  ;;  %v8140_v60 = vld [vmem:[#allocation3 + $0x2228] sm:$0xff]  ;;  %v10406_v61 = vcombine.low %v8127_v47, %v8131_v48  ;;  %v8191_v48 = vld [vmem:[#allocation3 + $0x23c0] sm:$0xff] }
 0x477   : > { %8849 = vmatprep.subr.bf16.mxu0 %v10351_v39  ;;  %8892 = vmatprep.subr.bf16.mxu1 %v10353_v62  ;;  %v10408_v39 = vcombine.low %v8128_v49, %v8132_v51  ;;  %v10415_v62 = vcombine.high %v8135_v57, %v8139_v10  ;;  %v10417_v0 = vcombine.high %v8136_v58, %v8140_v60  ;;  %v8195_v49 = vld [vmem:[#allocation3 + $0x23e0] sm:$0xff]  ;;  %v8192_v51 = vld [vmem:[#allocation3 + $0x23c8] sm:$0xff] }
 0x479   : > { %7998 = vmatmul.mubr.bf16.vlgmr.msra.gmra.mrb[4].mxu0 %v11106_v63  ;;  %8041 = vmatmul.mubr.bf16.vlgmr.msra.gmra.mrb[4].mxu1 %v11106_v63  ;;  %v10368_v63 = vcombine.low %v8088_v8, %v8092_v9  ;;  %v8155_v8 = vld [vmem:[#allocation3 + $0x22a0] sm:$0xff]  ;;  %v8152_v9 = vld [vmem:[#allocation3 + $0x2288] sm:$0xff] }
 0x47a   : > { %8850 = vmatpush1.bf16.msra.mxu0 %v10350_v3  ;;  %8893 = vmatpush1.bf16.msra.mxu1 %v10352_v4  ;;  %v8148_v3 = vld [vmem:[#allocation3 + $0x2268] sm:$0xff]  ;;  %v10414_v4 = vcombine.low %v8135_v57, %v8139_v10  ;;  %v8073_v10 = vld [vmem:[#allocation3 + $0x2010] sm:$0xff] }
 0x47b   : > { %8851 = vmatprep.subr.bf16.mxu0 %v10359_v5  ;;  %8894 = vmatprep.subr.bf16.mxu1 %v10361_v28  ;;  %v10416_v5 = vcombine.low %v8136_v58, %v8140_v60  ;;  %v10423_v28 = vcombine.high %v8143_v1, %v8147_v45  ;;  %v10425_v6 = vcombine.high %v8144_v2, %v8148_v3  ;;  %v8077_v58 = vld [vmem:[#allocation3 + $0x2030] sm:$0xff]  ;;  %v8074_v60 = vld [vmem:[#allocation3 + $0x2018] sm:$0xff] }
 0x47c   : > { %8881 = vmatprep.mubr.bf16.mxu0 %v11113_v55  ;;  %8924 = vmatprep.mubr.bf16.mxu1 %v11113_v55 }
 0x47e   : > { %8852 = vmatpush1.bf16.msra.mxu0 %v10358_v33  ;;  %8895 = vmatpush1.bf16.msra.mxu1 %v10360_v11  ;;  %v8156_v33 = vld [vmem:[#allocation3 + $0x22a8] sm:$0xff]  ;;  %v10422_v11 = vcombine.low %v8143_v1, %v8147_v45  ;;  %v8081_v45 = vld [vmem:[#allocation3 + $0x2050] sm:$0xff] }
 0x47f   : > { %8853 = vmatprep.subr.bf16.mxu0 %v10367_v12  ;;  %8896 = vmatprep.subr.bf16.mxu1 %v10369_v59  ;;  %v10424_v12 = vcombine.low %v8144_v2, %v8148_v3  ;;  %v10431_v59 = vcombine.high %v8151_v7, %v8155_v8  ;;  %v10433_v13 = vcombine.high %v8152_v9, %v8156_v33  ;;  %v8085_v2 = vld [vmem:[#allocation3 + $0x2070] sm:$0xff] }
 0x480   : > { %v11120_v3 = vld [vmem:[%s10992_s5 + $0x80] ss:$8 sps:$4 sm:$0xff]  }
 0x482   : > { %8854 = vmatpush1.bf16.msra.mxu0 %v10366_v16  ;;  %8897 = vmatpush1.bf16.msra.mxu1 %v10368_v63  ;;  %v8164_v16 = vld [vmem:[#allocation3 + $0x22e8] sm:$0xff]  ;;  %v10430_v63 = vcombine.low %v8151_v7, %v8155_v8  ;;  %v10363_v7 = vcombine.high %v8081_v45, %v8085_v2 }
 0x483   : > { %8855 = vmatprep.subr.bf16.mxu0 %v10375_v17  ;;  %8898 = vmatprep.subr.bf16.mxu1 %v10377_v18  ;;  %v10432_v17 = vcombine.low %v8152_v9, %v8156_v33  ;;  %v10439_v18 = vcombine.high %v8159_v14, %v8163_v38  ;;  %v10441_v44 = vcombine.high %v8160_v15, %v8164_v16  ;;  %v8089_v9 = vld [vmem:[#allocation3 + $0x2090] sm:$0xff] }
 0x484   : > { %v8093_v33 = vld [vmem:[#allocation3 + $0x20b0] sm:$0xff] }
 0x486   : > { %8856 = vmatpush1.bf16.msra.mxu0 %v10374_v22  ;;  %8899 = vmatpush1.bf16.msra.mxu1 %v10376_v50  ;;  %v8172_v22 = vld [vmem:[#allocation3 + $0x2328] sm:$0xff]  ;;  %v10438_v50 = vcombine.low %v8159_v14, %v8163_v38  ;;  %v10371_v14 = vcombine.high %v8089_v9, %v8093_v33 }
 0x487   : > { %8857 = vmatprep.subr.bf16.mxu0 %v10383_v23  ;;  %8900 = vmatprep.subr.bf16.mxu1 %v10385_v24  ;;  %v10440_v23 = vcombine.low %v8160_v15, %v8164_v16  ;;  %v10447_v24 = vcombine.high %v8167_v19, %v8171_v20  ;;  %v10449_v25 = vcombine.high %v8168_v21, %v8172_v22  ;;  %v8097_v15 = vld [vmem:[#allocation3 + $0x20d0] sm:$0xff] }
 0x488   : > { %v8101_v16 = vld [vmem:[#allocation3 + $0x20f0] sm:$0xff] }
 0x48a   : > { %8858 = vmatpush1.bf16.msra.mxu0 %v10382_v30  ;;  %8901 = vmatpush1.bf16.msra.mxu1 %v10384_v31  ;;  %v8180_v30 = vld [vmem:[#allocation3 + $0x2368] sm:$0xff]  ;;  %v10446_v31 = vcombine.low %v8167_v19, %v8171_v20  ;;  %v10379_v19 = vcombine.high %v8097_v15, %v8101_v16 }
 0x48b   : > { %8859 = vmatprep.subr.bf16.mxu0 %v10391_v32  ;;  %8902 = vmatprep.subr.bf16.mxu1 %v10393_v34  ;;  %v10448_v32 = vcombine.low %v8168_v21, %v8172_v22  ;;  %v10455_v34 = vcombine.high %v8175_v26, %v8179_v27  ;;  %v10457_v35 = vcombine.high %v8176_v29, %v8180_v30  ;;  %v8105_v21 = vld [vmem:[#allocation3 + $0x2110] sm:$0xff] }
 0x48c   : > { %v8109_v22 = vld [vmem:[#allocation3 + $0x2130] sm:$0xff] }
 0x48e   : > { %8860 = vmatpush1.bf16.msra.mxu0 %v10390_v41  ;;  %8903 = vmatpush1.bf16.msra.mxu1 %v10392_v42  ;;  %v8188_v41 = vld [vmem:[#allocation3 + $0x23a8] sm:$0xff]  ;;  %v10454_v42 = vcombine.low %v8175_v26, %v8179_v27  ;;  %v10387_v26 = vcombine.high %v8105_v21, %v8109_v22  ;;  %v8113_v27 = vld [vmem:[#allocation3 + $0x2150] sm:$0xff] }
 0x48f   : > { %8861 = vmatprep.subr.bf16.mxu0 %v10399_v43  ;;  %8904 = vmatprep.subr.bf16.mxu1 %v10401_v46  ;;  %v10456_v43 = vcombine.low %v8176_v29, %v8180_v30  ;;  %v10463_v46 = vcombine.high %v8183_v36, %v8187_v37  ;;  %v10465_v47 = vcombine.high %v8184_v40, %v8188_v41  ;;  %v8117_v29 = vld [vmem:[#allocation3 + $0x2170] sm:$0xff]  ;;  %v8114_v30 = vld [vmem:[#allocation3 + $0x2158] sm:$0xff] }
 0x492   : > { %8862 = vmatpush1.bf16.msra.mxu0 %v10398_v52  ;;  %8905 = vmatpush1.bf16.msra.mxu1 %v10400_v53  ;;  %v8196_v52 = vld [vmem:[#allocation3 + $0x23e8] sm:$0xff]  ;;  %v10462_v53 = vcombine.low %v8183_v36, %v8187_v37  ;;  %v8121_v37 = vld [vmem:[#allocation3 + $0x2190] sm:$0xff] }
 0x493   : > { %8863 = vmatprep.subr.bf16.mxu0 %v10407_v54  ;;  %8906 = vmatprep.subr.bf16.mxu1 %v10409_v56  ;;  %v10464_v54 = vcombine.low %v8184_v40, %v8188_v41  ;;  %v10471_v56 = vcombine.high %v8191_v48, %v8195_v49  ;;  %v10473_v57 = vcombine.high %v8192_v51, %v8196_v52  ;;  %v8125_v40 = vld [vmem:[#allocation3 + $0x21b0] sm:$0xff]  ;;  %v8122_v41 = vld [vmem:[#allocation3 + $0x2198] sm:$0xff] }
 0x496   : > { %8864 = vmatpush1.bf16.msra.mxu0 %v10406_v61  ;;  %8907 = vmatpush1.bf16.msra.mxu1 %v10408_v39  ;;  %v8078_v61 = vld [vmem:[#allocation3 + $0x2038] sm:$0xff]  ;;  %v10470_v39 = vcombine.low %v8191_v48, %v8195_v49  ;;  %v8129_v49 = vld [vmem:[#allocation3 + $0x21d0] sm:$0xff] }
 0x497   : > { %8865 = vmatprep.subr.bf16.mxu0 %v10415_v62  ;;  %8908 = vmatprep.subr.bf16.mxu1 %v10417_v0  ;;  %v10472_v62 = vcombine.low %v8192_v51, %v8196_v52  ;;  %v10355_v0 = vcombine.high %v8073_v10, %v8077_v58  ;;  %v10357_v1 = vcombine.high %v8074_v60, %v8078_v61  ;;  %v8133_v51 = vld [vmem:[#allocation3 + $0x21f0] sm:$0xff]  ;;  %v8130_v52 = vld [vmem:[#allocation3 + $0x21d8] sm:$0xff] }
 0x49a   : > { %8866 = vmatpush1.bf16.msra.mxu0 %v10414_v4  ;;  %8909 = vmatpush1.bf16.msra.mxu1 %v10416_v5  ;;  %v8082_v4 = vld [vmem:[#allocation3 + $0x2058] sm:$0xff] }
 0x49b   : > { %8867 = vmatprep.subr.bf16.mxu0 %v10423_v28  ;;  %8910 = vmatprep.subr.bf16.mxu1 %v10425_v6  ;;  %v8086_v5 = vld [vmem:[#allocation3 + $0x2078] sm:$0xff]  ;;  %v10354_v28 = vcombine.low %v8073_v10, %v8077_v58  ;;  %v10356_v6 = vcombine.low %v8074_v60, %v8078_v61  ;;  %v8137_v58 = vld [vmem:[#allocation3 + $0x2210] sm:$0xff] }
 0x49c   : > { %v10365_v8 = vcombine.high %v8082_v4, %v8086_v5  ;;  %v8141_v60 = vld [vmem:[#allocation3 + $0x2230] sm:$0xff]  ;;  %v8138_v61 = vld [vmem:[#allocation3 + $0x2218] sm:$0xff] }
 0x49e   : > { %8868 = vmatpush1.bf16.msra.mxu0 %v10422_v11  ;;  %8911 = vmatpush1.bf16.msra.mxu1 %v10424_v12  ;;  %v8090_v11 = vld [vmem:[#allocation3 + $0x2098] sm:$0xff] }
 0x49f   : > { %8869 = vmatprep.subr.bf16.mxu0 %v10431_v59  ;;  %8912 = vmatprep.subr.bf16.mxu1 %v10433_v13  ;;  %v8094_v12 = vld [vmem:[#allocation3 + $0x20b8] sm:$0xff]  ;;  %v10362_v59 = vcombine.low %v8081_v45, %v8085_v2  ;;  %v10364_v13 = vcombine.low %v8082_v4, %v8086_v5  ;;  %v8145_v2 = vld [vmem:[#allocation3 + $0x2250] sm:$0xff] }
 0x4a0   : > { %v10373_v38 = vcombine.high %v8090_v11, %v8094_v12  ;;  %v8149_v4 = vld [vmem:[#allocation3 + $0x2270] sm:$0xff]  ;;  %v8146_v5 = vld [vmem:[#allocation3 + $0x2258] sm:$0xff] }
 0x4a2   : > { %8870 = vmatpush1.bf16.msra.mxu0 %v10430_v63  ;;  %8913 = vmatpush1.bf16.msra.mxu1 %v10432_v17  ;;  %v8098_v63 = vld [vmem:[#allocation3 + $0x20d8] sm:$0xff] }
 0x4a3   : > { %8871 = vmatprep.subr.bf16.mxu0 %v10439_v18  ;;  %8914 = vmatprep.subr.bf16.mxu1 %v10441_v44  ;;  %v8102_v17 = vld [vmem:[#allocation3 + $0x20f8] sm:$0xff]  ;;  %v10370_v18 = vcombine.low %v8089_v9, %v8093_v33  ;;  %v10372_v44 = vcombine.low %v8090_v11, %v8094_v12  ;;  %v8153_v33 = vld [vmem:[#allocation3 + $0x2290] sm:$0xff] }
 0x4a4   : > { %v10381_v20 = vcombine.high %v8098_v63, %v8102_v17  ;;  %v8157_v11 = vld [vmem:[#allocation3 + $0x22b0] sm:$0xff]  ;;  %v8154_v12 = vld [vmem:[#allocation3 + $0x2298] sm:$0xff] }
 0x4a6   : > { %8872 = vmatpush1.bf16.msra.mxu0 %v10438_v50  ;;  %8915 = vmatpush1.bf16.msra.mxu1 %v10440_v23  ;;  %v8106_v50 = vld [vmem:[#allocation3 + $0x2118] sm:$0xff] }
 0x4a7   : > { %8873 = vmatprep.subr.bf16.mxu0 %v10447_v24  ;;  %8916 = vmatprep.subr.bf16.mxu1 %v10449_v25  ;;  %v8110_v23 = vld [vmem:[#allocation3 + $0x2138] sm:$0xff]  ;;  %v10378_v24 = vcombine.low %v8097_v15, %v8101_v16  ;;  %v10380_v25 = vcombine.low %v8098_v63, %v8102_v17  ;;  %v8161_v16 = vld [vmem:[#allocation3 + $0x22d0] sm:$0xff] }
 0x4a8   : > { %v8165_v63 = vld [vmem:[#allocation3 + $0x22f0] sm:$0xff]  ;;  %v8162_v17 = vld [vmem:[#allocation3 + $0x22d8] sm:$0xff] }
 0x4aa   : > { %8874 = vmatpush1.bf16.msra.mxu0 %v10446_v31  ;;  %8917 = vmatpush1.bf16.msra.mxu1 %v10448_v32  ;;  %v8118_v31 = vld [vmem:[#allocation3 + $0x2178] sm:$0xff]  ;;  %v10386_v32 = vcombine.low %v8105_v21, %v8109_v22  ;;  %v8169_v22 = vld [vmem:[#allocation3 + $0x2310] sm:$0xff] }
 0x4ab   : > { %8875 = vmatprep.subr.bf16.mxu0 %v10455_v34  ;;  %8918 = vmatprep.subr.bf16.mxu1 %v10457_v35  ;;  %v10388_v34 = vcombine.low %v8106_v50, %v8110_v23  ;;  %v10395_v35 = vcombine.high %v8113_v27, %v8117_v29  ;;  %v10397_v36 = vcombine.high %v8114_v30, %v8118_v31 }
 0x4ae   : > { %8876 = vmatpush1.bf16.msra.mxu0 %v10454_v42  ;;  %8919 = vmatpush1.bf16.msra.mxu1 %v10456_v43  ;;  %v8126_v42 = vld [vmem:[#allocation3 + $0x21b8] sm:$0xff]  ;;  %v10394_v43 = vcombine.low %v8113_v27, %v8117_v29  ;;  %v8177_v29 = vld [vmem:[#allocation3 + $0x2350] sm:$0xff] }
 0x4af   : > { %8877 = vmatprep.subr.bf16.mxu0 %v10463_v46  ;;  %8920 = vmatprep.subr.bf16.mxu1 %v10465_v47  ;;  %v10396_v46 = vcombine.low %v8114_v30, %v8118_v31  ;;  %v10403_v47 = vcombine.high %v8121_v37, %v8125_v40  ;;  %v10405_v48 = vcombine.high %v8122_v41, %v8126_v42  ;;  %v8181_v30 = vld [vmem:[#allocation3 + $0x2370] sm:$0xff]  ;;  %v8178_v31 = vld [vmem:[#allocation3 + $0x2358] sm:$0xff] }
 0x4b2   : > { %8878 = vmatpush1.bf16.msra.mxu0 %v10462_v53  ;;  %8921 = vmatpush1.bf16.msra.mxu1 %v10464_v54  ;;  %v8134_v53 = vld [vmem:[#allocation3 + $0x21f8] sm:$0xff]  ;;  %v10402_v54 = vcombine.low %v8121_v37, %v8125_v40  ;;  %v8185_v40 = vld [vmem:[#allocation3 + $0x2390] sm:$0xff] }
 0x4b3   : > { %8879 = vmatprep.subr.bf16.mxu0 %v10471_v56  ;;  %8922 = vmatprep.subr.bf16.mxu1 %v10473_v57  ;;  %v10404_v56 = vcombine.low %v8122_v41, %v8126_v42  ;;  %v10411_v57 = vcombine.high %v8129_v49, %v8133_v51  ;;  %v10413_v10 = vcombine.high %v8130_v52, %v8134_v53  ;;  %v8189_v41 = vld [vmem:[#allocation3 + $0x23b0] sm:$0xff]  ;;  %v8186_v42 = vld [vmem:[#allocation3 + $0x2398] sm:$0xff] }
 0x4b6   : > { %8880 = vmatpush1.bf16.msra.mxu0 %v10470_v39  ;;  %8923 = vmatpush1.bf16.msra.mxu1 %v10472_v62  ;;  %v8142_v39 = vld [vmem:[#allocation3 + $0x2238] sm:$0xff]  ;;  %v10410_v62 = vcombine.low %v8129_v49, %v8133_v51  ;;  %v8193_v51 = vld [vmem:[#allocation3 + $0x23d0] sm:$0xff] }
 0x4b7   : > { %8935 = vmatprep.subr.bf16.mxu0 %v10355_v0  ;;  %8978 = vmatprep.subr.bf16.mxu1 %v10357_v1  ;;  %v10412_v0 = vcombine.low %v8130_v52, %v8134_v53  ;;  %v10419_v1 = vcombine.high %v8137_v58, %v8141_v60  ;;  %v10421_v45 = vcombine.high %v8138_v61, %v8142_v39  ;;  %v8197_v52 = vld [vmem:[#allocation3 + $0x23f0] sm:$0xff]  ;;  %v8194_v53 = vld [vmem:[#allocation3 + $0x23d8] sm:$0xff] }
 0x4b9   : > { %8882 = vmatmul.mubr.bf16.vlgmr.msra.gmra.mrb[0].mxu0 %v11120_v3  ;;  %8925 = vmatmul.mubr.bf16.vlgmr.msra.gmra.mrb[0].mxu1 %v11120_v3 }
 0x4ba   : > { %8936 = vmatpush1.bf16.msra.mxu0 %v10354_v28  ;;  %8979 = vmatpush1.bf16.msra.mxu1 %v10356_v6  ;;  %v8150_v28 = vld [vmem:[#allocation3 + $0x2278] sm:$0xff]  ;;  %v10418_v6 = vcombine.low %v8137_v58, %v8141_v60  ;;  %v10474_v60 = vcombine.low %v8193_v51, %v8197_v52 }
 0x4bb   : > { %8937 = vmatprep.subr.bf16.mxu0 %v10363_v7  ;;  %8980 = vmatprep.subr.bf16.mxu1 %v10365_v8  ;;  %v10420_v7 = vcombine.low %v8138_v61, %v8142_v39  ;;  %v10427_v8 = vcombine.high %v8145_v2, %v8149_v4  ;;  %v10429_v9 = vcombine.high %v8146_v5, %v8150_v28  ;;  %v9039_v39 = vlaneseq }
 0x4bc   : > { %8967 = vmatprep.mubr.bf16.mxu0 %v11113_v55  ;;  %9010 = vmatprep.mubr.bf16.mxu1 %v11113_v55  ;;  %v10389_v55 = vcombine.high %v8106_v50, %v8110_v23  ;;  %v8173_v50 = vld [vmem:[#allocation3 + $0x2330] sm:$0xff]  ;;  %v8170_v23 = vld [vmem:[#allocation3 + $0x2318] sm:$0xff] }
 0x4be   : > { %8938 = vmatpush1.bf16.msra.mxu0 %v10362_v59  ;;  %8981 = vmatpush1.bf16.msra.mxu1 %v10364_v13  ;;  %v8158_v59 = vld [vmem:[#allocation3 + $0x22b8] sm:$0xff]  ;;  %v10426_v13 = vcombine.low %v8145_v2, %v8149_v4 }
 0x4bf   : > { %8939 = vmatprep.subr.bf16.mxu0 %v10371_v14  ;;  %8982 = vmatprep.subr.bf16.mxu1 %v10373_v38  ;;  %v10428_v14 = vcombine.low %v8146_v5, %v8150_v28  ;;  %v10435_v38 = vcombine.high %v8153_v33, %v8157_v11  ;;  %v10437_v15 = vcombine.high %v8154_v12, %v8158_v59  ;;  %v11137_v5 = vld [vmem:[#allocation7] sm:$0xff] }
 0x4c2   : > { %8940 = vmatpush1.bf16.msra.mxu0 %v10370_v18  ;;  %8983 = vmatpush1.bf16.msra.mxu1 %v10372_v44  ;;  %v8166_v18 = vld [vmem:[#allocation3 + $0x22f8] sm:$0xff]  ;;  %v10434_v44 = vcombine.low %v8153_v33, %v8157_v11 }
 0x4c3   : > { %8941 = vmatprep.subr.bf16.mxu0 %v10379_v19  ;;  %8984 = vmatprep.subr.bf16.mxu1 %v10381_v20  ;;  %v10436_v19 = vcombine.low %v8154_v12, %v8158_v59  ;;  %v10443_v20 = vcombine.high %v8161_v16, %v8165_v63  ;;  %v10445_v21 = vcombine.high %v8162_v17, %v8166_v18 }
 0x4c6   : > { %8942 = vmatpush1.bf16.msra.mxu0 %v10378_v24  ;;  %8985 = vmatpush1.bf16.msra.mxu1 %v10380_v25  ;;  %v8174_v24 = vld [vmem:[#allocation3 + $0x2338] sm:$0xff]  ;;  %v10442_v25 = vcombine.low %v8161_v16, %v8165_v63 }
 0x4c7   : > { %8943 = vmatprep.subr.bf16.mxu0 %v10387_v26  ;;  %8986 = vmatprep.subr.bf16.mxu1 %v10389_v55  ;;  %v10444_v26 = vcombine.low %v8162_v17, %v8166_v18  ;;  %v10451_v55 = vcombine.high %v8169_v22, %v8173_v50  ;;  %v10453_v27 = vcombine.high %v8170_v23, %v8174_v24 }
 0x4ca   : > { %8944 = vmatpush1.bf16.msra.mxu0 %v10386_v32  ;;  %8987 = vmatpush1.bf16.msra.mxu1 %v10388_v34  ;;  %v8182_v32 = vld [vmem:[#allocation3 + $0x2378] sm:$0xff]  ;;  %v10450_v34 = vcombine.low %v8169_v22, %v8173_v50 }
 0x4cb   : > { %8945 = vmatprep.subr.bf16.mxu0 %v10395_v35  ;;  %8988 = vmatprep.subr.bf16.mxu1 %v10397_v36  ;;  %v10452_v35 = vcombine.low %v8170_v23, %v8174_v24  ;;  %v10459_v36 = vcombine.high %v8177_v29, %v8181_v30  ;;  %v10461_v37 = vcombine.high %v8178_v31, %v8182_v32 }
 0x4ce   : > { %8946 = vmatpush1.bf16.msra.mxu0 %v10394_v43  ;;  %8989 = vmatpush1.bf16.msra.mxu1 %v10396_v46  ;;  %v8190_v43 = vld [vmem:[#allocation3 + $0x23b8] sm:$0xff]  ;;  %v10458_v46 = vcombine.low %v8177_v29, %v8181_v30 }
 0x4cf   : > { %8947 = vmatprep.subr.bf16.mxu0 %v10403_v47  ;;  %8990 = vmatprep.subr.bf16.mxu1 %v10405_v48  ;;  %v10460_v47 = vcombine.low %v8178_v31, %v8182_v32  ;;  %v10467_v48 = vcombine.high %v8185_v40, %v8189_v41  ;;  %v10469_v49 = vcombine.high %v8186_v42, %v8190_v43 }
 0x4d2   : > { %8948 = vmatpush1.bf16.msra.mxu0 %v10402_v54  ;;  %8991 = vmatpush1.bf16.msra.mxu1 %v10404_v56  ;;  %v8198_v54 = vld [vmem:[#allocation3 + $0x23f8] sm:$0xff]  ;;  %v10466_v56 = vcombine.low %v8185_v40, %v8189_v41 }
 0x4d3   : > { %8949 = vmatprep.subr.bf16.mxu0 %v10411_v57  ;;  %8992 = vmatprep.subr.bf16.mxu1 %v10413_v10  ;;  %v10468_v57 = vcombine.low %v8186_v42, %v8190_v43  ;;  %v10475_v10 = vcombine.high %v8193_v51, %v8197_v52  ;;  %v10477_v58 = vcombine.high %v8194_v53, %v8198_v54 }
 0x4d4   : > { %v10476_v61 = vcombine.low %v8194_v53, %v8198_v54 }
 0x4d6   : > { %8950 = vmatpush1.bf16.msra.mxu0 %v10410_v62  ;;  %8993 = vmatpush1.bf16.msra.mxu1 %v10412_v0  ;;  %v11128_v62 = vshrl.u32 %v9039_v39, 7 }
 0x4d7   : > { %8951 = vmatprep.subr.bf16.mxu0 %v10419_v1  ;;  %8994 = vmatprep.subr.bf16.mxu1 %v10421_v45  ;;  %v11132_v1 = vld [vmem:[#allocation5] sm:$0xff] }
 0x4d8   : > { %v9041_v0 = vsub.s32 0, %v11128_v62  ;;  %v9049_v45 = vsub.s32 2, %v11128_v62  ;;  %v9045_v2 = vsub.s32 1, %v11128_v62  ;;  %v9053_v4 = vsub.s32 3, %v11128_v62 }
 0x4d9   : > { %v9057_v42 = vsub.s32 4, %v11128_v62  ;;  %v9065_v43 = vsub.s32 6, %v11128_v62 }
 0x4da   : > { %8952 = vmatpush1.bf16.msra.mxu0 %v10418_v6  ;;  %8995 = vmatpush1.bf16.msra.mxu1 %v10420_v7  ;;  %v9042_v28 = vrot.slane %v11132_v1, %v9041_v0  ;;  %v9046_v6 = vrot.slane %v11132_v1, %v9045_v2  ;;  %v9100_v7 = vrot.slane %v11137_v5, %v9041_v0 }
 0x4db   : > { %8953 = vmatprep.subr.bf16.mxu0 %v10427_v8  ;;  %8996 = vmatprep.subr.bf16.mxu1 %v10429_v9  ;;  %v9054_v8 = vrot.slane %v11132_v1, %v9053_v4  ;;  %v9108_v33 = vrot.slane %v11137_v5, %v9049_v45  ;;  %v9104_v11 = vrot.slane %v11137_v5, %v9045_v2 }
 0x4dc   : > { %v9116_v52 = vrot.slane %v11137_v5, %v9057_v42 }
 0x4de   : > { %8954 = vmatpush1.bf16.msra.mxu0 %v10426_v13  ;;  %8997 = vmatpush1.bf16.msra.mxu1 %v10428_v14  ;;  %v9112_v14 = vrot.slane %v11137_v5, %v9053_v4 }
 0x4df   : > { %8955 = vmatprep.subr.bf16.mxu0 %v10435_v38  ;;  %8998 = vmatprep.subr.bf16.mxu1 %v10437_v15 }
 0x4e2   : > { %8956 = vmatpush1.bf16.msra.mxu0 %v10434_v44  ;;  %8999 = vmatpush1.bf16.msra.mxu1 %v10436_v19 }
 0x4e3   : > { %8957 = vmatprep.subr.bf16.mxu0 %v10443_v20  ;;  %9000 = vmatprep.subr.bf16.mxu1 %v10445_v21 }
 0x4e6   : > { %8958 = vmatpush1.bf16.msra.mxu0 %v10442_v25  ;;  %9001 = vmatpush1.bf16.msra.mxu1 %v10444_v26 }
 0x4e7   : > { %8959 = vmatprep.subr.bf16.mxu0 %v10451_v55  ;;  %9002 = vmatprep.subr.bf16.mxu1 %v10453_v27 }
 0x4ea   : > { %8960 = vmatpush1.bf16.msra.mxu0 %v10450_v34  ;;  %9003 = vmatpush1.bf16.msra.mxu1 %v10452_v35 }
 0x4eb   : > { %8961 = vmatprep.subr.bf16.mxu0 %v10459_v36  ;;  %9004 = vmatprep.subr.bf16.mxu1 %v10461_v37 }
 0x4ee   : > { %8962 = vmatpush1.bf16.msra.mxu0 %v10458_v46  ;;  %9005 = vmatpush1.bf16.msra.mxu1 %v10460_v47  ;;  %v9061_v46 = vsub.s32 5, %v11128_v62  ;;  %v9069_v47 = vsub.s32 7, %v11128_v62 }
 0x4ef   : > { %8963 = vmatprep.subr.bf16.mxu0 %v10467_v48  ;;  %9006 = vmatprep.subr.bf16.mxu1 %v10469_v49  ;;  %v9058_v48 = vrot.slane %v11132_v1, %v9057_v42  ;;  %v9066_v49 = vrot.slane %v11132_v1, %v9065_v43 }
 0x4f0   : > { %v9062_v51 = vrot.slane %v11132_v1, %v9061_v46  ;;  %v9070_v53 = vrot.slane %v11132_v1, %v9069_v47 }
 0x4f2   : > { %8964 = vmatpush1.bf16.msra.mxu0 %v10466_v56  ;;  %9007 = vmatpush1.bf16.msra.mxu1 %v10468_v57  ;;  %v9124_v56 = vrot.slane %v11137_v5, %v9065_v43  ;;  %v9120_v57 = vrot.slane %v11137_v5, %v9061_v46 }
 0x4f3   : > { %8965 = vmatprep.subr.bf16.mxu0 %v10475_v10  ;;  %9008 = vmatprep.subr.bf16.mxu1 %v10477_v58 }
 0x4f6   : > { %8966 = vmatpush1.bf16.msra.mxu0 %v10474_v60  ;;  %9009 = vmatpush1.bf16.msra.mxu1 %v10476_v61  ;;  %v9128_v61 = vrot.slane %v11137_v5, %v9069_v47 }
 0x4f9   : > { %8968 = vmatmul.mubr.bf16.vlgmr.msra.gmra.mrb[4].mxu0 %v11120_v3  ;;  %9011 = vmatmul.mubr.bf16.vlgmr.msra.gmra.mrb[4].mxu1 %v11120_v3  ;;  %v9050_v3 = vrot.slane %v11132_v1, %v9049_v45 }
 0x58c   : > { %v8883_v9 = vpop.f32.mrb[0].mxu0  ;;  %v8926_v59 = vpop.f32.mrb[0].mxu1 }
 0x58d   : > { %v9079_v12 = vmul.f32 %v9042_v28, %v8883_v9  ;;  %v8885_v13 = vpop.f32.mrb[1].mxu0  ;;  %v9081_v38 = vmul.f32 %v9050_v3, %v8926_v59  ;;  %v8928_v16 = vpop.f32.mrb[1].mxu1 }
 0x58e   : > { %v9080_v15 = vmul.f32 %v9046_v6, %v8885_v13  ;;  %v8887_v63 = vpop.f32.mrb[2].mxu0  ;;  %v9082_v18 = vmul.f32 %v9054_v8, %v8928_v16  ;;  %v8930_v19 = vpop.f32.mrb[2].mxu1 }
 0x58f   : > { %v9137_v17 = vadd.f32 %v9100_v7, %v9079_v12  ;;  %v9087_v44 = vmul.f32 %v9042_v28, %v8887_v63  ;;  %v8889_v20 = vpop.f32.mrb[3].mxu0  ;;  %v9139_v21 = vadd.f32 %v9108_v33, %v9081_v38  ;;  %v9089_v50 = vmul.f32 %v9050_v3, %v8930_v19  ;;  %v8932_v24 = vpop.f32.mrb[3].mxu1 }
 0x590   : > { %v9138_v22 = vadd.f32 %v9104_v11, %v9080_v15  ;;  %v9088_v23 = vmul.f32 %v9046_v6, %v8889_v20  ;;  %v9140_v26 = vadd.f32 %v9112_v14, %v9082_v18  ;;  %v9090_v27 = vmul.f32 %v9054_v8, %v8932_v24 }
 0x591   : > { %v9153_v25 = vmax.f32 %v9137_v17, 0.0  ;;  %v9145_v55 = vadd.f32 %v9100_v7, %v9087_v44  ;;  %v9155_v29 = vmax.f32 %v9139_v21, 0.0  ;;  %v9147_v31 = vadd.f32 %v9108_v33, %v9089_v50 }
 0x592   : > { %v9154_v30 = vmax.f32 %v9138_v22, 0.0  ;;  %v9146_v32 = vadd.f32 %v9104_v11, %v9088_v23  ;;  %v9156_v34 = vmax.f32 %v9140_v26, 0.0  ;;  %v9148_v36 = vadd.f32 %v9112_v14, %v9090_v27 }
 0x593   : > { %9169 = vst [vmem:[%s11151_s21] sm:$0xff] %v9153_v25  ;;  %v9161_v35 = vmax.f32 %v9145_v55, 0.0  ;;  %9171 = vst [vmem:[%s11151_s21 + $0x10] sm:$0xff] %v9155_v29  ;;  %v9163_v37 = vmax.f32 %v9147_v31, 0.0 }
 0x594   : > { %9170 = vst [vmem:[%s11151_s21 + $0x8] sm:$0xff] %v9154_v30  ;;  %v9162_v40 = vmax.f32 %v9146_v32, 0.0  ;;  %9172 = vst [vmem:[%s11151_s21 + $0x18] sm:$0xff] %v9156_v34  ;;  %v9164_v41 = vmax.f32 %v9148_v36, 0.0 }
 0x595   : > { %9177 = vst [vmem:[%s11151_s21 + $0x40] sm:$0xff] %v9161_v35  ;;  %9179 = vst [vmem:[%s11151_s21 + $0x50] sm:$0xff] %v9163_v37 }
 0x596   : > { %9178 = vst [vmem:[%s11151_s21 + $0x48] sm:$0xff] %v9162_v40  ;;  %9180 = vst [vmem:[%s11151_s21 + $0x58] sm:$0xff] %v9164_v41 }
 0x5cc   : > { %v8969_v54 = vpop.f32.mrb[4].mxu0  ;;  %v9012_v58 = vpop.f32.mrb[4].mxu1 }
 0x5cd   : > { %v9083_v10 = vmul.f32 %v9058_v48, %v8969_v54  ;;  %v8971_v60 = vpop.f32.mrb[5].mxu0  ;;  %v9085_v39 = vmul.f32 %v9066_v49, %v9012_v58  ;;  %v9014_v0 = vpop.f32.mrb[5].mxu1 }
 0x5ce   : > { %v9084_v62 = vmul.f32 %v9062_v51, %v8971_v60  ;;  %v8973_v45 = vpop.f32.mrb[6].mxu0  ;;  %v9086_v4 = vmul.f32 %v9070_v53, %v9014_v0  ;;  %v9016_v3 = vpop.f32.mrb[6].mxu1 }
 0x5cf   : > { %v9141_v2 = vadd.f32 %v9116_v52, %v9083_v10  ;;  %v9091_v28 = vmul.f32 %v9058_v48, %v8973_v45  ;;  %v8975_v1 = vpop.f32.mrb[7].mxu0  ;;  %v9143_v6 = vadd.f32 %v9124_v56, %v9085_v39  ;;  %v9093_v8 = vmul.f32 %v9066_v49, %v9016_v3  ;;  %v9018_v33 = vpop.f32.mrb[7].mxu1 }
 0x5d0   : > { %v9142_v7 = vadd.f32 %v9120_v57, %v9084_v62  ;;  %v9092_v9 = vmul.f32 %v9062_v51, %v8975_v1  ;;  %v9144_v5 = vadd.f32 %v9128_v61, %v9086_v4  ;;  %v9094_v59 = vmul.f32 %v9070_v53, %v9018_v33 }
 0x5d1   : > { %v9157_v11 = vmax.f32 %v9141_v2, 0.0  ;;  %v9149_v12 = vadd.f32 %v9116_v52, %v9091_v28  ;;  %v9159_v13 = vmax.f32 %v9143_v6, 0.0  ;;  %v9151_v38 = vadd.f32 %v9124_v56, %v9093_v8 }
 0x5d2   : > { %v9158_v14 = vmax.f32 %v9142_v7, 0.0  ;;  %v9150_v15 = vadd.f32 %v9120_v57, %v9092_v9  ;;  %v9160_v16 = vmax.f32 %v9144_v5, 0.0  ;;  %v9152_v17 = vadd.f32 %v9128_v61, %v9094_v59 }
 0x5d3   : > { %9173 = vst [vmem:[%s11151_s21 + $0x20] sm:$0xff] %v9157_v11  ;;  %v9165_v63 = vmax.f32 %v9149_v12, 0.0  ;;  %9175 = vst [vmem:[%s11151_s21 + $0x30] sm:$0xff] %v9159_v13  ;;  %v9167_v18 = vmax.f32 %v9151_v38, 0.0 }
 0x5d4   : > { %9174 = vst [vmem:[%s11151_s21 + $0x28] sm:$0xff] %v9158_v14  ;;  %v9166_v44 = vmax.f32 %v9150_v15, 0.0  ;;  %9176 = vst [vmem:[%s11151_s21 + $0x38] sm:$0xff] %v9160_v16  ;;  %v9168_v19 = vmax.f32 %v9152_v17, 0.0 }
 0x5d5   : > { %9181 = vst [vmem:[%s11151_s21 + $0x60] sm:$0xff] %v9165_v63  ;;  %9183 = vst [vmem:[%s11151_s21 + $0x70] sm:$0xff] %v9167_v18 }
 0x5d6   : > { %9182 = vst [vmem:[%s11151_s21 + $0x68] sm:$0xff] %v9166_v44  ;;  %9184 = vst [vmem:[%s11151_s21 + $0x78] sm:$0xff] %v9168_v19 }
 0x5d7 PF: > { %p13_p0 = scmp.ge.s32.totalorder %s10861_s19, 4   ;;  %s11208_s15 = smov %s10806_s16 }
 0x5d8   : > { %s11209_s16 = smov %s10871_s22  ;;  %s11210_s17 = smov %s10861_s19 }
 0x5d9   :  { %15 = sbr.rel (!%p13_p0) target bundleno = 3 (0x3), region = 138 }
 0x5e0   :  { %9206 = vsyncpa [#allocation4], 1 }
 0x5e1   :  { %9208 = vsyncpa [#allocation4 + $0x1], 1 }
 0x5e2   :  { %9209 = vsyncpa [#allocation6], 1 }

// kernel: network_forward.14
= control target key start
LH: loop header
LB: loop body
LE: loop exit
PB: predicated region body
PF: predicated region fallthrough
CT: control target
= control target key end

     0   :  { %s2518_s15 = smov 0   ;;  %s2520_s16 = smov 0   ;;  %s3171_s0 = inlined_call_operand.vmem [shape: bf16[3,2,8,256], index: 0, kind: input, shape index: {}]   ;;  %s3172_s1 = inlined_call_operand.vmem [shape: bf16[3,256,512], index: 1, kind: input, shape index: {}]   ;;  %s3173_s2 = inlined_call_operand.vmem [shape: f32[1,512], index: 2, kind: input, shape index: {}]   ;;  %s3174_s3 = inlined_call_operand.vmem [shape: f32[1,512], index: 3, kind: input, shape index: {}]   ;;  %s3175_s4 = inlined_call_operand.vmem [shape: f32[2,8,512], index: 4, kind: output, shape index: {}]  }
   0x1   :  { %s2522_s17 = smov 0  }
   0x2 LB: > { %s1792_s18 = sadd.s32 4294967295, %s2491_s17   ;;  %s2535_s19 = sadd.s32 1, %s2491_s17   ;;  %s2491_s17 = sphi %s2522_s17, %s3178_s17   ;;  %s2487_s16 = sphi %s2520_s16, %s3177_s16   ;;  %s2483_s15 = sphi %s2518_s15, %s3176_s15  }
   0x3   : > { %s18_s20 = ssub.s32 %s2491_s17, %s2535_s19  ;;  %s21_s21 = sadd.s32 1, %s2487_s16 }
   0x4   : > { %p19_p0 = scmp.eq.s32.totalorder %s18_s20, 0  ;;  %p28_p1 = scmp.ne.s32.totalorder %s2487_s16, %s2483_s15 }
   0x5   : > { %p29_p2 = scmp.eq.s32.totalorder %s2491_s17, 0  ;;  %p1795_p4 = scmp.ge.s32.totalorder %s2491_s17, 2 }
   0x6   : > { %s2544_s22 = scalar_select %p19_p0, %s2487_s16, %s21_s21  }
   0x7   : > { %p30_p3 = por %p29_p2, %p28_p1  ;;  %152 = sbr.rel (%p1795_p4) target bundleno = 21 (0x15), region = 28 }
   0xe   : > { %155 = sbr.rel (!%p30_p3) target bundleno = 21 (0x15), region = 32  ;;  %s157_s23 = sand.u32 (%p30_p3), 1, %s2487_s16  }
   0xf   : > { %s2131_s24 = sshll.u32 (%p30_p3), %s2491_s17, 3  ;;  %s2149_s25 = smul.u32 (%p30_p3), 24, %s157_s23 }
  0x10   : > { %s162_s28 = scalar_lea.vmem (%p30_p3), %s3171_s0, %s2131_s24 }
  0x11   : > { %v194_v0 = vld [vmem:[%s162_s28] sm:$0xff] (%p30_p3)  ;;  %v196_v1 = vld [vmem:[%s162_s28 + $0x10] sm:$0xff] (%p30_p3)  ;;  %s159_s29 = scalar_lea.vmem (%p30_p3), [#allocation2], %s2149_s25 }
  0x12   : > { %v198_v2 = vld [vmem:[%s162_s28 + $0x20] sm:$0xff] (%p30_p3)  ;;  %195 = vst [vmem:[%s159_s29] sm:$0xff] (%p30_p3), %v194_v0  ;;  %197 = vst [vmem:[%s159_s29 + $0x8] sm:$0xff] (%p30_p3), %v196_v1 }
  0x13   : > { %199 = vst [vmem:[%s159_s29 + $0x10] sm:$0xff] (%p30_p3), %v198_v2 }
  0x15 PF: > { %p1798_p5 = scmp.ge.s32.totalorder %s2491_s17, 1  ;;  %p204_p6 = scmp.lt.s32.totalorder %s2491_s17, 3 }
  0x17   : > { %p205_p7 = pnand %p1798_p5, %p204_p6 }
  0x18   : > { %v2175_v3 = vld [vmem:[%s3172_s1 + $0x204] ss:$16 sps:$4 sm:$0xff] (!%p205_p7)   ;;  %v2177_v4 = vld [vmem:[%s3172_s1 + $0x20c] ss:$16 sps:$4 sm:$0xff] (!%p205_p7)   ;;  %v2179_v5 = vld [vmem:[%s3172_s1 + $0x200] ss:$16 sps:$4 sm:$0xff] (!%p205_p7)  }
  0x19   : > { %208 = sbr.rel (%p205_p7) target bundleno = 437 (0x1b5), region = 70  ;;  %700 = vmatprep.subr.bf16.mxu0 (!%p205_p7), %v2175_v3  ;;  %v2180_v6 = vld [vmem:[%s3172_s1 + $0x208] ss:$16 sps:$4 sm:$0xff] (!%p205_p7)   ;;  %741 = vmatprep.subr.bf16.mxu1 (!%p205_p7), %v2177_v4  ;;  %v2181_v7 = vld [vmem:[%s3172_s1 + $0x224] ss:$16 sps:$4 sm:$0xff] (!%p205_p7)   ;;  %s211_s24 = sand.u32 (!%p205_p7), 1, %s2483_s15  }
  0x1a   : > { %701 = vmatpush1.bf16.msra.mxu0 (!%p205_p7), %v2179_v5  ;;  %742 = vmatpush1.bf16.msra.mxu1 (!%p205_p7), %v2180_v6  ;;  %v2183_v8 = vld [vmem:[%s3172_s1 + $0x22c] ss:$16 sps:$4 sm:$0xff] (!%p205_p7)   ;;  %v2185_v9 = vld [vmem:[%s3172_s1 + $0x220] ss:$16 sps:$4 sm:$0xff] (!%p205_p7)   ;;  %v2186_v10 = vld [vmem:[%s3172_s1 + $0x228] ss:$16 sps:$4 sm:$0xff] (!%p205_p7)  }
  0x1b   : > { %702 = vmatprep.subr.bf16.mxu0 (!%p205_p7), %v2181_v7  ;;  %743 = vmatprep.subr.bf16.mxu1 (!%p205_p7), %v2183_v8  ;;  %v2187_v11 = vld [vmem:[%s3172_s1 + $0x244] ss:$16 sps:$4 sm:$0xff] (!%p205_p7)   ;;  %v2189_v12 = vld [vmem:[%s3172_s1 + $0x24c] ss:$16 sps:$4 sm:$0xff] (!%p205_p7)   ;;  %v2191_v13 = vld [vmem:[%s3172_s1 + $0x240] ss:$16 sps:$4 sm:$0xff] (!%p205_p7)  }
  0x1c   : > { %v2192_v14 = vld [vmem:[%s3172_s1 + $0x248] ss:$16 sps:$4 sm:$0xff] (!%p205_p7)   ;;  %v2193_v15 = vld [vmem:[%s3172_s1 + $0x264] ss:$16 sps:$4 sm:$0xff] (!%p205_p7)   ;;  %v2195_v16 = vld [vmem:[%s3172_s1 + $0x26c] ss:$16 sps:$4 sm:$0xff] (!%p205_p7)  }
  0x1d   : > { %v2197_v17 = vld [vmem:[%s3172_s1 + $0x260] ss:$16 sps:$4 sm:$0xff] (!%p205_p7)   ;;  %v2198_v18 = vld [vmem:[%s3172_s1 + $0x268] ss:$16 sps:$4 sm:$0xff] (!%p205_p7)   ;;  %v2199_v19 = vld [vmem:[%s3172_s1 + $0x284] ss:$16 sps:$4 sm:$0xff] (!%p205_p7)  }
  0x1e   : > { %703 = vmatpush1.bf16.msra.mxu0 (!%p205_p7), %v2185_v9  ;;  %744 = vmatpush1.bf16.msra.mxu1 (!%p205_p7), %v2186_v10  ;;  %v2201_v20 = vld [vmem:[%s3172_s1 + $0x28c] ss:$16 sps:$4 sm:$0xff] (!%p205_p7)   ;;  %v2203_v21 = vld [vmem:[%s3172_s1 + $0x280] ss:$16 sps:$4 sm:$0xff] (!%p205_p7)   ;;  %v2204_v22 = vld [vmem:[%s3172_s1 + $0x288] ss:$16 sps:$4 sm:$0xff] (!%p205_p7)  }
  0x1f   : > { %704 = vmatprep.subr.bf16.mxu0 (!%p205_p7), %v2187_v11  ;;  %745 = vmatprep.subr.bf16.mxu1 (!%p205_p7), %v2189_v12  ;;  %v2205_v23 = vld [vmem:[%s3172_s1 + $0x2a4] ss:$16 sps:$4 sm:$0xff] (!%p205_p7)   ;;  %v2207_v24 = vld [vmem:[%s3172_s1 + $0x2ac] ss:$16 sps:$4 sm:$0xff] (!%p205_p7)   ;;  %v2209_v25 = vld [vmem:[%s3172_s1 + $0x2a0] ss:$16 sps:$4 sm:$0xff] (!%p205_p7)  }
  0x20   : > { %v2210_v26 = vld [vmem:[%s3172_s1 + $0x2a8] ss:$16 sps:$4 sm:$0xff]   ;;  %v2211_v27 = vld [vmem:[%s3172_s1 + $0x2c4] ss:$16 sps:$4 sm:$0xff]   ;;  %v2213_v28 = vld [vmem:[%s3172_s1 + $0x2cc] ss:$16 sps:$4 sm:$0xff]  }
  0x21   : > { %v2215_v29 = vld [vmem:[%s3172_s1 + $0x2c0] ss:$16 sps:$4 sm:$0xff]   ;;  %v2216_v30 = vld [vmem:[%s3172_s1 + $0x2c8] ss:$16 sps:$4 sm:$0xff]   ;;  %v2217_v31 = vld [vmem:[%s3172_s1 + $0x2e4] ss:$16 sps:$4 sm:$0xff]  }
  0x22   : > { %705 = vmatpush1.bf16.msra.mxu0 %v2191_v13  ;;  %746 = vmatpush1.bf16.msra.mxu1 %v2192_v14  ;;  %v2219_v32 = vld [vmem:[%s3172_s1 + $0x2ec] ss:$16 sps:$4 sm:$0xff]   ;;  %v2221_v33 = vld [vmem:[%s3172_s1 + $0x2e0] ss:$16 sps:$4 sm:$0xff]   ;;  %v2222_v34 = vld [vmem:[%s3172_s1 + $0x2e8] ss:$16 sps:$4 sm:$0xff]  }
  0x23   : > { %706 = vmatprep.subr.bf16.mxu0 %v2193_v15  ;;  %747 = vmatprep.subr.bf16.mxu1 %v2195_v16  ;;  %v2223_v35 = vld [vmem:[%s3172_s1 + $0x304] ss:$16 sps:$4 sm:$0xff]   ;;  %v2225_v36 = vld [vmem:[%s3172_s1 + $0x30c] ss:$16 sps:$4 sm:$0xff]   ;;  %v2227_v37 = vld [vmem:[%s3172_s1 + $0x300] ss:$16 sps:$4 sm:$0xff]  }
  0x24   : > { %v2228_v38 = vld [vmem:[%s3172_s1 + $0x308] ss:$16 sps:$4 sm:$0xff]   ;;  %v2229_v39 = vld [vmem:[%s3172_s1 + $0x324] ss:$16 sps:$4 sm:$0xff]   ;;  %v2231_v40 = vld [vmem:[%s3172_s1 + $0x32c] ss:$16 sps:$4 sm:$0xff]  }
  0x25   : > { %v2233_v41 = vld [vmem:[%s3172_s1 + $0x320] ss:$16 sps:$4 sm:$0xff]   ;;  %s2150_s29 = smul.u32 24, %s211_s24  ;;  %v2234_v42 = vld [vmem:[%s3172_s1 + $0x328] ss:$16 sps:$4 sm:$0xff]   ;;  %p236_p8 = scmp.lt.s32.totalorder %s1792_s18, 1 }
  0x26   : > { %707 = vmatpush1.bf16.msra.mxu0 %v2197_v17  ;;  %748 = vmatpush1.bf16.msra.mxu1 %v2198_v18  ;;  %v2235_v43 = vld [vmem:[%s3172_s1 + $0x344] ss:$16 sps:$4 sm:$0xff]   ;;  %v2237_v44 = vld [vmem:[%s3172_s1 + $0x34c] ss:$16 sps:$4 sm:$0xff]   ;;  %v2239_v45 = vld [vmem:[%s3172_s1 + $0x340] ss:$16 sps:$4 sm:$0xff]  }
  0x27   : > { %708 = vmatprep.subr.bf16.mxu0 %v2199_v19  ;;  %749 = vmatprep.subr.bf16.mxu1 %v2201_v20  ;;  %v2240_v46 = vld [vmem:[%s3172_s1 + $0x348] ss:$16 sps:$4 sm:$0xff]   ;;  %v2241_v47 = vld [vmem:[%s3172_s1 + $0x364] ss:$16 sps:$4 sm:$0xff]   ;;  %v2243_v48 = vld [vmem:[%s3172_s1 + $0x36c] ss:$16 sps:$4 sm:$0xff]  }
  0x28   : > { %s2693_s23 = scalar_lea.vmem [#allocation2], %s2150_s29  ;;  %v2245_v50 = vld [vmem:[%s3172_s1 + $0x360] ss:$16 sps:$4 sm:$0xff]   ;;  %v2246_v52 = vld [vmem:[%s3172_s1 + $0x368] ss:$16 sps:$4 sm:$0xff]   ;;  %s3180_s18 = smov (!%p236_p8, %s1792_s18), 1 }
  0x29   : > { %v1801_v49 = vld [vmem:[%s2693_s23 + $0x8] sm:$0xff]  ;;  %s2132_s15 = sshll.u32 %s3180_s18, 5 }
  0x2a   : > { %709 = vmatpush1.bf16.msra.mxu0 %v2203_v21  ;;  %750 = vmatpush1.bf16.msra.mxu1 %v2204_v22  ;;  %v1867_v51 = vcombine.high %v1801_v49, %v1801_v49  ;;  %v2247_v53 = vld [vmem:[%s3172_s1 + $0x384] ss:$16 sps:$4 sm:$0xff]   ;;  %v2249_v54 = vld [vmem:[%s3172_s1 + $0x38c] ss:$16 sps:$4 sm:$0xff]   ;;  %v2251_v55 = vld [vmem:[%s3172_s1 + $0x380] ss:$16 sps:$4 sm:$0xff]   ;;  %v1866_v7 = vcombine.low %v1801_v49, %v1801_v49  ;;  %s240_s9 = scalar_lea.vmem %s3175_s4, %s2132_s15 }
  0x2b   : > { %710 = vmatprep.subr.bf16.mxu0 %v2205_v23  ;;  %751 = vmatprep.subr.bf16.mxu1 %v2207_v24  ;;  %v2252_v56 = vld [vmem:[%s3172_s1 + $0x388] ss:$16 sps:$4 sm:$0xff]   ;;  %v2253_v57 = vld [vmem:[%s3172_s1 + $0x3a4] ss:$16 sps:$4 sm:$0xff]   ;;  %v2255_v58 = vld [vmem:[%s3172_s1 + $0x3ac] ss:$16 sps:$4 sm:$0xff]  }
  0x2c   : > { %732 = vmatprep.mubr.bf16.mxu0 %v1867_v51  ;;  %773 = vmatprep.mubr.bf16.mxu1 %v1867_v51  ;;  %v2257_v59 = vld [vmem:[%s3172_s1 + $0x3a0] ss:$16 sps:$4 sm:$0xff]   ;;  %v2258_v60 = vld [vmem:[%s3172_s1 + $0x3a8] ss:$16 sps:$4 sm:$0xff]   ;;  %v2259_v61 = vld [vmem:[%s3172_s1 + $0x3c4] ss:$16 sps:$4 sm:$0xff]  }
  0x2d   : > { %v2261_v62 = vld [vmem:[%s3172_s1 + $0x3cc] ss:$16 sps:$4 sm:$0xff]   ;;  %v2263_v63 = vld [vmem:[%s3172_s1 + $0x3c0] ss:$16 sps:$4 sm:$0xff]   ;;  %v2264_v0 = vld [vmem:[%s3172_s1 + $0x3c8] ss:$16 sps:$4 sm:$0xff]  }
  0x2e   : > { %711 = vmatpush1.bf16.msra.mxu0 %v2209_v25  ;;  %752 = vmatpush1.bf16.msra.mxu1 %v2210_v26  ;;  %v2265_v1 = vld [vmem:[%s3172_s1 + $0x3e4] ss:$16 sps:$4 sm:$0xff]   ;;  %v2267_v2 = vld [vmem:[%s3172_s1 + $0x3ec] ss:$16 sps:$4 sm:$0xff]   ;;  %v2269_v3 = vld [vmem:[%s3172_s1 + $0x3e0] ss:$16 sps:$4 sm:$0xff]  }
  0x2f   : > { %712 = vmatprep.subr.bf16.mxu0 %v2211_v27  ;;  %753 = vmatprep.subr.bf16.mxu1 %v2213_v28  ;;  %v2270_v4 = vld [vmem:[%s3172_s1 + $0x3e8] ss:$16 sps:$4 sm:$0xff]   ;;  %v2275_v5 = vld [vmem:[%s3172_s1 + $0x4] ss:$16 sps:$4 sm:$0xff]   ;;  %v2278_v6 = vld [vmem:[%s3172_s1 + $0xc] ss:$16 sps:$4 sm:$0xff]  }
  0x30   : > { %v2273_v8 = vld [vmem:[%s3172_s1] ss:$16 sps:$4 sm:$0xff]   ;;  %v2276_v9 = vld [vmem:[%s3172_s1 + $0x8] ss:$16 sps:$4 sm:$0xff]   ;;  %v2281_v10 = vld [vmem:[%s3172_s1 + $0x24] ss:$16 sps:$4 sm:$0xff]  }
  0x31   : > { %v2284_v11 = vld [vmem:[%s3172_s1 + $0x2c] ss:$16 sps:$4 sm:$0xff]   ;;  %v2279_v12 = vld [vmem:[%s3172_s1 + $0x20] ss:$16 sps:$4 sm:$0xff]   ;;  %v2282_v13 = vld [vmem:[%s3172_s1 + $0x28] ss:$16 sps:$4 sm:$0xff]  }
  0x32   : > { %713 = vmatpush1.bf16.msra.mxu0 %v2215_v29  ;;  %754 = vmatpush1.bf16.msra.mxu1 %v2216_v30  ;;  %v2287_v14 = vld [vmem:[%s3172_s1 + $0x44] ss:$16 sps:$4 sm:$0xff]   ;;  %v2290_v15 = vld [vmem:[%s3172_s1 + $0x4c] ss:$16 sps:$4 sm:$0xff]   ;;  %v2285_v16 = vld [vmem:[%s3172_s1 + $0x40] ss:$16 sps:$4 sm:$0xff]  }
  0x33   : > { %714 = vmatprep.subr.bf16.mxu0 %v2217_v31  ;;  %755 = vmatprep.subr.bf16.mxu1 %v2219_v32  ;;  %v2288_v17 = vld [vmem:[%s3172_s1 + $0x48] ss:$16 sps:$4 sm:$0xff]   ;;  %v2293_v18 = vld [vmem:[%s3172_s1 + $0x64] ss:$16 sps:$4 sm:$0xff]   ;;  %v2296_v19 = vld [vmem:[%s3172_s1 + $0x6c] ss:$16 sps:$4 sm:$0xff]  }
  0x34   : > { %v2291_v20 = vld [vmem:[%s3172_s1 + $0x60] ss:$16 sps:$4 sm:$0xff]   ;;  %v2294_v21 = vld [vmem:[%s3172_s1 + $0x68] ss:$16 sps:$4 sm:$0xff]   ;;  %v2299_v22 = vld [vmem:[%s3172_s1 + $0x84] ss:$16 sps:$4 sm:$0xff]  }
  0x35   : > { %v2302_v23 = vld [vmem:[%s3172_s1 + $0x8c] ss:$16 sps:$4 sm:$0xff]   ;;  %v2297_v24 = vld [vmem:[%s3172_s1 + $0x80] ss:$16 sps:$4 sm:$0xff]   ;;  %v2300_v25 = vld [vmem:[%s3172_s1 + $0x88] ss:$16 sps:$4 sm:$0xff]  }
  0x36   : > { %715 = vmatpush1.bf16.msra.mxu0 %v2221_v33  ;;  %756 = vmatpush1.bf16.msra.mxu1 %v2222_v34  ;;  %v2305_v26 = vld [vmem:[%s3172_s1 + $0xa4] ss:$16 sps:$4 sm:$0xff]   ;;  %v2308_v27 = vld [vmem:[%s3172_s1 + $0xac] ss:$16 sps:$4 sm:$0xff]   ;;  %v2303_v28 = vld [vmem:[%s3172_s1 + $0xa0] ss:$16 sps:$4 sm:$0xff]  }
  0x37   : > { %716 = vmatprep.subr.bf16.mxu0 %v2223_v35  ;;  %757 = vmatprep.subr.bf16.mxu1 %v2225_v36  ;;  %v2306_v29 = vld [vmem:[%s3172_s1 + $0xa8] ss:$16 sps:$4 sm:$0xff]   ;;  %v2311_v30 = vld [vmem:[%s3172_s1 + $0xc4] ss:$16 sps:$4 sm:$0xff]   ;;  %v2314_v31 = vld [vmem:[%s3172_s1 + $0xcc] ss:$16 sps:$4 sm:$0xff]  }
  0x38   : > { %v2829_v32 = vld [vmem:[%s2693_s23] sm:$0xff] }
  0x39   : > { %v1933_v33 = vcombine.high %v2829_v32, %v2829_v32  ;;  %v2309_v34 = vld [vmem:[%s3172_s1 + $0xc0] ss:$16 sps:$4 sm:$0xff]   ;;  %v2312_v35 = vld [vmem:[%s3172_s1 + $0xc8] ss:$16 sps:$4 sm:$0xff]   ;;  %v2317_v36 = vld [vmem:[%s3172_s1 + $0xe4] ss:$16 sps:$4 sm:$0xff]  }
  0x3a   : > { %717 = vmatpush1.bf16.msra.mxu0 %v2227_v37  ;;  %758 = vmatpush1.bf16.msra.mxu1 %v2228_v38  ;;  %v2320_v37 = vld [vmem:[%s3172_s1 + $0xec] ss:$16 sps:$4 sm:$0xff]   ;;  %v2315_v38 = vld [vmem:[%s3172_s1 + $0xe0] ss:$16 sps:$4 sm:$0xff]   ;;  %v2336_v51 = vld [vmem:[%s3172_s1 + $0x148] ss:$16 sps:$4 sm:$0xff]  }
  0x3b   : > { %718 = vmatprep.subr.bf16.mxu0 %v2229_v39  ;;  %759 = vmatprep.subr.bf16.mxu1 %v2231_v40  ;;  %v2318_v39 = vld [vmem:[%s3172_s1 + $0xe8] ss:$16 sps:$4 sm:$0xff]   ;;  %v2323_v40 = vld [vmem:[%s3172_s1 + $0x104] ss:$16 sps:$4 sm:$0xff]   ;;  %v2338_v49 = vld [vmem:[%s3172_s1 + $0x14c] ss:$16 sps:$4 sm:$0xff]  }
  0x3e   : > { %719 = vmatpush1.bf16.msra.mxu0 %v2233_v41  ;;  %760 = vmatpush1.bf16.msra.mxu1 %v2234_v42  ;;  %v2326_v41 = vld [vmem:[%s3172_s1 + $0x10c] ss:$16 sps:$4 sm:$0xff]   ;;  %v2321_v42 = vld [vmem:[%s3172_s1 + $0x100] ss:$16 sps:$4 sm:$0xff]  }
  0x3f   : > { %720 = vmatprep.subr.bf16.mxu0 %v2235_v43  ;;  %761 = vmatprep.subr.bf16.mxu1 %v2237_v44  ;;  %v2324_v43 = vld [vmem:[%s3172_s1 + $0x108] ss:$16 sps:$4 sm:$0xff]   ;;  %v2329_v44 = vld [vmem:[%s3172_s1 + $0x124] ss:$16 sps:$4 sm:$0xff]  }
  0x42   : > { %721 = vmatpush1.bf16.msra.mxu0 %v2239_v45  ;;  %762 = vmatpush1.bf16.msra.mxu1 %v2240_v46  ;;  %v2332_v45 = vld [vmem:[%s3172_s1 + $0x12c] ss:$16 sps:$4 sm:$0xff]   ;;  %v2327_v46 = vld [vmem:[%s3172_s1 + $0x120] ss:$16 sps:$4 sm:$0xff]  }
  0x43   : > { %722 = vmatprep.subr.bf16.mxu0 %v2241_v47  ;;  %763 = vmatprep.subr.bf16.mxu1 %v2243_v48  ;;  %v2330_v47 = vld [vmem:[%s3172_s1 + $0x128] ss:$16 sps:$4 sm:$0xff]   ;;  %v2335_v48 = vld [vmem:[%s3172_s1 + $0x144] ss:$16 sps:$4 sm:$0xff]  }
  0x46   : > { %723 = vmatpush1.bf16.msra.mxu0 %v2245_v50  ;;  %764 = vmatpush1.bf16.msra.mxu1 %v2246_v52  ;;  %v2333_v50 = vld [vmem:[%s3172_s1 + $0x140] ss:$16 sps:$4 sm:$0xff]   ;;  %v2341_v52 = vld [vmem:[%s3172_s1 + $0x164] ss:$16 sps:$4 sm:$0xff]  }
  0x47   : > { %724 = vmatprep.subr.bf16.mxu0 %v2247_v53  ;;  %765 = vmatprep.subr.bf16.mxu1 %v2249_v54  ;;  %v2344_v53 = vld [vmem:[%s3172_s1 + $0x16c] ss:$16 sps:$4 sm:$0xff]   ;;  %v2339_v54 = vld [vmem:[%s3172_s1 + $0x160] ss:$16 sps:$4 sm:$0xff]  }
  0x4a   : > { %725 = vmatpush1.bf16.msra.mxu0 %v2251_v55  ;;  %766 = vmatpush1.bf16.msra.mxu1 %v2252_v56  ;;  %v2342_v55 = vld [vmem:[%s3172_s1 + $0x168] ss:$16 sps:$4 sm:$0xff]   ;;  %v2347_v56 = vld [vmem:[%s3172_s1 + $0x184] ss:$16 sps:$4 sm:$0xff]  }
  0x4b   : > { %726 = vmatprep.subr.bf16.mxu0 %v2253_v57  ;;  %767 = vmatprep.subr.bf16.mxu1 %v2255_v58  ;;  %v2350_v57 = vld [vmem:[%s3172_s1 + $0x18c] ss:$16 sps:$4 sm:$0xff]   ;;  %v2345_v58 = vld [vmem:[%s3172_s1 + $0x180] ss:$16 sps:$4 sm:$0xff]  }
  0x4e   : > { %727 = vmatpush1.bf16.msra.mxu0 %v2257_v59  ;;  %768 = vmatpush1.bf16.msra.mxu1 %v2258_v60  ;;  %v2348_v59 = vld [vmem:[%s3172_s1 + $0x188] ss:$16 sps:$4 sm:$0xff]   ;;  %v2353_v60 = vld [vmem:[%s3172_s1 + $0x1a4] ss:$16 sps:$4 sm:$0xff]  }
  0x4f   : > { %728 = vmatprep.subr.bf16.mxu0 %v2259_v61  ;;  %769 = vmatprep.subr.bf16.mxu1 %v2261_v62  ;;  %v2356_v61 = vld [vmem:[%s3172_s1 + $0x1ac] ss:$16 sps:$4 sm:$0xff]   ;;  %v2351_v62 = vld [vmem:[%s3172_s1 + $0x1a0] ss:$16 sps:$4 sm:$0xff]  }
  0x52   : > { %729 = vmatpush1.bf16.msra.mxu0 %v2263_v63  ;;  %770 = vmatpush1.bf16.msra.mxu1 %v2264_v0  ;;  %v2354_v63 = vld [vmem:[%s3172_s1 + $0x1a8] ss:$16 sps:$4 sm:$0xff]   ;;  %v2359_v0 = vld [vmem:[%s3172_s1 + $0x1c4] ss:$16 sps:$4 sm:$0xff]  }
  0x53   : > { %730 = vmatprep.subr.bf16.mxu0 %v2265_v1  ;;  %771 = vmatprep.subr.bf16.mxu1 %v2267_v2  ;;  %v2362_v1 = vld [vmem:[%s3172_s1 + $0x1cc] ss:$16 sps:$4 sm:$0xff]   ;;  %v2357_v2 = vld [vmem:[%s3172_s1 + $0x1c0] ss:$16 sps:$4 sm:$0xff]  }
  0x56   : > { %731 = vmatpush1.bf16.msra.mxu0 %v2269_v3  ;;  %772 = vmatpush1.bf16.msra.mxu1 %v2270_v4  ;;  %v2360_v3 = vld [vmem:[%s3172_s1 + $0x1c8] ss:$16 sps:$4 sm:$0xff]   ;;  %v2365_v4 = vld [vmem:[%s3172_s1 + $0x1e4] ss:$16 sps:$4 sm:$0xff]  }
  0x57   : > { %1109 = vmatprep.subr.bf16.mxu0 %v2275_v5  ;;  %1150 = vmatprep.subr.bf16.mxu1 %v2278_v6  ;;  %v2368_v5 = vld [vmem:[%s3172_s1 + $0x1ec] ss:$16 sps:$4 sm:$0xff]   ;;  %v2363_v6 = vld [vmem:[%s3172_s1 + $0x1e0] ss:$16 sps:$4 sm:$0xff]  }
  0x59   : > { %733 = vmatmul.mubr.bf16.vlgmr.msra.gmra.mrb[0].mxu0 %v1866_v7  ;;  %774 = vmatmul.mubr.bf16.vlgmr.msra.gmra.mrb[0].mxu1 %v1866_v7  ;;  %v2366_v7 = vld [vmem:[%s3172_s1 + $0x1e8] ss:$16 sps:$4 sm:$0xff]  }
  0x5a   : > { %1110 = vmatpush1.bf16.msra.mxu0 %v2273_v8  ;;  %1151 = vmatpush1.bf16.msra.mxu1 %v2276_v9  ;;  %v2373_v8 = vld [vmem:[%s3172_s1 + $0x404] ss:$16 sps:$4 sm:$0xff]   ;;  %v2376_v9 = vld [vmem:[%s3172_s1 + $0x40c] ss:$16 sps:$4 sm:$0xff]  }
  0x5b   : > { %1111 = vmatprep.subr.bf16.mxu0 %v2281_v10  ;;  %1152 = vmatprep.subr.bf16.mxu1 %v2284_v11  ;;  %v1932_v10 = vcombine.low %v2829_v32, %v2829_v32  ;;  %v2371_v11 = vld [vmem:[%s3172_s1 + $0x400] ss:$16 sps:$4 sm:$0xff]   ;;  %v2406_v32 = vld [vmem:[%s3172_s1 + $0x4ac] ss:$16 sps:$4 sm:$0xff]  }
  0x5c   : > { %1141 = vmatprep.mubr.bf16.mxu0 %v1933_v33  ;;  %1182 = vmatprep.mubr.bf16.mxu1 %v1933_v33  ;;  %v2401_v33 = vld [vmem:[%s3172_s1 + $0x4a0] ss:$16 sps:$4 sm:$0xff]  }
  0x5e   : > { %1112 = vmatpush1.bf16.msra.mxu0 %v2279_v12  ;;  %1153 = vmatpush1.bf16.msra.mxu1 %v2282_v13  ;;  %v2374_v12 = vld [vmem:[%s3172_s1 + $0x408] ss:$16 sps:$4 sm:$0xff]  }
  0x5f   : > { %1113 = vmatprep.subr.bf16.mxu0 %v2287_v14  ;;  %1154 = vmatprep.subr.bf16.mxu1 %v2290_v15  ;;  %v2962_v13 = vld [vmem:[%s2693_s23 + $0x10] sm:$0xff] }
  0x60   : > { %v2379_v14 = vld [vmem:[%s3172_s1 + $0x424] ss:$16 sps:$4 sm:$0xff]   ;;  %v2382_v15 = vld [vmem:[%s3172_s1 + $0x42c] ss:$16 sps:$4 sm:$0xff]  }
  0x62   : > { %1114 = vmatpush1.bf16.msra.mxu0 %v2285_v16  ;;  %1155 = vmatpush1.bf16.msra.mxu1 %v2288_v17  ;;  %v2064_v16 = vcombine.high %v2962_v13, %v2962_v13  ;;  %v2377_v17 = vld [vmem:[%s3172_s1 + $0x420] ss:$16 sps:$4 sm:$0xff]  }
  0x63   : > { %1115 = vmatprep.subr.bf16.mxu0 %v2293_v18  ;;  %1156 = vmatprep.subr.bf16.mxu1 %v2296_v19  ;;  %v2380_v18 = vld [vmem:[%s3172_s1 + $0x428] ss:$16 sps:$4 sm:$0xff]   ;;  %v2385_v19 = vld [vmem:[%s3172_s1 + $0x444] ss:$16 sps:$4 sm:$0xff]  }
  0x66   : > { %1116 = vmatpush1.bf16.msra.mxu0 %v2291_v20  ;;  %1157 = vmatpush1.bf16.msra.mxu1 %v2294_v21  ;;  %v2388_v20 = vld [vmem:[%s3172_s1 + $0x44c] ss:$16 sps:$4 sm:$0xff]   ;;  %v2383_v21 = vld [vmem:[%s3172_s1 + $0x440] ss:$16 sps:$4 sm:$0xff]  }
  0x67   : > { %1117 = vmatprep.subr.bf16.mxu0 %v2299_v22  ;;  %1158 = vmatprep.subr.bf16.mxu1 %v2302_v23  ;;  %v2386_v22 = vld [vmem:[%s3172_s1 + $0x448] ss:$16 sps:$4 sm:$0xff]   ;;  %v2391_v23 = vld [vmem:[%s3172_s1 + $0x464] ss:$16 sps:$4 sm:$0xff]  }
  0x6a   : > { %1118 = vmatpush1.bf16.msra.mxu0 %v2297_v24  ;;  %1159 = vmatpush1.bf16.msra.mxu1 %v2300_v25  ;;  %v2394_v24 = vld [vmem:[%s3172_s1 + $0x46c] ss:$16 sps:$4 sm:$0xff]   ;;  %v2389_v25 = vld [vmem:[%s3172_s1 + $0x460] ss:$16 sps:$4 sm:$0xff]  }
  0x6b   : > { %1119 = vmatprep.subr.bf16.mxu0 %v2305_v26  ;;  %1160 = vmatprep.subr.bf16.mxu1 %v2308_v27  ;;  %v2392_v26 = vld [vmem:[%s3172_s1 + $0x468] ss:$16 sps:$4 sm:$0xff]   ;;  %v2397_v27 = vld [vmem:[%s3172_s1 + $0x484] ss:$16 sps:$4 sm:$0xff]  }
  0x6e   : > { %1120 = vmatpush1.bf16.msra.mxu0 %v2303_v28  ;;  %1161 = vmatpush1.bf16.msra.mxu1 %v2306_v29  ;;  %v2400_v28 = vld [vmem:[%s3172_s1 + $0x48c] ss:$16 sps:$4 sm:$0xff]   ;;  %v2395_v29 = vld [vmem:[%s3172_s1 + $0x480] ss:$16 sps:$4 sm:$0xff]  }
  0x6f   : > { %1121 = vmatprep.subr.bf16.mxu0 %v2311_v30  ;;  %1162 = vmatprep.subr.bf16.mxu1 %v2314_v31  ;;  %v2398_v30 = vld [vmem:[%s3172_s1 + $0x488] ss:$16 sps:$4 sm:$0xff]   ;;  %v2403_v31 = vld [vmem:[%s3172_s1 + $0x4a4] ss:$16 sps:$4 sm:$0xff]  }
  0x72   : > { %1122 = vmatpush1.bf16.msra.mxu0 %v2309_v34  ;;  %1163 = vmatpush1.bf16.msra.mxu1 %v2312_v35  ;;  %v2404_v34 = vld [vmem:[%s3172_s1 + $0x4a8] ss:$16 sps:$4 sm:$0xff]   ;;  %v2409_v35 = vld [vmem:[%s3172_s1 + $0x4c4] ss:$16 sps:$4 sm:$0xff]  }
  0x73   : > { %1123 = vmatprep.subr.bf16.mxu0 %v2317_v36  ;;  %1164 = vmatprep.subr.bf16.mxu1 %v2320_v37  ;;  %v2412_v36 = vld [vmem:[%s3172_s1 + $0x4cc] ss:$16 sps:$4 sm:$0xff]   ;;  %v2407_v37 = vld [vmem:[%s3172_s1 + $0x4c0] ss:$16 sps:$4 sm:$0xff]  }
  0x76   : > { %1124 = vmatpush1.bf16.msra.mxu0 %v2315_v38  ;;  %1165 = vmatpush1.bf16.msra.mxu1 %v2318_v39  ;;  %v2410_v38 = vld [vmem:[%s3172_s1 + $0x4c8] ss:$16 sps:$4 sm:$0xff]   ;;  %v2415_v39 = vld [vmem:[%s3172_s1 + $0x4e4] ss:$16 sps:$4 sm:$0xff]  }
  0x77   : > { %1125 = vmatprep.subr.bf16.mxu0 %v2323_v40  ;;  %1166 = vmatprep.subr.bf16.mxu1 %v2326_v41  ;;  %v2418_v40 = vld [vmem:[%s3172_s1 + $0x4ec] ss:$16 sps:$4 sm:$0xff]   ;;  %v2413_v41 = vld [vmem:[%s3172_s1 + $0x4e0] ss:$16 sps:$4 sm:$0xff]  }
  0x7a   : > { %1126 = vmatpush1.bf16.msra.mxu0 %v2321_v42  ;;  %1167 = vmatpush1.bf16.msra.mxu1 %v2324_v43  ;;  %v2416_v42 = vld [vmem:[%s3172_s1 + $0x4e8] ss:$16 sps:$4 sm:$0xff]   ;;  %v2421_v43 = vld [vmem:[%s3172_s1 + $0x504] ss:$16 sps:$4 sm:$0xff]  }
  0x7b   : > { %1127 = vmatprep.subr.bf16.mxu0 %v2329_v44  ;;  %1168 = vmatprep.subr.bf16.mxu1 %v2332_v45  ;;  %v2424_v44 = vld [vmem:[%s3172_s1 + $0x50c] ss:$16 sps:$4 sm:$0xff]   ;;  %v2419_v45 = vld [vmem:[%s3172_s1 + $0x500] ss:$16 sps:$4 sm:$0xff]  }
  0x7e   : > { %1128 = vmatpush1.bf16.msra.mxu0 %v2327_v46  ;;  %1169 = vmatpush1.bf16.msra.mxu1 %v2330_v47  ;;  %v2422_v46 = vld [vmem:[%s3172_s1 + $0x508] ss:$16 sps:$4 sm:$0xff]   ;;  %v2427_v47 = vld [vmem:[%s3172_s1 + $0x524] ss:$16 sps:$4 sm:$0xff]  }
  0x7f   : > { %1129 = vmatprep.subr.bf16.mxu0 %v2335_v48  ;;  %1170 = vmatprep.subr.bf16.mxu1 %v2338_v49  ;;  %v2430_v48 = vld [vmem:[%s3172_s1 + $0x52c] ss:$16 sps:$4 sm:$0xff]   ;;  %v2425_v49 = vld [vmem:[%s3172_s1 + $0x520] ss:$16 sps:$4 sm:$0xff]  }
  0x82   : > { %1130 = vmatpush1.bf16.msra.mxu0 %v2333_v50  ;;  %1171 = vmatpush1.bf16.msra.mxu1 %v2336_v51  ;;  %v2428_v50 = vld [vmem:[%s3172_s1 + $0x528] ss:$16 sps:$4 sm:$0xff]   ;;  %v2433_v51 = vld [vmem:[%s3172_s1 + $0x544] ss:$16 sps:$4 sm:$0xff]  }
  0x83   : > { %1131 = vmatprep.subr.bf16.mxu0 %v2341_v52  ;;  %1172 = vmatprep.subr.bf16.mxu1 %v2344_v53  ;;  %v2436_v52 = vld [vmem:[%s3172_s1 + $0x54c] ss:$16 sps:$4 sm:$0xff]   ;;  %v2431_v53 = vld [vmem:[%s3172_s1 + $0x540] ss:$16 sps:$4 sm:$0xff]  }
  0x86   : > { %1132 = vmatpush1.bf16.msra.mxu0 %v2339_v54  ;;  %1173 = vmatpush1.bf16.msra.mxu1 %v2342_v55  ;;  %v2434_v54 = vld [vmem:[%s3172_s1 + $0x548] ss:$16 sps:$4 sm:$0xff]   ;;  %v2439_v55 = vld [vmem:[%s3172_s1 + $0x564] ss:$16 sps:$4 sm:$0xff]  }
  0x87   : > { %1133 = vmatprep.subr.bf16.mxu0 %v2347_v56  ;;  %1174 = vmatprep.subr.bf16.mxu1 %v2350_v57  ;;  %v2442_v56 = vld [vmem:[%s3172_s1 + $0x56c] ss:$16 sps:$4 sm:$0xff]   ;;  %v2437_v57 = vld [vmem:[%s3172_s1 + $0x560] ss:$16 sps:$4 sm:$0xff]  }
  0x8a   : > { %1134 = vmatpush1.bf16.msra.mxu0 %v2345_v58  ;;  %1175 = vmatpush1.bf16.msra.mxu1 %v2348_v59  ;;  %v2440_v58 = vld [vmem:[%s3172_s1 + $0x568] ss:$16 sps:$4 sm:$0xff]   ;;  %v2445_v59 = vld [vmem:[%s3172_s1 + $0x584] ss:$16 sps:$4 sm:$0xff]  }
  0x8b   : > { %1135 = vmatprep.subr.bf16.mxu0 %v2353_v60  ;;  %1176 = vmatprep.subr.bf16.mxu1 %v2356_v61  ;;  %v2448_v60 = vld [vmem:[%s3172_s1 + $0x58c] ss:$16 sps:$4 sm:$0xff]   ;;  %v2443_v61 = vld [vmem:[%s3172_s1 + $0x580] ss:$16 sps:$4 sm:$0xff]  }
  0x8e   : > { %1136 = vmatpush1.bf16.msra.mxu0 %v2351_v62  ;;  %1177 = vmatpush1.bf16.msra.mxu1 %v2354_v63  ;;  %v2446_v62 = vld [vmem:[%s3172_s1 + $0x588] ss:$16 sps:$4 sm:$0xff]   ;;  %v2451_v63 = vld [vmem:[%s3172_s1 + $0x5a4] ss:$16 sps:$4 sm:$0xff]  }
  0x8f   : > { %1137 = vmatprep.subr.bf16.mxu0 %v2359_v0  ;;  %1178 = vmatprep.subr.bf16.mxu1 %v2362_v1  ;;  %v2454_v0 = vld [vmem:[%s3172_s1 + $0x5ac] ss:$16 sps:$4 sm:$0xff]   ;;  %v2449_v1 = vld [vmem:[%s3172_s1 + $0x5a0] ss:$16 sps:$4 sm:$0xff]  }
  0x92   : > { %1138 = vmatpush1.bf16.msra.mxu0 %v2357_v2  ;;  %1179 = vmatpush1.bf16.msra.mxu1 %v2360_v3  ;;  %v2452_v2 = vld [vmem:[%s3172_s1 + $0x5a8] ss:$16 sps:$4 sm:$0xff]   ;;  %v2457_v3 = vld [vmem:[%s3172_s1 + $0x5c4] ss:$16 sps:$4 sm:$0xff]  }
  0x93   : > { %1139 = vmatprep.subr.bf16.mxu0 %v2365_v4  ;;  %1180 = vmatprep.subr.bf16.mxu1 %v2368_v5  ;;  %v2460_v4 = vld [vmem:[%s3172_s1 + $0x5cc] ss:$16 sps:$4 sm:$0xff]   ;;  %v2455_v5 = vld [vmem:[%s3172_s1 + $0x5c0] ss:$16 sps:$4 sm:$0xff]  }
  0x96   : > { %1140 = vmatpush1.bf16.msra.mxu0 %v2363_v6  ;;  %1181 = vmatpush1.bf16.msra.mxu1 %v2366_v7  ;;  %v2458_v6 = vld [vmem:[%s3172_s1 + $0x5c8] ss:$16 sps:$4 sm:$0xff]   ;;  %v2463_v7 = vld [vmem:[%s3172_s1 + $0x5e4] ss:$16 sps:$4 sm:$0xff]  }
  0x97   : > { %1585 = vmatprep.subr.bf16.mxu0 %v2373_v8  ;;  %1626 = vmatprep.subr.bf16.mxu1 %v2376_v9  ;;  %v2466_v8 = vld [vmem:[%s3172_s1 + $0x5ec] ss:$16 sps:$4 sm:$0xff]   ;;  %v2461_v9 = vld [vmem:[%s3172_s1 + $0x5e0] ss:$16 sps:$4 sm:$0xff]  }
  0x99   : > { %1142 = vmatmul.mubr.bf16.vlgmr.msra.gmra.mrb[0].mxu0 %v1932_v10  ;;  %1183 = vmatmul.mubr.bf16.vlgmr.msra.gmra.mrb[0].mxu1 %v1932_v10  ;;  %v2464_v10 = vld [vmem:[%s3172_s1 + $0x5e8] ss:$16 sps:$4 sm:$0xff]  }
  0x9a   : > { %1586 = vmatpush1.bf16.msra.mxu0 %v2371_v11  ;;  %1627 = vmatpush1.bf16.msra.mxu1 %v2374_v12  ;;  %v2063_v11 = vcombine.low %v2962_v13, %v2962_v13  ;;  %v1673_v12 = vlaneseq  ;;  %v1697_v13 = vld [vmem:[%s3174_s3] sm:$0xf] }
  0x9b   : > { %1587 = vmatprep.subr.bf16.mxu0 %v2379_v14  ;;  %1628 = vmatprep.subr.bf16.mxu1 %v2382_v15 }
  0x9c   : > { %1617 = vmatprep.mubr.bf16.mxu0 %v2064_v16  ;;  %1658 = vmatprep.mubr.bf16.mxu1 %v2064_v16  ;;  %v1674_v14 = vshrl.u32 %v1673_v12, 7 }
  0x9e   : > { %1588 = vmatpush1.bf16.msra.mxu0 %v2377_v17  ;;  %1629 = vmatpush1.bf16.msra.mxu1 %v2380_v18  ;;  %v1675_v15 = vsub.s32 0, %v1674_v14  ;;  %v1683_v16 = vsub.s32 2, %v1674_v14  ;;  %v1671_v17 = vld [vmem:[%s3173_s2] sm:$0xf]  ;;  %v1679_v18 = vsub.s32 1, %v1674_v14 }
  0x9f   : > { %1589 = vmatprep.subr.bf16.mxu0 %v2385_v19  ;;  %1630 = vmatprep.subr.bf16.mxu1 %v2388_v20  ;;  %v1687_v19 = vsub.s32 3, %v1674_v14 }
  0xa0   : > { %v1676_v20 = vrot.slane %v1671_v17, %v1675_v15 }
  0xa2   : > { %1590 = vmatpush1.bf16.msra.mxu0 %v2383_v21  ;;  %1631 = vmatpush1.bf16.msra.mxu1 %v2386_v22  ;;  %v1684_v21 = vrot.slane %v1671_v17, %v1683_v16  ;;  %v1680_v22 = vrot.slane %v1671_v17, %v1679_v18 }
  0xa3   : > { %1591 = vmatprep.subr.bf16.mxu0 %v2391_v23  ;;  %1632 = vmatprep.subr.bf16.mxu1 %v2394_v24  ;;  %v1688_v23 = vrot.slane %v1671_v17, %v1687_v19  ;;  %v1702_v24 = vrot.slane %v1697_v13, %v1675_v15 }
  0xa6   : > { %1592 = vmatpush1.bf16.msra.mxu0 %v2389_v25  ;;  %1633 = vmatpush1.bf16.msra.mxu1 %v2392_v26  ;;  %v1710_v25 = vrot.slane %v1697_v13, %v1683_v16 }
  0xa7   : > { %1593 = vmatprep.subr.bf16.mxu0 %v2397_v27  ;;  %1634 = vmatprep.subr.bf16.mxu1 %v2400_v28  ;;  %v1706_v28 = vrot.slane %v1697_v13, %v1679_v18 }
  0xaa   : > { %1594 = vmatpush1.bf16.msra.mxu0 %v2395_v29  ;;  %1635 = vmatpush1.bf16.msra.mxu1 %v2398_v30  ;;  %v1714_v29 = vrot.slane %v1697_v13, %v1687_v19 }
  0xab   : > { %1595 = vmatprep.subr.bf16.mxu0 %v2403_v31  ;;  %1636 = vmatprep.subr.bf16.mxu1 %v2406_v32 }
  0xae   : > { %1596 = vmatpush1.bf16.msra.mxu0 %v2401_v33  ;;  %1637 = vmatpush1.bf16.msra.mxu1 %v2404_v34 }
  0xaf   : > { %1597 = vmatprep.subr.bf16.mxu0 %v2409_v35  ;;  %1638 = vmatprep.subr.bf16.mxu1 %v2412_v36 }
  0xb2   : > { %1598 = vmatpush1.bf16.msra.mxu0 %v2407_v37  ;;  %1639 = vmatpush1.bf16.msra.mxu1 %v2410_v38 }
  0xb3   : > { %1599 = vmatprep.subr.bf16.mxu0 %v2415_v39  ;;  %1640 = vmatprep.subr.bf16.mxu1 %v2418_v40 }
  0xb6   : > { %1600 = vmatpush1.bf16.msra.mxu0 %v2413_v41  ;;  %1641 = vmatpush1.bf16.msra.mxu1 %v2416_v42 }
  0xb7   : > { %1601 = vmatprep.subr.bf16.mxu0 %v2421_v43  ;;  %1642 = vmatprep.subr.bf16.mxu1 %v2424_v44 }
  0xba   : > { %1602 = vmatpush1.bf16.msra.mxu0 %v2419_v45  ;;  %1643 = vmatpush1.bf16.msra.mxu1 %v2422_v46 }
  0xbb   : > { %1603 = vmatprep.subr.bf16.mxu0 %v2427_v47  ;;  %1644 = vmatprep.subr.bf16.mxu1 %v2430_v48 }
  0xbe   : > { %1604 = vmatpush1.bf16.msra.mxu0 %v2425_v49  ;;  %1645 = vmatpush1.bf16.msra.mxu1 %v2428_v50 }
  0xbf   : > { %1605 = vmatprep.subr.bf16.mxu0 %v2433_v51  ;;  %1646 = vmatprep.subr.bf16.mxu1 %v2436_v52 }
  0xc2   : > { %1606 = vmatpush1.bf16.msra.mxu0 %v2431_v53  ;;  %1647 = vmatpush1.bf16.msra.mxu1 %v2434_v54 }
  0xc3   : > { %1607 = vmatprep.subr.bf16.mxu0 %v2439_v55  ;;  %1648 = vmatprep.subr.bf16.mxu1 %v2442_v56 }
  0xc6   : > { %1608 = vmatpush1.bf16.msra.mxu0 %v2437_v57  ;;  %1649 = vmatpush1.bf16.msra.mxu1 %v2440_v58 }
  0xc7   : > { %1609 = vmatprep.subr.bf16.mxu0 %v2445_v59  ;;  %1650 = vmatprep.subr.bf16.mxu1 %v2448_v60 }
  0xca   : > { %1610 = vmatpush1.bf16.msra.mxu0 %v2443_v61  ;;  %1651 = vmatpush1.bf16.msra.mxu1 %v2446_v62 }
  0xcb   : > { %1611 = vmatprep.subr.bf16.mxu0 %v2451_v63  ;;  %1652 = vmatprep.subr.bf16.mxu1 %v2454_v0 }
  0xce   : > { %1612 = vmatpush1.bf16.msra.mxu0 %v2449_v1  ;;  %1653 = vmatpush1.bf16.msra.mxu1 %v2452_v2 }
  0xcf   : > { %1613 = vmatprep.subr.bf16.mxu0 %v2457_v3  ;;  %1654 = vmatprep.subr.bf16.mxu1 %v2460_v4 }
  0xd2   : > { %1614 = vmatpush1.bf16.msra.mxu0 %v2455_v5  ;;  %1655 = vmatpush1.bf16.msra.mxu1 %v2458_v6 }
  0xd3   : > { %1615 = vmatprep.subr.bf16.mxu0 %v2463_v7  ;;  %1656 = vmatprep.subr.bf16.mxu1 %v2466_v8 }
  0xd6   : > { %1616 = vmatpush1.bf16.msra.mxu0 %v2461_v9  ;;  %1657 = vmatpush1.bf16.msra.mxu1 %v2464_v10 }
  0xd9   : > { %1618 = vmatmul.mubr.bf16.vlgmr.msra.gmra.mrb[0].mxu0 %v2063_v11  ;;  %1659 = vmatmul.mubr.bf16.vlgmr.msra.gmra.mrb[0].mxu1 %v2063_v11 }
 0x1ac   : > { %v1619_v26 = vpop.f32.mrb[0].mxu0  ;;  %v1660_v27 = vpop.f32.mrb[0].mxu1 }
 0x1ad   : > { %v1693_v30 = vmul.f32 %v1676_v20, %v1619_v26  ;;  %v1695_v31 = vmul.f32 %v1684_v21, %v1660_v27  ;;  %v1621_v32 = vpop.f32.mrb[1].mxu0  ;;  %v1662_v33 = vpop.f32.mrb[1].mxu1 }
 0x1ae   : > { %v1694_v34 = vmul.f32 %v1680_v22, %v1621_v32  ;;  %v1696_v35 = vmul.f32 %v1688_v23, %v1662_v33  ;;  %v1623_v36 = vpop.f32.mrb[2].mxu0  ;;  %v1664_v37 = vpop.f32.mrb[2].mxu1 }
 0x1af   : > { %v1719_v38 = vadd.f32 %v1702_v24, %v1693_v30  ;;  %v1721_v39 = vadd.f32 %v1710_v25, %v1695_v31  ;;  %v1624_v40 = vpop.f32.mrb[3].mxu0  ;;  %v1665_v41 = vpop.f32.mrb[3].mxu1 }
 0x1b0   : > { %v1720_v42 = vadd.f32 %v1706_v28, %v1694_v34  ;;  %v1722_v43 = vadd.f32 %v1714_v29, %v1696_v35 }
 0x1b1   : > { %v1723_v44 = vmax.f32 %v1719_v38, 0.0  ;;  %v1725_v45 = vmax.f32 %v1721_v39, 0.0 }
 0x1b2   : > { %v1724_v46 = vmax.f32 %v1720_v42, 0.0  ;;  %v1726_v47 = vmax.f32 %v1722_v43, 0.0 }
 0x1b3   : > { %1727 = vst [vmem:[%s240_s9] sm:$0xff] %v1723_v44  ;;  %1729 = vst [vmem:[%s240_s9 + $0x10] sm:$0xff] %v1725_v45 }
 0x1b4   : > { %1728 = vst [vmem:[%s240_s9 + $0x8] sm:$0xff] %v1724_v46  ;;  %1730 = vst [vmem:[%s240_s9 + $0x18] sm:$0xff] %v1726_v47 }
 0x1b5 PF: > { %p11_p9 = scmp.ge.s32.totalorder %s2535_s19, 4   ;;  %s3176_s15 = smov %s2487_s16 }
 0x1b6   : > { %s3177_s16 = smov %s2544_s22  ;;  %s3178_s17 = smov %s2535_s19 }
 0x1b7   :  { %13 = sbr.rel (!%p11_p9) target bundleno = 2 (0x2), region = 113 }

// kernel: network_forward.15
= control target key start
LH: loop header
LB: loop body
LE: loop exit
PB: predicated region body
PF: predicated region fallthrough
CT: control target
= control target key end

     0   :  { %s4648_s18 = smov 0   ;;  %s4650_s19 = smov 0   ;;  %s5908_s0 = inlined_call_operand.vmem [shape: bf16[3,2,8,512], index: 0, kind: input, shape index: {}]   ;;  %s5909_s1 = inlined_call_operand.vmem [shape: bf16[3,512,512], index: 1, kind: input, shape index: {}]   ;;  %s5910_s2 = inlined_call_operand.vmem [shape: f32[1,512], index: 2, kind: input, shape index: {}]   ;;  %s5911_s3 = inlined_call_operand.vmem [shape: f32[1,512], index: 3, kind: input, shape index: {}]   ;;  %s5912_s4 = inlined_call_operand.vmem [shape: f32[2,8,512], index: 4, kind: input, shape index: {}]   ;;  %s5913_s5 = inlined_call_operand.vmem [shape: f32[2,8,512], index: 5, kind: output, shape index: {}]  }
   0x1   :  { %s4652_s20 = smov 0  }
   0x2 LB: > { %s3268_s21 = sadd.s32 4294967295, %s4616_s20   ;;  %s4665_s22 = sadd.s32 1, %s4616_s20   ;;  %s4616_s20 = sphi %s4652_s20, %s5916_s20   ;;  %s4612_s19 = sphi %s4650_s19, %s5915_s19   ;;  %s4608_s18 = sphi %s4648_s18, %s5914_s18  }
   0x3   : > { %s19_s23 = ssub.s32 %s4616_s20, %s4665_s22  ;;  %s22_s24 = sadd.s32 1, %s4612_s19 }
   0x4   : > { %p20_p0 = scmp.eq.s32.totalorder %s19_s23, 0  ;;  %p29_p1 = scmp.ne.s32.totalorder %s4612_s19, %s4608_s18 }
   0x5   : > { %p30_p2 = scmp.eq.s32.totalorder %s4616_s20, 0  ;;  %p3271_p4 = scmp.ge.s32.totalorder %s4616_s20, 2 }
   0x6   : > { %s4674_s25 = scalar_select %p20_p0, %s4612_s19, %s22_s24  }
   0x7   : > { %p31_p3 = por %p30_p2, %p29_p1  ;;  %179 = sbr.rel (%p3271_p4) target bundleno = 21 (0x15), region = 28 }
   0xe   : > { %182 = sbr.rel (!%p31_p3) target bundleno = 21 (0x15), region = 32  ;;  %s184_s26 = sand.u32 (%p31_p3), 1, %s4612_s19  }
   0xf   : > { %s3937_s27 = sshll.u32 (%p31_p3), %s4616_s20, 4  ;;  %s3980_s28 = smul.u32 (%p31_p3), 48, %s184_s26 }
  0x10   : > { %s189_s6 = scalar_lea.vmem (%p31_p3), %s5908_s0, %s3937_s27 }
  0x11   : > { %v202_v0 = vld [vmem:[%s189_s6] sm:$0xff] (%p31_p3)  ;;  %v204_v1 = vld [vmem:[%s189_s6 + $0x8] sm:$0xff] (%p31_p3)  ;;  %s186_s7 = scalar_lea.vmem (%p31_p3), [#allocation2], %s3980_s28 }
  0x12   : > { %v206_v2 = vld [vmem:[%s189_s6 + $0x20] sm:$0xff] (%p31_p3)  ;;  %v208_v3 = vld [vmem:[%s189_s6 + $0x28] sm:$0xff] (%p31_p3)  ;;  %203 = vst [vmem:[%s186_s7] sm:$0xff] (%p31_p3), %v202_v0  ;;  %205 = vst [vmem:[%s186_s7 + $0x8] sm:$0xff] (%p31_p3), %v204_v1 }
  0x13   : > { %v210_v4 = vld [vmem:[%s189_s6 + $0x40] sm:$0xff] (%p31_p3)  ;;  %v212_v5 = vld [vmem:[%s189_s6 + $0x48] sm:$0xff] (%p31_p3)  ;;  %207 = vst [vmem:[%s186_s7 + $0x10] sm:$0xff] (%p31_p3), %v206_v2  ;;  %209 = vst [vmem:[%s186_s7 + $0x18] sm:$0xff] (%p31_p3), %v208_v3 }
  0x14   : > { %211 = vst [vmem:[%s186_s7 + $0x20] sm:$0xff] (%p31_p3), %v210_v4  ;;  %213 = vst [vmem:[%s186_s7 + $0x28] sm:$0xff] (%p31_p3), %v212_v5 }
  0x15 PF: > { %p3274_p5 = scmp.ge.s32.totalorder %s4616_s20, 1  ;;  %p226_p6 = scmp.lt.s32.totalorder %s4616_s20, 3 }
  0x17   : > { %p227_p7 = pnand %p3274_p5, %p226_p6 }
  0x18   : > { %v4006_v6 = vld [vmem:[%s5909_s1 + $0x404] ss:$16 sps:$4 sm:$0xff] (!%p227_p7)   ;;  %v4008_v7 = vld [vmem:[%s5909_s1 + $0x40c] ss:$16 sps:$4 sm:$0xff] (!%p227_p7)   ;;  %v4010_v8 = vld [vmem:[%s5909_s1 + $0x400] ss:$16 sps:$4 sm:$0xff] (!%p227_p7)  }
  0x19   : > { %230 = sbr.rel (%p227_p7) target bundleno = 631 (0x277), region = 59  ;;  %1191 = vmatprep.subr.bf16.mxu0 (!%p227_p7), %v4006_v6  ;;  %v4011_v9 = vld [vmem:[%s5909_s1 + $0x408] ss:$16 sps:$4 sm:$0xff] (!%p227_p7)   ;;  %1273 = vmatprep.subr.bf16.mxu1 (!%p227_p7), %v4008_v7  ;;  %v4012_v10 = vld [vmem:[%s5909_s1 + $0x424] ss:$16 sps:$4 sm:$0xff] (!%p227_p7)   ;;  %s233_s6 = sand.u32 (!%p227_p7), 1, %s4608_s18  }
  0x1a   : > { %1192 = vmatpush1.bf16.msra.mxu0 (!%p227_p7), %v4010_v8  ;;  %1274 = vmatpush1.bf16.msra.mxu1 (!%p227_p7), %v4011_v9  ;;  %v4014_v11 = vld [vmem:[%s5909_s1 + $0x42c] ss:$16 sps:$4 sm:$0xff] (!%p227_p7)   ;;  %v4016_v12 = vld [vmem:[%s5909_s1 + $0x420] ss:$16 sps:$4 sm:$0xff] (!%p227_p7)   ;;  %v4017_v13 = vld [vmem:[%s5909_s1 + $0x428] ss:$16 sps:$4 sm:$0xff] (!%p227_p7)  }
  0x1b   : > { %1193 = vmatprep.subr.bf16.mxu0 (!%p227_p7), %v4012_v10  ;;  %1275 = vmatprep.subr.bf16.mxu1 (!%p227_p7), %v4014_v11  ;;  %v4018_v14 = vld [vmem:[%s5909_s1 + $0x444] ss:$16 sps:$4 sm:$0xff] (!%p227_p7)   ;;  %v4020_v15 = vld [vmem:[%s5909_s1 + $0x44c] ss:$16 sps:$4 sm:$0xff] (!%p227_p7)   ;;  %v4022_v16 = vld [vmem:[%s5909_s1 + $0x440] ss:$16 sps:$4 sm:$0xff] (!%p227_p7)  }
  0x1c   : > { %v4023_v17 = vld [vmem:[%s5909_s1 + $0x448] ss:$16 sps:$4 sm:$0xff] (!%p227_p7)   ;;  %v4024_v18 = vld [vmem:[%s5909_s1 + $0x464] ss:$16 sps:$4 sm:$0xff] (!%p227_p7)   ;;  %v4026_v19 = vld [vmem:[%s5909_s1 + $0x46c] ss:$16 sps:$4 sm:$0xff] (!%p227_p7)  }
  0x1d   : > { %v4028_v20 = vld [vmem:[%s5909_s1 + $0x460] ss:$16 sps:$4 sm:$0xff] (!%p227_p7)   ;;  %v4029_v21 = vld [vmem:[%s5909_s1 + $0x468] ss:$16 sps:$4 sm:$0xff] (!%p227_p7)   ;;  %v4030_v22 = vld [vmem:[%s5909_s1 + $0x484] ss:$16 sps:$4 sm:$0xff] (!%p227_p7)  }
  0x1e   : > { %1194 = vmatpush1.bf16.msra.mxu0 (!%p227_p7), %v4016_v12  ;;  %1276 = vmatpush1.bf16.msra.mxu1 (!%p227_p7), %v4017_v13  ;;  %v4032_v23 = vld [vmem:[%s5909_s1 + $0x48c] ss:$16 sps:$4 sm:$0xff] (!%p227_p7)   ;;  %v4034_v24 = vld [vmem:[%s5909_s1 + $0x480] ss:$16 sps:$4 sm:$0xff] (!%p227_p7)   ;;  %v4035_v25 = vld [vmem:[%s5909_s1 + $0x488] ss:$16 sps:$4 sm:$0xff] (!%p227_p7)  }
  0x1f   : > { %1195 = vmatprep.subr.bf16.mxu0 (!%p227_p7), %v4018_v14  ;;  %1277 = vmatprep.subr.bf16.mxu1 (!%p227_p7), %v4020_v15  ;;  %v4036_v26 = vld [vmem:[%s5909_s1 + $0x4a4] ss:$16 sps:$4 sm:$0xff] (!%p227_p7)   ;;  %v4038_v27 = vld [vmem:[%s5909_s1 + $0x4ac] ss:$16 sps:$4 sm:$0xff] (!%p227_p7)   ;;  %v4040_v28 = vld [vmem:[%s5909_s1 + $0x4a0] ss:$16 sps:$4 sm:$0xff] (!%p227_p7)  }
  0x20   : > { %v4041_v29 = vld [vmem:[%s5909_s1 + $0x4a8] ss:$16 sps:$4 sm:$0xff]   ;;  %v4042_v30 = vld [vmem:[%s5909_s1 + $0x4c4] ss:$16 sps:$4 sm:$0xff]   ;;  %v4044_v31 = vld [vmem:[%s5909_s1 + $0x4cc] ss:$16 sps:$4 sm:$0xff]  }
  0x21   : > { %v4046_v32 = vld [vmem:[%s5909_s1 + $0x4c0] ss:$16 sps:$4 sm:$0xff]   ;;  %v4047_v33 = vld [vmem:[%s5909_s1 + $0x4c8] ss:$16 sps:$4 sm:$0xff]   ;;  %v4048_v34 = vld [vmem:[%s5909_s1 + $0x4e4] ss:$16 sps:$4 sm:$0xff]  }
  0x22   : > { %1196 = vmatpush1.bf16.msra.mxu0 %v4022_v16  ;;  %1278 = vmatpush1.bf16.msra.mxu1 %v4023_v17  ;;  %v4050_v35 = vld [vmem:[%s5909_s1 + $0x4ec] ss:$16 sps:$4 sm:$0xff]   ;;  %v4052_v36 = vld [vmem:[%s5909_s1 + $0x4e0] ss:$16 sps:$4 sm:$0xff]   ;;  %v4053_v37 = vld [vmem:[%s5909_s1 + $0x4e8] ss:$16 sps:$4 sm:$0xff]  }
  0x23   : > { %1197 = vmatprep.subr.bf16.mxu0 %v4024_v18  ;;  %1279 = vmatprep.subr.bf16.mxu1 %v4026_v19  ;;  %v4054_v38 = vld [vmem:[%s5909_s1 + $0x504] ss:$16 sps:$4 sm:$0xff]   ;;  %v4056_v39 = vld [vmem:[%s5909_s1 + $0x50c] ss:$16 sps:$4 sm:$0xff]   ;;  %v4058_v40 = vld [vmem:[%s5909_s1 + $0x500] ss:$16 sps:$4 sm:$0xff]  }
  0x24   : > { %v4059_v41 = vld [vmem:[%s5909_s1 + $0x508] ss:$16 sps:$4 sm:$0xff]   ;;  %v4060_v42 = vld [vmem:[%s5909_s1 + $0x524] ss:$16 sps:$4 sm:$0xff]   ;;  %v4062_v43 = vld [vmem:[%s5909_s1 + $0x52c] ss:$16 sps:$4 sm:$0xff]  }
  0x25   : > { %v4064_v44 = vld [vmem:[%s5909_s1 + $0x520] ss:$16 sps:$4 sm:$0xff]   ;;  %s3981_s11 = smul.u32 48, %s233_s6  ;;  %v4065_v45 = vld [vmem:[%s5909_s1 + $0x528] ss:$16 sps:$4 sm:$0xff]   ;;  %p265_p8 = scmp.lt.s32.totalorder %s3268_s21, 1 }
  0x26   : > { %1198 = vmatpush1.bf16.msra.mxu0 %v4028_v20  ;;  %1280 = vmatpush1.bf16.msra.mxu1 %v4029_v21  ;;  %v4066_v46 = vld [vmem:[%s5909_s1 + $0x544] ss:$16 sps:$4 sm:$0xff]   ;;  %v4068_v47 = vld [vmem:[%s5909_s1 + $0x54c] ss:$16 sps:$4 sm:$0xff]   ;;  %v4070_v48 = vld [vmem:[%s5909_s1 + $0x540] ss:$16 sps:$4 sm:$0xff]  }
  0x27   : > { %1199 = vmatprep.subr.bf16.mxu0 %v4030_v22  ;;  %1281 = vmatprep.subr.bf16.mxu1 %v4032_v23  ;;  %v4071_v49 = vld [vmem:[%s5909_s1 + $0x548] ss:$16 sps:$4 sm:$0xff]   ;;  %v4072_v50 = vld [vmem:[%s5909_s1 + $0x564] ss:$16 sps:$4 sm:$0xff]   ;;  %v4074_v51 = vld [vmem:[%s5909_s1 + $0x56c] ss:$16 sps:$4 sm:$0xff]  }
  0x28   : > { %s4823_s6 = scalar_lea.vmem [#allocation2], %s3981_s11  ;;  %v4076_v53 = vld [vmem:[%s5909_s1 + $0x560] ss:$16 sps:$4 sm:$0xff]   ;;  %v4077_v55 = vld [vmem:[%s5909_s1 + $0x568] ss:$16 sps:$4 sm:$0xff]   ;;  %s5918_s21 = smov (!%p265_p8, %s3268_s21), 1 }
  0x29   : > { %v3279_v52 = vld [vmem:[%s4823_s6 + $0x10] sm:$0xff]  ;;  %v4080_v57 = vld [vmem:[%s5909_s1 + $0x58c] ss:$16 sps:$4 sm:$0xff]   ;;  %v4083_v59 = vld [vmem:[%s5909_s1 + $0x588] ss:$16 sps:$4 sm:$0xff]   ;;  %s3938_s13 = sshll.u32 %s5918_s21, 5 }
  0x2a   : > { %1200 = vmatpush1.bf16.msra.mxu0 %v4034_v24  ;;  %1282 = vmatpush1.bf16.msra.mxu1 %v4035_v25  ;;  %v3410_v54 = vcombine.high %v3279_v52, %v3279_v52  ;;  %v4078_v56 = vld [vmem:[%s5909_s1 + $0x584] ss:$16 sps:$4 sm:$0xff]   ;;  %v4082_v58 = vld [vmem:[%s5909_s1 + $0x580] ss:$16 sps:$4 sm:$0xff]   ;;  %v4086_v61 = vld [vmem:[%s5909_s1 + $0x5ac] ss:$16 sps:$4 sm:$0xff]   ;;  %v3409_v10 = vcombine.low %v3279_v52, %v3279_v52  ;;  %s269_s18 = scalar_lea.vmem %s5912_s4, %s3938_s13  ;;  %s274_s24 = scalar_lea.vmem %s5913_s5, %s3938_s13 }
  0x2b   : > { %1201 = vmatprep.subr.bf16.mxu0 %v4036_v26  ;;  %1283 = vmatprep.subr.bf16.mxu1 %v4038_v27  ;;  %v4084_v60 = vld [vmem:[%s5909_s1 + $0x5a4] ss:$16 sps:$4 sm:$0xff]   ;;  %v4088_v62 = vld [vmem:[%s5909_s1 + $0x5a0] ss:$16 sps:$4 sm:$0xff]   ;;  %v4089_v63 = vld [vmem:[%s5909_s1 + $0x5a8] ss:$16 sps:$4 sm:$0xff]  }
  0x2c   : > { %1223 = vmatprep.mubr.bf16.mxu0 %v3410_v54  ;;  %1305 = vmatprep.mubr.bf16.mxu1 %v3410_v54  ;;  %v4090_v0 = vld [vmem:[%s5909_s1 + $0x5c4] ss:$16 sps:$4 sm:$0xff]   ;;  %v4092_v1 = vld [vmem:[%s5909_s1 + $0x5cc] ss:$16 sps:$4 sm:$0xff]   ;;  %v4094_v2 = vld [vmem:[%s5909_s1 + $0x5c0] ss:$16 sps:$4 sm:$0xff]  }
  0x2d   : > { %v4095_v3 = vld [vmem:[%s5909_s1 + $0x5c8] ss:$16 sps:$4 sm:$0xff]   ;;  %v4096_v4 = vld [vmem:[%s5909_s1 + $0x5e4] ss:$16 sps:$4 sm:$0xff]   ;;  %v4098_v5 = vld [vmem:[%s5909_s1 + $0x5ec] ss:$16 sps:$4 sm:$0xff]  }
  0x2e   : > { %1202 = vmatpush1.bf16.msra.mxu0 %v4040_v28  ;;  %1284 = vmatpush1.bf16.msra.mxu1 %v4041_v29  ;;  %v4100_v6 = vld [vmem:[%s5909_s1 + $0x5e0] ss:$16 sps:$4 sm:$0xff]   ;;  %v4101_v7 = vld [vmem:[%s5909_s1 + $0x5e8] ss:$16 sps:$4 sm:$0xff]   ;;  %v4106_v8 = vld [vmem:[%s5909_s1 + $0x604] ss:$16 sps:$4 sm:$0xff]  }
  0x2f   : > { %1203 = vmatprep.subr.bf16.mxu0 %v4042_v30  ;;  %1285 = vmatprep.subr.bf16.mxu1 %v4044_v31  ;;  %v4109_v9 = vld [vmem:[%s5909_s1 + $0x60c] ss:$16 sps:$4 sm:$0xff]   ;;  %v4104_v11 = vld [vmem:[%s5909_s1 + $0x600] ss:$16 sps:$4 sm:$0xff]   ;;  %v4107_v12 = vld [vmem:[%s5909_s1 + $0x608] ss:$16 sps:$4 sm:$0xff]  }
  0x30   : > { %v4112_v13 = vld [vmem:[%s5909_s1 + $0x624] ss:$16 sps:$4 sm:$0xff]   ;;  %v4115_v14 = vld [vmem:[%s5909_s1 + $0x62c] ss:$16 sps:$4 sm:$0xff]   ;;  %v4110_v15 = vld [vmem:[%s5909_s1 + $0x620] ss:$16 sps:$4 sm:$0xff]  }
  0x31   : > { %v4113_v16 = vld [vmem:[%s5909_s1 + $0x628] ss:$16 sps:$4 sm:$0xff]   ;;  %v4118_v17 = vld [vmem:[%s5909_s1 + $0x644] ss:$16 sps:$4 sm:$0xff]   ;;  %v4121_v18 = vld [vmem:[%s5909_s1 + $0x64c] ss:$16 sps:$4 sm:$0xff]  }
  0x32   : > { %1204 = vmatpush1.bf16.msra.mxu0 %v4046_v32  ;;  %1286 = vmatpush1.bf16.msra.mxu1 %v4047_v33  ;;  %v4116_v19 = vld [vmem:[%s5909_s1 + $0x640] ss:$16 sps:$4 sm:$0xff]   ;;  %v4119_v20 = vld [vmem:[%s5909_s1 + $0x648] ss:$16 sps:$4 sm:$0xff]   ;;  %v4124_v21 = vld [vmem:[%s5909_s1 + $0x664] ss:$16 sps:$4 sm:$0xff]  }
  0x33   : > { %1205 = vmatprep.subr.bf16.mxu0 %v4048_v34  ;;  %1287 = vmatprep.subr.bf16.mxu1 %v4050_v35  ;;  %v4127_v22 = vld [vmem:[%s5909_s1 + $0x66c] ss:$16 sps:$4 sm:$0xff]   ;;  %v4122_v23 = vld [vmem:[%s5909_s1 + $0x660] ss:$16 sps:$4 sm:$0xff]   ;;  %v4125_v24 = vld [vmem:[%s5909_s1 + $0x668] ss:$16 sps:$4 sm:$0xff]  }
  0x34   : > { %v4130_v25 = vld [vmem:[%s5909_s1 + $0x684] ss:$16 sps:$4 sm:$0xff]   ;;  %v4133_v26 = vld [vmem:[%s5909_s1 + $0x68c] ss:$16 sps:$4 sm:$0xff]   ;;  %v4128_v27 = vld [vmem:[%s5909_s1 + $0x680] ss:$16 sps:$4 sm:$0xff]  }
  0x35   : > { %v4131_v28 = vld [vmem:[%s5909_s1 + $0x688] ss:$16 sps:$4 sm:$0xff]   ;;  %v4136_v29 = vld [vmem:[%s5909_s1 + $0x6a4] ss:$16 sps:$4 sm:$0xff]   ;;  %v4139_v30 = vld [vmem:[%s5909_s1 + $0x6ac] ss:$16 sps:$4 sm:$0xff]  }
  0x36   : > { %1206 = vmatpush1.bf16.msra.mxu0 %v4052_v36  ;;  %1288 = vmatpush1.bf16.msra.mxu1 %v4053_v37  ;;  %v4134_v31 = vld [vmem:[%s5909_s1 + $0x6a0] ss:$16 sps:$4 sm:$0xff]   ;;  %v4137_v32 = vld [vmem:[%s5909_s1 + $0x6a8] ss:$16 sps:$4 sm:$0xff]   ;;  %v4142_v33 = vld [vmem:[%s5909_s1 + $0x6c4] ss:$16 sps:$4 sm:$0xff]  }
  0x37   : > { %1207 = vmatprep.subr.bf16.mxu0 %v4054_v38  ;;  %1289 = vmatprep.subr.bf16.mxu1 %v4056_v39  ;;  %v4145_v34 = vld [vmem:[%s5909_s1 + $0x6cc] ss:$16 sps:$4 sm:$0xff]   ;;  %v4140_v37 = vld [vmem:[%s5909_s1 + $0x6c0] ss:$16 sps:$4 sm:$0xff]   ;;  %v4143_v38 = vld [vmem:[%s5909_s1 + $0x6c8] ss:$16 sps:$4 sm:$0xff]  }
  0x38   : > { %v4959_v35 = vld [vmem:[%s4823_s6 + $0x18] sm:$0xff]  ;;  %v4148_v39 = vld [vmem:[%s5909_s1 + $0x6e4] ss:$16 sps:$4 sm:$0xff]  }
  0x39   : > { %v3412_v36 = vcombine.high %v4959_v35, %v4959_v35  ;;  %v4169_v52 = vld [vmem:[%s5909_s1 + $0x74c] ss:$16 sps:$4 sm:$0xff]   ;;  %v4167_v54 = vld [vmem:[%s5909_s1 + $0x748] ss:$16 sps:$4 sm:$0xff]  }
  0x3a   : > { %1208 = vmatpush1.bf16.msra.mxu0 %v4058_v40  ;;  %1290 = vmatpush1.bf16.msra.mxu1 %v4059_v41  ;;  %v4151_v40 = vld [vmem:[%s5909_s1 + $0x6ec] ss:$16 sps:$4 sm:$0xff]   ;;  %v4146_v41 = vld [vmem:[%s5909_s1 + $0x6e0] ss:$16 sps:$4 sm:$0xff]  }
  0x3b   : > { %1209 = vmatprep.subr.bf16.mxu0 %v4060_v42  ;;  %1291 = vmatprep.subr.bf16.mxu1 %v4062_v43  ;;  %v4149_v42 = vld [vmem:[%s5909_s1 + $0x6e8] ss:$16 sps:$4 sm:$0xff]   ;;  %v4154_v43 = vld [vmem:[%s5909_s1 + $0x704] ss:$16 sps:$4 sm:$0xff]  }
  0x3e   : > { %1210 = vmatpush1.bf16.msra.mxu0 %v4064_v44  ;;  %1292 = vmatpush1.bf16.msra.mxu1 %v4065_v45  ;;  %v4157_v44 = vld [vmem:[%s5909_s1 + $0x70c] ss:$16 sps:$4 sm:$0xff]   ;;  %v4152_v45 = vld [vmem:[%s5909_s1 + $0x700] ss:$16 sps:$4 sm:$0xff]  }
  0x3f   : > { %1211 = vmatprep.subr.bf16.mxu0 %v4066_v46  ;;  %1293 = vmatprep.subr.bf16.mxu1 %v4068_v47  ;;  %v4155_v46 = vld [vmem:[%s5909_s1 + $0x708] ss:$16 sps:$4 sm:$0xff]   ;;  %v4160_v47 = vld [vmem:[%s5909_s1 + $0x724] ss:$16 sps:$4 sm:$0xff]  }
  0x42   : > { %1212 = vmatpush1.bf16.msra.mxu0 %v4070_v48  ;;  %1294 = vmatpush1.bf16.msra.mxu1 %v4071_v49  ;;  %v4163_v48 = vld [vmem:[%s5909_s1 + $0x72c] ss:$16 sps:$4 sm:$0xff]   ;;  %v4158_v49 = vld [vmem:[%s5909_s1 + $0x720] ss:$16 sps:$4 sm:$0xff]  }
  0x43   : > { %1213 = vmatprep.subr.bf16.mxu0 %v4072_v50  ;;  %1295 = vmatprep.subr.bf16.mxu1 %v4074_v51  ;;  %v4161_v50 = vld [vmem:[%s5909_s1 + $0x728] ss:$16 sps:$4 sm:$0xff]   ;;  %v4166_v51 = vld [vmem:[%s5909_s1 + $0x744] ss:$16 sps:$4 sm:$0xff]  }
  0x46   : > { %1214 = vmatpush1.bf16.msra.mxu0 %v4076_v53  ;;  %1296 = vmatpush1.bf16.msra.mxu1 %v4077_v55  ;;  %v4164_v53 = vld [vmem:[%s5909_s1 + $0x740] ss:$16 sps:$4 sm:$0xff]   ;;  %v4172_v55 = vld [vmem:[%s5909_s1 + $0x764] ss:$16 sps:$4 sm:$0xff]  }
  0x47   : > { %1215 = vmatprep.subr.bf16.mxu0 %v4078_v56  ;;  %1297 = vmatprep.subr.bf16.mxu1 %v4080_v57  ;;  %v4175_v56 = vld [vmem:[%s5909_s1 + $0x76c] ss:$16 sps:$4 sm:$0xff]   ;;  %v4170_v57 = vld [vmem:[%s5909_s1 + $0x760] ss:$16 sps:$4 sm:$0xff]  }
  0x4a   : > { %1216 = vmatpush1.bf16.msra.mxu0 %v4082_v58  ;;  %1298 = vmatpush1.bf16.msra.mxu1 %v4083_v59  ;;  %v4173_v58 = vld [vmem:[%s5909_s1 + $0x768] ss:$16 sps:$4 sm:$0xff]   ;;  %v4178_v59 = vld [vmem:[%s5909_s1 + $0x784] ss:$16 sps:$4 sm:$0xff]  }
  0x4b   : > { %1217 = vmatprep.subr.bf16.mxu0 %v4084_v60  ;;  %1299 = vmatprep.subr.bf16.mxu1 %v4086_v61  ;;  %v4181_v60 = vld [vmem:[%s5909_s1 + $0x78c] ss:$16 sps:$4 sm:$0xff]   ;;  %v4176_v61 = vld [vmem:[%s5909_s1 + $0x780] ss:$16 sps:$4 sm:$0xff]  }
  0x4e   : > { %1218 = vmatpush1.bf16.msra.mxu0 %v4088_v62  ;;  %1300 = vmatpush1.bf16.msra.mxu1 %v4089_v63  ;;  %v4179_v62 = vld [vmem:[%s5909_s1 + $0x788] ss:$16 sps:$4 sm:$0xff]   ;;  %v4184_v63 = vld [vmem:[%s5909_s1 + $0x7a4] ss:$16 sps:$4 sm:$0xff]  }
  0x4f   : > { %1219 = vmatprep.subr.bf16.mxu0 %v4090_v0  ;;  %1301 = vmatprep.subr.bf16.mxu1 %v4092_v1  ;;  %v4187_v0 = vld [vmem:[%s5909_s1 + $0x7ac] ss:$16 sps:$4 sm:$0xff]   ;;  %v4182_v1 = vld [vmem:[%s5909_s1 + $0x7a0] ss:$16 sps:$4 sm:$0xff]  }
  0x52   : > { %1220 = vmatpush1.bf16.msra.mxu0 %v4094_v2  ;;  %1302 = vmatpush1.bf16.msra.mxu1 %v4095_v3  ;;  %v4185_v2 = vld [vmem:[%s5909_s1 + $0x7a8] ss:$16 sps:$4 sm:$0xff]   ;;  %v4190_v3 = vld [vmem:[%s5909_s1 + $0x7c4] ss:$16 sps:$4 sm:$0xff]  }
  0x53   : > { %1221 = vmatprep.subr.bf16.mxu0 %v4096_v4  ;;  %1303 = vmatprep.subr.bf16.mxu1 %v4098_v5  ;;  %v4193_v4 = vld [vmem:[%s5909_s1 + $0x7cc] ss:$16 sps:$4 sm:$0xff]   ;;  %v4188_v5 = vld [vmem:[%s5909_s1 + $0x7c0] ss:$16 sps:$4 sm:$0xff]  }
  0x56   : > { %1222 = vmatpush1.bf16.msra.mxu0 %v4100_v6  ;;  %1304 = vmatpush1.bf16.msra.mxu1 %v4101_v7  ;;  %v4191_v6 = vld [vmem:[%s5909_s1 + $0x7c8] ss:$16 sps:$4 sm:$0xff]   ;;  %v4196_v7 = vld [vmem:[%s5909_s1 + $0x7e4] ss:$16 sps:$4 sm:$0xff]  }
  0x57   : > { %1232 = vmatprep.subr.bf16.mxu0 %v4106_v8  ;;  %1314 = vmatprep.subr.bf16.mxu1 %v4109_v9  ;;  %v4199_v8 = vld [vmem:[%s5909_s1 + $0x7ec] ss:$16 sps:$4 sm:$0xff]   ;;  %v4194_v9 = vld [vmem:[%s5909_s1 + $0x7e0] ss:$16 sps:$4 sm:$0xff]  }
  0x59   : > { %1224 = vmatmul.mubr.bf16.vlgmr.msra.gmra.mrb[0].mxu0 %v3409_v10  ;;  %1306 = vmatmul.mubr.bf16.vlgmr.msra.gmra.mrb[0].mxu1 %v3409_v10  ;;  %v4197_v10 = vld [vmem:[%s5909_s1 + $0x7e8] ss:$16 sps:$4 sm:$0xff]  }
  0x5a   : > { %1233 = vmatpush1.bf16.msra.mxu0 %v4104_v11  ;;  %1315 = vmatpush1.bf16.msra.mxu1 %v4107_v12  ;;  %v4204_v11 = vld [vmem:[%s5909_s1 + $0x4] ss:$16 sps:$4 sm:$0xff]   ;;  %v4207_v12 = vld [vmem:[%s5909_s1 + $0xc] ss:$16 sps:$4 sm:$0xff]  }
  0x5b   : > { %1234 = vmatprep.subr.bf16.mxu0 %v4112_v13  ;;  %1316 = vmatprep.subr.bf16.mxu1 %v4115_v14  ;;  %v3411_v13 = vcombine.low %v4959_v35, %v4959_v35  ;;  %v4202_v14 = vld [vmem:[%s5909_s1] ss:$16 sps:$4 sm:$0xff]   ;;  %v4237_v35 = vld [vmem:[%s5909_s1 + $0xac] ss:$16 sps:$4 sm:$0xff]  }
  0x5c   : > { %1264 = vmatprep.mubr.bf16.mxu0 %v3412_v36  ;;  %1346 = vmatprep.mubr.bf16.mxu1 %v3412_v36  ;;  %v4232_v36 = vld [vmem:[%s5909_s1 + $0xa0] ss:$16 sps:$4 sm:$0xff]  }
  0x5e   : > { %1235 = vmatpush1.bf16.msra.mxu0 %v4110_v15  ;;  %1317 = vmatpush1.bf16.msra.mxu1 %v4113_v16  ;;  %v4205_v15 = vld [vmem:[%s5909_s1 + $0x8] ss:$16 sps:$4 sm:$0xff]   ;;  %v4210_v16 = vld [vmem:[%s5909_s1 + $0x24] ss:$16 sps:$4 sm:$0xff]  }
  0x5f   : > { %1236 = vmatprep.subr.bf16.mxu0 %v4118_v17  ;;  %1318 = vmatprep.subr.bf16.mxu1 %v4121_v18  ;;  %v5095_v17 = vld [vmem:[%s4823_s6] sm:$0xff]  ;;  %v4213_v18 = vld [vmem:[%s5909_s1 + $0x2c] ss:$16 sps:$4 sm:$0xff]  }
  0x62   : > { %1237 = vmatpush1.bf16.msra.mxu0 %v4116_v19  ;;  %1319 = vmatpush1.bf16.msra.mxu1 %v4119_v20  ;;  %v3542_v19 = vcombine.high %v5095_v17, %v5095_v17  ;;  %v4208_v20 = vld [vmem:[%s5909_s1 + $0x20] ss:$16 sps:$4 sm:$0xff]  }
  0x63   : > { %1238 = vmatprep.subr.bf16.mxu0 %v4124_v21  ;;  %1320 = vmatprep.subr.bf16.mxu1 %v4127_v22  ;;  %v4211_v21 = vld [vmem:[%s5909_s1 + $0x28] ss:$16 sps:$4 sm:$0xff]   ;;  %v4216_v22 = vld [vmem:[%s5909_s1 + $0x44] ss:$16 sps:$4 sm:$0xff]  }
  0x66   : > { %1239 = vmatpush1.bf16.msra.mxu0 %v4122_v23  ;;  %1321 = vmatpush1.bf16.msra.mxu1 %v4125_v24  ;;  %v4219_v23 = vld [vmem:[%s5909_s1 + $0x4c] ss:$16 sps:$4 sm:$0xff]   ;;  %v4214_v24 = vld [vmem:[%s5909_s1 + $0x40] ss:$16 sps:$4 sm:$0xff]  }
  0x67   : > { %1240 = vmatprep.subr.bf16.mxu0 %v4130_v25  ;;  %1322 = vmatprep.subr.bf16.mxu1 %v4133_v26  ;;  %v4217_v25 = vld [vmem:[%s5909_s1 + $0x48] ss:$16 sps:$4 sm:$0xff]   ;;  %v4222_v26 = vld [vmem:[%s5909_s1 + $0x64] ss:$16 sps:$4 sm:$0xff]  }
  0x6a   : > { %1241 = vmatpush1.bf16.msra.mxu0 %v4128_v27  ;;  %1323 = vmatpush1.bf16.msra.mxu1 %v4131_v28  ;;  %v4225_v27 = vld [vmem:[%s5909_s1 + $0x6c] ss:$16 sps:$4 sm:$0xff]   ;;  %v4220_v28 = vld [vmem:[%s5909_s1 + $0x60] ss:$16 sps:$4 sm:$0xff]  }
  0x6b   : > { %1242 = vmatprep.subr.bf16.mxu0 %v4136_v29  ;;  %1324 = vmatprep.subr.bf16.mxu1 %v4139_v30  ;;  %v4223_v29 = vld [vmem:[%s5909_s1 + $0x68] ss:$16 sps:$4 sm:$0xff]   ;;  %v4228_v30 = vld [vmem:[%s5909_s1 + $0x84] ss:$16 sps:$4 sm:$0xff]  }
  0x6e   : > { %1243 = vmatpush1.bf16.msra.mxu0 %v4134_v31  ;;  %1325 = vmatpush1.bf16.msra.mxu1 %v4137_v32  ;;  %v4231_v31 = vld [vmem:[%s5909_s1 + $0x8c] ss:$16 sps:$4 sm:$0xff]   ;;  %v4226_v32 = vld [vmem:[%s5909_s1 + $0x80] ss:$16 sps:$4 sm:$0xff]  }
  0x6f   : > { %1244 = vmatprep.subr.bf16.mxu0 %v4142_v33  ;;  %1326 = vmatprep.subr.bf16.mxu1 %v4145_v34  ;;  %v4229_v33 = vld [vmem:[%s5909_s1 + $0x88] ss:$16 sps:$4 sm:$0xff]   ;;  %v4234_v34 = vld [vmem:[%s5909_s1 + $0xa4] ss:$16 sps:$4 sm:$0xff]  }
  0x72   : > { %1245 = vmatpush1.bf16.msra.mxu0 %v4140_v37  ;;  %1327 = vmatpush1.bf16.msra.mxu1 %v4143_v38  ;;  %v4235_v37 = vld [vmem:[%s5909_s1 + $0xa8] ss:$16 sps:$4 sm:$0xff]   ;;  %v4240_v38 = vld [vmem:[%s5909_s1 + $0xc4] ss:$16 sps:$4 sm:$0xff]  }
  0x73   : > { %1246 = vmatprep.subr.bf16.mxu0 %v4148_v39  ;;  %1328 = vmatprep.subr.bf16.mxu1 %v4151_v40  ;;  %v4243_v39 = vld [vmem:[%s5909_s1 + $0xcc] ss:$16 sps:$4 sm:$0xff]   ;;  %v4238_v40 = vld [vmem:[%s5909_s1 + $0xc0] ss:$16 sps:$4 sm:$0xff]  }
  0x76   : > { %1247 = vmatpush1.bf16.msra.mxu0 %v4146_v41  ;;  %1329 = vmatpush1.bf16.msra.mxu1 %v4149_v42  ;;  %v4241_v41 = vld [vmem:[%s5909_s1 + $0xc8] ss:$16 sps:$4 sm:$0xff]   ;;  %v4246_v42 = vld [vmem:[%s5909_s1 + $0xe4] ss:$16 sps:$4 sm:$0xff]  }
  0x77   : > { %1248 = vmatprep.subr.bf16.mxu0 %v4154_v43  ;;  %1330 = vmatprep.subr.bf16.mxu1 %v4157_v44  ;;  %v4249_v43 = vld [vmem:[%s5909_s1 + $0xec] ss:$16 sps:$4 sm:$0xff]   ;;  %v4244_v44 = vld [vmem:[%s5909_s1 + $0xe0] ss:$16 sps:$4 sm:$0xff]  }
  0x7a   : > { %1249 = vmatpush1.bf16.msra.mxu0 %v4152_v45  ;;  %1331 = vmatpush1.bf16.msra.mxu1 %v4155_v46  ;;  %v4247_v45 = vld [vmem:[%s5909_s1 + $0xe8] ss:$16 sps:$4 sm:$0xff]   ;;  %v4252_v46 = vld [vmem:[%s5909_s1 + $0x104] ss:$16 sps:$4 sm:$0xff]  }
  0x7b   : > { %1250 = vmatprep.subr.bf16.mxu0 %v4160_v47  ;;  %1332 = vmatprep.subr.bf16.mxu1 %v4163_v48  ;;  %v4255_v47 = vld [vmem:[%s5909_s1 + $0x10c] ss:$16 sps:$4 sm:$0xff]   ;;  %v4250_v48 = vld [vmem:[%s5909_s1 + $0x100] ss:$16 sps:$4 sm:$0xff]  }
  0x7e   : > { %1251 = vmatpush1.bf16.msra.mxu0 %v4158_v49  ;;  %1333 = vmatpush1.bf16.msra.mxu1 %v4161_v50  ;;  %v4253_v49 = vld [vmem:[%s5909_s1 + $0x108] ss:$16 sps:$4 sm:$0xff]   ;;  %v4258_v50 = vld [vmem:[%s5909_s1 + $0x124] ss:$16 sps:$4 sm:$0xff]  }
  0x7f   : > { %1252 = vmatprep.subr.bf16.mxu0 %v4166_v51  ;;  %1334 = vmatprep.subr.bf16.mxu1 %v4169_v52  ;;  %v4261_v51 = vld [vmem:[%s5909_s1 + $0x12c] ss:$16 sps:$4 sm:$0xff]   ;;  %v4256_v52 = vld [vmem:[%s5909_s1 + $0x120] ss:$16 sps:$4 sm:$0xff]  }
  0x82   : > { %1253 = vmatpush1.bf16.msra.mxu0 %v4164_v53  ;;  %1335 = vmatpush1.bf16.msra.mxu1 %v4167_v54  ;;  %v4259_v53 = vld [vmem:[%s5909_s1 + $0x128] ss:$16 sps:$4 sm:$0xff]   ;;  %v4264_v54 = vld [vmem:[%s5909_s1 + $0x144] ss:$16 sps:$4 sm:$0xff]  }
  0x83   : > { %1254 = vmatprep.subr.bf16.mxu0 %v4172_v55  ;;  %1336 = vmatprep.subr.bf16.mxu1 %v4175_v56  ;;  %v4267_v55 = vld [vmem:[%s5909_s1 + $0x14c] ss:$16 sps:$4 sm:$0xff]   ;;  %v4262_v56 = vld [vmem:[%s5909_s1 + $0x140] ss:$16 sps:$4 sm:$0xff]  }
  0x86   : > { %1255 = vmatpush1.bf16.msra.mxu0 %v4170_v57  ;;  %1337 = vmatpush1.bf16.msra.mxu1 %v4173_v58  ;;  %v4265_v57 = vld [vmem:[%s5909_s1 + $0x148] ss:$16 sps:$4 sm:$0xff]   ;;  %v4270_v58 = vld [vmem:[%s5909_s1 + $0x164] ss:$16 sps:$4 sm:$0xff]  }
  0x87   : > { %1256 = vmatprep.subr.bf16.mxu0 %v4178_v59  ;;  %1338 = vmatprep.subr.bf16.mxu1 %v4181_v60  ;;  %v4273_v59 = vld [vmem:[%s5909_s1 + $0x16c] ss:$16 sps:$4 sm:$0xff]   ;;  %v4268_v60 = vld [vmem:[%s5909_s1 + $0x160] ss:$16 sps:$4 sm:$0xff]  }
  0x8a   : > { %1257 = vmatpush1.bf16.msra.mxu0 %v4176_v61  ;;  %1339 = vmatpush1.bf16.msra.mxu1 %v4179_v62  ;;  %v4271_v61 = vld [vmem:[%s5909_s1 + $0x168] ss:$16 sps:$4 sm:$0xff]   ;;  %v4276_v62 = vld [vmem:[%s5909_s1 + $0x184] ss:$16 sps:$4 sm:$0xff]  }
  0x8b   : > { %1258 = vmatprep.subr.bf16.mxu0 %v4184_v63  ;;  %1340 = vmatprep.subr.bf16.mxu1 %v4187_v0  ;;  %v4279_v63 = vld [vmem:[%s5909_s1 + $0x18c] ss:$16 sps:$4 sm:$0xff]   ;;  %v4274_v0 = vld [vmem:[%s5909_s1 + $0x180] ss:$16 sps:$4 sm:$0xff]  }
  0x8e   : > { %1259 = vmatpush1.bf16.msra.mxu0 %v4182_v1  ;;  %1341 = vmatpush1.bf16.msra.mxu1 %v4185_v2  ;;  %v4277_v1 = vld [vmem:[%s5909_s1 + $0x188] ss:$16 sps:$4 sm:$0xff]   ;;  %v4282_v2 = vld [vmem:[%s5909_s1 + $0x1a4] ss:$16 sps:$4 sm:$0xff]  }
  0x8f   : > { %1260 = vmatprep.subr.bf16.mxu0 %v4190_v3  ;;  %1342 = vmatprep.subr.bf16.mxu1 %v4193_v4  ;;  %v4285_v3 = vld [vmem:[%s5909_s1 + $0x1ac] ss:$16 sps:$4 sm:$0xff]   ;;  %v4280_v4 = vld [vmem:[%s5909_s1 + $0x1a0] ss:$16 sps:$4 sm:$0xff]  }
  0x92   : > { %1261 = vmatpush1.bf16.msra.mxu0 %v4188_v5  ;;  %1343 = vmatpush1.bf16.msra.mxu1 %v4191_v6  ;;  %v4283_v5 = vld [vmem:[%s5909_s1 + $0x1a8] ss:$16 sps:$4 sm:$0xff]   ;;  %v4288_v6 = vld [vmem:[%s5909_s1 + $0x1c4] ss:$16 sps:$4 sm:$0xff]  }
  0x93   : > { %1262 = vmatprep.subr.bf16.mxu0 %v4196_v7  ;;  %1344 = vmatprep.subr.bf16.mxu1 %v4199_v8  ;;  %v4291_v7 = vld [vmem:[%s5909_s1 + $0x1cc] ss:$16 sps:$4 sm:$0xff]   ;;  %v4286_v8 = vld [vmem:[%s5909_s1 + $0x1c0] ss:$16 sps:$4 sm:$0xff]  }
  0x96   : > { %1263 = vmatpush1.bf16.msra.mxu0 %v4194_v9  ;;  %1345 = vmatpush1.bf16.msra.mxu1 %v4197_v10  ;;  %v4289_v9 = vld [vmem:[%s5909_s1 + $0x1c8] ss:$16 sps:$4 sm:$0xff]   ;;  %v4294_v10 = vld [vmem:[%s5909_s1 + $0x1e4] ss:$16 sps:$4 sm:$0xff]  }
  0x97   : > { %2009 = vmatprep.subr.bf16.mxu0 %v4204_v11  ;;  %2091 = vmatprep.subr.bf16.mxu1 %v4207_v12  ;;  %v4297_v11 = vld [vmem:[%s5909_s1 + $0x1ec] ss:$16 sps:$4 sm:$0xff]   ;;  %v4292_v12 = vld [vmem:[%s5909_s1 + $0x1e0] ss:$16 sps:$4 sm:$0xff]  }
  0x99   : > { %1265 = vmatmul.mubr.bf16.vlgmr.msra.gmra.mrb[0].mxu0 %v3411_v13  ;;  %1347 = vmatmul.mubr.bf16.vlgmr.msra.gmra.mrb[0].mxu1 %v3411_v13  ;;  %v4295_v13 = vld [vmem:[%s5909_s1 + $0x1e8] ss:$16 sps:$4 sm:$0xff]  }
  0x9a   : > { %2010 = vmatpush1.bf16.msra.mxu0 %v4202_v14  ;;  %2092 = vmatpush1.bf16.msra.mxu1 %v4205_v15  ;;  %v4302_v14 = vld [vmem:[%s5909_s1 + $0x204] ss:$16 sps:$4 sm:$0xff]   ;;  %v4305_v15 = vld [vmem:[%s5909_s1 + $0x20c] ss:$16 sps:$4 sm:$0xff]  }
  0x9b   : > { %2011 = vmatprep.subr.bf16.mxu0 %v4210_v16  ;;  %2093 = vmatprep.subr.bf16.mxu1 %v4213_v18  ;;  %v4300_v16 = vld [vmem:[%s5909_s1 + $0x200] ss:$16 sps:$4 sm:$0xff]   ;;  %v3541_v18 = vcombine.low %v5095_v17, %v5095_v17 }
  0x9c   : > { %2041 = vmatprep.mubr.bf16.mxu0 %v3542_v19  ;;  %2123 = vmatprep.mubr.bf16.mxu1 %v3542_v19  ;;  %v4303_v19 = vld [vmem:[%s5909_s1 + $0x208] ss:$16 sps:$4 sm:$0xff]  }
  0x9e   : > { %2012 = vmatpush1.bf16.msra.mxu0 %v4208_v20  ;;  %2094 = vmatpush1.bf16.msra.mxu1 %v4211_v21  ;;  %v5291_v20 = vld [vmem:[%s4823_s6 + $0x8] sm:$0xff]  ;;  %v4308_v21 = vld [vmem:[%s5909_s1 + $0x224] ss:$16 sps:$4 sm:$0xff]  }
  0x9f   : > { %2013 = vmatprep.subr.bf16.mxu0 %v4216_v22  ;;  %2095 = vmatprep.subr.bf16.mxu1 %v4219_v23  ;;  %v4311_v22 = vld [vmem:[%s5909_s1 + $0x22c] ss:$16 sps:$4 sm:$0xff]   ;;  %v3544_v17 = vcombine.high %v5291_v20, %v5291_v20  ;;  %v4306_v23 = vld [vmem:[%s5909_s1 + $0x220] ss:$16 sps:$4 sm:$0xff]  }
  0xa2   : > { %2014 = vmatpush1.bf16.msra.mxu0 %v4214_v24  ;;  %2096 = vmatpush1.bf16.msra.mxu1 %v4217_v25  ;;  %v4309_v24 = vld [vmem:[%s5909_s1 + $0x228] ss:$16 sps:$4 sm:$0xff]   ;;  %v4314_v25 = vld [vmem:[%s5909_s1 + $0x244] ss:$16 sps:$4 sm:$0xff]  }
  0xa3   : > { %2015 = vmatprep.subr.bf16.mxu0 %v4222_v26  ;;  %2097 = vmatprep.subr.bf16.mxu1 %v4225_v27  ;;  %v4317_v26 = vld [vmem:[%s5909_s1 + $0x24c] ss:$16 sps:$4 sm:$0xff]   ;;  %v4312_v27 = vld [vmem:[%s5909_s1 + $0x240] ss:$16 sps:$4 sm:$0xff]  }
  0xa6   : > { %2016 = vmatpush1.bf16.msra.mxu0 %v4220_v28  ;;  %2098 = vmatpush1.bf16.msra.mxu1 %v4223_v29  ;;  %v4315_v28 = vld [vmem:[%s5909_s1 + $0x248] ss:$16 sps:$4 sm:$0xff]   ;;  %v4320_v29 = vld [vmem:[%s5909_s1 + $0x264] ss:$16 sps:$4 sm:$0xff]  }
  0xa7   : > { %2017 = vmatprep.subr.bf16.mxu0 %v4228_v30  ;;  %2099 = vmatprep.subr.bf16.mxu1 %v4231_v31  ;;  %v4323_v30 = vld [vmem:[%s5909_s1 + $0x26c] ss:$16 sps:$4 sm:$0xff]   ;;  %v4318_v31 = vld [vmem:[%s5909_s1 + $0x260] ss:$16 sps:$4 sm:$0xff]  }
  0xaa   : > { %2018 = vmatpush1.bf16.msra.mxu0 %v4226_v32  ;;  %2100 = vmatpush1.bf16.msra.mxu1 %v4229_v33  ;;  %v4321_v32 = vld [vmem:[%s5909_s1 + $0x268] ss:$16 sps:$4 sm:$0xff]   ;;  %v4326_v33 = vld [vmem:[%s5909_s1 + $0x284] ss:$16 sps:$4 sm:$0xff]  }
  0xab   : > { %2019 = vmatprep.subr.bf16.mxu0 %v4234_v34  ;;  %2101 = vmatprep.subr.bf16.mxu1 %v4237_v35  ;;  %v4329_v34 = vld [vmem:[%s5909_s1 + $0x28c] ss:$16 sps:$4 sm:$0xff]   ;;  %v4324_v35 = vld [vmem:[%s5909_s1 + $0x280] ss:$16 sps:$4 sm:$0xff]  }
  0xae   : > { %2020 = vmatpush1.bf16.msra.mxu0 %v4232_v36  ;;  %2102 = vmatpush1.bf16.msra.mxu1 %v4235_v37  ;;  %v4327_v36 = vld [vmem:[%s5909_s1 + $0x288] ss:$16 sps:$4 sm:$0xff]   ;;  %v4332_v37 = vld [vmem:[%s5909_s1 + $0x2a4] ss:$16 sps:$4 sm:$0xff]  }
  0xaf   : > { %2021 = vmatprep.subr.bf16.mxu0 %v4240_v38  ;;  %2103 = vmatprep.subr.bf16.mxu1 %v4243_v39  ;;  %v4335_v38 = vld [vmem:[%s5909_s1 + $0x2ac] ss:$16 sps:$4 sm:$0xff]   ;;  %v4330_v39 = vld [vmem:[%s5909_s1 + $0x2a0] ss:$16 sps:$4 sm:$0xff]  }
  0xb2   : > { %2022 = vmatpush1.bf16.msra.mxu0 %v4238_v40  ;;  %2104 = vmatpush1.bf16.msra.mxu1 %v4241_v41  ;;  %v4333_v40 = vld [vmem:[%s5909_s1 + $0x2a8] ss:$16 sps:$4 sm:$0xff]   ;;  %v4338_v41 = vld [vmem:[%s5909_s1 + $0x2c4] ss:$16 sps:$4 sm:$0xff]  }
  0xb3   : > { %2023 = vmatprep.subr.bf16.mxu0 %v4246_v42  ;;  %2105 = vmatprep.subr.bf16.mxu1 %v4249_v43  ;;  %v4341_v42 = vld [vmem:[%s5909_s1 + $0x2cc] ss:$16 sps:$4 sm:$0xff]   ;;  %v4336_v43 = vld [vmem:[%s5909_s1 + $0x2c0] ss:$16 sps:$4 sm:$0xff]  }
  0xb6   : > { %2024 = vmatpush1.bf16.msra.mxu0 %v4244_v44  ;;  %2106 = vmatpush1.bf16.msra.mxu1 %v4247_v45  ;;  %v4339_v44 = vld [vmem:[%s5909_s1 + $0x2c8] ss:$16 sps:$4 sm:$0xff]   ;;  %v4344_v45 = vld [vmem:[%s5909_s1 + $0x2e4] ss:$16 sps:$4 sm:$0xff]  }
  0xb7   : > { %2025 = vmatprep.subr.bf16.mxu0 %v4252_v46  ;;  %2107 = vmatprep.subr.bf16.mxu1 %v4255_v47  ;;  %v4347_v46 = vld [vmem:[%s5909_s1 + $0x2ec] ss:$16 sps:$4 sm:$0xff]   ;;  %v4342_v47 = vld [vmem:[%s5909_s1 + $0x2e0] ss:$16 sps:$4 sm:$0xff]  }
  0xba   : > { %2026 = vmatpush1.bf16.msra.mxu0 %v4250_v48  ;;  %2108 = vmatpush1.bf16.msra.mxu1 %v4253_v49  ;;  %v4345_v48 = vld [vmem:[%s5909_s1 + $0x2e8] ss:$16 sps:$4 sm:$0xff]   ;;  %v4350_v49 = vld [vmem:[%s5909_s1 + $0x304] ss:$16 sps:$4 sm:$0xff]  }
  0xbb   : > { %2027 = vmatprep.subr.bf16.mxu0 %v4258_v50  ;;  %2109 = vmatprep.subr.bf16.mxu1 %v4261_v51  ;;  %v4353_v50 = vld [vmem:[%s5909_s1 + $0x30c] ss:$16 sps:$4 sm:$0xff]   ;;  %v4348_v51 = vld [vmem:[%s5909_s1 + $0x300] ss:$16 sps:$4 sm:$0xff]  }
  0xbe   : > { %2028 = vmatpush1.bf16.msra.mxu0 %v4256_v52  ;;  %2110 = vmatpush1.bf16.msra.mxu1 %v4259_v53  ;;  %v4351_v52 = vld [vmem:[%s5909_s1 + $0x308] ss:$16 sps:$4 sm:$0xff]   ;;  %v4356_v53 = vld [vmem:[%s5909_s1 + $0x324] ss:$16 sps:$4 sm:$0xff]  }
  0xbf   : > { %2029 = vmatprep.subr.bf16.mxu0 %v4264_v54  ;;  %2111 = vmatprep.subr.bf16.mxu1 %v4267_v55  ;;  %v4359_v54 = vld [vmem:[%s5909_s1 + $0x32c] ss:$16 sps:$4 sm:$0xff]   ;;  %v4354_v55 = vld [vmem:[%s5909_s1 + $0x320] ss:$16 sps:$4 sm:$0xff]  }
  0xc2   : > { %2030 = vmatpush1.bf16.msra.mxu0 %v4262_v56  ;;  %2112 = vmatpush1.bf16.msra.mxu1 %v4265_v57  ;;  %v4357_v56 = vld [vmem:[%s5909_s1 + $0x328] ss:$16 sps:$4 sm:$0xff]   ;;  %v4362_v57 = vld [vmem:[%s5909_s1 + $0x344] ss:$16 sps:$4 sm:$0xff]  }
  0xc3   : > { %2031 = vmatprep.subr.bf16.mxu0 %v4270_v58  ;;  %2113 = vmatprep.subr.bf16.mxu1 %v4273_v59  ;;  %v4365_v58 = vld [vmem:[%s5909_s1 + $0x34c] ss:$16 sps:$4 sm:$0xff]   ;;  %v4360_v59 = vld [vmem:[%s5909_s1 + $0x340] ss:$16 sps:$4 sm:$0xff]  }
  0xc6   : > { %2032 = vmatpush1.bf16.msra.mxu0 %v4268_v60  ;;  %2114 = vmatpush1.bf16.msra.mxu1 %v4271_v61  ;;  %v4363_v60 = vld [vmem:[%s5909_s1 + $0x348] ss:$16 sps:$4 sm:$0xff]   ;;  %v4368_v61 = vld [vmem:[%s5909_s1 + $0x364] ss:$16 sps:$4 sm:$0xff]  }
  0xc7   : > { %2033 = vmatprep.subr.bf16.mxu0 %v4276_v62  ;;  %2115 = vmatprep.subr.bf16.mxu1 %v4279_v63  ;;  %v4371_v62 = vld [vmem:[%s5909_s1 + $0x36c] ss:$16 sps:$4 sm:$0xff]   ;;  %v4366_v63 = vld [vmem:[%s5909_s1 + $0x360] ss:$16 sps:$4 sm:$0xff]  }
  0xca   : > { %2034 = vmatpush1.bf16.msra.mxu0 %v4274_v0  ;;  %2116 = vmatpush1.bf16.msra.mxu1 %v4277_v1  ;;  %v4369_v0 = vld [vmem:[%s5909_s1 + $0x368] ss:$16 sps:$4 sm:$0xff]   ;;  %v4374_v1 = vld [vmem:[%s5909_s1 + $0x384] ss:$16 sps:$4 sm:$0xff]  }
  0xcb   : > { %2035 = vmatprep.subr.bf16.mxu0 %v4282_v2  ;;  %2117 = vmatprep.subr.bf16.mxu1 %v4285_v3  ;;  %v4377_v2 = vld [vmem:[%s5909_s1 + $0x38c] ss:$16 sps:$4 sm:$0xff]   ;;  %v4372_v3 = vld [vmem:[%s5909_s1 + $0x380] ss:$16 sps:$4 sm:$0xff]  }
  0xce   : > { %2036 = vmatpush1.bf16.msra.mxu0 %v4280_v4  ;;  %2118 = vmatpush1.bf16.msra.mxu1 %v4283_v5  ;;  %v4375_v4 = vld [vmem:[%s5909_s1 + $0x388] ss:$16 sps:$4 sm:$0xff]   ;;  %v4380_v5 = vld [vmem:[%s5909_s1 + $0x3a4] ss:$16 sps:$4 sm:$0xff]  }
  0xcf   : > { %2037 = vmatprep.subr.bf16.mxu0 %v4288_v6  ;;  %2119 = vmatprep.subr.bf16.mxu1 %v4291_v7  ;;  %v4383_v6 = vld [vmem:[%s5909_s1 + $0x3ac] ss:$16 sps:$4 sm:$0xff]   ;;  %v4378_v7 = vld [vmem:[%s5909_s1 + $0x3a0] ss:$16 sps:$4 sm:$0xff]  }
  0xd2   : > { %2038 = vmatpush1.bf16.msra.mxu0 %v4286_v8  ;;  %2120 = vmatpush1.bf16.msra.mxu1 %v4289_v9  ;;  %v4381_v8 = vld [vmem:[%s5909_s1 + $0x3a8] ss:$16 sps:$4 sm:$0xff]   ;;  %v4386_v9 = vld [vmem:[%s5909_s1 + $0x3c4] ss:$16 sps:$4 sm:$0xff]  }
  0xd3   : > { %2039 = vmatprep.subr.bf16.mxu0 %v4294_v10  ;;  %2121 = vmatprep.subr.bf16.mxu1 %v4297_v11  ;;  %v4389_v10 = vld [vmem:[%s5909_s1 + $0x3cc] ss:$16 sps:$4 sm:$0xff]   ;;  %v4384_v11 = vld [vmem:[%s5909_s1 + $0x3c0] ss:$16 sps:$4 sm:$0xff]  }
  0xd6   : > { %2040 = vmatpush1.bf16.msra.mxu0 %v4292_v12  ;;  %2122 = vmatpush1.bf16.msra.mxu1 %v4295_v13  ;;  %v4387_v12 = vld [vmem:[%s5909_s1 + $0x3c8] ss:$16 sps:$4 sm:$0xff]   ;;  %v4392_v13 = vld [vmem:[%s5909_s1 + $0x3e4] ss:$16 sps:$4 sm:$0xff]  }
  0xd7   : > { %2050 = vmatprep.subr.bf16.mxu0 %v4302_v14  ;;  %2132 = vmatprep.subr.bf16.mxu1 %v4305_v15  ;;  %v4395_v14 = vld [vmem:[%s5909_s1 + $0x3ec] ss:$16 sps:$4 sm:$0xff]   ;;  %v4390_v15 = vld [vmem:[%s5909_s1 + $0x3e0] ss:$16 sps:$4 sm:$0xff]  }
  0xd9   : > { %2042 = vmatmul.mubr.bf16.vlgmr.msra.gmra.mrb[0].mxu0 %v3541_v18  ;;  %2124 = vmatmul.mubr.bf16.vlgmr.msra.gmra.mrb[0].mxu1 %v3541_v18  ;;  %v4400_v18 = vld [vmem:[%s5909_s1 + $0x804] ss:$16 sps:$4 sm:$0xff]  }
  0xda   : > { %2051 = vmatpush1.bf16.msra.mxu0 %v4300_v16  ;;  %2133 = vmatpush1.bf16.msra.mxu1 %v4303_v19  ;;  %v4393_v16 = vld [vmem:[%s5909_s1 + $0x3e8] ss:$16 sps:$4 sm:$0xff]   ;;  %v4403_v19 = vld [vmem:[%s5909_s1 + $0x80c] ss:$16 sps:$4 sm:$0xff]  }
  0xdb   : > { %2052 = vmatprep.subr.bf16.mxu0 %v4308_v21  ;;  %2134 = vmatprep.subr.bf16.mxu1 %v4311_v22  ;;  %v4398_v21 = vld [vmem:[%s5909_s1 + $0x800] ss:$16 sps:$4 sm:$0xff]   ;;  %v3543_v22 = vcombine.low %v5291_v20, %v5291_v20 }
  0xdc   : > { %2082 = vmatprep.mubr.bf16.mxu0 %v3544_v17  ;;  %2164 = vmatprep.mubr.bf16.mxu1 %v3544_v17  ;;  %v5487_v17 = vld [vmem:[%s4823_s6 + $0x20] sm:$0xff] }
  0xdd   : > { %v3804_v20 = vcombine.high %v5487_v17, %v5487_v17 }
  0xde   : > { %2053 = vmatpush1.bf16.msra.mxu0 %v4306_v23  ;;  %2135 = vmatpush1.bf16.msra.mxu1 %v4309_v24  ;;  %v4401_v23 = vld [vmem:[%s5909_s1 + $0x808] ss:$16 sps:$4 sm:$0xff]   ;;  %v4406_v24 = vld [vmem:[%s5909_s1 + $0x824] ss:$16 sps:$4 sm:$0xff]  }
  0xdf   : > { %2054 = vmatprep.subr.bf16.mxu0 %v4314_v25  ;;  %2136 = vmatprep.subr.bf16.mxu1 %v4317_v26  ;;  %v4409_v25 = vld [vmem:[%s5909_s1 + $0x82c] ss:$16 sps:$4 sm:$0xff]   ;;  %v4404_v26 = vld [vmem:[%s5909_s1 + $0x820] ss:$16 sps:$4 sm:$0xff]  }
  0xe2   : > { %2055 = vmatpush1.bf16.msra.mxu0 %v4312_v27  ;;  %2137 = vmatpush1.bf16.msra.mxu1 %v4315_v28  ;;  %v4407_v27 = vld [vmem:[%s5909_s1 + $0x828] ss:$16 sps:$4 sm:$0xff]   ;;  %v4412_v28 = vld [vmem:[%s5909_s1 + $0x844] ss:$16 sps:$4 sm:$0xff]  }
  0xe3   : > { %2056 = vmatprep.subr.bf16.mxu0 %v4320_v29  ;;  %2138 = vmatprep.subr.bf16.mxu1 %v4323_v30  ;;  %v4415_v29 = vld [vmem:[%s5909_s1 + $0x84c] ss:$16 sps:$4 sm:$0xff]   ;;  %v4410_v30 = vld [vmem:[%s5909_s1 + $0x840] ss:$16 sps:$4 sm:$0xff]  }
  0xe6   : > { %2057 = vmatpush1.bf16.msra.mxu0 %v4318_v31  ;;  %2139 = vmatpush1.bf16.msra.mxu1 %v4321_v32  ;;  %v4413_v31 = vld [vmem:[%s5909_s1 + $0x848] ss:$16 sps:$4 sm:$0xff]   ;;  %v4418_v32 = vld [vmem:[%s5909_s1 + $0x864] ss:$16 sps:$4 sm:$0xff]  }
  0xe7   : > { %2058 = vmatprep.subr.bf16.mxu0 %v4326_v33  ;;  %2140 = vmatprep.subr.bf16.mxu1 %v4329_v34  ;;  %v4421_v33 = vld [vmem:[%s5909_s1 + $0x86c] ss:$16 sps:$4 sm:$0xff]   ;;  %v4416_v34 = vld [vmem:[%s5909_s1 + $0x860] ss:$16 sps:$4 sm:$0xff]  }
  0xea   : > { %2059 = vmatpush1.bf16.msra.mxu0 %v4324_v35  ;;  %2141 = vmatpush1.bf16.msra.mxu1 %v4327_v36  ;;  %v4419_v35 = vld [vmem:[%s5909_s1 + $0x868] ss:$16 sps:$4 sm:$0xff]   ;;  %v4424_v36 = vld [vmem:[%s5909_s1 + $0x884] ss:$16 sps:$4 sm:$0xff]  }
  0xeb   : > { %2060 = vmatprep.subr.bf16.mxu0 %v4332_v37  ;;  %2142 = vmatprep.subr.bf16.mxu1 %v4335_v38  ;;  %v4427_v37 = vld [vmem:[%s5909_s1 + $0x88c] ss:$16 sps:$4 sm:$0xff]   ;;  %v4422_v38 = vld [vmem:[%s5909_s1 + $0x880] ss:$16 sps:$4 sm:$0xff]  }
  0xee   : > { %2061 = vmatpush1.bf16.msra.mxu0 %v4330_v39  ;;  %2143 = vmatpush1.bf16.msra.mxu1 %v4333_v40  ;;  %v4425_v39 = vld [vmem:[%s5909_s1 + $0x888] ss:$16 sps:$4 sm:$0xff]   ;;  %v4430_v40 = vld [vmem:[%s5909_s1 + $0x8a4] ss:$16 sps:$4 sm:$0xff]  }
  0xef   : > { %2062 = vmatprep.subr.bf16.mxu0 %v4338_v41  ;;  %2144 = vmatprep.subr.bf16.mxu1 %v4341_v42  ;;  %v4433_v41 = vld [vmem:[%s5909_s1 + $0x8ac] ss:$16 sps:$4 sm:$0xff]   ;;  %v4428_v42 = vld [vmem:[%s5909_s1 + $0x8a0] ss:$16 sps:$4 sm:$0xff]  }
  0xf2   : > { %2063 = vmatpush1.bf16.msra.mxu0 %v4336_v43  ;;  %2145 = vmatpush1.bf16.msra.mxu1 %v4339_v44  ;;  %v4431_v43 = vld [vmem:[%s5909_s1 + $0x8a8] ss:$16 sps:$4 sm:$0xff]   ;;  %v4436_v44 = vld [vmem:[%s5909_s1 + $0x8c4] ss:$16 sps:$4 sm:$0xff]  }
  0xf3   : > { %2064 = vmatprep.subr.bf16.mxu0 %v4344_v45  ;;  %2146 = vmatprep.subr.bf16.mxu1 %v4347_v46  ;;  %v4439_v45 = vld [vmem:[%s5909_s1 + $0x8cc] ss:$16 sps:$4 sm:$0xff]   ;;  %v4434_v46 = vld [vmem:[%s5909_s1 + $0x8c0] ss:$16 sps:$4 sm:$0xff]  }
  0xf6   : > { %2065 = vmatpush1.bf16.msra.mxu0 %v4342_v47  ;;  %2147 = vmatpush1.bf16.msra.mxu1 %v4345_v48  ;;  %v4437_v47 = vld [vmem:[%s5909_s1 + $0x8c8] ss:$16 sps:$4 sm:$0xff]   ;;  %v4442_v48 = vld [vmem:[%s5909_s1 + $0x8e4] ss:$16 sps:$4 sm:$0xff]  }
  0xf7   : > { %2066 = vmatprep.subr.bf16.mxu0 %v4350_v49  ;;  %2148 = vmatprep.subr.bf16.mxu1 %v4353_v50  ;;  %v4445_v49 = vld [vmem:[%s5909_s1 + $0x8ec] ss:$16 sps:$4 sm:$0xff]   ;;  %v4440_v50 = vld [vmem:[%s5909_s1 + $0x8e0] ss:$16 sps:$4 sm:$0xff]  }
  0xfa   : > { %2067 = vmatpush1.bf16.msra.mxu0 %v4348_v51  ;;  %2149 = vmatpush1.bf16.msra.mxu1 %v4351_v52  ;;  %v4443_v51 = vld [vmem:[%s5909_s1 + $0x8e8] ss:$16 sps:$4 sm:$0xff]   ;;  %v4448_v52 = vld [vmem:[%s5909_s1 + $0x904] ss:$16 sps:$4 sm:$0xff]  }
  0xfb   : > { %2068 = vmatprep.subr.bf16.mxu0 %v4356_v53  ;;  %2150 = vmatprep.subr.bf16.mxu1 %v4359_v54  ;;  %v4451_v53 = vld [vmem:[%s5909_s1 + $0x90c] ss:$16 sps:$4 sm:$0xff]   ;;  %v4446_v54 = vld [vmem:[%s5909_s1 + $0x900] ss:$16 sps:$4 sm:$0xff]  }
  0xfe   : > { %2069 = vmatpush1.bf16.msra.mxu0 %v4354_v55  ;;  %2151 = vmatpush1.bf16.msra.mxu1 %v4357_v56  ;;  %v4449_v55 = vld [vmem:[%s5909_s1 + $0x908] ss:$16 sps:$4 sm:$0xff]   ;;  %v4454_v56 = vld [vmem:[%s5909_s1 + $0x924] ss:$16 sps:$4 sm:$0xff]  }
  0xff   : > { %2070 = vmatprep.subr.bf16.mxu0 %v4362_v57  ;;  %2152 = vmatprep.subr.bf16.mxu1 %v4365_v58  ;;  %v4457_v57 = vld [vmem:[%s5909_s1 + $0x92c] ss:$16 sps:$4 sm:$0xff]   ;;  %v4452_v58 = vld [vmem:[%s5909_s1 + $0x920] ss:$16 sps:$4 sm:$0xff]  }
 0x102   : > { %2071 = vmatpush1.bf16.msra.mxu0 %v4360_v59  ;;  %2153 = vmatpush1.bf16.msra.mxu1 %v4363_v60  ;;  %v4455_v59 = vld [vmem:[%s5909_s1 + $0x928] ss:$16 sps:$4 sm:$0xff]   ;;  %v4460_v60 = vld [vmem:[%s5909_s1 + $0x944] ss:$16 sps:$4 sm:$0xff]  }
 0x103   : > { %2072 = vmatprep.subr.bf16.mxu0 %v4368_v61  ;;  %2154 = vmatprep.subr.bf16.mxu1 %v4371_v62  ;;  %v4463_v61 = vld [vmem:[%s5909_s1 + $0x94c] ss:$16 sps:$4 sm:$0xff]   ;;  %v4458_v62 = vld [vmem:[%s5909_s1 + $0x940] ss:$16 sps:$4 sm:$0xff]  }
 0x106   : > { %2073 = vmatpush1.bf16.msra.mxu0 %v4366_v63  ;;  %2155 = vmatpush1.bf16.msra.mxu1 %v4369_v0  ;;  %v4461_v63 = vld [vmem:[%s5909_s1 + $0x948] ss:$16 sps:$4 sm:$0xff]   ;;  %v4466_v0 = vld [vmem:[%s5909_s1 + $0x964] ss:$16 sps:$4 sm:$0xff]  }
 0x107   : > { %2074 = vmatprep.subr.bf16.mxu0 %v4374_v1  ;;  %2156 = vmatprep.subr.bf16.mxu1 %v4377_v2  ;;  %v4469_v1 = vld [vmem:[%s5909_s1 + $0x96c] ss:$16 sps:$4 sm:$0xff]   ;;  %v4464_v2 = vld [vmem:[%s5909_s1 + $0x960] ss:$16 sps:$4 sm:$0xff]  }
 0x10a   : > { %2075 = vmatpush1.bf16.msra.mxu0 %v4372_v3  ;;  %2157 = vmatpush1.bf16.msra.mxu1 %v4375_v4  ;;  %v4467_v3 = vld [vmem:[%s5909_s1 + $0x968] ss:$16 sps:$4 sm:$0xff]   ;;  %v4472_v4 = vld [vmem:[%s5909_s1 + $0x984] ss:$16 sps:$4 sm:$0xff]  }
 0x10b   : > { %2076 = vmatprep.subr.bf16.mxu0 %v4380_v5  ;;  %2158 = vmatprep.subr.bf16.mxu1 %v4383_v6  ;;  %v4475_v5 = vld [vmem:[%s5909_s1 + $0x98c] ss:$16 sps:$4 sm:$0xff]   ;;  %v4470_v6 = vld [vmem:[%s5909_s1 + $0x980] ss:$16 sps:$4 sm:$0xff]  }
 0x10e   : > { %2077 = vmatpush1.bf16.msra.mxu0 %v4378_v7  ;;  %2159 = vmatpush1.bf16.msra.mxu1 %v4381_v8  ;;  %v4473_v7 = vld [vmem:[%s5909_s1 + $0x988] ss:$16 sps:$4 sm:$0xff]   ;;  %v4478_v8 = vld [vmem:[%s5909_s1 + $0x9a4] ss:$16 sps:$4 sm:$0xff]  }
 0x10f   : > { %2078 = vmatprep.subr.bf16.mxu0 %v4386_v9  ;;  %2160 = vmatprep.subr.bf16.mxu1 %v4389_v10  ;;  %v4481_v9 = vld [vmem:[%s5909_s1 + $0x9ac] ss:$16 sps:$4 sm:$0xff]   ;;  %v4476_v10 = vld [vmem:[%s5909_s1 + $0x9a0] ss:$16 sps:$4 sm:$0xff]  }
 0x112   : > { %2079 = vmatpush1.bf16.msra.mxu0 %v4384_v11  ;;  %2161 = vmatpush1.bf16.msra.mxu1 %v4387_v12  ;;  %v4479_v11 = vld [vmem:[%s5909_s1 + $0x9a8] ss:$16 sps:$4 sm:$0xff]   ;;  %v4484_v12 = vld [vmem:[%s5909_s1 + $0x9c4] ss:$16 sps:$4 sm:$0xff]  }
 0x113   : > { %2080 = vmatprep.subr.bf16.mxu0 %v4392_v13  ;;  %2162 = vmatprep.subr.bf16.mxu1 %v4395_v14  ;;  %v4487_v13 = vld [vmem:[%s5909_s1 + $0x9cc] ss:$16 sps:$4 sm:$0xff]   ;;  %v4482_v14 = vld [vmem:[%s5909_s1 + $0x9c0] ss:$16 sps:$4 sm:$0xff]  }
 0x116   : > { %2081 = vmatpush1.bf16.msra.mxu0 %v4390_v15  ;;  %2163 = vmatpush1.bf16.msra.mxu1 %v4393_v16  ;;  %v4485_v15 = vld [vmem:[%s5909_s1 + $0x9c8] ss:$16 sps:$4 sm:$0xff]   ;;  %v4490_v16 = vld [vmem:[%s5909_s1 + $0x9e4] ss:$16 sps:$4 sm:$0xff]  }
 0x117   : > { %2959 = vmatprep.subr.bf16.mxu0 %v4400_v18  ;;  %3041 = vmatprep.subr.bf16.mxu1 %v4403_v19  ;;  %v4493_v18 = vld [vmem:[%s5909_s1 + $0x9ec] ss:$16 sps:$4 sm:$0xff]   ;;  %v4488_v19 = vld [vmem:[%s5909_s1 + $0x9e0] ss:$16 sps:$4 sm:$0xff]  }
 0x119   : > { %2083 = vmatmul.mubr.bf16.vlgmr.msra.gmra.mrb[0].mxu0 %v3543_v22  ;;  %2165 = vmatmul.mubr.bf16.vlgmr.msra.gmra.mrb[0].mxu1 %v3543_v22  ;;  %v4498_v22 = vld [vmem:[%s5909_s1 + $0xa04] ss:$16 sps:$4 sm:$0xff]  }
 0x11a   : > { %2960 = vmatpush1.bf16.msra.mxu0 %v4398_v21  ;;  %3042 = vmatpush1.bf16.msra.mxu1 %v4401_v23  ;;  %v4491_v21 = vld [vmem:[%s5909_s1 + $0x9e8] ss:$16 sps:$4 sm:$0xff]   ;;  %v4501_v23 = vld [vmem:[%s5909_s1 + $0xa0c] ss:$16 sps:$4 sm:$0xff]  }
 0x11b   : > { %2961 = vmatprep.subr.bf16.mxu0 %v4406_v24  ;;  %3043 = vmatprep.subr.bf16.mxu1 %v4409_v25  ;;  %v3803_v24 = vcombine.low %v5487_v17, %v5487_v17  ;;  %v5683_v25 = vld [vmem:[%s4823_s6 + $0x28] sm:$0xff] }
 0x11c   : > { %2991 = vmatprep.mubr.bf16.mxu0 %v3804_v20  ;;  %3073 = vmatprep.mubr.bf16.mxu1 %v3804_v20  ;;  %v4496_v20 = vld [vmem:[%s5909_s1 + $0xa00] ss:$16 sps:$4 sm:$0xff]   ;;  %v4507_v17 = vld [vmem:[%s5909_s1 + $0xa2c] ss:$16 sps:$4 sm:$0xff]  }
 0x11e   : > { %2962 = vmatpush1.bf16.msra.mxu0 %v4404_v26  ;;  %3044 = vmatpush1.bf16.msra.mxu1 %v4407_v27  ;;  %v4499_v26 = vld [vmem:[%s5909_s1 + $0xa08] ss:$16 sps:$4 sm:$0xff]   ;;  %v4504_v27 = vld [vmem:[%s5909_s1 + $0xa24] ss:$16 sps:$4 sm:$0xff]  }
 0x11f   : > { %2963 = vmatprep.subr.bf16.mxu0 %v4412_v28  ;;  %3045 = vmatprep.subr.bf16.mxu1 %v4415_v29  ;;  %v3806_v28 = vcombine.high %v5683_v25, %v5683_v25  ;;  %v4502_v29 = vld [vmem:[%s5909_s1 + $0xa20] ss:$16 sps:$4 sm:$0xff]  }
 0x122   : > { %2964 = vmatpush1.bf16.msra.mxu0 %v4410_v30  ;;  %3046 = vmatpush1.bf16.msra.mxu1 %v4413_v31  ;;  %v4505_v30 = vld [vmem:[%s5909_s1 + $0xa28] ss:$16 sps:$4 sm:$0xff]   ;;  %v4510_v31 = vld [vmem:[%s5909_s1 + $0xa44] ss:$16 sps:$4 sm:$0xff]  }
 0x123   : > { %2965 = vmatprep.subr.bf16.mxu0 %v4418_v32  ;;  %3047 = vmatprep.subr.bf16.mxu1 %v4421_v33  ;;  %v4513_v32 = vld [vmem:[%s5909_s1 + $0xa4c] ss:$16 sps:$4 sm:$0xff]   ;;  %v4508_v33 = vld [vmem:[%s5909_s1 + $0xa40] ss:$16 sps:$4 sm:$0xff]  }
 0x126   : > { %2966 = vmatpush1.bf16.msra.mxu0 %v4416_v34  ;;  %3048 = vmatpush1.bf16.msra.mxu1 %v4419_v35  ;;  %v4511_v34 = vld [vmem:[%s5909_s1 + $0xa48] ss:$16 sps:$4 sm:$0xff]   ;;  %v4516_v35 = vld [vmem:[%s5909_s1 + $0xa64] ss:$16 sps:$4 sm:$0xff]  }
 0x127   : > { %2967 = vmatprep.subr.bf16.mxu0 %v4424_v36  ;;  %3049 = vmatprep.subr.bf16.mxu1 %v4427_v37  ;;  %v4519_v36 = vld [vmem:[%s5909_s1 + $0xa6c] ss:$16 sps:$4 sm:$0xff]   ;;  %v4514_v37 = vld [vmem:[%s5909_s1 + $0xa60] ss:$16 sps:$4 sm:$0xff]  }
 0x12a   : > { %2968 = vmatpush1.bf16.msra.mxu0 %v4422_v38  ;;  %3050 = vmatpush1.bf16.msra.mxu1 %v4425_v39  ;;  %v4517_v38 = vld [vmem:[%s5909_s1 + $0xa68] ss:$16 sps:$4 sm:$0xff]   ;;  %v4522_v39 = vld [vmem:[%s5909_s1 + $0xa84] ss:$16 sps:$4 sm:$0xff]  }
 0x12b   : > { %2969 = vmatprep.subr.bf16.mxu0 %v4430_v40  ;;  %3051 = vmatprep.subr.bf16.mxu1 %v4433_v41  ;;  %v4525_v40 = vld [vmem:[%s5909_s1 + $0xa8c] ss:$16 sps:$4 sm:$0xff]   ;;  %v4520_v41 = vld [vmem:[%s5909_s1 + $0xa80] ss:$16 sps:$4 sm:$0xff]  }
 0x12e   : > { %2970 = vmatpush1.bf16.msra.mxu0 %v4428_v42  ;;  %3052 = vmatpush1.bf16.msra.mxu1 %v4431_v43  ;;  %v4523_v42 = vld [vmem:[%s5909_s1 + $0xa88] ss:$16 sps:$4 sm:$0xff]   ;;  %v4528_v43 = vld [vmem:[%s5909_s1 + $0xaa4] ss:$16 sps:$4 sm:$0xff]  }
 0x12f   : > { %2971 = vmatprep.subr.bf16.mxu0 %v4436_v44  ;;  %3053 = vmatprep.subr.bf16.mxu1 %v4439_v45  ;;  %v4531_v44 = vld [vmem:[%s5909_s1 + $0xaac] ss:$16 sps:$4 sm:$0xff]   ;;  %v4526_v45 = vld [vmem:[%s5909_s1 + $0xaa0] ss:$16 sps:$4 sm:$0xff]  }
 0x132   : > { %2972 = vmatpush1.bf16.msra.mxu0 %v4434_v46  ;;  %3054 = vmatpush1.bf16.msra.mxu1 %v4437_v47  ;;  %v4529_v46 = vld [vmem:[%s5909_s1 + $0xaa8] ss:$16 sps:$4 sm:$0xff]   ;;  %v4534_v47 = vld [vmem:[%s5909_s1 + $0xac4] ss:$16 sps:$4 sm:$0xff]  }
 0x133   : > { %2973 = vmatprep.subr.bf16.mxu0 %v4442_v48  ;;  %3055 = vmatprep.subr.bf16.mxu1 %v4445_v49  ;;  %v4537_v48 = vld [vmem:[%s5909_s1 + $0xacc] ss:$16 sps:$4 sm:$0xff]   ;;  %v4532_v49 = vld [vmem:[%s5909_s1 + $0xac0] ss:$16 sps:$4 sm:$0xff]  }
 0x136   : > { %2974 = vmatpush1.bf16.msra.mxu0 %v4440_v50  ;;  %3056 = vmatpush1.bf16.msra.mxu1 %v4443_v51  ;;  %v4535_v50 = vld [vmem:[%s5909_s1 + $0xac8] ss:$16 sps:$4 sm:$0xff]   ;;  %v4540_v51 = vld [vmem:[%s5909_s1 + $0xae4] ss:$16 sps:$4 sm:$0xff]  }
 0x137   : > { %2975 = vmatprep.subr.bf16.mxu0 %v4448_v52  ;;  %3057 = vmatprep.subr.bf16.mxu1 %v4451_v53  ;;  %v4543_v52 = vld [vmem:[%s5909_s1 + $0xaec] ss:$16 sps:$4 sm:$0xff]   ;;  %v4538_v53 = vld [vmem:[%s5909_s1 + $0xae0] ss:$16 sps:$4 sm:$0xff]  }
 0x13a   : > { %2976 = vmatpush1.bf16.msra.mxu0 %v4446_v54  ;;  %3058 = vmatpush1.bf16.msra.mxu1 %v4449_v55  ;;  %v4541_v54 = vld [vmem:[%s5909_s1 + $0xae8] ss:$16 sps:$4 sm:$0xff]   ;;  %v4546_v55 = vld [vmem:[%s5909_s1 + $0xb04] ss:$16 sps:$4 sm:$0xff]  }
 0x13b   : > { %2977 = vmatprep.subr.bf16.mxu0 %v4454_v56  ;;  %3059 = vmatprep.subr.bf16.mxu1 %v4457_v57  ;;  %v4549_v56 = vld [vmem:[%s5909_s1 + $0xb0c] ss:$16 sps:$4 sm:$0xff]   ;;  %v4544_v57 = vld [vmem:[%s5909_s1 + $0xb00] ss:$16 sps:$4 sm:$0xff]  }
 0x13e   : > { %2978 = vmatpush1.bf16.msra.mxu0 %v4452_v58  ;;  %3060 = vmatpush1.bf16.msra.mxu1 %v4455_v59  ;;  %v4547_v58 = vld [vmem:[%s5909_s1 + $0xb08] ss:$16 sps:$4 sm:$0xff]   ;;  %v4552_v59 = vld [vmem:[%s5909_s1 + $0xb24] ss:$16 sps:$4 sm:$0xff]  }
 0x13f   : > { %2979 = vmatprep.subr.bf16.mxu0 %v4460_v60  ;;  %3061 = vmatprep.subr.bf16.mxu1 %v4463_v61  ;;  %v4555_v60 = vld [vmem:[%s5909_s1 + $0xb2c] ss:$16 sps:$4 sm:$0xff]   ;;  %v4550_v61 = vld [vmem:[%s5909_s1 + $0xb20] ss:$16 sps:$4 sm:$0xff]  }
 0x142   : > { %2980 = vmatpush1.bf16.msra.mxu0 %v4458_v62  ;;  %3062 = vmatpush1.bf16.msra.mxu1 %v4461_v63  ;;  %v4553_v62 = vld [vmem:[%s5909_s1 + $0xb28] ss:$16 sps:$4 sm:$0xff]   ;;  %v4558_v63 = vld [vmem:[%s5909_s1 + $0xb44] ss:$16 sps:$4 sm:$0xff]  }
 0x143   : > { %2981 = vmatprep.subr.bf16.mxu0 %v4466_v0  ;;  %3063 = vmatprep.subr.bf16.mxu1 %v4469_v1  ;;  %v4561_v0 = vld [vmem:[%s5909_s1 + $0xb4c] ss:$16 sps:$4 sm:$0xff]   ;;  %v4556_v1 = vld [vmem:[%s5909_s1 + $0xb40] ss:$16 sps:$4 sm:$0xff]  }
 0x146   : > { %2982 = vmatpush1.bf16.msra.mxu0 %v4464_v2  ;;  %3064 = vmatpush1.bf16.msra.mxu1 %v4467_v3  ;;  %v4559_v2 = vld [vmem:[%s5909_s1 + $0xb48] ss:$16 sps:$4 sm:$0xff]   ;;  %v4564_v3 = vld [vmem:[%s5909_s1 + $0xb64] ss:$16 sps:$4 sm:$0xff]  }
 0x147   : > { %2983 = vmatprep.subr.bf16.mxu0 %v4472_v4  ;;  %3065 = vmatprep.subr.bf16.mxu1 %v4475_v5  ;;  %v4567_v4 = vld [vmem:[%s5909_s1 + $0xb6c] ss:$16 sps:$4 sm:$0xff]   ;;  %v4562_v5 = vld [vmem:[%s5909_s1 + $0xb60] ss:$16 sps:$4 sm:$0xff]  }
 0x14a   : > { %2984 = vmatpush1.bf16.msra.mxu0 %v4470_v6  ;;  %3066 = vmatpush1.bf16.msra.mxu1 %v4473_v7  ;;  %v4565_v6 = vld [vmem:[%s5909_s1 + $0xb68] ss:$16 sps:$4 sm:$0xff]   ;;  %v4570_v7 = vld [vmem:[%s5909_s1 + $0xb84] ss:$16 sps:$4 sm:$0xff]  }
 0x14b   : > { %2985 = vmatprep.subr.bf16.mxu0 %v4478_v8  ;;  %3067 = vmatprep.subr.bf16.mxu1 %v4481_v9  ;;  %v4573_v8 = vld [vmem:[%s5909_s1 + $0xb8c] ss:$16 sps:$4 sm:$0xff]   ;;  %v4568_v9 = vld [vmem:[%s5909_s1 + $0xb80] ss:$16 sps:$4 sm:$0xff]  }
 0x14e   : > { %2986 = vmatpush1.bf16.msra.mxu0 %v4476_v10  ;;  %3068 = vmatpush1.bf16.msra.mxu1 %v4479_v11  ;;  %v4571_v10 = vld [vmem:[%s5909_s1 + $0xb88] ss:$16 sps:$4 sm:$0xff]   ;;  %v4576_v11 = vld [vmem:[%s5909_s1 + $0xba4] ss:$16 sps:$4 sm:$0xff]  }
 0x14f   : > { %2987 = vmatprep.subr.bf16.mxu0 %v4484_v12  ;;  %3069 = vmatprep.subr.bf16.mxu1 %v4487_v13  ;;  %v4579_v12 = vld [vmem:[%s5909_s1 + $0xbac] ss:$16 sps:$4 sm:$0xff]   ;;  %v4574_v13 = vld [vmem:[%s5909_s1 + $0xba0] ss:$16 sps:$4 sm:$0xff]  }
 0x152   : > { %2988 = vmatpush1.bf16.msra.mxu0 %v4482_v14  ;;  %3070 = vmatpush1.bf16.msra.mxu1 %v4485_v15  ;;  %v4577_v14 = vld [vmem:[%s5909_s1 + $0xba8] ss:$16 sps:$4 sm:$0xff]   ;;  %v4582_v15 = vld [vmem:[%s5909_s1 + $0xbc4] ss:$16 sps:$4 sm:$0xff]  }
 0x153   : > { %2989 = vmatprep.subr.bf16.mxu0 %v4490_v16  ;;  %3071 = vmatprep.subr.bf16.mxu1 %v4493_v18  ;;  %v4585_v16 = vld [vmem:[%s5909_s1 + $0xbcc] ss:$16 sps:$4 sm:$0xff]   ;;  %v4580_v18 = vld [vmem:[%s5909_s1 + $0xbc0] ss:$16 sps:$4 sm:$0xff]  }
 0x156   : > { %2990 = vmatpush1.bf16.msra.mxu0 %v4488_v19  ;;  %3072 = vmatpush1.bf16.msra.mxu1 %v4491_v21  ;;  %v4583_v19 = vld [vmem:[%s5909_s1 + $0xbc8] ss:$16 sps:$4 sm:$0xff]   ;;  %v4588_v21 = vld [vmem:[%s5909_s1 + $0xbe4] ss:$16 sps:$4 sm:$0xff]  }
 0x157   : > { %3000 = vmatprep.subr.bf16.mxu0 %v4498_v22  ;;  %3082 = vmatprep.subr.bf16.mxu1 %v4501_v23  ;;  %v4591_v22 = vld [vmem:[%s5909_s1 + $0xbec] ss:$16 sps:$4 sm:$0xff]   ;;  %v4586_v23 = vld [vmem:[%s5909_s1 + $0xbe0] ss:$16 sps:$4 sm:$0xff]  }
 0x159   : > { %2992 = vmatmul.mubr.bf16.vlgmr.msra.gmra.mrb[0].mxu0 %v3803_v24  ;;  %3074 = vmatmul.mubr.bf16.vlgmr.msra.gmra.mrb[0].mxu1 %v3803_v24  ;;  %v4589_v24 = vld [vmem:[%s5909_s1 + $0xbe8] ss:$16 sps:$4 sm:$0xff]  }
 0x15a   : > { %3001 = vmatpush1.bf16.msra.mxu0 %v4496_v20  ;;  %3083 = vmatpush1.bf16.msra.mxu1 %v4499_v26  ;;  %v3805_v20 = vcombine.low %v5683_v25, %v5683_v25  ;;  %v3133_v26 = vlaneseq  ;;  %v3131_v25 = vld [vmem:[%s5910_s2] sm:$0xf] }
 0x15b   : > { %3002 = vmatprep.subr.bf16.mxu0 %v4504_v27  ;;  %3084 = vmatprep.subr.bf16.mxu1 %v4507_v17 }
 0x15c   : > { %3032 = vmatprep.mubr.bf16.mxu0 %v3806_v28  ;;  %3114 = vmatprep.mubr.bf16.mxu1 %v3806_v28  ;;  %v3134_v27 = vshrl.u32 %v3133_v26, 7 }
 0x15e   : > { %3003 = vmatpush1.bf16.msra.mxu0 %v4502_v29  ;;  %3085 = vmatpush1.bf16.msra.mxu1 %v4505_v30  ;;  %v3135_v17 = vsub.s32 0, %v3134_v27  ;;  %v3143_v28 = vsub.s32 2, %v3134_v27  ;;  %v3139_v29 = vsub.s32 1, %v3134_v27  ;;  %v3147_v30 = vsub.s32 3, %v3134_v27 }
 0x15f   : > { %3004 = vmatprep.subr.bf16.mxu0 %v4510_v31  ;;  %3086 = vmatprep.subr.bf16.mxu1 %v4513_v32 }
 0x160   : > { %v3136_v31 = vrot.slane %v3131_v25, %v3135_v17  ;;  %v3144_v32 = vrot.slane %v3131_v25, %v3143_v28 }
 0x162   : > { %3005 = vmatpush1.bf16.msra.mxu0 %v4508_v33  ;;  %3087 = vmatpush1.bf16.msra.mxu1 %v4511_v34  ;;  %v3161_v33 = vld [vmem:[%s5911_s3] sm:$0xf]  ;;  %v3140_v34 = vrot.slane %v3131_v25, %v3139_v29 }
 0x163   : > { %3006 = vmatprep.subr.bf16.mxu0 %v4516_v35  ;;  %3088 = vmatprep.subr.bf16.mxu1 %v4519_v36  ;;  %v3148_v35 = vrot.slane %v3131_v25, %v3147_v30 }
 0x166   : > { %3007 = vmatpush1.bf16.msra.mxu0 %v4514_v37  ;;  %3089 = vmatpush1.bf16.msra.mxu1 %v4517_v38  ;;  %v3127_v37 = vld [vmem:[%s269_s18] sm:$0xff] }
 0x167   : > { %3008 = vmatprep.subr.bf16.mxu0 %v4522_v39  ;;  %3090 = vmatprep.subr.bf16.mxu1 %v4525_v40  ;;  %v3129_v39 = vld [vmem:[%s269_s18 + $0x10] sm:$0xff] }
 0x16a   : > { %3009 = vmatpush1.bf16.msra.mxu0 %v4520_v41  ;;  %3091 = vmatpush1.bf16.msra.mxu1 %v4523_v42  ;;  %v3166_v41 = vrot.slane %v3161_v33, %v3135_v17 }
 0x16b   : > { %3010 = vmatprep.subr.bf16.mxu0 %v4528_v43  ;;  %3092 = vmatprep.subr.bf16.mxu1 %v4531_v44  ;;  %v3174_v43 = vrot.slane %v3161_v33, %v3143_v28 }
 0x16e   : > { %3011 = vmatpush1.bf16.msra.mxu0 %v4526_v45  ;;  %3093 = vmatpush1.bf16.msra.mxu1 %v4529_v46  ;;  %v3128_v45 = vld [vmem:[%s269_s18 + $0x8] sm:$0xff] }
 0x16f   : > { %3012 = vmatprep.subr.bf16.mxu0 %v4534_v47  ;;  %3094 = vmatprep.subr.bf16.mxu1 %v4537_v48  ;;  %v3130_v47 = vld [vmem:[%s269_s18 + $0x18] sm:$0xff] }
 0x172   : > { %3013 = vmatpush1.bf16.msra.mxu0 %v4532_v49  ;;  %3095 = vmatpush1.bf16.msra.mxu1 %v4535_v50  ;;  %v3170_v49 = vrot.slane %v3161_v33, %v3139_v29 }
 0x173   : > { %3014 = vmatprep.subr.bf16.mxu0 %v4540_v51  ;;  %3096 = vmatprep.subr.bf16.mxu1 %v4543_v52  ;;  %v3178_v51 = vrot.slane %v3161_v33, %v3147_v30 }
 0x176   : > { %3015 = vmatpush1.bf16.msra.mxu0 %v4538_v53  ;;  %3097 = vmatpush1.bf16.msra.mxu1 %v4541_v54 }
 0x177   : > { %3016 = vmatprep.subr.bf16.mxu0 %v4546_v55  ;;  %3098 = vmatprep.subr.bf16.mxu1 %v4549_v56 }
 0x17a   : > { %3017 = vmatpush1.bf16.msra.mxu0 %v4544_v57  ;;  %3099 = vmatpush1.bf16.msra.mxu1 %v4547_v58 }
 0x17b   : > { %3018 = vmatprep.subr.bf16.mxu0 %v4552_v59  ;;  %3100 = vmatprep.subr.bf16.mxu1 %v4555_v60 }
 0x17e   : > { %3019 = vmatpush1.bf16.msra.mxu0 %v4550_v61  ;;  %3101 = vmatpush1.bf16.msra.mxu1 %v4553_v62 }
 0x17f   : > { %3020 = vmatprep.subr.bf16.mxu0 %v4558_v63  ;;  %3102 = vmatprep.subr.bf16.mxu1 %v4561_v0 }
 0x182   : > { %3021 = vmatpush1.bf16.msra.mxu0 %v4556_v1  ;;  %3103 = vmatpush1.bf16.msra.mxu1 %v4559_v2 }
 0x183   : > { %3022 = vmatprep.subr.bf16.mxu0 %v4564_v3  ;;  %3104 = vmatprep.subr.bf16.mxu1 %v4567_v4 }
 0x186   : > { %3023 = vmatpush1.bf16.msra.mxu0 %v4562_v5  ;;  %3105 = vmatpush1.bf16.msra.mxu1 %v4565_v6 }
 0x187   : > { %3024 = vmatprep.subr.bf16.mxu0 %v4570_v7  ;;  %3106 = vmatprep.subr.bf16.mxu1 %v4573_v8 }
 0x18a   : > { %3025 = vmatpush1.bf16.msra.mxu0 %v4568_v9  ;;  %3107 = vmatpush1.bf16.msra.mxu1 %v4571_v10 }
 0x18b   : > { %3026 = vmatprep.subr.bf16.mxu0 %v4576_v11  ;;  %3108 = vmatprep.subr.bf16.mxu1 %v4579_v12 }
 0x18e   : > { %3027 = vmatpush1.bf16.msra.mxu0 %v4574_v13  ;;  %3109 = vmatpush1.bf16.msra.mxu1 %v4577_v14 }
 0x18f   : > { %3028 = vmatprep.subr.bf16.mxu0 %v4582_v15  ;;  %3110 = vmatprep.subr.bf16.mxu1 %v4585_v16 }
 0x192   : > { %3029 = vmatpush1.bf16.msra.mxu0 %v4580_v18  ;;  %3111 = vmatpush1.bf16.msra.mxu1 %v4583_v19 }
 0x193   : > { %3030 = vmatprep.subr.bf16.mxu0 %v4588_v21  ;;  %3112 = vmatprep.subr.bf16.mxu1 %v4591_v22 }
 0x196   : > { %3031 = vmatpush1.bf16.msra.mxu0 %v4586_v23  ;;  %3113 = vmatpush1.bf16.msra.mxu1 %v4589_v24 }
 0x199   : > { %3033 = vmatmul.mubr.bf16.vlgmr.msra.gmra.mrb[0].mxu0 %v3805_v20  ;;  %3115 = vmatmul.mubr.bf16.vlgmr.msra.gmra.mrb[0].mxu1 %v3805_v20 }
 0x26c   : > { %v3034_v36 = vpop.f32.mrb[0].mxu0  ;;  %v3116_v38 = vpop.f32.mrb[0].mxu1 }
 0x26d   : > { %v3153_v40 = vmul.f32 %v3136_v31, %v3034_v36  ;;  %v3155_v42 = vmul.f32 %v3144_v32, %v3116_v38  ;;  %v3036_v44 = vpop.f32.mrb[1].mxu0  ;;  %v3118_v46 = vpop.f32.mrb[1].mxu1 }
 0x26e   : > { %v3154_v48 = vmul.f32 %v3140_v34, %v3036_v44  ;;  %v3156_v50 = vmul.f32 %v3148_v35, %v3118_v46  ;;  %v3038_v52 = vpop.f32.mrb[2].mxu0  ;;  %v3120_v53 = vpop.f32.mrb[2].mxu1 }
 0x26f   : > { %v3157_v54 = vadd.f32 %v3153_v40, %v3127_v37  ;;  %v3159_v55 = vadd.f32 %v3155_v42, %v3129_v39  ;;  %v3039_v56 = vpop.f32.mrb[3].mxu0  ;;  %v3121_v57 = vpop.f32.mrb[3].mxu1 }
 0x270   : > { %v3158_v58 = vadd.f32 %v3154_v48, %v3128_v45  ;;  %v3160_v59 = vadd.f32 %v3156_v50, %v3130_v47 }
 0x271   : > { %v3183_v60 = vadd.f32 %v3166_v41, %v3157_v54  ;;  %v3185_v61 = vadd.f32 %v3174_v43, %v3159_v55 }
 0x272   : > { %v3184_v62 = vadd.f32 %v3170_v49, %v3158_v58  ;;  %v3186_v63 = vadd.f32 %v3178_v51, %v3160_v59 }
 0x273   : > { %v3187_v0 = vmax.f32 %v3183_v60, 0.0  ;;  %v3189_v1 = vmax.f32 %v3185_v61, 0.0 }
 0x274   : > { %v3188_v2 = vmax.f32 %v3184_v62, 0.0  ;;  %v3190_v3 = vmax.f32 %v3186_v63, 0.0 }
 0x275   : > { %3191 = vst [vmem:[%s274_s24] sm:$0xff] %v3187_v0  ;;  %3193 = vst [vmem:[%s274_s24 + $0x10] sm:$0xff] %v3189_v1 }
 0x276   : > { %3192 = vst [vmem:[%s274_s24 + $0x8] sm:$0xff] %v3188_v2  ;;  %3194 = vst [vmem:[%s274_s24 + $0x18] sm:$0xff] %v3190_v3 }
 0x277 PF: > { %p12_p9 = scmp.ge.s32.totalorder %s4665_s22, 4   ;;  %s5914_s18 = smov %s4612_s19 }
 0x278   : > { %s5915_s19 = smov %s4674_s25  ;;  %s5916_s20 = smov %s4665_s22 }
 0x279   :  { %14 = sbr.rel (!%p12_p9) target bundleno = 2 (0x2), region = 105 }

// kernel: network_forward.16
= control target key start
LH: loop header
LB: loop body
LE: loop exit
PB: predicated region body
PF: predicated region fallthrough
CT: control target
= control target key end

     0   :  { %s268_s6 = smov 0   ;;  %s289_s0 = inlined_call_operand.vmem [shape: f32[8,1024], index: 0, kind: input, shape index: {}]   ;;  %s290_s1 = inlined_call_operand.vmem [shape: f32[1,1024], index: 1, kind: output, shape index: {}]  }
   0x1 LB: > { %s230_s7 = sadd.s32 4294967295, %s255_s6   ;;  %p234_p0 = scmp.ge.s32.totalorder %s255_s6, 1  ;;  %s255_s6 = sphi %s268_s6, %s11_s6  }
   0x2   : > { %p88_p1 = scmp.lt.s32.totalorder %s255_s6, 3 }
   0x4   : > { %p89_p2 = pnand %p234_p0, %p88_p1 }
   0x5   : > { %s235_s8 = sshll.u32 (!%p89_p2), %s230_s7, 2  ;;  %v155_v8 = vlaneseq (!%p89_p2)  ;;  %v257_v12 = vmov (!%p89_p2), 1966171168  }
   0x6   : > { %92 = sbr.rel (%p89_p2) target bundleno = 39 (0x27), region = 24  ;;  %p108_p3 = scmp.lt.s32.totalorder (!%p89_p2), %s235_s8, 7  ;;  %v153_v13 = vunpack.c.l.s4 (!%p89_p2), %v257_v12 }
   0x7   : > { %v156_v19 = vshrl.u32 (!%p89_p2), %v155_v8, 7  ;;  %vm177_vm0 = vcmp.lt.s32.totalorder (!%p89_p2), %v155_v8, 512 }
   0x8   : > { %v154_v23 = vunpack.c.0.s8 (!%p89_p2), %v153_v13 }
   0xa   : > { %v157_v32 = vsub.s32 (!%p89_p2), %v154_v23, %v156_v19 }
   0xd   : > { %s292_s8 = smov (!%p108_p3, %s235_s8), 7 }
   0xe   : > { %s236_s9 = sshll.u32 %s292_s8, 3  ;;  %s116_s15 = scalar_lea.vmem %s290_s1, %s292_s8 }
   0xf   : > { %s111_s12 = scalar_lea.vmem %s289_s0, %s236_s9 }
  0x10   : > { %v118_v0 = vld [vmem:[%s111_s12] sm:$0xff]  ;;  %v119_v1 = vld [vmem:[%s111_s12 + $0x8] sm:$0xff]  ;;  %v120_v2 = vld [vmem:[%s111_s12 + $0x10] sm:$0xff] }
  0x11   : > { %v121_v3 = vld [vmem:[%s111_s12 + $0x18] sm:$0xff]  ;;  %v122_v4 = vrot.slane %v118_v0, 4  ;;  %v128_v5 = vrot.slane %v119_v1, 4  ;;  %v134_v6 = vrot.slane %v120_v2, 4 }
  0x12   : > { %v140_v7 = vrot.slane %v121_v3, 4 }
  0x13   : > { %v123_v9 = vmax.f32 %v118_v0, %v122_v4  ;;  %v129_v10 = vmax.f32 %v119_v1, %v128_v5  ;;  %v135_v11 = vmax.f32 %v120_v2, %v134_v6 }
  0x14   : > { %v141_v14 = vmax.f32 %v121_v3, %v140_v7 }
  0x15   : > { %v124_v15 = vrot.slane %v123_v9, 2  ;;  %v130_v16 = vrot.slane %v129_v10, 2  ;;  %v136_v17 = vrot.slane %v135_v11, 2 }
  0x16   : > { %v142_v18 = vrot.slane %v141_v14, 2 }
  0x17   : > { %v125_v20 = vmax.f32 %v123_v9, %v124_v15  ;;  %v131_v21 = vmax.f32 %v129_v10, %v130_v16  ;;  %v137_v22 = vmax.f32 %v135_v11, %v136_v17 }
  0x18   : > { %v143_v24 = vmax.f32 %v141_v14, %v142_v18 }
  0x19   : > { %v126_v25 = vrot.slane %v125_v20, 1  ;;  %v132_v26 = vrot.slane %v131_v21, 1  ;;  %v138_v27 = vrot.slane %v137_v22, 1 }
  0x1a   : > { %v144_v28 = vrot.slane %v143_v24, 1 }
  0x1b   : > { %v127_v29 = vmax.f32 %v125_v20, %v126_v25  ;;  %v133_v30 = vmax.f32 %v131_v21, %v132_v26  ;;  %v139_v31 = vmax.f32 %v137_v22, %v138_v27 }
  0x1c   : > { %v145_v33 = vmax.f32 %v143_v24, %v144_v28 }
  0x1d   : > { %v150_v34 = vcombine.low %v127_v29, %v133_v30 }
  0x1e   : > { %v151_v35 = vcombine.low %v139_v31, %v145_v33 }
  0x1f   : > { %v158_v36 = vrot.slane %v150_v34, %v157_v32 }
  0x20   : > { %v165_v37 = vrot.slane %v151_v35, %v157_v32 }
  0x22   : > { %v166_v38 = vcombine.low %v158_v36, %v165_v37 }
  0x24   : > { %v173_v39 = vrot.slane %v166_v38, %v157_v32 }
  0x26   : > { %179 = vst.msk [vmem:[%s116_s15] sm:$0xf] %vm177_vm0, %v173_v39 }
  0x27 PF: > { %s11_s6 = sadd.s32 1, %s255_s6  }
  0x28   : > { %p8_p4 = scmp.ge.s32.totalorder %s11_s6, 4  }
  0x2a   :  { %10 = sbr.rel (!%p8_p4) target bundleno = 1 (0x1), region = 54 }

// kernel: network_forward.17
= control target key start
LH: loop header
LB: loop body
LE: loop exit
PB: predicated region body
PF: predicated region fallthrough
CT: control target
= control target key end

     0   :  { %s1004_s15 = smov 0   ;;  %s1006_s16 = smov 0   ;;  %s1216_s0 = inlined_call_operand.vmem [shape: bf16[3,2,4,128], index: 0, kind: input, shape index: {}]   ;;  %s1217_s1 = inlined_call_operand.vmem [shape: bf16[3,128,256], index: 1, kind: input, shape index: {}]   ;;  %s1218_s2 = inlined_call_operand.vmem [shape: f32[1,256], index: 2, kind: input, shape index: {}]   ;;  %s1219_s3 = inlined_call_operand.vmem [shape: f32[1,256], index: 3, kind: input, shape index: {}]   ;;  %s1220_s4 = inlined_call_operand.vmem [shape: f32[2,4,256], index: 4, kind: output, shape index: {}]  }
   0x1   :  { %s1008_s17 = smov 0  }
   0x2 LB: > { %s756_s18 = sadd.s32 4294967295, %s976_s17   ;;  %s1021_s19 = sadd.s32 1, %s976_s17   ;;  %s976_s17 = sphi %s1008_s17, %s1223_s17   ;;  %s972_s16 = sphi %s1006_s16, %s1222_s16   ;;  %s968_s15 = sphi %s1004_s15, %s1221_s15  }
   0x3   : > { %s18_s20 = ssub.s32 %s976_s17, %s1021_s19  ;;  %s21_s21 = sadd.s32 1, %s972_s16 }
   0x4   : > { %p19_p0 = scmp.eq.s32.totalorder %s18_s20, 0  ;;  %p28_p1 = scmp.ne.s32.totalorder %s972_s16, %s968_s15 }
   0x5   : > { %p29_p2 = scmp.eq.s32.totalorder %s976_s17, 0  ;;  %p759_p4 = scmp.ge.s32.totalorder %s976_s17, 2 }
   0x6   : > { %s1030_s22 = scalar_select %p19_p0, %s972_s16, %s21_s21  }
   0x7   : > { %p30_p3 = por %p29_p2, %p28_p1  ;;  %152 = sbr.rel (%p759_p4) target bundleno = 21 (0x15), region = 28 }
   0xe   : > { %155 = sbr.rel (!%p30_p3) target bundleno = 21 (0x15), region = 32  ;;  %s157_s23 = sand.u32 (%p30_p3), 1, %s972_s16  }
   0xf   : > { %s760_s24 = sshll.u32 (%p30_p3), %s976_s17, 1  ;;  %s855_s25 = smul.u32 (%p30_p3), 6, %s157_s23 }
  0x10   : > { %s161_s28 = scalar_lea.vmem (%p30_p3), %s1216_s0, %s760_s24 }
  0x11   : > { %v177_v0 = vld [vmem:[%s161_s28] sm:$0x3] (%p30_p3)  ;;  %v179_v1 = vld [vmem:[%s161_s28 + $0x4] sm:$0x3] (%p30_p3)  ;;  %v181_v2 = vld [vmem:[%s161_s28 + $0x8] sm:$0x3] (%p30_p3) }
  0x12   : > { %s159_s29 = scalar_lea.vmem (%p30_p3), [#allocation2], %s855_s25 }
  0x13   : > { %178 = vst [vmem:[%s159_s29] sm:$0x3] (%p30_p3), %v177_v0  ;;  %180 = vst [vmem:[%s159_s29 + $0x2] sm:$0x3] (%p30_p3), %v179_v1 }
  0x14   : > { %182 = vst [vmem:[%s159_s29 + $0x4] sm:$0x3] (%p30_p3), %v181_v2 }
  0x15 PF: > { %p761_p5 = scmp.ge.s32.totalorder %s976_s17, 1  ;;  %p202_p6 = scmp.lt.s32.totalorder %s976_s17, 3 }
  0x17   : > { %p203_p7 = pnand %p761_p5, %p202_p6 }
  0x18   : > { %v882_v3 = vld [vmem:[%s1217_s1 + $0x4] ss:$8 sps:$4 sm:$0xff] (!%p203_p7)   ;;  %v884_v4 = vld [vmem:[%s1217_s1] ss:$8 sps:$4 sm:$0xff] (!%p203_p7)   ;;  %v978_v5 = vmov (!%p203_p7), 0   ;;  %s209_s30 = sand.u32 (!%p203_p7), 1, %s968_s15   ;;  %v662_v59 = vlaneseq (!%p203_p7) }
  0x19   : > { %206 = sbr.rel (%p203_p7) target bundleno = 314 (0x13a), region = 66  ;;  %509 = vmatprep.mubr.bf16.mxu0 (!%p203_p7), %v978_v5  ;;  %388 = vmatprep.mubr.bf16.mxu1 (!%p203_p7), %v978_v5  ;;  %v885_v6 = vld [vmem:[%s1217_s1 + $0x14] ss:$8 sps:$4 sm:$0xff] (!%p203_p7)   ;;  %v887_v7 = vld [vmem:[%s1217_s1 + $0x10] ss:$8 sps:$4 sm:$0xff] (!%p203_p7)   ;;  %p234_p8 = scmp.lt.s32.totalorder (!%p203_p7), %s756_s18, 1 }
  0x1a   : > { %477 = vmatprep.subr.bf16.mxu0 (!%p203_p7), %v882_v3  ;;  %v888_v8 = vld [vmem:[%s1217_s1 + $0x24] ss:$8 sps:$4 sm:$0xff] (!%p203_p7)   ;;  %v890_v9 = vld [vmem:[%s1217_s1 + $0x20] ss:$8 sps:$4 sm:$0xff] (!%p203_p7)   ;;  %v891_v10 = vld [vmem:[%s1217_s1 + $0x34] ss:$8 sps:$4 sm:$0xff] (!%p203_p7)  }
  0x1b   : > { %478 = vmatpush1.bf16.msra.mxu0 (!%p203_p7), %v884_v4  ;;  %v893_v11 = vld [vmem:[%s1217_s1 + $0x30] ss:$8 sps:$4 sm:$0xff] (!%p203_p7)   ;;  %v905_v12 = vld [vmem:[%s1217_s1 + $0x84] ss:$8 sps:$4 sm:$0xff] (!%p203_p7)   ;;  %v908_v13 = vld [vmem:[%s1217_s1 + $0x80] ss:$8 sps:$4 sm:$0xff] (!%p203_p7)  }
  0x1c   : > { %479 = vmatprep.subr.bf16.mxu0 (!%p203_p7), %v885_v6  ;;  %v894_v14 = vld [vmem:[%s1217_s1 + $0x44] ss:$8 sps:$4 sm:$0xff] (!%p203_p7)   ;;  %356 = vmatprep.subr.bf16.mxu1 (!%p203_p7), %v905_v12  ;;  %v912_v15 = vld [vmem:[%s1217_s1 + $0x94] ss:$8 sps:$4 sm:$0xff] (!%p203_p7)   ;;  %v914_v16 = vld [vmem:[%s1217_s1 + $0x90] ss:$8 sps:$4 sm:$0xff] (!%p203_p7)  }
  0x1d   : > { %357 = vmatpush1.bf16.msra.mxu1 (!%p203_p7), %v908_v13  ;;  %v896_v17 = vld [vmem:[%s1217_s1 + $0x40] ss:$8 sps:$4 sm:$0xff] (!%p203_p7)   ;;  %v897_v18 = vld [vmem:[%s1217_s1 + $0x54] ss:$8 sps:$4 sm:$0xff] (!%p203_p7)   ;;  %v918_v19 = vld [vmem:[%s1217_s1 + $0xa4] ss:$8 sps:$4 sm:$0xff] (!%p203_p7)  }
  0x1e   : > { %358 = vmatprep.subr.bf16.mxu1 (!%p203_p7), %v912_v15  ;;  %v899_v20 = vld [vmem:[%s1217_s1 + $0x50] ss:$8 sps:$4 sm:$0xff] (!%p203_p7)   ;;  %v920_v21 = vld [vmem:[%s1217_s1 + $0xa0] ss:$8 sps:$4 sm:$0xff] (!%p203_p7)   ;;  %v924_v22 = vld [vmem:[%s1217_s1 + $0xb4] ss:$8 sps:$4 sm:$0xff] (!%p203_p7)  }
  0x1f   : > { %480 = vmatpush1.bf16.msra.mxu0 (!%p203_p7), %v887_v7  ;;  %v900_v23 = vld [vmem:[%s1217_s1 + $0x64] ss:$8 sps:$4 sm:$0xff] (!%p203_p7)   ;;  %v902_v24 = vld [vmem:[%s1217_s1 + $0x60] ss:$8 sps:$4 sm:$0xff] (!%p203_p7)   ;;  %v926_v25 = vld [vmem:[%s1217_s1 + $0xb0] ss:$8 sps:$4 sm:$0xff] (!%p203_p7)  }
  0x20   : > { %481 = vmatprep.subr.bf16.mxu0 %v888_v8  ;;  %s856_s9 = smul.u32 6, %s209_s30  ;;  %v930_v26 = vld [vmem:[%s1217_s1 + $0xc4] ss:$8 sps:$4 sm:$0xff]   ;;  %v903_v27 = vld [vmem:[%s1217_s1 + $0x74] ss:$8 sps:$4 sm:$0xff]   ;;  %v663_v60 = vshrl.u32 %v662_v59, 7 }
  0x21   : > { %359 = vmatpush1.bf16.msra.mxu1 %v914_v16  ;;  %v907_v28 = vld [vmem:[%s1217_s1 + $0x70] ss:$8 sps:$4 sm:$0xff]   ;;  %v932_v29 = vld [vmem:[%s1217_s1 + $0xc0] ss:$8 sps:$4 sm:$0xff]   ;;  %v936_v30 = vld [vmem:[%s1217_s1 + $0xd4] ss:$8 sps:$4 sm:$0xff]  }
  0x22   : > { %360 = vmatprep.subr.bf16.mxu1 %v918_v19  ;;  %v911_v31 = vld [vmem:[%s1217_s1 + $0x104] ss:$8 sps:$4 sm:$0xff]   ;;  %v909_v32 = vld [vmem:[%s1217_s1 + $0x100] ss:$8 sps:$4 sm:$0xff]   ;;  %s1130_s29 = scalar_lea.vmem [#allocation2], %s856_s9  ;;  %v664_v61 = vsub.s32 0, %v663_v60 }
  0x23   : > { %482 = vmatpush1.bf16.msra.mxu0 %v890_v9  ;;  %v240_v33 = vld [vmem:[%s1130_s29] sm:$0x3]  ;;  %v938_v34 = vld [vmem:[%s1217_s1 + $0xd0] ss:$8 sps:$4 sm:$0xff]   ;;  %v917_v36 = vld [vmem:[%s1217_s1 + $0x114] ss:$8 sps:$4 sm:$0xff]  }
  0x24   : > { %483 = vmatprep.subr.bf16.mxu0 %v891_v10  ;;  %v942_v35 = vld [vmem:[%s1217_s1 + $0xe4] ss:$8 sps:$4 sm:$0xff]   ;;  %v944_v37 = vld [vmem:[%s1217_s1 + $0xe0] ss:$8 sps:$4 sm:$0xff]   ;;  %v915_v38 = vld [vmem:[%s1217_s1 + $0x110] ss:$8 sps:$4 sm:$0xff]  }
  0x25   : > { %361 = vmatpush1.bf16.msra.mxu1 %v920_v21  ;;  %v948_v39 = vld [vmem:[%s1217_s1 + $0xf4] ss:$8 sps:$4 sm:$0xff]   ;;  %v923_v40 = vld [vmem:[%s1217_s1 + $0x124] ss:$8 sps:$4 sm:$0xff]   ;;  %v950_v41 = vld [vmem:[%s1217_s1 + $0xf0] ss:$8 sps:$4 sm:$0xff]  }
  0x26   : > { %362 = vmatprep.subr.bf16.mxu1 %v924_v22  ;;  %v921_v42 = vld [vmem:[%s1217_s1 + $0x120] ss:$8 sps:$4 sm:$0xff]   ;;  %v929_v43 = vld [vmem:[%s1217_s1 + $0x134] ss:$8 sps:$4 sm:$0xff]   ;;  %v927_v45 = vld [vmem:[%s1217_s1 + $0x130] ss:$8 sps:$4 sm:$0xff]  }
  0x27   : > { %484 = vmatpush1.bf16.msra.mxu0 %v893_v11  ;;  %v764_v44 = vld [vmem:[%s1130_s29 + $0x2] sm:$0x3]  ;;  %v935_v46 = vld [vmem:[%s1217_s1 + $0x144] ss:$8 sps:$4 sm:$0xff]   ;;  %v941_v48 = vld [vmem:[%s1217_s1 + $0x154] ss:$8 sps:$4 sm:$0xff]  }
  0x28   : > { %485 = vmatprep.subr.bf16.mxu0 %v894_v14  ;;  %v933_v47 = vld [vmem:[%s1217_s1 + $0x140] ss:$8 sps:$4 sm:$0xff]   ;;  %v939_v49 = vld [vmem:[%s1217_s1 + $0x150] ss:$8 sps:$4 sm:$0xff]   ;;  %v947_v50 = vld [vmem:[%s1217_s1 + $0x164] ss:$8 sps:$4 sm:$0xff]  }
  0x29   : > { %363 = vmatpush1.bf16.msra.mxu1 %v926_v25  ;;  %v945_v51 = vld [vmem:[%s1217_s1 + $0x160] ss:$8 sps:$4 sm:$0xff]   ;;  %v953_v52 = vld [vmem:[%s1217_s1 + $0x174] ss:$8 sps:$4 sm:$0xff]   ;;  %v951_v53 = vld [vmem:[%s1217_s1 + $0x170] ss:$8 sps:$4 sm:$0xff]  }
  0x2a   : > { %364 = vmatprep.subr.bf16.mxu1 %v930_v26  ;;  %v813_v54 = vld [vmem:[%s1130_s29 + $0x4] sm:$0x3]  ;;  %v660_v62 = vld [vmem:[%s1218_s2] sm:$0x3]  ;;  %v668_v63 = vsub.s32 1, %v663_v60  ;;  %s1225_s18 = smov (!%p234_p8, %s756_s18), 1 }
  0x2b   : > { %486 = vmatpush1.bf16.msra.mxu0 %v896_v17  ;;  %v674_v0 = vld [vmem:[%s1219_s3] sm:$0x3]  ;;  %v665_v1 = vrot.slane %v660_v62, %v664_v61  ;;  %s848_s29 = sshll.u32 %s1225_s18, 3 }
  0x2c   : > { %487 = vmatprep.subr.bf16.mxu0 %v897_v18  ;;  %v669_v3 = vrot.slane %v660_v62, %v668_v63  ;;  %v683_v8 = vrot.slane %v674_v0, %v668_v63  ;;  %s238_s8 = scalar_lea.vmem %s1220_s4, %s848_s29 }
  0x2d   : > { %365 = vmatpush1.bf16.msra.mxu1 %v932_v29 }
  0x2e   : > { %366 = vmatprep.subr.bf16.mxu1 %v936_v30 }
  0x2f   : > { %488 = vmatpush1.bf16.msra.mxu0 %v899_v20 }
  0x30   : > { %489 = vmatprep.subr.bf16.mxu0 %v900_v23 }
  0x31   : > { %367 = vmatpush1.bf16.msra.mxu1 %v938_v34 }
  0x32   : > { %368 = vmatprep.subr.bf16.mxu1 %v942_v35 }
  0x33   : > { %490 = vmatpush1.bf16.msra.mxu0 %v902_v24 }
  0x34   : > { %491 = vmatprep.subr.bf16.mxu0 %v903_v27 }
  0x35   : > { %369 = vmatpush1.bf16.msra.mxu1 %v944_v37 }
  0x36   : > { %370 = vmatprep.subr.bf16.mxu1 %v948_v39 }
  0x37   : > { %492 = vmatpush1.bf16.msra.mxu0 %v907_v28 }
  0x38   : > { %617 = vmatprep.subr.bf16.mxu0 %v911_v31 }
  0x39   : > { %371 = vmatpush1.bf16.msra.mxu1 %v950_v41 }
  0x3a   : > { %510 = vmatmul.mubr.bf16.vlgmr.msra.gmra.mrb[0].mxu0 %v240_v33 }
  0x3b   : > { %618 = vmatpush1.bf16.msra.mxu0 %v909_v32  ;;  %649 = vmatprep.mubr.bf16.mxu0 %v978_v5  ;;  %v679_v5 = vrot.slane %v674_v0, %v664_v61 }
  0x3c   : > { %619 = vmatprep.subr.bf16.mxu0 %v917_v36  ;;  %389 = vmatmul.mubr.bf16.vlgmr.msra.gmra.mrb[0].mxu1 %v764_v44 }
  0x3f   : > { %620 = vmatpush1.bf16.msra.mxu0 %v915_v38 }
  0x40   : > { %621 = vmatprep.subr.bf16.mxu0 %v923_v40 }
  0x43   : > { %622 = vmatpush1.bf16.msra.mxu0 %v921_v42 }
  0x44   : > { %623 = vmatprep.subr.bf16.mxu0 %v929_v43 }
  0x47   : > { %624 = vmatpush1.bf16.msra.mxu0 %v927_v45 }
  0x48   : > { %625 = vmatprep.subr.bf16.mxu0 %v935_v46 }
  0x4b   : > { %626 = vmatpush1.bf16.msra.mxu0 %v933_v47 }
  0x4c   : > { %627 = vmatprep.subr.bf16.mxu0 %v941_v48 }
  0x4f   : > { %628 = vmatpush1.bf16.msra.mxu0 %v939_v49 }
  0x50   : > { %629 = vmatprep.subr.bf16.mxu0 %v947_v50 }
  0x53   : > { %630 = vmatpush1.bf16.msra.mxu0 %v945_v51 }
  0x54   : > { %631 = vmatprep.subr.bf16.mxu0 %v953_v52 }
  0x57   : > { %632 = vmatpush1.bf16.msra.mxu0 %v951_v53 }
  0x5a   : > { %650 = vmatmul.mubr.bf16.vlgmr.msra.gmra.mrb[0].mxu0 %v813_v54 }
 0x10f   : > { %v390_v55 = vpop.f32.mrb[0].mxu1 }
 0x110   : > { %v392_v56 = vpop.f32.mrb[1].mxu1 }
 0x111   : > { %v394_v57 = vpop.f32.mrb[2].mxu1 }
 0x112   : > { %v395_v58 = vpop.f32.mrb[3].mxu1 }
 0x12d   : > { %v651_v2 = vpop.f32.mrb[0].mxu0 }
 0x12e   : > { %v849_v4 = vadd.f32 %v651_v2, %v390_v55  ;;  %v653_v6 = vpop.f32.mrb[1].mxu0 }
 0x12f   : > { %v850_v7 = vadd.f32 %v653_v6, %v392_v56  ;;  %v655_v9 = vpop.f32.mrb[2].mxu0 }
 0x130   : > { %v672_v10 = vmul.f32 %v849_v4, %v665_v1  ;;  %v656_v11 = vpop.f32.mrb[3].mxu0 }
 0x131   : > { %v673_v12 = vmul.f32 %v850_v7, %v669_v3 }
 0x132   : > { %v686_v13 = vadd.f32 %v679_v5, %v672_v10 }
 0x133   : > { %v687_v14 = vadd.f32 %v683_v8, %v673_v12 }
 0x134   : > { %v688_v15 = vmax.f32 %v686_v13, 0.0 }
 0x135   : > { %v689_v16 = vmax.f32 %v687_v14, 0.0 }
 0x137   : > { %v692_v17 = vcombine.low %v688_v15, %v689_v16 }
 0x139   : > { %694 = vst [vmem:[%s238_s8] sm:$0xff] %v692_v17 }
 0x13a PF: > { %p11_p9 = scmp.ge.s32.totalorder %s1021_s19, 4   ;;  %s1221_s15 = smov %s972_s16 }
 0x13b   : > { %s1222_s16 = smov %s1030_s22  ;;  %s1223_s17 = smov %s1021_s19 }
 0x13c   :  { %13 = sbr.rel (!%p11_p9) target bundleno = 2 (0x2), region = 109 }

// kernel: network_forward.18
= control target key start
LH: loop header
LB: loop body
LE: loop exit
PB: predicated region body
PF: predicated region fallthrough
CT: control target
= control target key end

     0   :  { %s1555_s18 = smov 0   ;;  %s1557_s19 = smov 0   ;;  %s1921_s0 = inlined_call_operand.vmem [shape: bf16[3,2,4,256], index: 0, kind: input, shape index: {}]   ;;  %s1922_s1 = inlined_call_operand.vmem [shape: bf16[3,256,256], index: 1, kind: input, shape index: {}]   ;;  %s1923_s2 = inlined_call_operand.vmem [shape: f32[1,256], index: 2, kind: input, shape index: {}]   ;;  %s1924_s3 = inlined_call_operand.vmem [shape: f32[1,256], index: 3, kind: input, shape index: {}]   ;;  %s1925_s4 = inlined_call_operand.vmem [shape: f32[2,4,256], index: 4, kind: input, shape index: {}]   ;;  %s1926_s5 = inlined_call_operand.vmem [shape: f32[2,4,256], index: 5, kind: output, shape index: {}]  }
   0x1   :  { %s1559_s20 = smov 0  }
   0x2 LB: > { %s1144_s21 = sadd.s32 4294967295, %s1523_s20   ;;  %s1572_s22 = sadd.s32 1, %s1523_s20   ;;  %s1523_s20 = sphi %s1559_s20, %s1929_s20   ;;  %s1519_s19 = sphi %s1557_s19, %s1928_s19   ;;  %s1515_s18 = sphi %s1555_s18, %s1927_s18  }
   0x3   : > { %s19_s23 = ssub.s32 %s1523_s20, %s1572_s22  ;;  %s22_s24 = sadd.s32 1, %s1519_s19 }
   0x4   : > { %p20_p0 = scmp.eq.s32.totalorder %s19_s23, 0  ;;  %p29_p1 = scmp.ne.s32.totalorder %s1519_s19, %s1515_s18 }
   0x5   : > { %p30_p2 = scmp.eq.s32.totalorder %s1523_s20, 0  ;;  %p1147_p4 = scmp.ge.s32.totalorder %s1523_s20, 2 }
   0x6   : > { %s1581_s25 = scalar_select %p20_p0, %s1519_s19, %s22_s24  }
   0x7   : > { %p31_p3 = por %p30_p2, %p29_p1  ;;  %179 = sbr.rel (%p1147_p4) target bundleno = 21 (0x15), region = 28 }
   0xe   : > { %182 = sbr.rel (!%p31_p3) target bundleno = 21 (0x15), region = 32  ;;  %s184_s26 = sand.u32 (%p31_p3), 1, %s1519_s19  }
   0xf   : > { %s1322_s27 = sshll.u32 (%p31_p3), %s1523_s20, 2  ;;  %s1331_s28 = smul.u32 (%p31_p3), 12, %s184_s26 }
  0x10   : > { %s189_s6 = scalar_lea.vmem (%p31_p3), %s1921_s0, %s1322_s27 }
  0x11   : > { %v205_v0 = vld [vmem:[%s189_s6] sm:$0xf] (%p31_p3)  ;;  %v207_v1 = vld [vmem:[%s189_s6 + $0x8] sm:$0xf] (%p31_p3)  ;;  %v209_v2 = vld [vmem:[%s189_s6 + $0x10] sm:$0xf] (%p31_p3) }
  0x12   : > { %s186_s7 = scalar_lea.vmem (%p31_p3), [#allocation2], %s1331_s28 }
  0x13   : > { %206 = vst [vmem:[%s186_s7] sm:$0xf] (%p31_p3), %v205_v0  ;;  %208 = vst [vmem:[%s186_s7 + $0x4] sm:$0xf] (%p31_p3), %v207_v1 }
  0x14   : > { %210 = vst [vmem:[%s186_s7 + $0x8] sm:$0xf] (%p31_p3), %v209_v2 }
  0x15 PF: > { %p1150_p5 = scmp.ge.s32.totalorder %s1523_s20, 1  ;;  %p246_p6 = scmp.lt.s32.totalorder %s1523_s20, 3 }
  0x17   : > { %p247_p7 = pnand %p1150_p5, %p246_p6 }
  0x18   : > { %v1357_v3 = vld [vmem:[%s1922_s1 + $0x4] ss:$8 sps:$4 sm:$0xff] (!%p247_p7)   ;;  %v1359_v4 = vld [vmem:[%s1922_s1] ss:$8 sps:$4 sm:$0xff] (!%p247_p7)   ;;  %v1360_v5 = vld [vmem:[%s1922_s1 + $0x14] ss:$8 sps:$4 sm:$0xff] (!%p247_p7)  }
  0x19   : > { %250 = sbr.rel (%p247_p7) target bundleno = 379 (0x17b), region = 77  ;;  %746 = vmatprep.subr.bf16.mxu0 (!%p247_p7), %v1357_v3  ;;  %v1362_v6 = vld [vmem:[%s1922_s1 + $0x10] ss:$8 sps:$4 sm:$0xff] (!%p247_p7)   ;;  %v1363_v7 = vld [vmem:[%s1922_s1 + $0x24] ss:$8 sps:$4 sm:$0xff] (!%p247_p7)   ;;  %s253_s7 = sand.u32 (!%p247_p7), 1, %s1515_s18  }
  0x1a   : > { %747 = vmatpush1.bf16.msra.mxu0 (!%p247_p7), %v1359_v4  ;;  %v1365_v8 = vld [vmem:[%s1922_s1 + $0x20] ss:$8 sps:$4 sm:$0xff] (!%p247_p7)   ;;  %v1366_v9 = vld [vmem:[%s1922_s1 + $0x34] ss:$8 sps:$4 sm:$0xff] (!%p247_p7)   ;;  %v1368_v10 = vld [vmem:[%s1922_s1 + $0x30] ss:$8 sps:$4 sm:$0xff] (!%p247_p7)  }
  0x1b   : > { %748 = vmatprep.subr.bf16.mxu0 (!%p247_p7), %v1360_v5  ;;  %v1369_v11 = vld [vmem:[%s1922_s1 + $0x44] ss:$8 sps:$4 sm:$0xff] (!%p247_p7)   ;;  %v1371_v12 = vld [vmem:[%s1922_s1 + $0x40] ss:$8 sps:$4 sm:$0xff] (!%p247_p7)   ;;  %v1372_v13 = vld [vmem:[%s1922_s1 + $0x54] ss:$8 sps:$4 sm:$0xff] (!%p247_p7)  }
  0x1c   : > { %s1332_s12 = smul.u32 (!%p247_p7), 12, %s253_s7  ;;  %v1374_v14 = vld [vmem:[%s1922_s1 + $0x50] ss:$8 sps:$4 sm:$0xff] (!%p247_p7)   ;;  %v1375_v15 = vld [vmem:[%s1922_s1 + $0x64] ss:$8 sps:$4 sm:$0xff] (!%p247_p7)   ;;  %p285_p8 = scmp.lt.s32.totalorder (!%p247_p7), %s1144_s21, 1 }
  0x1d   : > { %v1404_v16 = vld [vmem:[%s1922_s1 + $0x104] ss:$8 sps:$4 sm:$0xff] (!%p247_p7)   ;;  %v1377_v17 = vld [vmem:[%s1922_s1 + $0x60] ss:$8 sps:$4 sm:$0xff] (!%p247_p7)   ;;  %v1378_v20 = vld [vmem:[%s1922_s1 + $0x74] ss:$8 sps:$4 sm:$0xff] (!%p247_p7)  }
  0x1e   : > { %749 = vmatpush1.bf16.msra.mxu0 (!%p247_p7), %v1362_v6  ;;  %v1407_v18 = vld [vmem:[%s1922_s1 + $0x100] ss:$8 sps:$4 sm:$0xff] (!%p247_p7)   ;;  %534 = vmatprep.subr.bf16.mxu1 (!%p247_p7), %v1404_v16  ;;  %s1640_s28 = scalar_lea.vmem (!%p247_p7), [#allocation2], %s1332_s12  ;;  %v1411_v22 = vld [vmem:[%s1922_s1 + $0x114] ss:$8 sps:$4 sm:$0xff] (!%p247_p7)  }
  0x1f   : > { %750 = vmatprep.subr.bf16.mxu0 (!%p247_p7), %v1363_v7  ;;  %v1643_v19 = vld.sshfl [vmem:[%s1640_s28] sm:$0x33 pattern:$0x76325410] (!%p247_p7)  ;;  %535 = vmatpush1.bf16.msra.mxu1 (!%p247_p7), %v1407_v18  ;;  %v1413_v23 = vld [vmem:[%s1922_s1 + $0x110] ss:$8 sps:$4 sm:$0xff] (!%p247_p7)  }
  0x20   : > { %v583_v21 = vcombine.high %v1643_v19, %v1643_v19  ;;  %v1380_v24 = vld [vmem:[%s1922_s1 + $0x70] ss:$8 sps:$4 sm:$0xff]   ;;  %v1381_v25 = vld [vmem:[%s1922_s1 + $0x84] ss:$8 sps:$4 sm:$0xff]   ;;  %536 = vmatprep.subr.bf16.mxu1 %v1411_v22  ;;  %v1419_v27 = vld [vmem:[%s1922_s1 + $0x120] ss:$8 sps:$4 sm:$0xff]  }
  0x21   : > { %v1417_v26 = vld [vmem:[%s1922_s1 + $0x124] ss:$8 sps:$4 sm:$0xff]   ;;  %v1383_v28 = vld [vmem:[%s1922_s1 + $0x80] ss:$8 sps:$4 sm:$0xff]   ;;  %v1423_v29 = vld [vmem:[%s1922_s1 + $0x134] ss:$8 sps:$4 sm:$0xff]  }
  0x22   : > { %751 = vmatpush1.bf16.msra.mxu0 %v1365_v8  ;;  %778 = vmatprep.mubr.bf16.mxu0 %v583_v21  ;;  %v1384_v30 = vld [vmem:[%s1922_s1 + $0x94] ss:$8 sps:$4 sm:$0xff]   ;;  %v1425_v31 = vld [vmem:[%s1922_s1 + $0x130] ss:$8 sps:$4 sm:$0xff]   ;;  %v1429_v32 = vld [vmem:[%s1922_s1 + $0x144] ss:$8 sps:$4 sm:$0xff]  }
  0x23   : > { %752 = vmatprep.subr.bf16.mxu0 %v1366_v9  ;;  %537 = vmatpush1.bf16.msra.mxu1 %v1413_v23  ;;  %v1386_v33 = vld [vmem:[%s1922_s1 + $0x90] ss:$8 sps:$4 sm:$0xff]   ;;  %v1387_v34 = vld [vmem:[%s1922_s1 + $0xa4] ss:$8 sps:$4 sm:$0xff]   ;;  %v1431_v35 = vld [vmem:[%s1922_s1 + $0x140] ss:$8 sps:$4 sm:$0xff]  }
  0x24   : > { %538 = vmatprep.subr.bf16.mxu1 %v1417_v26  ;;  %v1435_v36 = vld [vmem:[%s1922_s1 + $0x154] ss:$8 sps:$4 sm:$0xff]   ;;  %v1389_v37 = vld [vmem:[%s1922_s1 + $0xa0] ss:$8 sps:$4 sm:$0xff]   ;;  %v1437_v39 = vld [vmem:[%s1922_s1 + $0x150] ss:$8 sps:$4 sm:$0xff]  }
  0x25   : > { %v1390_v38 = vld [vmem:[%s1922_s1 + $0xb4] ss:$8 sps:$4 sm:$0xff]   ;;  %v1441_v40 = vld [vmem:[%s1922_s1 + $0x164] ss:$8 sps:$4 sm:$0xff]   ;;  %v1392_v41 = vld [vmem:[%s1922_s1 + $0xb0] ss:$8 sps:$4 sm:$0xff]  }
  0x26   : > { %753 = vmatpush1.bf16.msra.mxu0 %v1368_v10  ;;  %v1393_v42 = vld [vmem:[%s1922_s1 + $0xc4] ss:$8 sps:$4 sm:$0xff]   ;;  %v1443_v43 = vld [vmem:[%s1922_s1 + $0x160] ss:$8 sps:$4 sm:$0xff]   ;;  %v1447_v44 = vld [vmem:[%s1922_s1 + $0x174] ss:$8 sps:$4 sm:$0xff]  }
  0x27   : > { %754 = vmatprep.subr.bf16.mxu0 %v1369_v11  ;;  %539 = vmatpush1.bf16.msra.mxu1 %v1419_v27  ;;  %v1395_v45 = vld [vmem:[%s1922_s1 + $0xc0] ss:$8 sps:$4 sm:$0xff]   ;;  %v1396_v46 = vld [vmem:[%s1922_s1 + $0xd4] ss:$8 sps:$4 sm:$0xff]   ;;  %v1449_v47 = vld [vmem:[%s1922_s1 + $0x170] ss:$8 sps:$4 sm:$0xff]  }
  0x28   : > { %540 = vmatprep.subr.bf16.mxu1 %v1423_v29  ;;  %v1453_v48 = vld [vmem:[%s1922_s1 + $0x184] ss:$8 sps:$4 sm:$0xff]   ;;  %v1398_v49 = vld [vmem:[%s1922_s1 + $0xd0] ss:$8 sps:$4 sm:$0xff]   ;;  %v1455_v51 = vld [vmem:[%s1922_s1 + $0x180] ss:$8 sps:$4 sm:$0xff]  }
  0x29   : > { %v1399_v50 = vld [vmem:[%s1922_s1 + $0xe4] ss:$8 sps:$4 sm:$0xff]   ;;  %v1459_v52 = vld [vmem:[%s1922_s1 + $0x194] ss:$8 sps:$4 sm:$0xff]   ;;  %v1401_v53 = vld [vmem:[%s1922_s1 + $0xe0] ss:$8 sps:$4 sm:$0xff]  }
  0x2a   : > { %755 = vmatpush1.bf16.msra.mxu0 %v1371_v12  ;;  %v1402_v54 = vld [vmem:[%s1922_s1 + $0xf4] ss:$8 sps:$4 sm:$0xff]   ;;  %v1461_v55 = vld [vmem:[%s1922_s1 + $0x190] ss:$8 sps:$4 sm:$0xff]   ;;  %v1465_v56 = vld [vmem:[%s1922_s1 + $0x1a4] ss:$8 sps:$4 sm:$0xff]  }
  0x2b   : > { %756 = vmatprep.subr.bf16.mxu0 %v1372_v13  ;;  %541 = vmatpush1.bf16.msra.mxu1 %v1425_v31  ;;  %v1406_v57 = vld [vmem:[%s1922_s1 + $0xf0] ss:$8 sps:$4 sm:$0xff]   ;;  %v1410_v58 = vld [vmem:[%s1922_s1 + $0x204] ss:$8 sps:$4 sm:$0xff]   ;;  %v1467_v59 = vld [vmem:[%s1922_s1 + $0x1a0] ss:$8 sps:$4 sm:$0xff]  }
  0x2c   : > { %542 = vmatprep.subr.bf16.mxu1 %v1429_v32  ;;  %v1471_v60 = vld [vmem:[%s1922_s1 + $0x1b4] ss:$8 sps:$4 sm:$0xff]   ;;  %v1408_v61 = vld [vmem:[%s1922_s1 + $0x200] ss:$8 sps:$4 sm:$0xff]   ;;  %v1473_v0 = vld [vmem:[%s1922_s1 + $0x1b0] ss:$8 sps:$4 sm:$0xff]  }
  0x2d   : > { %v1188_v62 = vld.sshfl [vmem:[%s1640_s28 + $0x4] sm:$0x33 pattern:$0x76325410]  ;;  %v1416_v63 = vld [vmem:[%s1922_s1 + $0x214] ss:$8 sps:$4 sm:$0xff]  }
  0x2e   : > { %757 = vmatpush1.bf16.msra.mxu0 %v1374_v14  ;;  %v371_v1 = vcombine.high %v1188_v62, %v1188_v62  ;;  %v1477_v2 = vld [vmem:[%s1922_s1 + $0x1c4] ss:$8 sps:$4 sm:$0xff]   ;;  %v1781_v3 = vld.sshfl [vmem:[%s1640_s28 + $0x8] sm:$0x33 pattern:$0x76325410] }
  0x2f   : > { %758 = vmatprep.subr.bf16.mxu0 %v1375_v15  ;;  %543 = vmatpush1.bf16.msra.mxu1 %v1431_v35  ;;  %v830_v4 = vcombine.high %v1781_v3, %v1781_v3  ;;  %v1414_v5 = vld [vmem:[%s1922_s1 + $0x210] ss:$8 sps:$4 sm:$0xff]   ;;  %v1422_v6 = vld [vmem:[%s1922_s1 + $0x224] ss:$8 sps:$4 sm:$0xff]   ;;  %v1479_v7 = vld [vmem:[%s1922_s1 + $0x1c0] ss:$8 sps:$4 sm:$0xff]  }
  0x30   : > { %544 = vmatprep.subr.bf16.mxu1 %v1435_v36  ;;  %566 = vmatprep.mubr.bf16.mxu1 %v371_v1  ;;  %v1483_v8 = vld [vmem:[%s1922_s1 + $0x1d4] ss:$8 sps:$4 sm:$0xff]   ;;  %v1420_v9 = vld [vmem:[%s1922_s1 + $0x220] ss:$8 sps:$4 sm:$0xff]   ;;  %v1485_v11 = vld [vmem:[%s1922_s1 + $0x1d0] ss:$8 sps:$4 sm:$0xff]  }
  0x31   : > { %v1428_v10 = vld [vmem:[%s1922_s1 + $0x234] ss:$8 sps:$4 sm:$0xff]   ;;  %v1489_v12 = vld [vmem:[%s1922_s1 + $0x1e4] ss:$8 sps:$4 sm:$0xff]   ;;  %v1426_v13 = vld [vmem:[%s1922_s1 + $0x230] ss:$8 sps:$4 sm:$0xff]  }
  0x32   : > { %759 = vmatpush1.bf16.msra.mxu0 %v1377_v17  ;;  %v1434_v14 = vld [vmem:[%s1922_s1 + $0x244] ss:$8 sps:$4 sm:$0xff]   ;;  %v1491_v15 = vld [vmem:[%s1922_s1 + $0x1e0] ss:$8 sps:$4 sm:$0xff]   ;;  %v1495_v16 = vld [vmem:[%s1922_s1 + $0x1f4] ss:$8 sps:$4 sm:$0xff]  }
  0x33   : > { %760 = vmatprep.subr.bf16.mxu0 %v1378_v20  ;;  %545 = vmatpush1.bf16.msra.mxu1 %v1437_v39  ;;  %v1432_v17 = vld [vmem:[%s1922_s1 + $0x240] ss:$8 sps:$4 sm:$0xff]   ;;  %v1440_v18 = vld [vmem:[%s1922_s1 + $0x254] ss:$8 sps:$4 sm:$0xff]   ;;  %v1438_v20 = vld [vmem:[%s1922_s1 + $0x250] ss:$8 sps:$4 sm:$0xff]  }
  0x34   : > { %546 = vmatprep.subr.bf16.mxu1 %v1441_v40  ;;  %v1446_v21 = vld [vmem:[%s1922_s1 + $0x264] ss:$8 sps:$4 sm:$0xff]   ;;  %v1444_v22 = vld [vmem:[%s1922_s1 + $0x260] ss:$8 sps:$4 sm:$0xff]   ;;  %v1452_v23 = vld [vmem:[%s1922_s1 + $0x274] ss:$8 sps:$4 sm:$0xff]  }
  0x35   : > { %v1456_v26 = vld [vmem:[%s1922_s1 + $0x280] ss:$8 sps:$4 sm:$0xff]   ;;  %v1464_v27 = vld [vmem:[%s1922_s1 + $0x294] ss:$8 sps:$4 sm:$0xff]   ;;  %v1470_v29 = vld [vmem:[%s1922_s1 + $0x2a4] ss:$8 sps:$4 sm:$0xff]  }
  0x36   : > { %761 = vmatpush1.bf16.msra.mxu0 %v1380_v24  ;;  %v1450_v24 = vld [vmem:[%s1922_s1 + $0x270] ss:$8 sps:$4 sm:$0xff]   ;;  %v1476_v31 = vld [vmem:[%s1922_s1 + $0x2b4] ss:$8 sps:$4 sm:$0xff]   ;;  %s1931_s21 = smov (!%p285_p8, %s1144_s21), 1 }
  0x37   : > { %762 = vmatprep.subr.bf16.mxu0 %v1381_v25  ;;  %547 = vmatpush1.bf16.msra.mxu1 %v1443_v43  ;;  %v1458_v25 = vld [vmem:[%s1922_s1 + $0x284] ss:$8 sps:$4 sm:$0xff]   ;;  %v1474_v32 = vld [vmem:[%s1922_s1 + $0x2b0] ss:$8 sps:$4 sm:$0xff]   ;;  %v1488_v35 = vld [vmem:[%s1922_s1 + $0x2d4] ss:$8 sps:$4 sm:$0xff]  }
  0x38   : > { %548 = vmatprep.subr.bf16.mxu1 %v1447_v44  ;;  %v1486_v36 = vld [vmem:[%s1922_s1 + $0x2d0] ss:$8 sps:$4 sm:$0xff]   ;;  %v1500_v39 = vld [vmem:[%s1922_s1 + $0x2f4] ss:$8 sps:$4 sm:$0xff]   ;;  %s1323_s12 = sshll.u32 %s1931_s21, 3 }
  0x39   : > { %v1498_v40 = vld [vmem:[%s1922_s1 + $0x2f0] ss:$8 sps:$4 sm:$0xff]   ;;  %s289_s20 = scalar_lea.vmem %s1925_s4, %s1323_s12  ;;  %s294_s16 = scalar_lea.vmem %s1926_s5, %s1323_s12 }
  0x3a   : > { %763 = vmatpush1.bf16.msra.mxu0 %v1383_v28  ;;  %v1462_v28 = vld [vmem:[%s1922_s1 + $0x290] ss:$8 sps:$4 sm:$0xff]  }
  0x3b   : > { %764 = vmatprep.subr.bf16.mxu0 %v1384_v30  ;;  %549 = vmatpush1.bf16.msra.mxu1 %v1449_v47  ;;  %v1468_v30 = vld [vmem:[%s1922_s1 + $0x2a0] ss:$8 sps:$4 sm:$0xff]  }
  0x3c   : > { %550 = vmatprep.subr.bf16.mxu1 %v1453_v48  ;;  %v1037_v48 = vld [vmem:[%s1923_s2] sm:$0x3] }
  0x3e   : > { %765 = vmatpush1.bf16.msra.mxu0 %v1386_v33  ;;  %v1482_v33 = vld [vmem:[%s1922_s1 + $0x2c4] ss:$8 sps:$4 sm:$0xff]  }
  0x3f   : > { %766 = vmatprep.subr.bf16.mxu0 %v1387_v34  ;;  %551 = vmatpush1.bf16.msra.mxu1 %v1455_v51  ;;  %v1480_v34 = vld [vmem:[%s1922_s1 + $0x2c0] ss:$8 sps:$4 sm:$0xff]  }
  0x40   : > { %552 = vmatprep.subr.bf16.mxu1 %v1459_v52  ;;  %v1056_v51 = vld [vmem:[%s1924_s3] sm:$0x3] }
  0x42   : > { %767 = vmatpush1.bf16.msra.mxu0 %v1389_v37  ;;  %v1494_v37 = vld [vmem:[%s1922_s1 + $0x2e4] ss:$8 sps:$4 sm:$0xff]  }
  0x43   : > { %768 = vmatprep.subr.bf16.mxu0 %v1390_v38  ;;  %553 = vmatpush1.bf16.msra.mxu1 %v1461_v55  ;;  %v1492_v38 = vld [vmem:[%s1922_s1 + $0x2e0] ss:$8 sps:$4 sm:$0xff]  }
  0x44   : > { %554 = vmatprep.subr.bf16.mxu1 %v1465_v56 }
  0x46   : > { %769 = vmatpush1.bf16.msra.mxu0 %v1392_v41 }
  0x47   : > { %770 = vmatprep.subr.bf16.mxu0 %v1393_v42  ;;  %555 = vmatpush1.bf16.msra.mxu1 %v1467_v59 }
  0x48   : > { %556 = vmatprep.subr.bf16.mxu1 %v1471_v60 }
  0x4a   : > { %771 = vmatpush1.bf16.msra.mxu0 %v1395_v45  ;;  %v1039_v45 = vlaneseq }
  0x4b   : > { %772 = vmatprep.subr.bf16.mxu0 %v1396_v46  ;;  %557 = vmatpush1.bf16.msra.mxu1 %v1473_v0 }
  0x4c   : > { %558 = vmatprep.subr.bf16.mxu1 %v1477_v2  ;;  %v1040_v46 = vshrl.u32 %v1039_v45, 7 }
  0x4e   : > { %773 = vmatpush1.bf16.msra.mxu0 %v1398_v49  ;;  %v1041_v47 = vsub.s32 0, %v1040_v46  ;;  %v1045_v49 = vsub.s32 1, %v1040_v46 }
  0x4f   : > { %774 = vmatprep.subr.bf16.mxu0 %v1399_v50  ;;  %559 = vmatpush1.bf16.msra.mxu1 %v1479_v7 }
  0x50   : > { %560 = vmatprep.subr.bf16.mxu1 %v1483_v8  ;;  %v1042_v50 = vrot.slane %v1037_v48, %v1041_v47  ;;  %v1061_v56 = vrot.slane %v1056_v51, %v1041_v47 }
  0x52   : > { %775 = vmatpush1.bf16.msra.mxu0 %v1401_v53  ;;  %v1046_v53 = vrot.slane %v1037_v48, %v1045_v49 }
  0x53   : > { %776 = vmatprep.subr.bf16.mxu0 %v1402_v54  ;;  %561 = vmatpush1.bf16.msra.mxu1 %v1485_v11 }
  0x54   : > { %562 = vmatprep.subr.bf16.mxu1 %v1489_v12 }
  0x56   : > { %777 = vmatpush1.bf16.msra.mxu0 %v1406_v57 }
  0x57   : > { %993 = vmatprep.subr.bf16.mxu0 %v1410_v58  ;;  %563 = vmatpush1.bf16.msra.mxu1 %v1491_v15  ;;  %v1065_v58 = vrot.slane %v1056_v51, %v1045_v49 }
  0x58   : > { %564 = vmatprep.subr.bf16.mxu1 %v1495_v16 }
  0x59   : > { %779 = vmatmul.mubr.bf16.vlgmr.msra.gmra.mrb[0].mxu0 %v1643_v19  ;;  %v1497_v19 = vld [vmem:[%s1922_s1 + $0x1f0] ss:$8 sps:$4 sm:$0xff]   ;;  %v1066_v1 = vcombine.low %v1061_v56, %v1065_v58 }
  0x5a   : > { %994 = vmatpush1.bf16.msra.mxu0 %v1408_v61  ;;  %1025 = vmatprep.mubr.bf16.mxu0 %v830_v4 }
  0x5b   : > { %995 = vmatprep.subr.bf16.mxu0 %v1416_v63  ;;  %565 = vmatpush1.bf16.msra.mxu1 %v1497_v19  ;;  %v1036_v63 = vld [vmem:[%s289_s20] sm:$0xff] }
  0x5e   : > { %996 = vmatpush1.bf16.msra.mxu0 %v1414_v5  ;;  %567 = vmatmul.mubr.bf16.vlgmr.msra.gmra.mrb[0].mxu1 %v1188_v62 }
  0x5f   : > { %997 = vmatprep.subr.bf16.mxu0 %v1422_v6 }
  0x62   : > { %998 = vmatpush1.bf16.msra.mxu0 %v1420_v9 }
  0x63   : > { %999 = vmatprep.subr.bf16.mxu0 %v1428_v10 }
  0x66   : > { %1000 = vmatpush1.bf16.msra.mxu0 %v1426_v13 }
  0x67   : > { %1001 = vmatprep.subr.bf16.mxu0 %v1434_v14 }
  0x6a   : > { %1002 = vmatpush1.bf16.msra.mxu0 %v1432_v17 }
  0x6b   : > { %1003 = vmatprep.subr.bf16.mxu0 %v1440_v18 }
  0x6e   : > { %1004 = vmatpush1.bf16.msra.mxu0 %v1438_v20 }
  0x6f   : > { %1005 = vmatprep.subr.bf16.mxu0 %v1446_v21 }
  0x72   : > { %1006 = vmatpush1.bf16.msra.mxu0 %v1444_v22 }
  0x73   : > { %1007 = vmatprep.subr.bf16.mxu0 %v1452_v23 }
  0x76   : > { %1008 = vmatpush1.bf16.msra.mxu0 %v1450_v24 }
  0x77   : > { %1009 = vmatprep.subr.bf16.mxu0 %v1458_v25 }
  0x7a   : > { %1010 = vmatpush1.bf16.msra.mxu0 %v1456_v26 }
  0x7b   : > { %1011 = vmatprep.subr.bf16.mxu0 %v1464_v27 }
  0x7e   : > { %1012 = vmatpush1.bf16.msra.mxu0 %v1462_v28 }
  0x7f   : > { %1013 = vmatprep.subr.bf16.mxu0 %v1470_v29 }
  0x82   : > { %1014 = vmatpush1.bf16.msra.mxu0 %v1468_v30 }
  0x83   : > { %1015 = vmatprep.subr.bf16.mxu0 %v1476_v31 }
  0x86   : > { %1016 = vmatpush1.bf16.msra.mxu0 %v1474_v32 }
  0x87   : > { %1017 = vmatprep.subr.bf16.mxu0 %v1482_v33 }
  0x8a   : > { %1018 = vmatpush1.bf16.msra.mxu0 %v1480_v34 }
  0x8b   : > { %1019 = vmatprep.subr.bf16.mxu0 %v1488_v35 }
  0x8e   : > { %1020 = vmatpush1.bf16.msra.mxu0 %v1486_v36 }
  0x8f   : > { %1021 = vmatprep.subr.bf16.mxu0 %v1494_v37 }
  0x92   : > { %1022 = vmatpush1.bf16.msra.mxu0 %v1492_v38 }
  0x93   : > { %1023 = vmatprep.subr.bf16.mxu0 %v1500_v39 }
  0x96   : > { %1024 = vmatpush1.bf16.msra.mxu0 %v1498_v40 }
  0x99   : > { %1026 = vmatmul.mubr.bf16.vlgmr.msra.gmra.mrb[0].mxu0 %v1781_v3 }
 0x131   : > { %v568_v41 = vpop.f32.mrb[0].mxu1 }
 0x132   : > { %v570_v42 = vpop.f32.mrb[1].mxu1 }
 0x133   : > { %v572_v43 = vpop.f32.mrb[2].mxu1 }
 0x134   : > { %v573_v44 = vpop.f32.mrb[3].mxu1 }
 0x16c   : > { %v1027_v52 = vpop.f32.mrb[0].mxu0 }
 0x16d   : > { %v1325_v54 = vadd.f32 %v1027_v52, %v568_v41  ;;  %v1029_v55 = vpop.f32.mrb[1].mxu0 }
 0x16e   : > { %v1326_v57 = vadd.f32 %v1029_v55, %v570_v42  ;;  %v1031_v59 = vpop.f32.mrb[2].mxu0 }
 0x16f   : > { %v1049_v60 = vmul.f32 %v1325_v54, %v1042_v50  ;;  %v1032_v61 = vpop.f32.mrb[3].mxu0 }
 0x170   : > { %v1050_v62 = vmul.f32 %v1326_v57, %v1046_v53 }
 0x172   : > { %v1053_v0 = vcombine.low %v1049_v60, %v1050_v62 }
 0x174   : > { %v1055_v2 = vadd.f32 %v1053_v0, %v1036_v63 }
 0x176   : > { %v1068_v3 = vadd.f32 %v1066_v1, %v1055_v2 }
 0x178   : > { %v1069_v4 = vmax.f32 %v1068_v3, 0.0 }
 0x17a   : > { %1070 = vst [vmem:[%s294_s16] sm:$0xff] %v1069_v4 }
 0x17b PF: > { %p12_p9 = scmp.ge.s32.totalorder %s1572_s22, 4   ;;  %s1927_s18 = smov %s1519_s19 }
 0x17c   : > { %s1928_s19 = smov %s1581_s25  ;;  %s1929_s20 = smov %s1572_s22 }
 0x17d   :  { %14 = sbr.rel (!%p12_p9) target bundleno = 2 (0x2), region = 123 }

// kernel: network_forward.19
= control target key start
LH: loop header
LB: loop body
LE: loop exit
PB: predicated region body
PF: predicated region fallthrough
CT: control target
= control target key end

     0   :  { %v50_v6 = vmov 1966171168   ;;  %v28_v8 = vlaneseq  ;;  %s70_s0 = inlined_call_operand.vmem [shape: f32[8,256], index: 0, kind: input, shape index: {}]   ;;  %s71_s1 = inlined_call_operand.vmem [shape: f32[1,256], index: 1, kind: output, shape index: {}]  }
   0x1   :  { %v8_v0 = vld [vmem:[%s70_s0] sm:$0xff]  ;;  %v9_v1 = vld [vmem:[%s70_s0 + $0x8] sm:$0xff]  ;;  %v26_v7 = vunpack.c.l.s4 %v50_v6 }
   0x2   :  { %v10_v2 = vrot.slane %v8_v0, 4  ;;  %v16_v3 = vrot.slane %v9_v1, 4  ;;  %v29_v14 = vshrl.u32 %v28_v8, 7  ;;  %vm42_vm0 = vcmp.lt.s32.totalorder %v28_v8, 256 }
   0x3   :  { %v27_v13 = vunpack.c.0.s8 %v26_v7 }
   0x4   :  { %v11_v4 = vmax.f32 %v8_v0, %v10_v2  ;;  %v17_v5 = vmax.f32 %v9_v1, %v16_v3 }
   0x5   :  { %v30_v19 = vsub.s32 %v27_v13, %v29_v14 }
   0x6   :  { %v12_v9 = vrot.slane %v11_v4, 2  ;;  %v18_v10 = vrot.slane %v17_v5, 2 }
   0x8   :  { %v13_v11 = vmax.f32 %v11_v4, %v12_v9  ;;  %v19_v12 = vmax.f32 %v17_v5, %v18_v10 }
   0xa   :  { %v14_v15 = vrot.slane %v13_v11, 1  ;;  %v20_v16 = vrot.slane %v19_v12, 1 }
   0xc   :  { %v15_v17 = vmax.f32 %v13_v11, %v14_v15  ;;  %v21_v18 = vmax.f32 %v19_v12, %v20_v16 }
   0xe   :  { %v24_v20 = vcombine.low %v15_v17, %v21_v18 }
  0x10   :  { %v31_v21 = vrot.slane %v24_v20, %v30_v19 }
  0x12   :  { %v38_v22 = vrot.slane %v31_v21, %v30_v19 }
  0x14   :  { %44 = vst.msk [vmem:[%s71_s1] sm:$0x3] %vm42_vm0, %v38_v22 }

// kernel: network_forward.20
= control target key start
LH: loop header
LB: loop body
LE: loop exit
PB: predicated region body
PF: predicated region fallthrough
CT: control target
= control target key end

     0   :  { %s737_s15 = smov 0   ;;  %s739_s16 = smov 0   ;;  %s839_s0 = inlined_call_operand.vmem [shape: bf16[3,2,2,64], index: 0, kind: input, shape index: {}]   ;;  %s840_s1 = inlined_call_operand.vmem [shape: bf16[3,64,128], index: 1, kind: input, shape index: {}]   ;;  %s841_s2 = inlined_call_operand.vmem [shape: f32[1,128], index: 2, kind: input, shape index: {}]   ;;  %s842_s3 = inlined_call_operand.vmem [shape: f32[1,128], index: 3, kind: input, shape index: {}]   ;;  %s843_s4 = inlined_call_operand.vmem [shape: f32[2,2,128], index: 4, kind: output, shape index: {}]  }
   0x1   :  { %s741_s17 = smov 0  }
   0x2 LB: > { %s547_s18 = sadd.s32 4294967295, %s708_s17   ;;  %s754_s19 = sadd.s32 1, %s708_s17   ;;  %s708_s17 = sphi %s741_s17, %s846_s17   ;;  %s704_s16 = sphi %s739_s16, %s845_s16   ;;  %s700_s15 = sphi %s737_s15, %s844_s15  }
   0x3   : > { %s18_s20 = ssub.s32 %s708_s17, %s754_s19  ;;  %s21_s21 = sadd.s32 1, %s704_s16 }
   0x4   : > { %p19_p0 = scmp.eq.s32.totalorder %s18_s20, 0  ;;  %p28_p1 = scmp.ne.s32.totalorder %s704_s16, %s700_s15 }
   0x5   : > { %p29_p2 = scmp.eq.s32.totalorder %s708_s17, 0  ;;  %p550_p4 = scmp.ge.s32.totalorder %s708_s17, 2 }
   0x6   : > { %s763_s22 = scalar_select %p19_p0, %s704_s16, %s21_s21  }
   0x7   : > { %p30_p3 = por %p29_p2, %p28_p1  ;;  %152 = sbr.rel (%p550_p4) target bundleno = 21 (0x15), region = 28 }
   0xe   : > { %155 = sbr.rel (!%p30_p3) target bundleno = 21 (0x15), region = 32  ;;  %s157_s23 = sand.u32 (%p30_p3), 1, %s704_s16  }
   0xf   : > { %s160_s26 = scalar_lea.vmem (%p30_p3), %s839_s0, %s708_s17  ;;  %s646_s27 = smul.u32 (%p30_p3), 3, %s157_s23 }
  0x10   : > { %v176_v0 = vld [vmem:[%s160_s26] sm:$0x1] (%p30_p3)  ;;  %v178_v1 = vld [vmem:[%s160_s26 + $0x2] sm:$0x1] (%p30_p3)  ;;  %v180_v2 = vld [vmem:[%s160_s26 + $0x4] sm:$0x1] (%p30_p3) }
  0x11   : > { %s159_s28 = scalar_lea.vmem (%p30_p3), [#allocation2], %s646_s27 }
  0x12   : > { %177 = vst [vmem:[%s159_s28] sm:$0x1] (%p30_p3), %v176_v0  ;;  %179 = vst [vmem:[%s159_s28 + $0x1] sm:$0x1] (%p30_p3), %v178_v1 }
  0x13   : > { %181 = vst [vmem:[%s159_s28 + $0x2] sm:$0x1] (%p30_p3), %v180_v2 }
  0x15 PF: > { %p551_p5 = scmp.ge.s32.totalorder %s708_s17, 1  ;;  %p201_p6 = scmp.lt.s32.totalorder %s708_s17, 3 }
  0x17   : > { %p202_p7 = pnand %p551_p5, %p201_p6 }
  0x18   : > { %v674_v3 = vld [vmem:[%s840_s1] sm:$0xff] (!%p202_p7)   ;;  %v710_v4 = vmov (!%p202_p7), 0.0   ;;  %v675_v5 = vld [vmem:[%s840_s1 + $0x8] sm:$0xff] (!%p202_p7)   ;;  %vm711_vm0 = vmmov (!%p202_p7), 0   ;;  %s208_s9 = sand.u32 (!%p202_p7), 1, %s700_s15   ;;  %v676_v7 = vld [vmem:[%s840_s1 + $0x10] sm:$0xff] (!%p202_p7)  }
  0x19   : > { %205 = sbr.rel (%p202_p7) target bundleno = 278 (0x116), region = 66  ;;  %617 = vmatprep.subr.bf16.mxu0 (!%p202_p7), %v710_v4  ;;  %605 = vmatprep.subr.bf16.mxu1 (!%p202_p7), %v710_v4  ;;  %v678_v6 = vld [vmem:[%s840_s1 + $0x20] sm:$0xff] (!%p202_p7)   ;;  %v680_v8 = vld [vmem:[%s840_s1 + $0x28] sm:$0xff] (!%p202_p7)   ;;  %v677_v9 = vld [vmem:[%s840_s1 + $0x18] sm:$0xff] (!%p202_p7)   ;;  %vm281_vm1 = vcmask (!%p202_p7), 523264   ;;  %p232_p8 = scmp.lt.s32.totalorder (!%p202_p7), %s547_s18, 1 }
  0x1a   : > { %618 = vmatpush3.bf16.msra.mxu0 (!%p202_p7), %v674_v3  ;;  %625 = vmatprep.mubr.msk.bf16.mxu0 (!%p202_p7), %vm711_vm0, %v710_v4  ;;  %s647_s12 = smul.u32 (!%p202_p7), 3, %s208_s9  ;;  %v682_v10 = vld [vmem:[%s840_s1 + $0x30] sm:$0xff] (!%p202_p7)   ;;  %v679_v12 = vld [vmem:[%s840_s1 + $0x40] sm:$0xff] (!%p202_p7)   ;;  %v684_v13 = vld [vmem:[%s840_s1 + $0x38] sm:$0xff] (!%p202_p7)  }
  0x1b   : > { %619 = vmatprep.subr.bf16.mxu0 (!%p202_p7), %v710_v4  ;;  %613 = vmatprep.mubr.msk.bf16.mxu1 (!%p202_p7), %vm711_vm0, %v710_v4  ;;  %v681_v14 = vld [vmem:[%s840_s1 + $0x48] sm:$0xff] (!%p202_p7)   ;;  %v683_v16 = vld [vmem:[%s840_s1 + $0x50] sm:$0xff] (!%p202_p7)   ;;  %v685_v17 = vld [vmem:[%s840_s1 + $0x58] sm:$0xff] (!%p202_p7)  }
  0x1c   : > { %606 = vmatpush3.bf16.msra.mxu1 (!%p202_p7), %v678_v6  ;;  %s210_s24 = scalar_lea.vmem (!%p202_p7), [#allocation2], %s647_s12  ;;  %v586_v24 = vld [vmem:[%s841_s2] ss:$0 sm:$0xff] (!%p202_p7) }
  0x1d   : > { %607 = vmatprep.subr.bf16.mxu1 (!%p202_p7), %v710_v4  ;;  %v237_v11 = vld [vmem:[%s210_s24] sm:$0x1] (!%p202_p7)  ;;  %v553_v15 = vld [vmem:[%s210_s24 + $0x1] sm:$0x1] (!%p202_p7)  ;;  %v572_v18 = vld [vmem:[%s210_s24 + $0x2] sm:$0x1] (!%p202_p7) }
  0x1e   : > { %620 = vmatpush3.bf16.msra.mxu0 (!%p202_p7), %v675_v5  ;;  %v587_v27 = vld [vmem:[%s842_s3] ss:$0 sm:$0xff] (!%p202_p7) }
  0x1f   : > { %621 = vmatprep.subr.bf16.mxu0 (!%p202_p7), %v710_v4 }
  0x20   : > { %608 = vmatpush3.bf16.msra.mxu1 %v680_v8  ;;  %s848_s18 = smov (!%p232_p8, %s547_s18), 1 }
  0x21   : > { %609 = vmatprep.subr.bf16.mxu1 %v710_v4  ;;  %s552_s13 = sshll.u32 %s848_s18, 1 }
  0x22   : > { %622 = vmatpush3.bf16.msra.mxu0 %v676_v7  ;;  %s235_s17 = scalar_lea.vmem %s843_s4, %s552_s13 }
  0x23   : > { %623 = vmatprep.subr.bf16.mxu0 %v710_v4 }
  0x24   : > { %610 = vmatpush3.bf16.msra.mxu1 %v682_v10 }
  0x25   : > { %611 = vmatprep.subr.bf16.mxu1 %v710_v4 }
  0x26   : > { %624 = vmatpush3.bf16.msra.mxu0 %v677_v9 }
  0x27   : > { %629 = vmatprep.subr.bf16.mxu0 %v710_v4 }
  0x28   : > { %612 = vmatpush3.bf16.msra.mxu1 %v684_v13 }
  0x29   : > { %626 = vmatmul.mubr.msk.bf16.vlgmr.msra.gmra.mrb[0].mxu0 %vm281_vm1, %v237_v11 }
  0x2a   : > { %630 = vmatpush3.bf16.msra.mxu0 %v679_v12  ;;  %637 = vmatprep.mubr.msk.bf16.mxu0 %vm711_vm0, %v710_v4 }
  0x2b   : > { %631 = vmatprep.subr.bf16.mxu0 %v710_v4  ;;  %614 = vmatmul.mubr.msk.bf16.vlgmr.msra.gmra.mrb[0].mxu1 %vm281_vm1, %v553_v15 }
  0x2e   : > { %632 = vmatpush3.bf16.msra.mxu0 %v681_v14 }
  0x2f   : > { %633 = vmatprep.subr.bf16.mxu0 %v710_v4 }
  0x32   : > { %634 = vmatpush3.bf16.msra.mxu0 %v683_v16 }
  0x33   : > { %635 = vmatprep.subr.bf16.mxu0 %v710_v4 }
  0x36   : > { %636 = vmatpush3.bf16.msra.mxu0 %v685_v17 }
  0x39   : > { %638 = vmatmul.mubr.msk.bf16.vlgmr.msra.gmra.mrb[0].mxu0 %vm281_vm1, %v572_v18 }
  0xfe   : > { %v319_v19 = vpop.f32.mrb[0].mxu1 }
  0xff   : > { %v615_v20 = vpop.f32.mrb[1].mxu1 }
 0x100   : > { %v322_v21 = vpop.f32.mrb[2].mxu1 }
 0x101   : > { %v616_v22 = vpop.f32.mrb[3].mxu1 }
 0x10c   : > { %v464_v23 = vpop.f32.mrb[0].mxu0 }
 0x10d   : > { %v641_v25 = vadd.f32 %v464_v23, %v319_v19  ;;  %v639_v26 = vpop.f32.mrb[1].mxu0 }
 0x10e   : > { %v467_v28 = vpop.f32.mrb[2].mxu0 }
 0x10f   : > { %v478_v29 = vmul.f32 %v641_v25, %v586_v24  ;;  %v640_v30 = vpop.f32.mrb[3].mxu0 }
 0x111   : > { %v486_v31 = vadd.f32 %v587_v27, %v478_v29 }
 0x113   : > { %v487_v32 = vmax.f32 %v486_v31, 0.0 }
 0x115   : > { %488 = vst [vmem:[%s235_s17] sm:$0x3] %v487_v32 }
 0x116 PF: > { %p11_p9 = scmp.ge.s32.totalorder %s754_s19, 4   ;;  %s844_s15 = smov %s704_s16 }
 0x117   : > { %s845_s16 = smov %s763_s22  ;;  %s846_s17 = smov %s754_s19 }
 0x118   :  { %13 = sbr.rel (!%p11_p9) target bundleno = 2 (0x2), region = 109 }

// kernel: network_forward.21
= control target key start
LH: loop header
LB: loop body
LE: loop exit
PB: predicated region body
PF: predicated region fallthrough
CT: control target
= control target key end

     0   :  { %s960_s18 = smov 0   ;;  %s962_s19 = smov 0   ;;  %s1130_s0 = inlined_call_operand.vmem [shape: bf16[3,2,2,128], index: 0, kind: input, shape index: {}]   ;;  %s1131_s1 = inlined_call_operand.vmem [shape: bf16[3,128,128], index: 1, kind: input, shape index: {}]   ;;  %s1132_s2 = inlined_call_operand.vmem [shape: f32[1,128], index: 2, kind: input, shape index: {}]   ;;  %s1133_s3 = inlined_call_operand.vmem [shape: f32[1,128], index: 3, kind: input, shape index: {}]   ;;  %s1134_s4 = inlined_call_operand.vmem [shape: f32[2,2,128], index: 4, kind: input, shape index: {}]   ;;  %s1135_s5 = inlined_call_operand.vmem [shape: f32[2,2,128], index: 5, kind: output, shape index: {}]  }
   0x1   :  { %s964_s20 = smov 0  }
   0x2 LB: > { %s691_s21 = sadd.s32 4294967295, %s926_s20   ;;  %s977_s22 = sadd.s32 1, %s926_s20   ;;  %s926_s20 = sphi %s964_s20, %s1138_s20   ;;  %s922_s19 = sphi %s962_s19, %s1137_s19   ;;  %s918_s18 = sphi %s960_s18, %s1136_s18  }
   0x3   : > { %s19_s23 = ssub.s32 %s926_s20, %s977_s22  ;;  %s22_s24 = sadd.s32 1, %s922_s19 }
   0x4   : > { %p20_p0 = scmp.eq.s32.totalorder %s19_s23, 0  ;;  %p29_p1 = scmp.ne.s32.totalorder %s922_s19, %s918_s18 }
   0x5   : > { %p30_p2 = scmp.eq.s32.totalorder %s926_s20, 0  ;;  %p694_p4 = scmp.ge.s32.totalorder %s926_s20, 2 }
   0x6   : > { %s986_s25 = scalar_select %p20_p0, %s922_s19, %s22_s24  }
   0x7   : > { %p31_p3 = por %p30_p2, %p29_p1  ;;  %179 = sbr.rel (%p694_p4) target bundleno = 21 (0x15), region = 28 }
   0xe   : > { %182 = sbr.rel (!%p31_p3) target bundleno = 21 (0x15), region = 32  ;;  %s184_s26 = sand.u32 (%p31_p3), 1, %s922_s19  }
   0xf   : > { %s187_s29 = scalar_lea.vmem (%p31_p3), %s1130_s0, %s926_s20  ;;  %s852_s30 = smul.u32 (%p31_p3), 3, %s184_s26 }
  0x10   : > { %v203_v0 = vld [vmem:[%s187_s29] sm:$0x1] (%p31_p3)  ;;  %v205_v1 = vld [vmem:[%s187_s29 + $0x2] sm:$0x1] (%p31_p3)  ;;  %v207_v2 = vld [vmem:[%s187_s29 + $0x4] sm:$0x1] (%p31_p3) }
  0x11   : > { %s186_s6 = scalar_lea.vmem (%p31_p3), [#allocation2], %s852_s30 }
  0x12   : > { %204 = vst [vmem:[%s186_s6] sm:$0x1] (%p31_p3), %v203_v0  ;;  %206 = vst [vmem:[%s186_s6 + $0x1] sm:$0x1] (%p31_p3), %v205_v1 }
  0x13   : > { %208 = vst [vmem:[%s186_s6 + $0x2] sm:$0x1] (%p31_p3), %v207_v2 }
  0x15 PF: > { %p695_p5 = scmp.ge.s32.totalorder %s926_s20, 1  ;;  %p235_p6 = scmp.lt.s32.totalorder %s926_s20, 3 }
  0x17   : > { %p236_p7 = pnand %p695_p5, %p235_p6 }
  0x18   : > { %v880_v3 = vld [vmem:[%s1131_s1] sm:$0xff] (!%p236_p7)   ;;  %v928_v4 = vmov (!%p236_p7), 0.0   ;;  %v881_v5 = vld [vmem:[%s1131_s1 + $0x8] sm:$0xff] (!%p236_p7)   ;;  %vm929_vm0 = vmmov (!%p236_p7), 0   ;;  %v882_v6 = vld [vmem:[%s1131_s1 + $0x10] sm:$0xff] (!%p236_p7)   ;;  %s242_s8 = sand.u32 (!%p236_p7), 1, %s918_s18  }
  0x19   : > { %239 = sbr.rel (%p236_p7) target bundleno = 312 (0x138), region = 70  ;;  %807 = vmatprep.subr.bf16.mxu0 (!%p236_p7), %v928_v4  ;;  %787 = vmatprep.subr.bf16.mxu1 (!%p236_p7), %v928_v4  ;;  %v888_v7 = vld [vmem:[%s1131_s1 + $0x40] sm:$0xff] (!%p236_p7)   ;;  %v883_v8 = vld [vmem:[%s1131_s1 + $0x18] sm:$0xff] (!%p236_p7)   ;;  %v890_v9 = vld [vmem:[%s1131_s1 + $0x48] sm:$0xff] (!%p236_p7)   ;;  %p272_p8 = scmp.lt.s32.totalorder (!%p236_p7), %s691_s21, 1 }
  0x1a   : > { %808 = vmatpush3.bf16.msra.mxu0 (!%p236_p7), %v880_v3  ;;  %823 = vmatprep.mubr.msk.bf16.mxu0 (!%p236_p7), %vm929_vm0, %v928_v4  ;;  %v884_v10 = vld [vmem:[%s1131_s1 + $0x20] sm:$0xff] (!%p236_p7)   ;;  %v892_v11 = vld [vmem:[%s1131_s1 + $0x50] sm:$0xff] (!%p236_p7)   ;;  %v885_v12 = vld [vmem:[%s1131_s1 + $0x28] sm:$0xff] (!%p236_p7)   ;;  %s853_s13 = smul.u32 (!%p236_p7), 3, %s242_s8 }
  0x1b   : > { %809 = vmatprep.subr.bf16.mxu0 (!%p236_p7), %v928_v4  ;;  %803 = vmatprep.mubr.msk.bf16.mxu1 (!%p236_p7), %vm929_vm0, %v928_v4  ;;  %v894_v13 = vld [vmem:[%s1131_s1 + $0x58] sm:$0xff] (!%p236_p7)   ;;  %v886_v14 = vld [vmem:[%s1131_s1 + $0x30] sm:$0xff] (!%p236_p7)   ;;  %v896_v15 = vld [vmem:[%s1131_s1 + $0x60] sm:$0xff] (!%p236_p7)  }
  0x1c   : > { %788 = vmatpush3.bf16.msra.mxu1 (!%p236_p7), %v888_v7  ;;  %v887_v16 = vld [vmem:[%s1131_s1 + $0x38] sm:$0xff] (!%p236_p7)   ;;  %v898_v17 = vld [vmem:[%s1131_s1 + $0x68] sm:$0xff] (!%p236_p7)   ;;  %s1057_s17 = scalar_lea.vmem (!%p236_p7), [#allocation2], %s853_s13  ;;  %v889_v19 = vld [vmem:[%s1131_s1 + $0x80] sm:$0xff] (!%p236_p7)  }
  0x1d   : > { %789 = vmatprep.subr.bf16.mxu1 (!%p236_p7), %v928_v4  ;;  %v281_v18 = vld [vmem:[%s1057_s17] sm:$0x1] (!%p236_p7)  ;;  %v900_v20 = vld [vmem:[%s1131_s1 + $0x70] sm:$0xff] (!%p236_p7)   ;;  %v891_v21 = vld [vmem:[%s1131_s1 + $0x88] sm:$0xff] (!%p236_p7)  }
  0x1e   : > { %810 = vmatpush3.bf16.msra.mxu0 (!%p236_p7), %v881_v5  ;;  %v902_v22 = vld [vmem:[%s1131_s1 + $0x78] sm:$0xff] (!%p236_p7)   ;;  %v893_v23 = vld [vmem:[%s1131_s1 + $0x90] sm:$0xff] (!%p236_p7)   ;;  %v698_v24 = vld [vmem:[%s1057_s17 + $0x1] sm:$0x1] (!%p236_p7) }
  0x1f   : > { %811 = vmatprep.subr.bf16.mxu0 (!%p236_p7), %v928_v4  ;;  %v895_v25 = vld [vmem:[%s1131_s1 + $0x98] sm:$0xff] (!%p236_p7)   ;;  %v897_v26 = vld [vmem:[%s1131_s1 + $0xa0] sm:$0xff] (!%p236_p7)   ;;  %v899_v27 = vld [vmem:[%s1131_s1 + $0xa8] sm:$0xff] (!%p236_p7)  }
  0x20   : > { %790 = vmatpush3.bf16.msra.mxu1 %v890_v9  ;;  %v901_v28 = vld [vmem:[%s1131_s1 + $0xb0] sm:$0xff]   ;;  %v903_v29 = vld [vmem:[%s1131_s1 + $0xb8] sm:$0xff]   ;;  %v731_v30 = vld [vmem:[%s1057_s17 + $0x2] sm:$0x1]  ;;  %s1140_s21 = smov (!%p272_p8, %s691_s21), 1 }
  0x21   : > { %791 = vmatprep.subr.bf16.mxu1 %v928_v4  ;;  %s696_s24 = sshll.u32 %s1140_s21, 1  ;;  %v756_v36 = vld [vmem:[%s1132_s2] ss:$0 sm:$0xff] }
  0x22   : > { %812 = vmatpush3.bf16.msra.mxu0 %v882_v6  ;;  %s275_s28 = scalar_lea.vmem %s1134_s4, %s696_s24  ;;  %v757_v43 = vld [vmem:[%s1133_s3] ss:$0 sm:$0xff]  ;;  %s279_s7 = scalar_lea.vmem %s1135_s5, %s696_s24 }
  0x23   : > { %813 = vmatprep.subr.bf16.mxu0 %v928_v4  ;;  %v601_v39 = vld [vmem:[%s275_s28] sm:$0x3] }
  0x24   : > { %792 = vmatpush3.bf16.msra.mxu1 %v892_v11 }
  0x25   : > { %793 = vmatprep.subr.bf16.mxu1 %v928_v4 }
  0x26   : > { %814 = vmatpush3.bf16.msra.mxu0 %v883_v8 }
  0x27   : > { %815 = vmatprep.subr.bf16.mxu0 %v928_v4 }
  0x28   : > { %794 = vmatpush3.bf16.msra.mxu1 %v894_v13 }
  0x29   : > { %795 = vmatprep.subr.bf16.mxu1 %v928_v4 }
  0x2a   : > { %816 = vmatpush3.bf16.msra.mxu0 %v884_v10 }
  0x2b   : > { %817 = vmatprep.subr.bf16.mxu0 %v928_v4 }
  0x2c   : > { %796 = vmatpush3.bf16.msra.mxu1 %v896_v15 }
  0x2d   : > { %797 = vmatprep.subr.bf16.mxu1 %v928_v4 }
  0x2e   : > { %818 = vmatpush3.bf16.msra.mxu0 %v885_v12 }
  0x2f   : > { %819 = vmatprep.subr.bf16.mxu0 %v928_v4 }
  0x30   : > { %798 = vmatpush3.bf16.msra.mxu1 %v898_v17 }
  0x31   : > { %799 = vmatprep.subr.bf16.mxu1 %v928_v4 }
  0x32   : > { %820 = vmatpush3.bf16.msra.mxu0 %v886_v14 }
  0x33   : > { %821 = vmatprep.subr.bf16.mxu0 %v928_v4 }
  0x34   : > { %800 = vmatpush3.bf16.msra.mxu1 %v900_v20 }
  0x35   : > { %801 = vmatprep.subr.bf16.mxu1 %v928_v4 }
  0x36   : > { %822 = vmatpush3.bf16.msra.mxu0 %v887_v16 }
  0x37   : > { %827 = vmatprep.subr.bf16.mxu0 %v928_v4 }
  0x38   : > { %802 = vmatpush3.bf16.msra.mxu1 %v902_v22 }
  0x39   : > { %824 = vmatmul.mubr.bf16.vlgmr.msra.gmra.mrb[0].mxu0 %v281_v18 }
  0x3a   : > { %828 = vmatpush3.bf16.msra.mxu0 %v889_v19  ;;  %843 = vmatprep.mubr.msk.bf16.mxu0 %vm929_vm0, %v928_v4 }
  0x3b   : > { %829 = vmatprep.subr.bf16.mxu0 %v928_v4  ;;  %804 = vmatmul.mubr.bf16.vlgmr.msra.gmra.mrb[0].mxu1 %v698_v24 }
  0x3e   : > { %830 = vmatpush3.bf16.msra.mxu0 %v891_v21 }
  0x3f   : > { %831 = vmatprep.subr.bf16.mxu0 %v928_v4 }
  0x42   : > { %832 = vmatpush3.bf16.msra.mxu0 %v893_v23 }
  0x43   : > { %833 = vmatprep.subr.bf16.mxu0 %v928_v4 }
  0x46   : > { %834 = vmatpush3.bf16.msra.mxu0 %v895_v25 }
  0x47   : > { %835 = vmatprep.subr.bf16.mxu0 %v928_v4 }
  0x4a   : > { %836 = vmatpush3.bf16.msra.mxu0 %v897_v26 }
  0x4b   : > { %837 = vmatprep.subr.bf16.mxu0 %v928_v4 }
  0x4e   : > { %838 = vmatpush3.bf16.msra.mxu0 %v899_v27 }
  0x4f   : > { %839 = vmatprep.subr.bf16.mxu0 %v928_v4 }
  0x52   : > { %840 = vmatpush3.bf16.msra.mxu0 %v901_v28 }
  0x53   : > { %841 = vmatprep.subr.bf16.mxu0 %v928_v4 }
  0x56   : > { %842 = vmatpush3.bf16.msra.mxu0 %v903_v29 }
  0x59   : > { %844 = vmatmul.mubr.bf16.vlgmr.msra.gmra.mrb[0].mxu0 %v731_v30 }
 0x10e   : > { %v399_v31 = vpop.f32.mrb[0].mxu1 }
 0x10f   : > { %v805_v32 = vpop.f32.mrb[1].mxu1 }
 0x110   : > { %v402_v33 = vpop.f32.mrb[2].mxu1 }
 0x111   : > { %v806_v34 = vpop.f32.mrb[3].mxu1 }
 0x12c   : > { %v594_v35 = vpop.f32.mrb[0].mxu0 }
 0x12d   : > { %v847_v37 = vadd.f32 %v594_v35, %v399_v31  ;;  %v845_v38 = vpop.f32.mrb[1].mxu0 }
 0x12e   : > { %v597_v40 = vpop.f32.mrb[2].mxu0 }
 0x12f   : > { %v609_v41 = vmul.f32 %v847_v37, %v756_v36  ;;  %v846_v42 = vpop.f32.mrb[3].mxu0 }
 0x131   : > { %v610_v44 = vadd.f32 %v609_v41, %v601_v39 }
 0x133   : > { %v618_v45 = vadd.f32 %v757_v43, %v610_v44 }
 0x135   : > { %v619_v46 = vmax.f32 %v618_v45, 0.0 }
 0x137   : > { %620 = vst [vmem:[%s279_s7] sm:$0x3] %v619_v46 }
 0x138 PF: > { %p12_p9 = scmp.ge.s32.totalorder %s977_s22, 4   ;;  %s1136_s18 = smov %s922_s19 }
 0x139   : > { %s1137_s19 = smov %s986_s25  ;;  %s1138_s20 = smov %s977_s22 }
 0x13a   :  { %14 = sbr.rel (!%p12_p9) target bundleno = 2 (0x2), region = 116 }

// kernel: network_forward.22
= control target key start
LH: loop header
LB: loop body
LE: loop exit
PB: predicated region body
PF: predicated region fallthrough
CT: control target
= control target key end

     0   :  { %vm9_vm0 = vcmask 523264   ;;  %vm17_vm1 = vcmask 516096   ;;  %s39_s0 = inlined_call_operand.vmem [shape: f32[8,64], index: 0, kind: input, shape index: {}]   ;;  %s40_s1 = inlined_call_operand.vmem [shape: f32[1,64], index: 1, kind: output, shape index: {}]  }
   0x1   :  { %v8_v0 = vld [vmem:[%s39_s0] sm:$0xff] }
   0x2   :  { %v10_v1 = vsel %vm9_vm0, %v8_v0, -inf }
   0x3   :  { %v11_v2 = vrot.slane %v10_v1, 4 }
   0x5   :  { %v12_v3 = vmax.f32 %v10_v1, %v11_v2 }
   0x7   :  { %v13_v4 = vrot.slane %v12_v3, 2 }
   0x9   :  { %v14_v5 = vmax.f32 %v12_v3, %v13_v4 }
   0xb   :  { %v15_v6 = vrot.slane %v14_v5, 1 }
   0xd   :  { %v16_v7 = vmax.f32 %v14_v5, %v15_v6 }
   0xf   :  { %18 = vst.msk [vmem:[%s40_s1] sm:$0x1] %vm17_vm1, %v16_v7 }

// kernel: network_forward.23
= control target key start
LH: loop header
LB: loop body
LE: loop exit
PB: predicated region body
PF: predicated region fallthrough
CT: control target
= control target key end

     0   :  { %v282_v3 = vmov 0.0|0.0   ;;  %vm283_vm0 = vmmov 0   ;;  %v284_v6 = vmov 0.0   ;;  %s355_s0 = inlined_call_operand.vmem [shape: f32[2,32], index: 0, kind: input, shape index: {}]   ;;  %s356_s1 = inlined_call_operand.vmem [shape: f32[32,8], index: 1, kind: input, shape index: {}]   ;;  %s357_s2 = inlined_call_operand.vmem [shape: f32[1,8], index: 2, kind: input, shape index: {}]   ;;  %s358_s3 = inlined_call_operand.vmem [shape: f32[8,2], index: 3, kind: input, shape index: {}]   ;;  %s359_s4 = inlined_call_operand.vmem [shape: f32[1,2], index: 4, kind: input, shape index: {}]   ;;  %s360_s5 = inlined_call_operand.hbm [shape: f32[2,2], index: 5, kind: output, shape index: {}]  }
   0x1   :  { %v22_v0 = vld [vmem:[%s356_s1] sm:$0xff]  ;;  %v23_v1 = vld [vmem:[%s356_s1 + $0x8] sm:$0xff]  ;;  %v24_v2 = vld [vmem:[%s356_s1 + $0x10] sm:$0xff]  ;;  %244 = vmatprep.subr.bf16.mxu0 %v282_v3  ;;  %236 = vmatprep.mubr.msk.f32.mxu0 %vm283_vm0, %v284_v6 }
   0x2   :  { %v245_v4 = vpack.c.bf16 %v23_v1, %v22_v0  ;;  %v25_v5 = vld [vmem:[%s356_s1 + $0x18] sm:$0xff]  ;;  %239 = vmatprep.subr.mxu1 %v284_v6  ;;  %241 = vmatprep.mubr.msk.f32.mxu1 %vm283_vm0, %v284_v6 }
   0x3   :  { %10 = vsyncpa [#allocation3], 0  ;;  %v248_v7 = vpack.c.bf16 %v25_v5, %v24_v2  ;;  %v21_v8 = vld [vmem:[%s355_s0] sm:$0x3]  ;;  %vm33_vm1 = vcmask 261120   ;;  %vm116_vm2 = vcmask 64512  }
   0x4   :  { %246 = vmatpush3.bf16.msra.mxu0 %v245_v4  ;;  %v108_v9 = vld [vmem:[%s358_s3] sm:$0xff]  ;;  %vm190_vm3 = vcmask 9216   ;;  %s285_s0 = smov [#allocation2]  }
   0x5   :  { %247 = vmatprep.subr.bf16.mxu0 %v282_v3  ;;  %240 = vmatpush3.msra.mxu1 %v108_v9  ;;  %v217_v10 = vld [vmem:[%s357_s2] ss:$0 sm:$0xff]  ;;  %s209_s2 = sshll.u32 %s285_s0, 4  ;;  %s210_s2 = int_to_ptr.vmem [resolvable:$true] %s209_s2 }
   0x6   :  { %v219_v15 = vld [vmem:[%s359_s4] ss:$0 sm:$0xff]  ;;  %s258_s3 = scalar_lea.vmem %s210_s2, 32  ;;  %p263_p1 = scmp.lt.s32.totalorder %s210_s2, %s210_s2 }
   0x7   :  { %p259_p0 = scmp.ne.s32.totalorder %s210_s2, %s258_s3  ;;  %p264_p2 = scmp.lt.s32.totalorder %s258_s3, %s258_s3 }
   0x8   :  { %249 = vmatpush3.bf16.msra.mxu0 %v248_v7 }
   0x9   :  { %p265_p3 = por %p264_p2, %p263_p1 }
   0xb   :  { %237 = vmatmul.mubr.msk.f32.vlgmr.msra.gmra.mrb[0].mxu0 %vm33_vm1, %v21_v8  ;;  %p266_p4 = pnand %p265_p3, %p259_p0 }
  0xde   :  { %v103_v11 = vpop.f32.mrb[0].mxu0 }
  0xdf   :  { %v104_v12 = vadd.f32 %v217_v10, %v103_v11  ;;  %v238_v13 = vpop.f32.mrb[1].mxu0 }
  0xe1   :  { %v107_v14 = vmax.f32 %v104_v12, 0.0 }
  0xe3   :  { %242 = vmatmul.mubr.msk.f32.vlgmr.msra.gmra.mrb[0].mxu1 %vm116_vm2, %v107_v14 }
 0x1b6   :  { %v186_v16 = vpop.f32.mrb[0].mxu1 }
 0x1b7   :  { %v187_v17 = vadd.f32 %v219_v15, %v186_v16  ;;  %v243_v18 = vpop.f32.mrb[1].mxu1 }
 0x1b9   :  { %v191_v19 = vsel %vm190_vm3, %v187_v17, -inf }
 0x1ba   :  { %192 = vmax.xlane.f32.xlu0 %v191_v19 }
 0x247   :  { %v193_v20 = vpop.xlane.xlu0 %192 }
 0x248   :  { %v194_v21 = vsub.f32 %v187_v17, %v193_v20 }
 0x24a   :  { %v195_v22 = vmul.f32 1.442695, %v194_v21 }
 0x24c   :  { %254 = vpow2.f32 %v195_v22 }
 0x256   :  { %v255_v23 = vpop.eup %254 }
 0x257   :  { %v197_v24 = vsel %vm190_vm3, %v255_v23, 0.0 }
 0x258   :  { %198 = vadd.xlane.f32.xlu0 %v197_v24 }
 0x2e5   :  { %v199_v25 = vpop.xlane.xlu0 %198 }
 0x2e6   :  { %256 = vrcp.f32 %v199_v25 }
 0x2f0   :  { %v257_v26 = vpop.eup %256 }
 0x2f1   :  { %v201_v27 = vmul.f32 %v257_v26, %v255_v23 }
 0x2f3   :  { %202 = vst.msk [vmem:[#allocation2] sm:$0x3] %vm190_vm3, %v201_v27 }
 0x2f4   :  { %269 = shalt.err (!%p266_p4)
}
 0x2f5   :  { %s270_s9 = scalar_lea.hbm %s360_s5, 32 }
 0x2f6   :  { %p271_p5 = scmp.ne.s32.totalorder %s360_s5, %s270_s9  ;;  %p274_p6 = scmp.lt.u32.totalorder %s270_s9, %s360_s5 }
 0x2f8   :  { %p276_p7 = pnand %p274_p6, %p271_p5 }
 0x2fa   :  { %279 = shalt.err (!%p276_p7)
}
 0x2fb   :  { %212 = dma.vmem_to_hbm [thread:$0]  %s210_s2, 32, %s360_s5, [#allocation3]  }
 0x2fc   :  { %280 = dma.done.wait [#allocation3], 32  }
 0x2fd   :  { %281 = vsyncadd [#allocation3], 4294967264 }
 0x2fe   :  { %216 = vsyncpa [#allocation3], 1 }

</bundles_post_ra>
